<compile_context>
chip_gen: v7x
topology: tpu7x:2x2x1
jax: 0.10.0
libtpu: 0.0.40
codegen_flags: <defaults>
</compile_context>

<pallas_src>
import functools

import jax
import jax.numpy as jnp
from jax.experimental import pallas as pl
from jax.experimental.pallas import tpu as pltpu


def _round_up(v, m):
    return (v + m - 1) // m * m


def _pick_rows_per_chunk(H, W, target_m=128):
    """Largest divisor G of H with G*W <= target_m (falls back to 1)."""
    best = 1
    for g in range(1, H + 1):
        if H % g == 0 and g * W <= target_m:
            best = g
    return best


def _residual_stack_kernel(x_ref, w1_ref, w2_ref, o_ref, state_scr, relu_scr,
                           *, L, H, W, C, Cp, Chp, G):
    # x_ref:     (1, H, W, C)        one batch element, NHWC, real channels only
    # w1_ref:    (L, 9, Cp, Chp)     3x3 conv weights per tap, bf16, lane-dense
    # w2_ref:    (L, Chp, Cp)        1x1 conv weights, bf16, lane-dense
    # o_ref:     (1, H, W, C)
    # state_scr: VMEM (H, W, Cp) f32       residual-stream activation
    # relu_scr:  VMEM (H+2, W+2, Cp) bf16  zero-padded ReLU(state) (MXU operand)

    # Zero only the 1-pixel border of the padded ReLU buffer (== conv padding);
    # the interior is fully rewritten every layer.  Done every grid step so
    # correctness never depends on which core got which grid slice.
    zrow = jnp.zeros((1, W + 2, Cp), jnp.bfloat16)
    relu_scr[0:1, :, :] = zrow
    relu_scr[H + 1:H + 2, :, :] = zrow
    zcol = jnp.zeros((H + 2, 1, Cp), jnp.bfloat16)
    relu_scr[:, 0:1, :] = zcol
    relu_scr[:, W + 1:W + 2, :] = zcol

    # Load the input once, zero-padding channels C -> Cp in VMEM.  The padded
    # channels must be exactly zero (they get ReLU'd and fed to the MXU).
    if C != Cp:
        state_scr[...] = jnp.zeros((H, W, Cp), jnp.float32)
    state_scr[:, :, 0:C] = x_ref[0].astype(jnp.float32)

    n_chunks = H // G
    for l in range(L):                      # L is small and static
        # ReLU(state) -> bf16, written into the interior of the padded buffer.
        relu_scr[1:H + 1, 1:W + 1, :] = jnp.maximum(
            state_scr[...], 0.0).astype(jnp.bfloat16)

        for ci in range(n_chunks):          # bounded-live-range row chunks
            y0 = ci * G
            # 3x3 conv on this chunk: 9 shifted-window matmuls, f32 accumulate
            # (no materialized im2col patches).
            acc = None
            for ky in range(3):
                for kx in range(3):
                    lhs = relu_scr[y0 + ky:y0 + ky + G, kx:kx + W, :]
                    part = jnp.dot(lhs.reshape(G * W, Cp),
                                   w1_ref[l, ky * 3 + kx],
                                   preferred_element_type=jnp.float32)
                    acc = part if acc is None else acc + part
            # ReLU -> 1x1 conv -> residual add (elementwise math stays f32).
            h2 = jnp.maximum(acc, 0.0).astype(jnp.bfloat16)
            y = jnp.dot(h2, w2_ref[l], preferred_element_type=jnp.float32)
            state_scr[y0:y0 + G, :, :] = (
                state_scr[y0:y0 + G, :, :] + y.reshape(G, W, Cp))

    out = jnp.maximum(state_scr[...], 0.0)           # final ReLU
    o_ref[0] = out[:, :, 0:C].astype(o_ref.dtype)


def residual_stack(x_nchw, w1, w2):
    """x_nchw: (N, C, H, W); w1: (L, 3, 3, C, Ch) HWIO; w2: (L, Ch, C)."""
    N, C, H, W = x_nchw.shape
    L = w1.shape[0]
    Ch = w1.shape[-1]
    Cp = _round_up(C, 128)      # lane-dense channel dims for the MXU
    Chp = _round_up(Ch, 128)
    G = _pick_rows_per_chunk(H, W)

    # NHWC, real channels only (no padded HBM traffic for thin-channel configs).
    x = jnp.transpose(x_nchw, (0, 2, 3, 1))

    # Weights: per-tap layout (L, 9, Cp, Chp) / (L, Chp, Cp), bf16, lane-dense.
    w1p = jnp.pad(w1, ((0, 0), (0, 0), (0, 0), (0, Cp - C), (0, Chp - Ch)))
    w1p = w1p.reshape(L, 9, Cp, Chp).astype(jnp.bfloat16)
    w2p = jnp.pad(w2, ((0, 0), (0, Chp - Ch), (0, Cp - C))).astype(jnp.bfloat16)

    kernel = functools.partial(_residual_stack_kernel,
                               L=L, H=H, W=W, C=C, Cp=Cp, Chp=Chp, G=G)

    # VMEM budget: double-buffered I/O blocks + double-buffered weights +
    # scratch, with headroom.
    vmem_bytes = (
        2 * H * W * C * 4            # input block (double buffered, f32)
        + 2 * H * W * C * 4          # output block
        + 2 * (w1p.size + w2p.size) * 2   # bf16 weights (double buffered)
        + H * W * Cp * 4             # state scratch
        + (H + 2) * (W + 2) * Cp * 2     # padded ReLU scratch (bf16)
    )
    vmem_limit = int(min(100 * 2**20, max(24 * 2**20, 1.5 * vmem_bytes)))

    out = pl.pallas_call(
        kernel,
        out_shape=jax.ShapeDtypeStruct((N, H, W, C), x.dtype),
        grid_spec=pltpu.PrefetchScalarGridSpec(
            num_scalar_prefetch=0,
            grid=(N,),
            in_specs=[
                pl.BlockSpec((1, H, W, C), lambda n: (n, 0, 0, 0)),
                pl.BlockSpec((L, 9, Cp, Chp), lambda n: (0, 0, 0, 0)),
                pl.BlockSpec((L, Chp, Cp), lambda n: (0, 0, 0)),
            ],
            out_specs=pl.BlockSpec((1, H, W, C), lambda n: (n, 0, 0, 0)),
            scratch_shapes=[
                pltpu.VMEM((H, W, Cp), jnp.float32),           # state_scr
                pltpu.VMEM((H + 2, W + 2, Cp), jnp.bfloat16),  # relu_scr
            ],
        ),
        compiler_params=pltpu.CompilerParams(
            dimension_semantics=("parallel",),
            vmem_limit_bytes=vmem_limit),
    )(x, w1p, w2p)

    return jnp.transpose(out, (0, 3, 1, 2))   # -> NCHW


def residual_stack_reference(x_nchw, w1, w2):
    """Pure-JAX reference (lax conv), NCHW in/out — mirrors the PyTorch module."""
    x = jnp.transpose(x_nchw, (0, 2, 3, 1))
    L = w1.shape[0]
    dn = ("NHWC", "HWIO", "NHWC")
    for l in range(L):
        h = jax.nn.relu(x)
        h = jax.lax.conv_general_dilated(h, w1[l], (1, 1), "SAME",
                                         dimension_numbers=dn)
        h = jax.nn.relu(h)
        h = jax.lax.conv_general_dilated(h, w2[l][None, None], (1, 1), "VALID",
                                         dimension_numbers=dn)
        x = x + h
    x = jax.nn.relu(x)
    return jnp.transpose(x, (0, 3, 1, 2))


if __name__ == "__main__":
    # Small shapes consistent with the module:
    # in_channels == num_hiddens == 4 (required for the residual add),
    # num_residual_hiddens = 8, num_residual_layers = 2, spatial = 16.
    N, C, H, W = 2, 4, 16, 16
    Ch, L = 8, 2

    key = jax.random.PRNGKey(0)
    k_w1, k_w2, k_x = jax.random.split(key, 3)
    w1 = jax.random.normal(k_w1, (L, 3, 3, C, Ch), jnp.float32) * 0.1
    w2 = jax.random.normal(k_w2, (L, Ch, C), jnp.float32) * 0.1
    x = jax.random.normal(k_x, (N, C, H, W), jnp.float32)

    out = jax.block_until_ready(residual_stack(x, w1, w2))
    ref = jax.block_until_ready(residual_stack_reference(x, w1, w2))

    assert out.shape == (N, C, H, W), out.shape
    # bf16 MXU operands -> tolerance loosened vs the f32 reference.
    assert jnp.allclose(out, ref, atol=2e-2, rtol=2e-2), float(
        jnp.max(jnp.abs(out - ref)))
    print("KERNEL_OK")
</pallas_src>

<mosaic_0001>
module attributes {stable_mosaic.version = 11 : i64} {
  func.func @_residual_stack_kernel(%arg0: i32, %arg1: memref<1x16x16x4xf32, #tpu.memory_space<vmem>>, %arg2: memref<2x9x128x128xbf16, #tpu.memory_space<vmem>>, %arg3: memref<2x128x128xbf16, #tpu.memory_space<vmem>>, %arg4: memref<1x16x16x4xf32, #tpu.memory_space<vmem>>, %arg5: memref<16x16x128xf32, #tpu.memory_space<vmem>>, %arg6: memref<18x18x128xbf16, #tpu.memory_space<vmem>>) attributes {dimension_semantics = [#tpu.dimension_semantics<parallel>], iteration_bounds = array<i64: 2>, scalar_prefetch = 0 : i64, scratch_operands = 2 : i64, tpu.core_type = #tpu.core_type<tc>, window_params = [{transform_indices = @transform_0, window_bounds = array<i64: 1, 16, 16, 4>}, {pipeline_mode = #tpu.pipeline_mode<synchronous>, transform_indices = @transform_1, window_bounds = array<i64: 2, 9, 128, 128>}, {pipeline_mode = #tpu.pipeline_mode<synchronous>, transform_indices = @transform_2, window_bounds = array<i64: 2, 128, 128>}, {transform_indices = @transform_3, window_bounds = array<i64: 1, 16, 16, 4>}]} {
    %cst = arith.constant 0.000000e+00 : bf16
    %0 = vector.broadcast %cst : bf16 to vector<1x18x128xbf16>
    %c0 = arith.constant 0 : index
    %c0_0 = arith.constant 0 : index
    %c0_1 = arith.constant 0 : index
    %1 = vector.load %arg6[%c0, %c0_0, %c0_1] : memref<18x18x128xbf16, #tpu.memory_space<vmem>>, vector<1x18x128xbf16>
    tpu.vector_store %arg6[%c0, %c0_0, %c0_1], %0 {strides = array<i32>} : memref<18x18x128xbf16, #tpu.memory_space<vmem>>, vector<1x18x128xbf16>,
    %c17 = arith.constant 17 : index
    %c0_2 = arith.constant 0 : index
    %c0_3 = arith.constant 0 : index
    %2 = vector.load %arg6[%c17, %c0_2, %c0_3] : memref<18x18x128xbf16, #tpu.memory_space<vmem>>, vector<1x18x128xbf16>
    tpu.vector_store %arg6[%c17, %c0_2, %c0_3], %0 {strides = array<i32>} : memref<18x18x128xbf16, #tpu.memory_space<vmem>>, vector<1x18x128xbf16>,
    %cst_4 = arith.constant 0.000000e+00 : bf16
    %3 = vector.broadcast %cst_4 : bf16 to vector<18x1x128xbf16>
    %c0_5 = arith.constant 0 : index
    %c0_6 = arith.constant 0 : index
    %c0_7 = arith.constant 0 : index
    %4 = vector.load %arg6[%c0_5, %c0_6, %c0_7] : memref<18x18x128xbf16, #tpu.memory_space<vmem>>, vector<18x1x128xbf16>
    tpu.vector_store %arg6[%c0_5, %c0_6, %c0_7], %3 {strides = array<i32>} : memref<18x18x128xbf16, #tpu.memory_space<vmem>>, vector<18x1x128xbf16>,
    %c0_8 = arith.constant 0 : index
    %c17_9 = arith.constant 17 : index
    %c0_10 = arith.constant 0 : index
    %5 = vector.load %arg6[%c0_8, %c17_9, %c0_10] : memref<18x18x128xbf16, #tpu.memory_space<vmem>>, vector<18x1x128xbf16>
    tpu.vector_store %arg6[%c0_8, %c17_9, %c0_10], %3 {strides = array<i32>} : memref<18x18x128xbf16, #tpu.memory_space<vmem>>, vector<18x1x128xbf16>,
    %cst_11 = arith.constant 0.000000e+00 : f32
    %6 = vector.broadcast %cst_11 : f32 to vector<16x16x128xf32>
    %c0_12 = arith.constant 0 : index
    %c0_13 = arith.constant 0 : index
    %c0_14 = arith.constant 0 : index
    %7 = vector.load %arg5[%c0_12, %c0_13, %c0_14] : memref<16x16x128xf32, #tpu.memory_space<vmem>>, vector<16x16x128xf32>
    tpu.vector_store %arg5[%c0_12, %c0_13, %c0_14], %6 {strides = array<i32>} : memref<16x16x128xf32, #tpu.memory_space<vmem>>, vector<16x16x128xf32>,
    %c0_15 = arith.constant 0 : index
    %c0_16 = arith.constant 0 : index
    %c0_17 = arith.constant 0 : index
    %c0_18 = arith.constant 0 : index
    %8 = vector.load %arg1[%c0_15, %c0_16, %c0_17, %c0_18] : memref<1x16x16x4xf32, #tpu.memory_space<vmem>>, vector<1x16x16x4xf32>
    %9 = vector.shape_cast %8 : vector<1x16x16x4xf32> to vector<16x16x4xf32>
    %c0_19 = arith.constant 0 : index
    %c0_20 = arith.constant 0 : index
    %c0_21 = arith.constant 0 : index
    %10 = vector.load %arg5[%c0_19, %c0_20, %c0_21] : memref<16x16x128xf32, #tpu.memory_space<vmem>>, vector<16x16x4xf32>
    tpu.vector_store %arg5[%c0_19, %c0_20, %c0_21], %9 {strides = array<i32>} : memref<16x16x128xf32, #tpu.memory_space<vmem>>, vector<16x16x4xf32>,
    %c0_22 = arith.constant 0 : index
    %c0_23 = arith.constant 0 : index
    %c0_24 = arith.constant 0 : index
    %11 = vector.load %arg5[%c0_22, %c0_23, %c0_24] : memref<16x16x128xf32, #tpu.memory_space<vmem>>, vector<16x16x128xf32>
    %cst_25 = arith.constant 0.000000e+00 : f32
    %12 = vector.broadcast %cst_25 : f32 to vector<16x16x128xf32>
    %13 = arith.maximumf %11, %12 : vector<16x16x128xf32>
    %14 = arith.truncf %13 : vector<16x16x128xf32> to vector<16x16x128xbf16>
    %c1 = arith.constant 1 : index
    %c1_26 = arith.constant 1 : index
    %c0_27 = arith.constant 0 : index
    %15 = vector.load %arg6[%c1, %c1_26, %c0_27] : memref<18x18x128xbf16, #tpu.memory_space<vmem>>, vector<16x16x128xbf16>
    tpu.vector_store %arg6[%c1, %c1_26, %c0_27], %14 {strides = array<i32>} : memref<18x18x128xbf16, #tpu.memory_space<vmem>>, vector<16x16x128xbf16>,
    %c0_28 = arith.constant 0 : index
    %c0_29 = arith.constant 0 : index
    %c0_30 = arith.constant 0 : index
    %16 = vector.load %arg6[%c0_28, %c0_29, %c0_30] : memref<18x18x128xbf16, #tpu.memory_space<vmem>>, vector<8x16x128xbf16>
    %17 = vector.shape_cast %16 : vector<8x16x128xbf16> to vector<128x128xbf16>
    %c0_31 = arith.constant 0 : index
    %c0_32 = arith.constant 0 : index
    %c0_33 = arith.constant 0 : index
    %c0_34 = arith.constant 0 : index
    %18 = vector.load %arg2[%c0_31, %c0_32, %c0_33, %c0_34] : memref<2x9x128x128xbf16, #tpu.memory_space<vmem>>, vector<1x1x128x128xbf16>
    %19 = vector.shape_cast %18 : vector<1x1x128x128xbf16> to vector<128x128xbf16>
    %cst_35 = arith.constant dense<0.000000e+00> : vector<128x128xf32>
    %20 = tpu.matmul %17, %19, %cst_35 {dimension_numbers = #tpu.dot_dimension_numbers<[1], [0], [0], [1], [0, 0, 1, 1], [], []>} : vector<128x128xbf16>, vector<128x128xbf16>, vector<128x128xf32> -> vector<128x128xf32>
    %c0_36 = arith.constant 0 : index
    %c1_37 = arith.constant 1 : index
    %c0_38 = arith.constant 0 : index
    %21 = vector.load %arg6[%c0_36, %c1_37, %c0_38] : memref<18x18x128xbf16, #tpu.memory_space<vmem>>, vector<8x16x128xbf16>
    %22 = vector.shape_cast %21 : vector<8x16x128xbf16> to vector<128x128xbf16>
    %c0_39 = arith.constant 0 : index
    %c1_40 = arith.constant 1 : index
    %c0_41 = arith.constant 0 : index
    %c0_42 = arith.constant 0 : index
    %23 = vector.load %arg2[%c0_39, %c1_40, %c0_41, %c0_42] : memref<2x9x128x128xbf16, #tpu.memory_space<vmem>>, vector<1x1x128x128xbf16>
    %24 = vector.shape_cast %23 : vector<1x1x128x128xbf16> to vector<128x128xbf16>
    %cst_43 = arith.constant dense<0.000000e+00> : vector<128x128xf32>
    %25 = tpu.matmul %22, %24, %cst_43 {dimension_numbers = #tpu.dot_dimension_numbers<[1], [0], [0], [1], [0, 0, 1, 1], [], []>} : vector<128x128xbf16>, vector<128x128xbf16>, vector<128x128xf32> -> vector<128x128xf32>
    %26 = arith.addf %20, %25 : vector<128x128xf32>
    %c0_44 = arith.constant 0 : index
    %c2 = arith.constant 2 : index
    %c0_45 = arith.constant 0 : index
    %27 = vector.load %arg6[%c0_44, %c2, %c0_45] : memref<18x18x128xbf16, #tpu.memory_space<vmem>>, vector<8x16x128xbf16>
    %28 = vector.shape_cast %27 : vector<8x16x128xbf16> to vector<128x128xbf16>
    %c0_46 = arith.constant 0 : index
    %c2_47 = arith.constant 2 : index
    %c0_48 = arith.constant 0 : index
    %c0_49 = arith.constant 0 : index
    %29 = vector.load %arg2[%c0_46, %c2_47, %c0_48, %c0_49] : memref<2x9x128x128xbf16, #tpu.memory_space<vmem>>, vector<1x1x128x128xbf16>
    %30 = vector.shape_cast %29 : vector<1x1x128x128xbf16> to vector<128x128xbf16>
    %cst_50 = arith.constant dense<0.000000e+00> : vector<128x128xf32>
    %31 = tpu.matmul %28, %30, %cst_50 {dimension_numbers = #tpu.dot_dimension_numbers<[1], [0], [0], [1], [0, 0, 1, 1], [], []>} : vector<128x128xbf16>, vector<128x128xbf16>, vector<128x128xf32> -> vector<128x128xf32>
    %32 = arith.addf %26, %31 : vector<128x128xf32>
    %c1_51 = arith.constant 1 : index
    %c0_52 = arith.constant 0 : index
    %c0_53 = arith.constant 0 : index
    %33 = vector.load %arg6[%c1_51, %c0_52, %c0_53] : memref<18x18x128xbf16, #tpu.memory_space<vmem>>, vector<8x16x128xbf16>
    %34 = vector.shape_cast %33 : vector<8x16x128xbf16> to vector<128x128xbf16>
    %c0_54 = arith.constant 0 : index
    %c3 = arith.constant 3 : index
    %c0_55 = arith.constant 0 : index
    %c0_56 = arith.constant 0 : index
    %35 = vector.load %arg2[%c0_54, %c3, %c0_55, %c0_56] : memref<2x9x128x128xbf16, #tpu.memory_space<vmem>>, vector<1x1x128x128xbf16>
    %36 = vector.shape_cast %35 : vector<1x1x128x128xbf16> to vector<128x128xbf16>
    %cst_57 = arith.constant dense<0.000000e+00> : vector<128x128xf32>
    %37 = tpu.matmul %34, %36, %cst_57 {dimension_numbers = #tpu.dot_dimension_numbers<[1], [0], [0], [1], [0, 0, 1, 1], [], []>} : vector<128x128xbf16>, vector<128x128xbf16>, vector<128x128xf32> -> vector<128x128xf32>
    %38 = arith.addf %32, %37 : vector<128x128xf32>
    %c1_58 = arith.constant 1 : index
    %c1_59 = arith.constant 1 : index
    %c0_60 = arith.constant 0 : index
    %39 = vector.load %arg6[%c1_58, %c1_59, %c0_60] : memref<18x18x128xbf16, #tpu.memory_space<vmem>>, vector<8x16x128xbf16>
    %40 = vector.shape_cast %39 : vector<8x16x128xbf16> to vector<128x128xbf16>
    %c0_61 = arith.constant 0 : index
    %c4 = arith.constant 4 : index
    %c0_62 = arith.constant 0 : index
    %c0_63 = arith.constant 0 : index
    %41 = vector.load %arg2[%c0_61, %c4, %c0_62, %c0_63] : memref<2x9x128x128xbf16, #tpu.memory_space<vmem>>, vector<1x1x128x128xbf16>
    %42 = vector.shape_cast %41 : vector<1x1x128x128xbf16> to vector<128x128xbf16>
    %cst_64 = arith.constant dense<0.000000e+00> : vector<128x128xf32>
    %43 = tpu.matmul %40, %42, %cst_64 {dimension_numbers = #tpu.dot_dimension_numbers<[1], [0], [0], [1], [0, 0, 1, 1], [], []>} : vector<128x128xbf16>, vector<128x128xbf16>, vector<128x128xf32> -> vector<128x128xf32>
    %44 = arith.addf %38, %43 : vector<128x128xf32>
    %c1_65 = arith.constant 1 : index
    %c2_66 = arith.constant 2 : index
    %c0_67 = arith.constant 0 : index
    %45 = vector.load %arg6[%c1_65, %c2_66, %c0_67] : memref<18x18x128xbf16, #tpu.memory_space<vmem>>, vector<8x16x128xbf16>
    %46 = vector.shape_cast %45 : vector<8x16x128xbf16> to vector<128x128xbf16>
    %c0_68 = arith.constant 0 : index
    %c5 = arith.constant 5 : index
    %c0_69 = arith.constant 0 : index
    %c0_70 = arith.constant 0 : index
    %47 = vector.load %arg2[%c0_68, %c5, %c0_69, %c0_70] : memref<2x9x128x128xbf16, #tpu.memory_space<vmem>>, vector<1x1x128x128xbf16>
    %48 = vector.shape_cast %47 : vector<1x1x128x128xbf16> to vector<128x128xbf16>
    %cst_71 = arith.constant dense<0.000000e+00> : vector<128x128xf32>
    %49 = tpu.matmul %46, %48, %cst_71 {dimension_numbers = #tpu.dot_dimension_numbers<[1], [0], [0], [1], [0, 0, 1, 1], [], []>} : vector<128x128xbf16>, vector<128x128xbf16>, vector<128x128xf32> -> vector<128x128xf32>
    %50 = arith.addf %44, %49 : vector<128x128xf32>
    %c2_72 = arith.constant 2 : index
    %c0_73 = arith.constant 0 : index
    %c0_74 = arith.constant 0 : index
    %51 = vector.load %arg6[%c2_72, %c0_73, %c0_74] : memref<18x18x128xbf16, #tpu.memory_space<vmem>>, vector<8x16x128xbf16>
    %52 = vector.shape_cast %51 : vector<8x16x128xbf16> to vector<128x128xbf16>
    %c0_75 = arith.constant 0 : index
    %c6 = arith.constant 6 : index
    %c0_76 = arith.constant 0 : index
    %c0_77 = arith.constant 0 : index
    %53 = vector.load %arg2[%c0_75, %c6, %c0_76, %c0_77] : memref<2x9x128x128xbf16, #tpu.memory_space<vmem>>, vector<1x1x128x128xbf16>
    %54 = vector.shape_cast %53 : vector<1x1x128x128xbf16> to vector<128x128xbf16>
    %cst_78 = arith.constant dense<0.000000e+00> : vector<128x128xf32>
    %55 = tpu.matmul %52, %54, %cst_78 {dimension_numbers = #tpu.dot_dimension_numbers<[1], [0], [0], [1], [0, 0, 1, 1], [], []>} : vector<128x128xbf16>, vector<128x128xbf16>, vector<128x128xf32> -> vector<128x128xf32>
    %56 = arith.addf %50, %55 : vector<128x128xf32>
    %c2_79 = arith.constant 2 : index
    %c1_80 = arith.constant 1 : index
    %c0_81 = arith.constant 0 : index
    %57 = vector.load %arg6[%c2_79, %c1_80, %c0_81] : memref<18x18x128xbf16, #tpu.memory_space<vmem>>, vector<8x16x128xbf16>
    %58 = vector.shape_cast %57 : vector<8x16x128xbf16> to vector<128x128xbf16>
    %c0_82 = arith.constant 0 : index
    %c7 = arith.constant 7 : index
    %c0_83 = arith.constant 0 : index
    %c0_84 = arith.constant 0 : index
    %59 = vector.load %arg2[%c0_82, %c7, %c0_83, %c0_84] : memref<2x9x128x128xbf16, #tpu.memory_space<vmem>>, vector<1x1x128x128xbf16>
    %60 = vector.shape_cast %59 : vector<1x1x128x128xbf16> to vector<128x128xbf16>
    %cst_85 = arith.constant dense<0.000000e+00> : vector<128x128xf32>
    %61 = tpu.matmul %58, %60, %cst_85 {dimension_numbers = #tpu.dot_dimension_numbers<[1], [0], [0], [1], [0, 0, 1, 1], [], []>} : vector<128x128xbf16>, vector<128x128xbf16>, vector<128x128xf32> -> vector<128x128xf32>
    %62 = arith.addf %56, %61 : vector<128x128xf32>
    %c2_86 = arith.constant 2 : index
    %c2_87 = arith.constant 2 : index
    %c0_88 = arith.constant 0 : index
    %63 = vector.load %arg6[%c2_86, %c2_87, %c0_88] : memref<18x18x128xbf16, #tpu.memory_space<vmem>>, vector<8x16x128xbf16>
    %64 = vector.shape_cast %63 : vector<8x16x128xbf16> to vector<128x128xbf16>
    %c0_89 = arith.constant 0 : index
    %c8 = arith.constant 8 : index
    %c0_90 = arith.constant 0 : index
    %c0_91 = arith.constant 0 : index
    %65 = vector.load %arg2[%c0_89, %c8, %c0_90, %c0_91] : memref<2x9x128x128xbf16, #tpu.memory_space<vmem>>, vector<1x1x128x128xbf16>
    %66 = vector.shape_cast %65 : vector<1x1x128x128xbf16> to vector<128x128xbf16>
    %cst_92 = arith.constant dense<0.000000e+00> : vector<128x128xf32>
    %67 = tpu.matmul %64, %66, %cst_92 {dimension_numbers = #tpu.dot_dimension_numbers<[1], [0], [0], [1], [0, 0, 1, 1], [], []>} : vector<128x128xbf16>, vector<128x128xbf16>, vector<128x128xf32> -> vector<128x128xf32>
    %68 = arith.addf %62, %67 : vector<128x128xf32>
    %cst_93 = arith.constant 0.000000e+00 : f32
    %69 = vector.broadcast %cst_93 : f32 to vector<128x128xf32>
    %70 = arith.maximumf %68, %69 : vector<128x128xf32>
    %71 = arith.truncf %70 : vector<128x128xf32> to vector<128x128xbf16>
    %c0_94 = arith.constant 0 : index
    %c0_95 = arith.constant 0 : index
    %c0_96 = arith.constant 0 : index
    %72 = vector.load %arg3[%c0_94, %c0_95, %c0_96] : memref<2x128x128xbf16, #tpu.memory_space<vmem>>, vector<1x128x128xbf16>
    %73 = vector.shape_cast %72 : vector<1x128x128xbf16> to vector<128x128xbf16>
    %cst_97 = arith.constant dense<0.000000e+00> : vector<128x128xf32>
    %74 = tpu.matmul %71, %73, %cst_97 {dimension_numbers = #tpu.dot_dimension_numbers<[1], [0], [0], [1], [0, 0, 1, 1], [], []>} : vector<128x128xbf16>, vector<128x128xbf16>, vector<128x128xf32> -> vector<128x128xf32>
    %c0_98 = arith.constant 0 : index
    %c0_99 = arith.constant 0 : index
    %c0_100 = arith.constant 0 : index
    %75 = vector.load %arg5[%c0_98, %c0_99, %c0_100] : memref<16x16x128xf32, #tpu.memory_space<vmem>>, vector<8x16x128xf32>
    %76 = vector.shape_cast %74 : vector<128x128xf32> to vector<8x16x128xf32>
    %77 = arith.addf %75, %76 : vector<8x16x128xf32>
    %c0_101 = arith.constant 0 : index
    %c0_102 = arith.constant 0 : index
    %c0_103 = arith.constant 0 : index
    %78 = vector.load %arg5[%c0_101, %c0_102, %c0_103] : memref<16x16x128xf32, #tpu.memory_space<vmem>>, vector<8x16x128xf32>
    tpu.vector_store %arg5[%c0_101, %c0_102, %c0_103], %77 {strides = array<i32>} : memref<16x16x128xf32, #tpu.memory_space<vmem>>, vector<8x16x128xf32>,
    %c8_104 = arith.constant 8 : index
    %c0_105 = arith.constant 0 : index
    %c0_106 = arith.constant 0 : index
    %79 = vector.load %arg6[%c8_104, %c0_105, %c0_106] : memref<18x18x128xbf16, #tpu.memory_space<vmem>>, vector<8x16x128xbf16>
    %80 = vector.shape_cast %79 : vector<8x16x128xbf16> to vector<128x128xbf16>
    %c0_107 = arith.constant 0 : index
    %c0_108 = arith.constant 0 : index
    %c0_109 = arith.constant 0 : index
    %c0_110 = arith.constant 0 : index
    %81 = vector.load %arg2[%c0_107, %c0_108, %c0_109, %c0_110] : memref<2x9x128x128xbf16, #tpu.memory_space<vmem>>, vector<1x1x128x128xbf16>
    %82 = vector.shape_cast %81 : vector<1x1x128x128xbf16> to vector<128x128xbf16>
    %cst_111 = arith.constant dense<0.000000e+00> : vector<128x128xf32>
    %83 = tpu.matmul %80, %82, %cst_111 {dimension_numbers = #tpu.dot_dimension_numbers<[1], [0], [0], [1], [0, 0, 1, 1], [], []>} : vector<128x128xbf16>, vector<128x128xbf16>, vector<128x128xf32> -> vector<128x128xf32>
    %c8_112 = arith.constant 8 : index
    %c1_113 = arith.constant 1 : index
    %c0_114 = arith.constant 0 : index
    %84 = vector.load %arg6[%c8_112, %c1_113, %c0_114] : memref<18x18x128xbf16, #tpu.memory_space<vmem>>, vector<8x16x128xbf16>
    %85 = vector.shape_cast %84 : vector<8x16x128xbf16> to vector<128x128xbf16>
    %c0_115 = arith.constant 0 : index
    %c1_116 = arith.constant 1 : index
    %c0_117 = arith.constant 0 : index
    %c0_118 = arith.constant 0 : index
    %86 = vector.load %arg2[%c0_115, %c1_116, %c0_117, %c0_118] : memref<2x9x128x128xbf16, #tpu.memory_space<vmem>>, vector<1x1x128x128xbf16>
    %87 = vector.shape_cast %86 : vector<1x1x128x128xbf16> to vector<128x128xbf16>
    %cst_119 = arith.constant dense<0.000000e+00> : vector<128x128xf32>
    %88 = tpu.matmul %85, %87, %cst_119 {dimension_numbers = #tpu.dot_dimension_numbers<[1], [0], [0], [1], [0, 0, 1, 1], [], []>} : vector<128x128xbf16>, vector<128x128xbf16>, vector<128x128xf32> -> vector<128x128xf32>
    %89 = arith.addf %83, %88 : vector<128x128xf32>
    %c8_120 = arith.constant 8 : index
    %c2_121 = arith.constant 2 : index
    %c0_122 = arith.constant 0 : index
    %90 = vector.load %arg6[%c8_120, %c2_121, %c0_122] : memref<18x18x128xbf16, #tpu.memory_space<vmem>>, vector<8x16x128xbf16>
    %91 = vector.shape_cast %90 : vector<8x16x128xbf16> to vector<128x128xbf16>
    %c0_123 = arith.constant 0 : index
    %c2_124 = arith.constant 2 : index
    %c0_125 = arith.constant 0 : index
    %c0_126 = arith.constant 0 : index
    %92 = vector.load %arg2[%c0_123, %c2_124, %c0_125, %c0_126] : memref<2x9x128x128xbf16, #tpu.memory_space<vmem>>, vector<1x1x128x128xbf16>
    %93 = vector.shape_cast %92 : vector<1x1x128x128xbf16> to vector<128x128xbf16>
    %cst_127 = arith.constant dense<0.000000e+00> : vector<128x128xf32>
    %94 = tpu.matmul %91, %93, %cst_127 {dimension_numbers = #tpu.dot_dimension_numbers<[1], [0], [0], [1], [0, 0, 1, 1], [], []>} : vector<128x128xbf16>, vector<128x128xbf16>, vector<128x128xf32> -> vector<128x128xf32>
    %95 = arith.addf %89, %94 : vector<128x128xf32>
    %c9 = arith.constant 9 : index
    %c0_128 = arith.constant 0 : index
    %c0_129 = arith.constant 0 : index
    %96 = vector.load %arg6[%c9, %c0_128, %c0_129] : memref<18x18x128xbf16, #tpu.memory_space<vmem>>, vector<8x16x128xbf16>
    %97 = vector.shape_cast %96 : vector<8x16x128xbf16> to vector<128x128xbf16>
    %c0_130 = arith.constant 0 : index
    %c3_131 = arith.constant 3 : index
    %c0_132 = arith.constant 0 : index
    %c0_133 = arith.constant 0 : index
    %98 = vector.load %arg2[%c0_130, %c3_131, %c0_132, %c0_133] : memref<2x9x128x128xbf16, #tpu.memory_space<vmem>>, vector<1x1x128x128xbf16>
    %99 = vector.shape_cast %98 : vector<1x1x128x128xbf16> to vector<128x128xbf16>
    %cst_134 = arith.constant dense<0.000000e+00> : vector<128x128xf32>
    %100 = tpu.matmul %97, %99, %cst_134 {dimension_numbers = #tpu.dot_dimension_numbers<[1], [0], [0], [1], [0, 0, 1, 1], [], []>} : vector<128x128xbf16>, vector<128x128xbf16>, vector<128x128xf32> -> vector<128x128xf32>
    %101 = arith.addf %95, %100 : vector<128x128xf32>
    %c9_135 = arith.constant 9 : index
    %c1_136 = arith.constant 1 : index
    %c0_137 = arith.constant 0 : index
    %102 = vector.load %arg6[%c9_135, %c1_136, %c0_137] : memref<18x18x128xbf16, #tpu.memory_space<vmem>>, vector<8x16x128xbf16>
    %103 = vector.shape_cast %102 : vector<8x16x128xbf16> to vector<128x128xbf16>
    %c0_138 = arith.constant 0 : index
    %c4_139 = arith.constant 4 : index
    %c0_140 = arith.constant 0 : index
    %c0_141 = arith.constant 0 : index
    %104 = vector.load %arg2[%c0_138, %c4_139, %c0_140, %c0_141] : memref<2x9x128x128xbf16, #tpu.memory_space<vmem>>, vector<1x1x128x128xbf16>
    %105 = vector.shape_cast %104 : vector<1x1x128x128xbf16> to vector<128x128xbf16>
    %cst_142 = arith.constant dense<0.000000e+00> : vector<128x128xf32>
    %106 = tpu.matmul %103, %105, %cst_142 {dimension_numbers = #tpu.dot_dimension_numbers<[1], [0], [0], [1], [0, 0, 1, 1], [], []>} : vector<128x128xbf16>, vector<128x128xbf16>, vector<128x128xf32> -> vector<128x128xf32>
    %107 = arith.addf %101, %106 : vector<128x128xf32>
    %c9_143 = arith.constant 9 : index
    %c2_144 = arith.constant 2 : index
    %c0_145 = arith.constant 0 : index
    %108 = vector.load %arg6[%c9_143, %c2_144, %c0_145] : memref<18x18x128xbf16, #tpu.memory_space<vmem>>, vector<8x16x128xbf16>
    %109 = vector.shape_cast %108 : vector<8x16x128xbf16> to vector<128x128xbf16>
    %c0_146 = arith.constant 0 : index
    %c5_147 = arith.constant 5 : index
    %c0_148 = arith.constant 0 : index
    %c0_149 = arith.constant 0 : index
    %110 = vector.load %arg2[%c0_146, %c5_147, %c0_148, %c0_149] : memref<2x9x128x128xbf16, #tpu.memory_space<vmem>>, vector<1x1x128x128xbf16>
    %111 = vector.shape_cast %110 : vector<1x1x128x128xbf16> to vector<128x128xbf16>
    %cst_150 = arith.constant dense<0.000000e+00> : vector<128x128xf32>
    %112 = tpu.matmul %109, %111, %cst_150 {dimension_numbers = #tpu.dot_dimension_numbers<[1], [0], [0], [1], [0, 0, 1, 1], [], []>} : vector<128x128xbf16>, vector<128x128xbf16>, vector<128x128xf32> -> vector<128x128xf32>
    %113 = arith.addf %107, %112 : vector<128x128xf32>
    %c10 = arith.constant 10 : index
    %c0_151 = arith.constant 0 : index
    %c0_152 = arith.constant 0 : index
    %114 = vector.load %arg6[%c10, %c0_151, %c0_152] : memref<18x18x128xbf16, #tpu.memory_space<vmem>>, vector<8x16x128xbf16>
    %115 = vector.shape_cast %114 : vector<8x16x128xbf16> to vector<128x128xbf16>
    %c0_153 = arith.constant 0 : index
    %c6_154 = arith.constant 6 : index
    %c0_155 = arith.constant 0 : index
    %c0_156 = arith.constant 0 : index
    %116 = vector.load %arg2[%c0_153, %c6_154, %c0_155, %c0_156] : memref<2x9x128x128xbf16, #tpu.memory_space<vmem>>, vector<1x1x128x128xbf16>
    %117 = vector.shape_cast %116 : vector<1x1x128x128xbf16> to vector<128x128xbf16>
    %cst_157 = arith.constant dense<0.000000e+00> : vector<128x128xf32>
    %118 = tpu.matmul %115, %117, %cst_157 {dimension_numbers = #tpu.dot_dimension_numbers<[1], [0], [0], [1], [0, 0, 1, 1], [], []>} : vector<128x128xbf16>, vector<128x128xbf16>, vector<128x128xf32> -> vector<128x128xf32>
    %119 = arith.addf %113, %118 : vector<128x128xf32>
    %c10_158 = arith.constant 10 : index
    %c1_159 = arith.constant 1 : index
    %c0_160 = arith.constant 0 : index
    %120 = vector.load %arg6[%c10_158, %c1_159, %c0_160] : memref<18x18x128xbf16, #tpu.memory_space<vmem>>, vector<8x16x128xbf16>
    %121 = vector.shape_cast %120 : vector<8x16x128xbf16> to vector<128x128xbf16>
    %c0_161 = arith.constant 0 : index
    %c7_162 = arith.constant 7 : index
    %c0_163 = arith.constant 0 : index
    %c0_164 = arith.constant 0 : index
    %122 = vector.load %arg2[%c0_161, %c7_162, %c0_163, %c0_164] : memref<2x9x128x128xbf16, #tpu.memory_space<vmem>>, vector<1x1x128x128xbf16>
    %123 = vector.shape_cast %122 : vector<1x1x128x128xbf16> to vector<128x128xbf16>
    %cst_165 = arith.constant dense<0.000000e+00> : vector<128x128xf32>
    %124 = tpu.matmul %121, %123, %cst_165 {dimension_numbers = #tpu.dot_dimension_numbers<[1], [0], [0], [1], [0, 0, 1, 1], [], []>} : vector<128x128xbf16>, vector<128x128xbf16>, vector<128x128xf32> -> vector<128x128xf32>
    %125 = arith.addf %119, %124 : vector<128x128xf32>
    %c10_166 = arith.constant 10 : index
    %c2_167 = arith.constant 2 : index
    %c0_168 = arith.constant 0 : index
    %126 = vector.load %arg6[%c10_166, %c2_167, %c0_168] : memref<18x18x128xbf16, #tpu.memory_space<vmem>>, vector<8x16x128xbf16>
    %127 = vector.shape_cast %126 : vector<8x16x128xbf16> to vector<128x128xbf16>
    %c0_169 = arith.constant 0 : index
    %c8_170 = arith.constant 8 : index
    %c0_171 = arith.constant 0 : index
    %c0_172 = arith.constant 0 : index
    %128 = vector.load %arg2[%c0_169, %c8_170, %c0_171, %c0_172] : memref<2x9x128x128xbf16, #tpu.memory_space<vmem>>, vector<1x1x128x128xbf16>
    %129 = vector.shape_cast %128 : vector<1x1x128x128xbf16> to vector<128x128xbf16>
    %cst_173 = arith.constant dense<0.000000e+00> : vector<128x128xf32>
    %130 = tpu.matmul %127, %129, %cst_173 {dimension_numbers = #tpu.dot_dimension_numbers<[1], [0], [0], [1], [0, 0, 1, 1], [], []>} : vector<128x128xbf16>, vector<128x128xbf16>, vector<128x128xf32> -> vector<128x128xf32>
    %131 = arith.addf %125, %130 : vector<128x128xf32>
    %cst_174 = arith.constant 0.000000e+00 : f32
    %132 = vector.broadcast %cst_174 : f32 to vector<128x128xf32>
    %133 = arith.maximumf %131, %132 : vector<128x128xf32>
    %134 = arith.truncf %133 : vector<128x128xf32> to vector<128x128xbf16>
    %c0_175 = arith.constant 0 : index
    %c0_176 = arith.constant 0 : index
    %c0_177 = arith.constant 0 : index
    %135 = vector.load %arg3[%c0_175, %c0_176, %c0_177] : memref<2x128x128xbf16, #tpu.memory_space<vmem>>, vector<1x128x128xbf16>
    %136 = vector.shape_cast %135 : vector<1x128x128xbf16> to vector<128x128xbf16>
    %cst_178 = arith.constant dense<0.000000e+00> : vector<128x128xf32>
    %137 = tpu.matmul %134, %136, %cst_178 {dimension_numbers = #tpu.dot_dimension_numbers<[1], [0], [0], [1], [0, 0, 1, 1], [], []>} : vector<128x128xbf16>, vector<128x128xbf16>, vector<128x128xf32> -> vector<128x128xf32>
    %c8_179 = arith.constant 8 : index
    %c0_180 = arith.constant 0 : index
    %c0_181 = arith.constant 0 : index
    %138 = vector.load %arg5[%c8_179, %c0_180, %c0_181] : memref<16x16x128xf32, #tpu.memory_space<vmem>>, vector<8x16x128xf32>
    %139 = vector.shape_cast %137 : vector<128x128xf32> to vector<8x16x128xf32>
    %140 = arith.addf %138, %139 : vector<8x16x128xf32>
    %c8_182 = arith.constant 8 : index
    %c0_183 = arith.constant 0 : index
    %c0_184 = arith.constant 0 : index
    %141 = vector.load %arg5[%c8_182, %c0_183, %c0_184] : memref<16x16x128xf32, #tpu.memory_space<vmem>>, vector<8x16x128xf32>
    tpu.vector_store %arg5[%c8_182, %c0_183, %c0_184], %140 {strides = array<i32>} : memref<16x16x128xf32, #tpu.memory_space<vmem>>, vector<8x16x128xf32>,
    %c0_185 = arith.constant 0 : index
    %c0_186 = arith.constant 0 : index
    %c0_187 = arith.constant 0 : index
    %142 = vector.load %arg5[%c0_185, %c0_186, %c0_187] : memref<16x16x128xf32, #tpu.memory_space<vmem>>, vector<16x16x128xf32>
    %cst_188 = arith.constant 0.000000e+00 : f32
    %143 = vector.broadcast %cst_188 : f32 to vector<16x16x128xf32>
    %144 = arith.maximumf %142, %143 : vector<16x16x128xf32>
    %145 = arith.truncf %144 : vector<16x16x128xf32> to vector<16x16x128xbf16>
    %c1_189 = arith.constant 1 : index
    %c1_190 = arith.constant 1 : index
    %c0_191 = arith.constant 0 : index
    %146 = vector.load %arg6[%c1_189, %c1_190, %c0_191] : memref<18x18x128xbf16, #tpu.memory_space<vmem>>, vector<16x16x128xbf16>
    tpu.vector_store %arg6[%c1_189, %c1_190, %c0_191], %145 {strides = array<i32>} : memref<18x18x128xbf16, #tpu.memory_space<vmem>>, vector<16x16x128xbf16>,
    %c0_192 = arith.constant 0 : index
    %c0_193 = arith.constant 0 : index
    %c0_194 = arith.constant 0 : index
    %147 = vector.load %arg6[%c0_192, %c0_193, %c0_194] : memref<18x18x128xbf16, #tpu.memory_space<vmem>>, vector<8x16x128xbf16>
    %148 = vector.shape_cast %147 : vector<8x16x128xbf16> to vector<128x128xbf16>
    %c1_195 = arith.constant 1 : index
    %c0_196 = arith.constant 0 : index
    %c0_197 = arith.constant 0 : index
    %c0_198 = arith.constant 0 : index
    %149 = vector.load %arg2[%c1_195, %c0_196, %c0_197, %c0_198] : memref<2x9x128x128xbf16, #tpu.memory_space<vmem>>, vector<1x1x128x128xbf16>
    %150 = vector.shape_cast %149 : vector<1x1x128x128xbf16> to vector<128x128xbf16>
    %cst_199 = arith.constant dense<0.000000e+00> : vector<128x128xf32>
    %151 = tpu.matmul %148, %150, %cst_199 {dimension_numbers = #tpu.dot_dimension_numbers<[1], [0], [0], [1], [0, 0, 1, 1], [], []>} : vector<128x128xbf16>, vector<128x128xbf16>, vector<128x128xf32> -> vector<128x128xf32>
    %c0_200 = arith.constant 0 : index
    %c1_201 = arith.constant 1 : index
    %c0_202 = arith.constant 0 : index
    %152 = vector.load %arg6[%c0_200, %c1_201, %c0_202] : memref<18x18x128xbf16, #tpu.memory_space<vmem>>, vector<8x16x128xbf16>
    %153 = vector.shape_cast %152 : vector<8x16x128xbf16> to vector<128x128xbf16>
    %c1_203 = arith.constant 1 : index
    %c1_204 = arith.constant 1 : index
    %c0_205 = arith.constant 0 : index
    %c0_206 = arith.constant 0 : index
    %154 = vector.load %arg2[%c1_203, %c1_204, %c0_205, %c0_206] : memref<2x9x128x128xbf16, #tpu.memory_space<vmem>>, vector<1x1x128x128xbf16>
    %155 = vector.shape_cast %154 : vector<1x1x128x128xbf16> to vector<128x128xbf16>
    %cst_207 = arith.constant dense<0.000000e+00> : vector<128x128xf32>
    %156 = tpu.matmul %153, %155, %cst_207 {dimension_numbers = #tpu.dot_dimension_numbers<[1], [0], [0], [1], [0, 0, 1, 1], [], []>} : vector<128x128xbf16>, vector<128x128xbf16>, vector<128x128xf32> -> vector<128x128xf32>
    %157 = arith.addf %151, %156 : vector<128x128xf32>
    %c0_208 = arith.constant 0 : index
    %c2_209 = arith.constant 2 : index
    %c0_210 = arith.constant 0 : index
    %158 = vector.load %arg6[%c0_208, %c2_209, %c0_210] : memref<18x18x128xbf16, #tpu.memory_space<vmem>>, vector<8x16x128xbf16>
    %159 = vector.shape_cast %158 : vector<8x16x128xbf16> to vector<128x128xbf16>
    %c1_211 = arith.constant 1 : index
    %c2_212 = arith.constant 2 : index
    %c0_213 = arith.constant 0 : index
    %c0_214 = arith.constant 0 : index
    %160 = vector.load %arg2[%c1_211, %c2_212, %c0_213, %c0_214] : memref<2x9x128x128xbf16, #tpu.memory_space<vmem>>, vector<1x1x128x128xbf16>
    %161 = vector.shape_cast %160 : vector<1x1x128x128xbf16> to vector<128x128xbf16>
    %cst_215 = arith.constant dense<0.000000e+00> : vector<128x128xf32>
    %162 = tpu.matmul %159, %161, %cst_215 {dimension_numbers = #tpu.dot_dimension_numbers<[1], [0], [0], [1], [0, 0, 1, 1], [], []>} : vector<128x128xbf16>, vector<128x128xbf16>, vector<128x128xf32> -> vector<128x128xf32>
    %163 = arith.addf %157, %162 : vector<128x128xf32>
    %c1_216 = arith.constant 1 : index
    %c0_217 = arith.constant 0 : index
    %c0_218 = arith.constant 0 : index
    %164 = vector.load %arg6[%c1_216, %c0_217, %c0_218] : memref<18x18x128xbf16, #tpu.memory_space<vmem>>, vector<8x16x128xbf16>
    %165 = vector.shape_cast %164 : vector<8x16x128xbf16> to vector<128x128xbf16>
    %c1_219 = arith.constant 1 : index
    %c3_220 = arith.constant 3 : index
    %c0_221 = arith.constant 0 : index
    %c0_222 = arith.constant 0 : index
    %166 = vector.load %arg2[%c1_219, %c3_220, %c0_221, %c0_222] : memref<2x9x128x128xbf16, #tpu.memory_space<vmem>>, vector<1x1x128x128xbf16>
    %167 = vector.shape_cast %166 : vector<1x1x128x128xbf16> to vector<128x128xbf16>
    %cst_223 = arith.constant dense<0.000000e+00> : vector<128x128xf32>
    %168 = tpu.matmul %165, %167, %cst_223 {dimension_numbers = #tpu.dot_dimension_numbers<[1], [0], [0], [1], [0, 0, 1, 1], [], []>} : vector<128x128xbf16>, vector<128x128xbf16>, vector<128x128xf32> -> vector<128x128xf32>
    %169 = arith.addf %163, %168 : vector<128x128xf32>
    %c1_224 = arith.constant 1 : index
    %c1_225 = arith.constant 1 : index
    %c0_226 = arith.constant 0 : index
    %170 = vector.load %arg6[%c1_224, %c1_225, %c0_226] : memref<18x18x128xbf16, #tpu.memory_space<vmem>>, vector<8x16x128xbf16>
    %171 = vector.shape_cast %170 : vector<8x16x128xbf16> to vector<128x128xbf16>
    %c1_227 = arith.constant 1 : index
    %c4_228 = arith.constant 4 : index
    %c0_229 = arith.constant 0 : index
    %c0_230 = arith.constant 0 : index
    %172 = vector.load %arg2[%c1_227, %c4_228, %c0_229, %c0_230] : memref<2x9x128x128xbf16, #tpu.memory_space<vmem>>, vector<1x1x128x128xbf16>
    %173 = vector.shape_cast %172 : vector<1x1x128x128xbf16> to vector<128x128xbf16>
    %cst_231 = arith.constant dense<0.000000e+00> : vector<128x128xf32>
    %174 = tpu.matmul %171, %173, %cst_231 {dimension_numbers = #tpu.dot_dimension_numbers<[1], [0], [0], [1], [0, 0, 1, 1], [], []>} : vector<128x128xbf16>, vector<128x128xbf16>, vector<128x128xf32> -> vector<128x128xf32>
    %175 = arith.addf %169, %174 : vector<128x128xf32>
    %c1_232 = arith.constant 1 : index
    %c2_233 = arith.constant 2 : index
    %c0_234 = arith.constant 0 : index
    %176 = vector.load %arg6[%c1_232, %c2_233, %c0_234] : memref<18x18x128xbf16, #tpu.memory_space<vmem>>, vector<8x16x128xbf16>
    %177 = vector.shape_cast %176 : vector<8x16x128xbf16> to vector<128x128xbf16>
    %c1_235 = arith.constant 1 : index
    %c5_236 = arith.constant 5 : index
    %c0_237 = arith.constant 0 : index
    %c0_238 = arith.constant 0 : index
    %178 = vector.load %arg2[%c1_235, %c5_236, %c0_237, %c0_238] : memref<2x9x128x128xbf16, #tpu.memory_space<vmem>>, vector<1x1x128x128xbf16>
    %179 = vector.shape_cast %178 : vector<1x1x128x128xbf16> to vector<128x128xbf16>
    %cst_239 = arith.constant dense<0.000000e+00> : vector<128x128xf32>
    %180 = tpu.matmul %177, %179, %cst_239 {dimension_numbers = #tpu.dot_dimension_numbers<[1], [0], [0], [1], [0, 0, 1, 1], [], []>} : vector<128x128xbf16>, vector<128x128xbf16>, vector<128x128xf32> -> vector<128x128xf32>
    %181 = arith.addf %175, %180 : vector<128x128xf32>
    %c2_240 = arith.constant 2 : index
    %c0_241 = arith.constant 0 : index
    %c0_242 = arith.constant 0 : index
    %182 = vector.load %arg6[%c2_240, %c0_241, %c0_242] : memref<18x18x128xbf16, #tpu.memory_space<vmem>>, vector<8x16x128xbf16>
    %183 = vector.shape_cast %182 : vector<8x16x128xbf16> to vector<128x128xbf16>
    %c1_243 = arith.constant 1 : index
    %c6_244 = arith.constant 6 : index
    %c0_245 = arith.constant 0 : index
    %c0_246 = arith.constant 0 : index
    %184 = vector.load %arg2[%c1_243, %c6_244, %c0_245, %c0_246] : memref<2x9x128x128xbf16, #tpu.memory_space<vmem>>, vector<1x1x128x128xbf16>
    %185 = vector.shape_cast %184 : vector<1x1x128x128xbf16> to vector<128x128xbf16>
    %cst_247 = arith.constant dense<0.000000e+00> : vector<128x128xf32>
    %186 = tpu.matmul %183, %185, %cst_247 {dimension_numbers = #tpu.dot_dimension_numbers<[1], [0], [0], [1], [0, 0, 1, 1], [], []>} : vector<128x128xbf16>, vector<128x128xbf16>, vector<128x128xf32> -> vector<128x128xf32>
    %187 = arith.addf %181, %186 : vector<128x128xf32>
    %c2_248 = arith.constant 2 : index
    %c1_249 = arith.constant 1 : index
    %c0_250 = arith.constant 0 : index
    %188 = vector.load %arg6[%c2_248, %c1_249, %c0_250] : memref<18x18x128xbf16, #tpu.memory_space<vmem>>, vector<8x16x128xbf16>
    %189 = vector.shape_cast %188 : vector<8x16x128xbf16> to vector<128x128xbf16>
    %c1_251 = arith.constant 1 : index
    %c7_252 = arith.constant 7 : index
    %c0_253 = arith.constant 0 : index
    %c0_254 = arith.constant 0 : index
    %190 = vector.load %arg2[%c1_251, %c7_252, %c0_253, %c0_254] : memref<2x9x128x128xbf16, #tpu.memory_space<vmem>>, vector<1x1x128x128xbf16>
    %191 = vector.shape_cast %190 : vector<1x1x128x128xbf16> to vector<128x128xbf16>
    %cst_255 = arith.constant dense<0.000000e+00> : vector<128x128xf32>
    %192 = tpu.matmul %189, %191, %cst_255 {dimension_numbers = #tpu.dot_dimension_numbers<[1], [0], [0], [1], [0, 0, 1, 1], [], []>} : vector<128x128xbf16>, vector<128x128xbf16>, vector<128x128xf32> -> vector<128x128xf32>
    %193 = arith.addf %187, %192 : vector<128x128xf32>
    %c2_256 = arith.constant 2 : index
    %c2_257 = arith.constant 2 : index
    %c0_258 = arith.constant 0 : index
    %194 = vector.load %arg6[%c2_256, %c2_257, %c0_258] : memref<18x18x128xbf16, #tpu.memory_space<vmem>>, vector<8x16x128xbf16>
    %195 = vector.shape_cast %194 : vector<8x16x128xbf16> to vector<128x128xbf16>
    %c1_259 = arith.constant 1 : index
    %c8_260 = arith.constant 8 : index
    %c0_261 = arith.constant 0 : index
    %c0_262 = arith.constant 0 : index
    %196 = vector.load %arg2[%c1_259, %c8_260, %c0_261, %c0_262] : memref<2x9x128x128xbf16, #tpu.memory_space<vmem>>, vector<1x1x128x128xbf16>
    %197 = vector.shape_cast %196 : vector<1x1x128x128xbf16> to vector<128x128xbf16>
    %cst_263 = arith.constant dense<0.000000e+00> : vector<128x128xf32>
    %198 = tpu.matmul %195, %197, %cst_263 {dimension_numbers = #tpu.dot_dimension_numbers<[1], [0], [0], [1], [0, 0, 1, 1], [], []>} : vector<128x128xbf16>, vector<128x128xbf16>, vector<128x128xf32> -> vector<128x128xf32>
    %199 = arith.addf %193, %198 : vector<128x128xf32>
    %cst_264 = arith.constant 0.000000e+00 : f32
    %200 = vector.broadcast %cst_264 : f32 to vector<128x128xf32>
    %201 = arith.maximumf %199, %200 : vector<128x128xf32>
    %202 = arith.truncf %201 : vector<128x128xf32> to vector<128x128xbf16>
    %c1_265 = arith.constant 1 : index
    %c0_266 = arith.constant 0 : index
    %c0_267 = arith.constant 0 : index
    %203 = vector.load %arg3[%c1_265, %c0_266, %c0_267] : memref<2x128x128xbf16, #tpu.memory_space<vmem>>, vector<1x128x128xbf16>
    %204 = vector.shape_cast %203 : vector<1x128x128xbf16> to vector<128x128xbf16>
    %cst_268 = arith.constant dense<0.000000e+00> : vector<128x128xf32>
    %205 = tpu.matmul %202, %204, %cst_268 {dimension_numbers = #tpu.dot_dimension_numbers<[1], [0], [0], [1], [0, 0, 1, 1], [], []>} : vector<128x128xbf16>, vector<128x128xbf16>, vector<128x128xf32> -> vector<128x128xf32>
    %c0_269 = arith.constant 0 : index
    %c0_270 = arith.constant 0 : index
    %c0_271 = arith.constant 0 : index
    %206 = vector.load %arg5[%c0_269, %c0_270, %c0_271] : memref<16x16x128xf32, #tpu.memory_space<vmem>>, vector<8x16x128xf32>
    %207 = vector.shape_cast %205 : vector<128x128xf32> to vector<8x16x128xf32>
    %208 = arith.addf %206, %207 : vector<8x16x128xf32>
    %c0_272 = arith.constant 0 : index
    %c0_273 = arith.constant 0 : index
    %c0_274 = arith.constant 0 : index
    %209 = vector.load %arg5[%c0_272, %c0_273, %c0_274] : memref<16x16x128xf32, #tpu.memory_space<vmem>>, vector<8x16x128xf32>
    tpu.vector_store %arg5[%c0_272, %c0_273, %c0_274], %208 {strides = array<i32>} : memref<16x16x128xf32, #tpu.memory_space<vmem>>, vector<8x16x128xf32>,
    %c8_275 = arith.constant 8 : index
    %c0_276 = arith.constant 0 : index
    %c0_277 = arith.constant 0 : index
    %210 = vector.load %arg6[%c8_275, %c0_276, %c0_277] : memref<18x18x128xbf16, #tpu.memory_space<vmem>>, vector<8x16x128xbf16>
    %211 = vector.shape_cast %210 : vector<8x16x128xbf16> to vector<128x128xbf16>
    %c1_278 = arith.constant 1 : index
    %c0_279 = arith.constant 0 : index
    %c0_280 = arith.constant 0 : index
    %c0_281 = arith.constant 0 : index
    %212 = vector.load %arg2[%c1_278, %c0_279, %c0_280, %c0_281] : memref<2x9x128x128xbf16, #tpu.memory_space<vmem>>, vector<1x1x128x128xbf16>
    %213 = vector.shape_cast %212 : vector<1x1x128x128xbf16> to vector<128x128xbf16>
    %cst_282 = arith.constant dense<0.000000e+00> : vector<128x128xf32>
    %214 = tpu.matmul %211, %213, %cst_282 {dimension_numbers = #tpu.dot_dimension_numbers<[1], [0], [0], [1], [0, 0, 1, 1], [], []>} : vector<128x128xbf16>, vector<128x128xbf16>, vector<128x128xf32> -> vector<128x128xf32>
    %c8_283 = arith.constant 8 : index
    %c1_284 = arith.constant 1 : index
    %c0_285 = arith.constant 0 : index
    %215 = vector.load %arg6[%c8_283, %c1_284, %c0_285] : memref<18x18x128xbf16, #tpu.memory_space<vmem>>, vector<8x16x128xbf16>
    %216 = vector.shape_cast %215 : vector<8x16x128xbf16> to vector<128x128xbf16>
    %c1_286 = arith.constant 1 : index
    %c1_287 = arith.constant 1 : index
    %c0_288 = arith.constant 0 : index
    %c0_289 = arith.constant 0 : index
    %217 = vector.load %arg2[%c1_286, %c1_287, %c0_288, %c0_289] : memref<2x9x128x128xbf16, #tpu.memory_space<vmem>>, vector<1x1x128x128xbf16>
    %218 = vector.shape_cast %217 : vector<1x1x128x128xbf16> to vector<128x128xbf16>
    %cst_290 = arith.constant dense<0.000000e+00> : vector<128x128xf32>
    %219 = tpu.matmul %216, %218, %cst_290 {dimension_numbers = #tpu.dot_dimension_numbers<[1], [0], [0], [1], [0, 0, 1, 1], [], []>} : vector<128x128xbf16>, vector<128x128xbf16>, vector<128x128xf32> -> vector<128x128xf32>
    %220 = arith.addf %214, %219 : vector<128x128xf32>
    %c8_291 = arith.constant 8 : index
    %c2_292 = arith.constant 2 : index
    %c0_293 = arith.constant 0 : index
    %221 = vector.load %arg6[%c8_291, %c2_292, %c0_293] : memref<18x18x128xbf16, #tpu.memory_space<vmem>>, vector<8x16x128xbf16>
    %222 = vector.shape_cast %221 : vector<8x16x128xbf16> to vector<128x128xbf16>
    %c1_294 = arith.constant 1 : index
    %c2_295 = arith.constant 2 : index
    %c0_296 = arith.constant 0 : index
    %c0_297 = arith.constant 0 : index
    %223 = vector.load %arg2[%c1_294, %c2_295, %c0_296, %c0_297] : memref<2x9x128x128xbf16, #tpu.memory_space<vmem>>, vector<1x1x128x128xbf16>
    %224 = vector.shape_cast %223 : vector<1x1x128x128xbf16> to vector<128x128xbf16>
    %cst_298 = arith.constant dense<0.000000e+00> : vector<128x128xf32>
    %225 = tpu.matmul %222, %224, %cst_298 {dimension_numbers = #tpu.dot_dimension_numbers<[1], [0], [0], [1], [0, 0, 1, 1], [], []>} : vector<128x128xbf16>, vector<128x128xbf16>, vector<128x128xf32> -> vector<128x128xf32>
    %226 = arith.addf %220, %225 : vector<128x128xf32>
    %c9_299 = arith.constant 9 : index
    %c0_300 = arith.constant 0 : index
    %c0_301 = arith.constant 0 : index
    %227 = vector.load %arg6[%c9_299, %c0_300, %c0_301] : memref<18x18x128xbf16, #tpu.memory_space<vmem>>, vector<8x16x128xbf16>
    %228 = vector.shape_cast %227 : vector<8x16x128xbf16> to vector<128x128xbf16>
    %c1_302 = arith.constant 1 : index
    %c3_303 = arith.constant 3 : index
    %c0_304 = arith.constant 0 : index
    %c0_305 = arith.constant 0 : index
    %229 = vector.load %arg2[%c1_302, %c3_303, %c0_304, %c0_305] : memref<2x9x128x128xbf16, #tpu.memory_space<vmem>>, vector<1x1x128x128xbf16>
    %230 = vector.shape_cast %229 : vector<1x1x128x128xbf16> to vector<128x128xbf16>
    %cst_306 = arith.constant dense<0.000000e+00> : vector<128x128xf32>
    %231 = tpu.matmul %228, %230, %cst_306 {dimension_numbers = #tpu.dot_dimension_numbers<[1], [0], [0], [1], [0, 0, 1, 1], [], []>} : vector<128x128xbf16>, vector<128x128xbf16>, vector<128x128xf32> -> vector<128x128xf32>
    %232 = arith.addf %226, %231 : vector<128x128xf32>
    %c9_307 = arith.constant 9 : index
    %c1_308 = arith.constant 1 : index
    %c0_309 = arith.constant 0 : index
    %233 = vector.load %arg6[%c9_307, %c1_308, %c0_309] : memref<18x18x128xbf16, #tpu.memory_space<vmem>>, vector<8x16x128xbf16>
    %234 = vector.shape_cast %233 : vector<8x16x128xbf16> to vector<128x128xbf16>
    %c1_310 = arith.constant 1 : index
    %c4_311 = arith.constant 4 : index
    %c0_312 = arith.constant 0 : index
    %c0_313 = arith.constant 0 : index
    %235 = vector.load %arg2[%c1_310, %c4_311, %c0_312, %c0_313] : memref<2x9x128x128xbf16, #tpu.memory_space<vmem>>, vector<1x1x128x128xbf16>
    %236 = vector.shape_cast %235 : vector<1x1x128x128xbf16> to vector<128x128xbf16>
    %cst_314 = arith.constant dense<0.000000e+00> : vector<128x128xf32>
    %237 = tpu.matmul %234, %236, %cst_314 {dimension_numbers = #tpu.dot_dimension_numbers<[1], [0], [0], [1], [0, 0, 1, 1], [], []>} : vector<128x128xbf16>, vector<128x128xbf16>, vector<128x128xf32> -> vector<128x128xf32>
    %238 = arith.addf %232, %237 : vector<128x128xf32>
    %c9_315 = arith.constant 9 : index
    %c2_316 = arith.constant 2 : index
    %c0_317 = arith.constant 0 : index
    %239 = vector.load %arg6[%c9_315, %c2_316, %c0_317] : memref<18x18x128xbf16, #tpu.memory_space<vmem>>, vector<8x16x128xbf16>
    %240 = vector.shape_cast %239 : vector<8x16x128xbf16> to vector<128x128xbf16>
    %c1_318 = arith.constant 1 : index
    %c5_319 = arith.constant 5 : index
    %c0_320 = arith.constant 0 : index
    %c0_321 = arith.constant 0 : index
    %241 = vector.load %arg2[%c1_318, %c5_319, %c0_320, %c0_321] : memref<2x9x128x128xbf16, #tpu.memory_space<vmem>>, vector<1x1x128x128xbf16>
    %242 = vector.shape_cast %241 : vector<1x1x128x128xbf16> to vector<128x128xbf16>
    %cst_322 = arith.constant dense<0.000000e+00> : vector<128x128xf32>
    %243 = tpu.matmul %240, %242, %cst_322 {dimension_numbers = #tpu.dot_dimension_numbers<[1], [0], [0], [1], [0, 0, 1, 1], [], []>} : vector<128x128xbf16>, vector<128x128xbf16>, vector<128x128xf32> -> vector<128x128xf32>
    %244 = arith.addf %238, %243 : vector<128x128xf32>
    %c10_323 = arith.constant 10 : index
    %c0_324 = arith.constant 0 : index
    %c0_325 = arith.constant 0 : index
    %245 = vector.load %arg6[%c10_323, %c0_324, %c0_325] : memref<18x18x128xbf16, #tpu.memory_space<vmem>>, vector<8x16x128xbf16>
    %246 = vector.shape_cast %245 : vector<8x16x128xbf16> to vector<128x128xbf16>
    %c1_326 = arith.constant 1 : index
    %c6_327 = arith.constant 6 : index
    %c0_328 = arith.constant 0 : index
    %c0_329 = arith.constant 0 : index
    %247 = vector.load %arg2[%c1_326, %c6_327, %c0_328, %c0_329] : memref<2x9x128x128xbf16, #tpu.memory_space<vmem>>, vector<1x1x128x128xbf16>
    %248 = vector.shape_cast %247 : vector<1x1x128x128xbf16> to vector<128x128xbf16>
    %cst_330 = arith.constant dense<0.000000e+00> : vector<128x128xf32>
    %249 = tpu.matmul %246, %248, %cst_330 {dimension_numbers = #tpu.dot_dimension_numbers<[1], [0], [0], [1], [0, 0, 1, 1], [], []>} : vector<128x128xbf16>, vector<128x128xbf16>, vector<128x128xf32> -> vector<128x128xf32>
    %250 = arith.addf %244, %249 : vector<128x128xf32>
    %c10_331 = arith.constant 10 : index
    %c1_332 = arith.constant 1 : index
    %c0_333 = arith.constant 0 : index
    %251 = vector.load %arg6[%c10_331, %c1_332, %c0_333] : memref<18x18x128xbf16, #tpu.memory_space<vmem>>, vector<8x16x128xbf16>
    %252 = vector.shape_cast %251 : vector<8x16x128xbf16> to vector<128x128xbf16>
    %c1_334 = arith.constant 1 : index
    %c7_335 = arith.constant 7 : index
    %c0_336 = arith.constant 0 : index
    %c0_337 = arith.constant 0 : index
    %253 = vector.load %arg2[%c1_334, %c7_335, %c0_336, %c0_337] : memref<2x9x128x128xbf16, #tpu.memory_space<vmem>>, vector<1x1x128x128xbf16>
    %254 = vector.shape_cast %253 : vector<1x1x128x128xbf16> to vector<128x128xbf16>
    %cst_338 = arith.constant dense<0.000000e+00> : vector<128x128xf32>
    %255 = tpu.matmul %252, %254, %cst_338 {dimension_numbers = #tpu.dot_dimension_numbers<[1], [0], [0], [1], [0, 0, 1, 1], [], []>} : vector<128x128xbf16>, vector<128x128xbf16>, vector<128x128xf32> -> vector<128x128xf32>
    %256 = arith.addf %250, %255 : vector<128x128xf32>
    %c10_339 = arith.constant 10 : index
    %c2_340 = arith.constant 2 : index
    %c0_341 = arith.constant 0 : index
    %257 = vector.load %arg6[%c10_339, %c2_340, %c0_341] : memref<18x18x128xbf16, #tpu.memory_space<vmem>>, vector<8x16x128xbf16>
    %258 = vector.shape_cast %257 : vector<8x16x128xbf16> to vector<128x128xbf16>
    %c1_342 = arith.constant 1 : index
    %c8_343 = arith.constant 8 : index
    %c0_344 = arith.constant 0 : index
    %c0_345 = arith.constant 0 : index
    %259 = vector.load %arg2[%c1_342, %c8_343, %c0_344, %c0_345] : memref<2x9x128x128xbf16, #tpu.memory_space<vmem>>, vector<1x1x128x128xbf16>
    %260 = vector.shape_cast %259 : vector<1x1x128x128xbf16> to vector<128x128xbf16>
    %cst_346 = arith.constant dense<0.000000e+00> : vector<128x128xf32>
    %261 = tpu.matmul %258, %260, %cst_346 {dimension_numbers = #tpu.dot_dimension_numbers<[1], [0], [0], [1], [0, 0, 1, 1], [], []>} : vector<128x128xbf16>, vector<128x128xbf16>, vector<128x128xf32> -> vector<128x128xf32>
    %262 = arith.addf %256, %261 : vector<128x128xf32>
    %cst_347 = arith.constant 0.000000e+00 : f32
    %263 = vector.broadcast %cst_347 : f32 to vector<128x128xf32>
    %264 = arith.maximumf %262, %263 : vector<128x128xf32>
    %265 = arith.truncf %264 : vector<128x128xf32> to vector<128x128xbf16>
    %c1_348 = arith.constant 1 : index
    %c0_349 = arith.constant 0 : index
    %c0_350 = arith.constant 0 : index
    %266 = vector.load %arg3[%c1_348, %c0_349, %c0_350] : memref<2x128x128xbf16, #tpu.memory_space<vmem>>, vector<1x128x128xbf16>
    %267 = vector.shape_cast %266 : vector<1x128x128xbf16> to vector<128x128xbf16>
    %cst_351 = arith.constant dense<0.000000e+00> : vector<128x128xf32>
    %268 = tpu.matmul %265, %267, %cst_351 {dimension_numbers = #tpu.dot_dimension_numbers<[1], [0], [0], [1], [0, 0, 1, 1], [], []>} : vector<128x128xbf16>, vector<128x128xbf16>, vector<128x128xf32> -> vector<128x128xf32>
    %c8_352 = arith.constant 8 : index
    %c0_353 = arith.constant 0 : index
    %c0_354 = arith.constant 0 : index
    %269 = vector.load %arg5[%c8_352, %c0_353, %c0_354] : memref<16x16x128xf32, #tpu.memory_space<vmem>>, vector<8x16x128xf32>
    %270 = vector.shape_cast %268 : vector<128x128xf32> to vector<8x16x128xf32>
    %271 = arith.addf %269, %270 : vector<8x16x128xf32>
    %c8_355 = arith.constant 8 : index
    %c0_356 = arith.constant 0 : index
    %c0_357 = arith.constant 0 : index
    %272 = vector.load %arg5[%c8_355, %c0_356, %c0_357] : memref<16x16x128xf32, #tpu.memory_space<vmem>>, vector<8x16x128xf32>
    tpu.vector_store %arg5[%c8_355, %c0_356, %c0_357], %271 {strides = array<i32>} : memref<16x16x128xf32, #tpu.memory_space<vmem>>, vector<8x16x128xf32>,
    %c0_358 = arith.constant 0 : index
    %c0_359 = arith.constant 0 : index
    %c0_360 = arith.constant 0 : index
    %273 = vector.load %arg5[%c0_358, %c0_359, %c0_360] : memref<16x16x128xf32, #tpu.memory_space<vmem>>, vector<16x16x128xf32>
    %cst_361 = arith.constant 0.000000e+00 : f32
    %274 = vector.broadcast %cst_361 : f32 to vector<16x16x128xf32>
    %275 = arith.maximumf %273, %274 : vector<16x16x128xf32>
    %276 = vector.extract_strided_slice %275 {offsets = [0, 0, 0], sizes = [16, 16, 4], strides = [1, 1, 1]} : vector<16x16x128xf32> to vector<16x16x4xf32>
    %c0_362 = arith.constant 0 : index
    %c0_363 = arith.constant 0 : index
    %c0_364 = arith.constant 0 : index
    %c0_365 = arith.constant 0 : index
    %277 = vector.load %arg4[%c0_362, %c0_363, %c0_364, %c0_365] : memref<1x16x16x4xf32, #tpu.memory_space<vmem>>, vector<1x16x16x4xf32>
    %278 = vector.shape_cast %277 : vector<1x16x16x4xf32> to vector<16x16x4xf32>
    %279 = vector.shape_cast %276 : vector<16x16x4xf32> to vector<1x16x16x4xf32>
    tpu.vector_store %arg4[%c0_362, %c0_363, %c0_364, %c0_365], %279 {strides = array<i32>} : memref<1x16x16x4xf32, #tpu.memory_space<vmem>>, vector<1x16x16x4xf32>,
    return
  }
  func.func @transform_0(%arg0: i32) -> (i32, i32, i32, i32) {
    %c0_i32 = arith.constant 0 : i32
    %c0_i32_0 = arith.constant 0 : i32
    %c0_i32_1 = arith.constant 0 : i32
    %c0_i32_2 = arith.constant 0 : i32
    return %arg0, %c0_i32, %c0_i32_0, %c0_i32_1 : i32, i32, i32, i32
  }
  func.func @transform_1(%arg0: i32) -> (i32, i32, i32, i32) {
    %c0_i32 = arith.constant 0 : i32
    %c0_i32_0 = arith.constant 0 : i32
    %c0_i32_1 = arith.constant 0 : i32
    %c0_i32_2 = arith.constant 0 : i32
    %c0_i32_3 = arith.constant 0 : i32
    return %c0_i32, %c0_i32_0, %c0_i32_1, %c0_i32_2 : i32, i32, i32, i32
  }
  func.func @transform_2(%arg0: i32) -> (i32, i32, i32) {
    %c0_i32 = arith.constant 0 : i32
    %c0_i32_0 = arith.constant 0 : i32
    %c0_i32_1 = arith.constant 0 : i32
    %c0_i32_2 = arith.constant 0 : i32
    return %c0_i32, %c0_i32_0, %c0_i32_1 : i32, i32, i32
  }
  func.func @transform_3(%arg0: i32) -> (i32, i32, i32, i32) {
    %c0_i32 = arith.constant 0 : i32
    %c0_i32_0 = arith.constant 0 : i32
    %c0_i32_1 = arith.constant 0 : i32
    %c0_i32_2 = arith.constant 0 : i32
    return %arg0, %c0_i32, %c0_i32_0, %c0_i32_1 : i32, i32, i32, i32
  }
}

</mosaic_0001>

<bundles_post_ra>
// kernel: tpu_custom_call.1
= control target key start
LH: loop header
LB: loop body
LE: loop exit
PB: predicated region body
PF: predicated region fallthrough
CT: control target
= control target key end

     0   :  { %8 = vsyncpa [#allocation5], 0  ;;  %s17859_s12 = smov 0   ;;  %s21601_s0 = inlined_call_operand.vmem [shape: f32[2,16,16,4], index: 0, kind: input, shape index: {}]   ;;  %s21602_s1 = inlined_call_operand.hbm [shape: bf16[2,9,128,128], index: 1, kind: input, shape index: {}]   ;;  %s21603_s2 = inlined_call_operand.vmem [shape: bf16[2,128,128], index: 2, kind: input, shape index: {}]   ;;  %s21604_s3 = inlined_call_operand.vmem [shape: f32[2,16,16,4], index: 3, kind: output, shape index: {}]  }
   0x1 LB: > { %s17865_s13 = sadd.s32 4294967295, %s17832_s12   ;;  %p14051_p0 = scmp.ge.s32.totalorder %s17832_s12, 1  ;;  %s17832_s12 = sphi %s17859_s12, %s14_s12  }
   0x2   : > { %p113_p1 = scmp.lt.s32.totalorder %s17832_s12, 3  ;;  %s17834_s14 = smov [#allocation4]  }
   0x3   : > { %s125_s15 = sshll.u32 %s17834_s14, 4  ;;  %p21605_p3 = scmp.eq.s32.totalorder %s17865_s13, 0  ;;  %s126_s15 = int_to_ptr.vmem [resolvable:$true] %s125_s15 }
   0x4   : > { %p17869_p2 = pnand %p14051_p0, %p113_p1  ;;  %s17794_s20 = scalar_lea.hbm %s21602_s1, 18432 }
   0x5   : > { %p17795_p6 = scmp.ne.s32.totalorder %s21602_s1, %s17794_s20  ;;  %p17801_p10 = scmp.lt.u32.totalorder %s17794_s20, %s21602_s1 }
   0x6   : > { %s21692_s16 = scalar_select %p17869_p2, 1, 0 }
   0x7   : > { %p17364_p4 = pneg %p17869_p2 }
   0x9   : > { %p17878_p5 = pnand %p21605_p3, %p17364_p4 }
   0xb   : > { %p17796_p7 = pneg %p17878_p5 }
   0xd   : > { %p17797_p8 = pnand %p17796_p7, %p17795_p6 }
   0xf   : > { %p17798_p9 = pneg %p17797_p8 }
  0x11   : > { %p17803_p11 = pnand %p17801_p10, %p17798_p9 }
  0x13   : > { %17806 = shalt.err (!%p17803_p11)
}
  0x14   : > { %s17807_s25 = scalar_lea.vmem %s126_s15, 18432  ;;  %p17815_p1 = scmp.lt.s32.totalorder %s126_s15, %s126_s15 }
  0x15   : > { %p17808_p12 = scmp.ne.s32.totalorder %s126_s15, %s17807_s25  ;;  %p17816_p4 = scmp.lt.s32.totalorder %s17807_s25, %s17807_s25 }
  0x17   : > { %p17810_p13 = pnand %p17808_p12, %p17796_p7  ;;  %p17817_p3 = por %p17816_p4, %p17815_p1 }
  0x19   : > { %p17811_p0 = pneg %p17810_p13 }
  0x1b   : > { %p17818_p2 = pnand %p17817_p3, %p17811_p0 }
  0x1d   : > { %17821 = shalt.err (!%p17818_p2)
}
  0x1e   : > { %s17835_s26 = smov 64   ;;  %s17836_s27 = smov 4  }
  0x1f   : > { %17367 = dma.hbm_to_vmem [thread:$0]  (!%p17878_p5), %s21602_s1, 18432, %s126_s15, [#allocation5], %s17835_s26, %s17835_s26, %s17836_s27  }
  0x20   : > { %p21694_p6 = scmp.ne.s32.totalorder %s21692_s16, 0 }
  0x22   : > { %152 = sbr.rel (%p21694_p6) target bundleno = 2375 (0x947), region = 32 }
  0x29   : > { %p21695_p8 = scmp.eq.s32.totalorder %s17865_s13, 0 }
  0x2b   : > { %17827 = dma.done.wait (%p21695_p8), [#allocation5], 18432   ;;  %p21696_p7 = pmov %p21695_p8 }
  0x2c   : > { %v17837_v0 = vmov 0   ;;  %v17838_v1 = vmov 0.0   ;;  %p176_p2 = scmp.lt.s32.totalorder %s17865_s13, 1  ;;  %v17383_v2 = vld [vmem:[#allocation4 + $0x40] sm:$0xff]   ;;  %vm194_vm0 = vcmask 1040384   ;;  %v17384_v3 = vld [vmem:[#allocation4 + $0x48] sm:$0xff]  }
  0x2d   : > { %17829 = vsyncadd (%p21696_p7), [#allocation5], 4294948864  ;;  %187 = vst [vmem:[#allocation3] sm:$0xf] %v17837_v0  ;;  %15568 = vmatprep.subr.bf16.mxu0 %v17383_v2  ;;  %vm195_vm1 = vsmask.f32 256 }
  0x2e   : > { %188 = vst [vmem:[#allocation3 + $0x4] sm:$0xf] %v17837_v0  ;;  %189 = vst [vmem:[#allocation3 + $0x8] sm:$0x1] %v17837_v0  ;;  %s22004_s13 = smov (!%p176_p2, %s17865_s13), 1  ;;  %15569 = vmatpush3.bf16.msra.mxu0 %v17383_v2  ;;  %v17385_v4 = vld [vmem:[#allocation4 + $0x50] sm:$0xff]  }
  0x2f   : > { %191 = vst [vmem:[#allocation3 + $0xcc] sm:$0xf] %v17837_v0  ;;  %192 = vst [vmem:[#allocation3 + $0xd0] sm:$0xf] %v17837_v0  ;;  %vm251_vm2 = vsmask.f32 7938  ;;  %15570 = vmatprep.subr.bf16.mxu0 %v17384_v3 }
  0x30   : > { %193 = vst [vmem:[#allocation3 + $0xd4] sm:$0x1] %v17837_v0  ;;  %307 = vst [vmem:[#allocation2] sm:$0xff] %v17838_v1  ;;  %v21697_v5 = vmov 0  ;;  %s14862_s30 = sshll.u32 %s22004_s13, 8  ;;  %v21700_v6 = vmov 0 }
  0x31   : > { %308 = vst [vmem:[#allocation2 + $0x8] sm:$0xff] %v17838_v1  ;;  %309 = vst [vmem:[#allocation2 + $0x10] sm:$0xff] %v17838_v1  ;;  %v17386_v7 = vld [vmem:[#allocation4 + $0x58] sm:$0xff]   ;;  %vm371_vm5 = vcmask 31744   ;;  %s17926_s6 = scalar_lea.vmem %s21601_s0, %s14862_s30  ;;  %vm1041_vm6 = vsmask.f32 3328  ;;  %s21351_s23 = scalar_lea.vmem %s21604_s3, %s14862_s30 }
  0x32   : > { %310 = vst [vmem:[#allocation2 + $0x18] sm:$0xff] %v17838_v1  ;;  %311 = vst [vmem:[#allocation2 + $0x20] sm:$0xff] %v17838_v1  ;;  %15571 = vmatpush3.bf16.msra.mxu0 %v17384_v3  ;;  %vm1042_vm7 = vsmask.f32 7440  ;;  %v17387_v15 = vld [vmem:[#allocation4 + $0x60] sm:$0xff]   ;;  %v339_v21 = vld [vmem:[%s17926_s6] sm:$0xff] }
  0x33   : > { %312 = vst [vmem:[#allocation2 + $0x28] sm:$0xff] %v17838_v1  ;;  %313 = vst [vmem:[#allocation2 + $0x30] sm:$0xff] %v17838_v1  ;;  %15572 = vmatprep.subr.bf16.mxu0 %v17385_v4  ;;  %v200_v16 = vld [vmem:[#allocation3 + $0xc] sm:$0x1]  ;;  %v256_v20 = vld [vmem:[#allocation3 + $0x14] sm:$0x1] }
  0x34   : > { %314 = vst [vmem:[#allocation2 + $0x38] sm:$0xff] %v17838_v1  ;;  %315 = vst [vmem:[#allocation2 + $0x40] sm:$0xff] %v17838_v1  ;;  %v197_v8 = vld [vmem:[#allocation3] sm:$0x1]  ;;  %v340_v23 = vld [vmem:[%s17926_s6 + $0x8] sm:$0xff]  ;;  %vm1647_vm8 = vcmask 1042432  }
  0x35   : > { %316 = vst [vmem:[#allocation2 + $0x48] sm:$0xff] %v17838_v1  ;;  %317 = vst [vmem:[#allocation2 + $0x50] sm:$0xff] %v17838_v1  ;;  %v253_v9 = vld [vmem:[#allocation3 + $0x8] sm:$0x1]  ;;  %v17919_v10 = vld [vmem:[#allocation3 + $0x4] sm:$0xf] }
  0x36   : > { %318 = vst [vmem:[#allocation2 + $0x58] sm:$0xff] %v17838_v1  ;;  %319 = vst [vmem:[#allocation2 + $0x60] sm:$0xff] %v17838_v1  ;;  %v1054_v13 = vshll.u32 %v17919_v10, 16  ;;  %v1058_v14 = vshrl.u32 %v17919_v10, 16  ;;  %15573 = vmatpush3.bf16.msra.mxu0 %v17385_v4  ;;  %v203_v24 = vld [vmem:[#allocation3 + $0x18] sm:$0x1] }
  0x37   : > { %320 = vst [vmem:[#allocation2 + $0x68] sm:$0xff] %v17838_v1  ;;  %321 = vst [vmem:[#allocation2 + $0x70] sm:$0xff] %v17838_v1  ;;  %15574 = vmatprep.subr.bf16.mxu0 %v17386_v7  ;;  %v259_v25 = vld [vmem:[#allocation3 + $0x20] sm:$0x1]  ;;  %v1652_v26 = vrot.slane %v17919_v10, 5  ;;  %v341_v29 = vld [vmem:[%s17926_s6 + $0x10] sm:$0xff] }
  0x38   : > { %322 = vst [vmem:[#allocation2 + $0x78] sm:$0xff] %v17838_v1  ;;  %323 = vst [vmem:[#allocation2 + $0x80] sm:$0xff] %v17838_v1  ;;  %v17934_v17 = vrot.slane %v1054_v13, 5  ;;  %v1060_v18 = vrot.slane %v1058_v14, 4  ;;  %v342_v30 = vld [vmem:[%s17926_s6 + $0x18] sm:$0xff]  ;;  %v17388_v31 = vld [vmem:[#allocation4 + $0x68] sm:$0xff]  }
  0x39   : > { %324 = vst [vmem:[#allocation2 + $0x88] sm:$0xff] %v17838_v1  ;;  %325 = vst [vmem:[#allocation2 + $0x90] sm:$0xff] %v17838_v1  ;;  %v206_v33 = vld [vmem:[#allocation3 + $0x24] sm:$0x1]  ;;  %vm1648_vm9 = vcmask 1046532   ;;  %v344_v37 = vld [vmem:[%s17926_s6 + $0x28] sm:$0xff] }
  0x3a   : > { %326 = vst [vmem:[#allocation2 + $0x98] sm:$0xff] %v17838_v1  ;;  %327 = vst [vmem:[#allocation2 + $0xa0] sm:$0xff] %v17838_v1  ;;  %15575 = vmatpush3.bf16.msra.mxu0 %v17386_v7  ;;  %v1061_v32 = vor.u32 %v1060_v18, %v17934_v17  ;;  %v262_v35 = vld [vmem:[#allocation3 + $0x2c] sm:$0x1]  ;;  %v343_v36 = vld [vmem:[%s17926_s6 + $0x20] sm:$0xff]  ;;  %v1654_v41 = vrot.slane %v1652_v26, 4 }
  0x3b   : > { %328 = vst [vmem:[#allocation2 + $0xa8] sm:$0xff] %v17838_v1  ;;  %329 = vst [vmem:[#allocation2 + $0xb0] sm:$0xff] %v17838_v1  ;;  %15576 = vmatprep.subr.bf16.mxu0 %v17387_v15  ;;  %v21703_v46 = vmov 0  ;;  %v17389_v47 = vld [vmem:[#allocation4 + $0x70] sm:$0xff]   ;;  %v345_v57 = vld [vmem:[%s17926_s6 + $0x30] sm:$0xff]  ;;  %vm887_vm12 = vcmask 1043456  }
  0x3c   : > { %330 = vst [vmem:[#allocation2 + $0xb8] sm:$0xff] %v17838_v1  ;;  %331 = vst [vmem:[#allocation2 + $0xc0] sm:$0xff] %v17838_v1  ;;  %v1062_v48 = vrot.slane %v1061_v32, 4  ;;  %v209_v59 = vld [vmem:[#allocation3 + $0x30] sm:$0x1]  ;;  %v346_v60 = vld [vmem:[%s17926_s6 + $0x38] sm:$0xff] }
  0x3d   : > { %332 = vst [vmem:[#allocation2 + $0xc8] sm:$0xff] %v17838_v1  ;;  %333 = vst [vmem:[#allocation2 + $0xd0] sm:$0xff] %v17838_v1  ;;  %vm564_vm13 = vsmask.f32 4368  ;;  %v17390_v3 = vld [vmem:[#allocation4 + $0x78] sm:$0xff]  }
  0x3e   : > { %334 = vst [vmem:[#allocation2 + $0xd8] sm:$0xff] %v17838_v1  ;;  %335 = vst [vmem:[#allocation2 + $0xe0] sm:$0xff] %v17838_v1  ;;  %15577 = vmatpush3.bf16.msra.mxu0 %v17387_v15 }
  0x3f   : > { %336 = vst [vmem:[#allocation2 + $0xe8] sm:$0xff] %v17838_v1  ;;  %337 = vst [vmem:[#allocation2 + $0xf0] sm:$0xff] %v17838_v1  ;;  %15578 = vmatprep.subr.bf16.mxu0 %v17388_v31 }
  0x40   : > { %338 = vst [vmem:[#allocation2 + $0xf8] sm:$0xff] %v17838_v1  ;;  %vm17909_vm3 = vmand %vm194_vm0, %vm195_vm1 }
  0x41   : > { %v21698_v5 = vsel %vm17909_vm3, 4294967295, %v21697_v5  ;;  %vm17915_vm4 = vmand %vm194_vm0, %vm251_vm2  ;;  %v198_v11 = vsel %vm17909_vm3, 0, %v197_v8  ;;  %v201_v19 = vsel %vm17909_vm3, 0, %v200_v16  ;;  %372 = vst.msk [vmem:[#allocation2] sm:$0xff] %vm371_vm5, %v339_v21  ;;  %v204_v27 = vsel %vm17909_vm3, 0, %v203_v24 }
  0x42   : > { %21699 = vst [vmem:[#allocation7_spill] sm:$0xff] %v21698_v5  ;;  %v21701_v6 = vsel %vm17915_vm4, 4294967295, %v21700_v6  ;;  %v254_v12 = vsel %vm17915_vm4, 0, %v253_v9  ;;  %199 = vst [vmem:[#allocation3] sm:$0x1] %v198_v11  ;;  %v257_v22 = vsel %vm17915_vm4, 0, %v256_v20  ;;  %15579 = vmatpush3.bf16.msra.mxu0 %v17388_v31 }
  0x43   : > { %21702 = vst [vmem:[#allocation8_spill] sm:$0xff] %v21701_v6  ;;  %255 = vst [vmem:[#allocation3 + $0x8] sm:$0x1] %v254_v12  ;;  %v260_v28 = vsel %vm17915_vm4, 0, %v259_v25  ;;  %v207_v34 = vsel %vm17909_vm3, 0, %v206_v33  ;;  %v263_v40 = vsel %vm17915_vm4, 0, %v262_v35  ;;  %15580 = vmatprep.subr.bf16.mxu0 %v17389_v47 }
  0x44   : > { %202 = vst [vmem:[#allocation3 + $0xc] sm:$0x1] %v201_v19  ;;  %258 = vst [vmem:[#allocation3 + $0x14] sm:$0x1] %v257_v22  ;;  %v210_v2 = vsel %vm17909_vm3, 0, %v209_v59  ;;  %v17999_v25 = vld [vmem:[#allocation4] sm:$0xff]  }
  0x45   : > { %373 = vst.msk [vmem:[#allocation2 + $0x8] sm:$0xff] %vm371_vm5, %v340_v23  ;;  %205 = vst [vmem:[#allocation3 + $0x18] sm:$0x1] %v204_v27  ;;  %v265_v11 = vld [vmem:[#allocation3 + $0x38] sm:$0x1]  ;;  %v21708_v31 = vmov 0 }
  0x46   : > { %261 = vst [vmem:[#allocation3 + $0x20] sm:$0x1] %v260_v28  ;;  %374 = vst.msk [vmem:[#allocation2 + $0x10] sm:$0xff] %vm371_vm5, %v341_v29  ;;  %v266_v18 = vsel %vm17915_vm4, 0, %v265_v11  ;;  %15581 = vmatpush3.bf16.msra.mxu0 %v17389_v47 }
  0x47   : > { %375 = vst.msk [vmem:[#allocation2 + $0x18] sm:$0xff] %vm371_vm5, %v342_v30  ;;  %208 = vst [vmem:[#allocation3 + $0x24] sm:$0x1] %v207_v34  ;;  %15582 = vmatprep.subr.bf16.mxu0 %v17390_v3 }
  0x48   : > { %376 = vst.msk [vmem:[#allocation2 + $0x20] sm:$0xff] %vm371_vm5, %v343_v36  ;;  %377 = vst.msk [vmem:[#allocation2 + $0x28] sm:$0xff] %vm371_vm5, %v344_v37  ;;  %v404_v49 = vld [vmem:[#allocation2] sm:$0xff] }
  0x49   : > { %v17958_v38 = vld [vmem:[#allocation3] sm:$0xf]  ;;  %264 = vst [vmem:[#allocation3 + $0x2c] sm:$0x1] %v263_v40  ;;  %vm17970_vm10 = vmor %vm1647_vm8, %vm1648_vm9  ;;  %v436_v56 = vmax.f32 %v404_v49, 0.0 }
  0x4a   : > { %v1033_v39 = vld [vmem:[#allocation3 + $0x8] sm:$0x1]  ;;  %v1045_v42 = vshrl.u32 %v17958_v38, 16  ;;  %v1048_v43 = vshll.u32 %v17958_v38, 16  ;;  %v21704_v46 = vsel %vm17970_vm10, 4294967295, %v21703_v46  ;;  %v14108_v50 = vcombine.low %v17958_v38, %v17919_v10  ;;  %vm17978_vm11 = vmor %vm1041_vm6, %vm1042_vm7  ;;  %378 = vst.msk [vmem:[#allocation2 + $0x30] sm:$0xff] %vm371_vm5, %v345_v57  ;;  %15583 = vmatpush3.bf16.msra.mxu0 %v17390_v3 }
  0x4b   : > { %v1064_v44 = vshll.u32 %v1033_v39, 16  ;;  %v1655_v45 = vrot.slane %v1033_v39, 5  ;;  %21705 = vst [vmem:[#allocation9_spill] sm:$0xff] %v21704_v46  ;;  %v14864_v63 = vpack.c.bf16 %v436_v56, %v436_v56  ;;  %379 = vst.msk [vmem:[#allocation2 + $0x38] sm:$0xff] %vm371_vm5, %v346_v60  ;;  %v889_v21 = vld [vmem:[#allocation3 + $0xc] sm:$0xf]  ;;  %15600 = vmatprep.subr.bf16.mxu0 %v17999_v25 }
  0x4c   : > { %v1047_v52 = vrot.slane %v1045_v42, 4  ;;  %v1050_v53 = vrot.slane %v1048_v43, 5  ;;  %v405_v55 = vld [vmem:[#allocation2 + $0x8] sm:$0xff]  ;;  %211 = vst [vmem:[#allocation3 + $0x30] sm:$0x1] %v210_v2  ;;  %vm18003_vm14 = vmand %vm887_vm12, %vm251_vm2  ;;  %v347_v36 = vld [vmem:[%s17926_s6 + $0x40] sm:$0xff] }
  0x4d   : > { %v1066_v54 = vrot.slane %v1064_v44, 5  ;;  %v437_v58 = vmax.f32 %v405_v55, 0.0  ;;  %v17987_v61 = vsel %vm17970_vm10, %v1654_v41, %v1655_v45  ;;  %v406_v0 = vld [vmem:[#allocation2 + $0x10] sm:$0xff]  ;;  %v567_v13 = vshrl.u32 %v14864_v63, 16  ;;  %267 = vst [vmem:[#allocation3 + $0x38] sm:$0x1] %v266_v18  ;;  %vm18010_vm15 = vmor %vm195_vm1, %vm564_vm13 }
  0x4e   : > { %v1051_v62 = vor.u32 %v1050_v53, %v1047_v52  ;;  %v407_v1 = vld [vmem:[#allocation2 + $0x18] sm:$0xff]  ;;  %v438_v8 = vmax.f32 %v406_v0, 0.0  ;;  %v570_v14 = vshll.u32 %v14864_v63, 16  ;;  %v893_v28 = vld [vmem:[#allocation3 + $0x14] sm:$0x1]  ;;  %v21709_v31 = vsel %vm18003_vm14, 4294967295, %v21708_v31 }
  0x4f   : > { %v1067_v4 = vsel %vm17978_vm11, %v1062_v48, %v1066_v54  ;;  %v14865_v7 = vpack.c.bf16 %v437_v58, %v437_v58  ;;  %v439_v9 = vmax.f32 %v407_v1, 0.0  ;;  %v408_v15 = vld [vmem:[#allocation2 + $0x20] sm:$0xff]  ;;  %v409_v16 = vld [vmem:[#allocation2 + $0x28] sm:$0xff]  ;;  %v569_v27 = vrot.slane %v567_v13, 7  ;;  %21710 = vst [vmem:[#allocation10_spill] sm:$0xff] %v21709_v31  ;;  %380 = vst.msk [vmem:[#allocation2 + $0x40] sm:$0xff] %vm371_vm5, %v347_v36 }
  0x50   : > { %v1052_v12 = vrot.slane %v1051_v62, 4  ;;  %v14866_v22 = vpack.c.bf16 %v438_v8, %v438_v8  ;;  %v440_v29 = vmax.f32 %v408_v15, 0.0  ;;  %v441_v30 = vmax.f32 %v409_v16, 0.0  ;;  %v896_v42 = vld [vmem:[#allocation3 + $0x18] sm:$0xf]  ;;  %v348_v52 = vld [vmem:[%s17926_s6 + $0x48] sm:$0xff] }
  0x51   : > { %v575_v19 = vshrl.u32 %v14865_v7, 16  ;;  %v578_v20 = vshll.u32 %v14865_v7, 16  ;;  %v14867_v23 = vpack.c.bf16 %v439_v9, %v439_v9  ;;  %v572_v37 = vor.u32 %v570_v14, %v569_v27  ;;  %v410_v43 = vld [vmem:[#allocation2 + $0x30] sm:$0xff]  ;;  %v900_v48 = vld [vmem:[#allocation3 + $0x20] sm:$0x1]  ;;  %381 = vst.msk [vmem:[#allocation2 + $0x48] sm:$0xff] %vm371_vm5, %v348_v52 }
  0x52   : > { %v1057_v24 = vsel %vm17978_vm11, %v1052_v12, %v17934_v17  ;;  %v584_v34 = vshrl.u32 %v14866_v22, 16  ;;  %v587_v35 = vshll.u32 %v14866_v22, 16  ;;  %v21711_v17 = vmov 0  ;;  %v411_v56 = vld [vmem:[#allocation2 + $0x38] sm:$0xff]  ;;  %v268_v3 = vld [vmem:[#allocation3 + $0x44] sm:$0x1] }
  0x53   : > { %v14092_v32 = vcombine.low %v1057_v24, %v1067_v4  ;;  %v577_v33 = vrot.slane %v575_v19, 7  ;;  %v21712_v17 = vsel %vm18010_vm15, 4294967295, %v21711_v17  ;;  %v573_v39 = vrot.slane %v569_v27, 4  ;;  %v212_v63 = vld [vmem:[#allocation3 + $0x3c] sm:$0x1]  ;;  %v349_v7 = vld [vmem:[%s17926_s6 + $0x50] sm:$0xff] }
  0x54   : > { %21713 = vst [vmem:[#allocation11_spill] sm:$0xff] %v21712_v17  ;;  %v592_v40 = vshrl.u32 %v14867_v23, 16  ;;  %v595_v41 = vshll.u32 %v14867_v23, 16  ;;  %v586_v47 = vrot.slane %v584_v34, 7  ;;  %v14868_v49 = vpack.c.bf16 %v440_v29, %v440_v29  ;;  %v350_v13 = vld [vmem:[%s17926_s6 + $0x58] sm:$0xff]  ;;  %382 = vst.msk [vmem:[#allocation2 + $0x50] sm:$0xff] %vm371_vm5, %v349_v7 }
  0x55   : > { %15584 = vmatprep.mubr.bf16.mxu0 %v14092_v32  ;;  %v580_v44 = vor.u32 %v578_v20, %v577_v33  ;;  %v582_v45 = vrot.slane %v577_v33, 4  ;;  %v890_v53 = vsel %vm18003_vm14, %v572_v37, %v889_v21  ;;  %v14869_v55 = vpack.c.bf16 %v441_v30, %v441_v30  ;;  %383 = vst.msk [vmem:[#allocation2 + $0x58] sm:$0xff] %vm371_vm5, %v350_v13  ;;  %v903_v20 = vld [vmem:[#allocation3 + $0x24] sm:$0xf]  ;;  %v907_v29 = vld [vmem:[#allocation3 + $0x2c] sm:$0x1] }
  0x56   : > { %v594_v54 = vrot.slane %v592_v40, 7  ;;  %v442_v57 = vmax.f32 %v410_v43, 0.0  ;;  %891 = vst [vmem:[#allocation3 + $0xc] sm:$0xf] %v890_v53  ;;  %v589_v60 = vor.u32 %v587_v35, %v586_v47  ;;  %v590_v62 = vrot.slane %v586_v47, 4  ;;  %v18040_v24 = vld [vmem:[#allocation2 + $0x40] sm:$0xff] }
  0x57   : > { %v581_v58 = vsel %vm18010_vm15, %v573_v39, %v580_v44  ;;  %v894_v59 = vsel %vm17909_vm3, %v582_v45, %v893_v28  ;;  %v601_v2 = vshrl.u32 %v14868_v49, 16  ;;  %v604_v4 = vshll.u32 %v14868_v49, 16  ;;  %v351_v32 = vld [vmem:[%s17926_s6 + $0x60] sm:$0xff]  ;;  %v352_v39 = vld [vmem:[%s17926_s6 + $0x68] sm:$0xff] }
  0x58   : > { %892 = vst [vmem:[#allocation3 + $0x10] sm:$0xf] %v581_v58  ;;  %895 = vst [vmem:[#allocation3 + $0x14] sm:$0x1] %v894_v59  ;;  %v597_v0 = vor.u32 %v595_v41, %v594_v54  ;;  %v599_v1 = vrot.slane %v594_v54, 4  ;;  %v897_v8 = vsel %vm18003_vm14, %v589_v60, %v896_v42  ;;  %v609_v9 = vshrl.u32 %v14869_v55, 16 }
  0x59   : > { %v612_v11 = vshll.u32 %v14869_v55, 16  ;;  %v443_v12 = vmax.f32 %v411_v56, 0.0  ;;  %898 = vst [vmem:[#allocation3 + $0x18] sm:$0xf] %v897_v8  ;;  %v603_v16 = vrot.slane %v601_v2, 7  ;;  %v14870_v18 = vpack.c.bf16 %v442_v57, %v442_v57  ;;  %v18044_v37 = vld [vmem:[#allocation2 + $0x48] sm:$0xff] }
  0x5a   : > { %v598_v14 = vsel %vm18010_vm15, %v590_v62, %v597_v0  ;;  %v901_v15 = vsel %vm17909_vm3, %v599_v1, %v900_v48  ;;  %v611_v19 = vrot.slane %v609_v9, 7  ;;  %v213_v22 = vsel %vm17909_vm3, 0, %v212_v63  ;;  %384 = vst.msk [vmem:[#allocation2 + $0x60] sm:$0xff] %vm371_vm5, %v351_v32  ;;  %385 = vst.msk [vmem:[#allocation2 + $0x68] sm:$0xff] %vm371_vm5, %v352_v39  ;;  %v17401_v10 = vld [vmem:[#allocation4 + $0x90] sm:$0xff]  }
  0x5b   : > { %899 = vst [vmem:[#allocation3 + $0x1c] sm:$0xf] %v598_v14  ;;  %902 = vst [vmem:[#allocation3 + $0x20] sm:$0x1] %v901_v15  ;;  %v18034_v21 = vpack.c.bf16 %v443_v12, %v443_v12  ;;  %v269_v23 = vsel %vm17915_vm4, 0, %v268_v3  ;;  %v606_v27 = vor.u32 %v604_v4, %v603_v16  ;;  %v607_v28 = vrot.slane %v603_v16, 4 }
  0x5c   : > { %v618_v30 = vshrl.u32 %v14870_v18, 16  ;;  %214 = vst [vmem:[#allocation3 + $0x3c] sm:$0x1] %v213_v22  ;;  %270 = vst [vmem:[#allocation3 + $0x44] sm:$0x1] %v269_v23  ;;  %v614_v33 = vor.u32 %v612_v11, %v611_v19  ;;  %v616_v34 = vrot.slane %v611_v19, 4 }
  0x5d   : > { %v621_v35 = vshll.u32 %v14870_v18, 16  ;;  %v626_v36 = vshrl.u32 %v18034_v21, 16  ;;  %v18048_v40 = vld [vmem:[#allocation3 + $0xc] sm:$0xf]  ;;  %v904_v41 = vsel %vm18003_vm14, %v606_v27, %v903_v20  ;;  %v629_v43 = vshll.u32 %v18034_v21, 16 }
  0x5e   : > { %v18052_v42 = vrot.slane %v618_v30, 7  ;;  %v444_v44 = vmax.f32 %v18040_v24, 0.0  ;;  %v1069_v48 = vshrl.u32 %v18048_v40, 16  ;;  %v1072_v49 = vshll.u32 %v18048_v40, 16  ;;  %905 = vst [vmem:[#allocation3 + $0x24] sm:$0xf] %v904_v41 }
  0x5f   : > { %v18057_v45 = vld [vmem:[#allocation3 + $0x10] sm:$0xf]  ;;  %v18059_v47 = vld [vmem:[#allocation3 + $0x14] sm:$0x1]  ;;  %v615_v52 = vsel %vm18010_vm15, %v607_v28, %v614_v33  ;;  %v908_v53 = vsel %vm17909_vm3, %v616_v34, %v907_v29  ;;  %v445_v57 = vmax.f32 %v18044_v37, 0.0  ;;  %v628_v16 = vrot.slane %v626_v36, 7 }
  0x60   : > { %v1078_v54 = vshll.u32 %v18057_v45, 16  ;;  %v1082_v55 = vshrl.u32 %v18057_v45, 16  ;;  %v1088_v56 = vshll.u32 %v18059_v47, 16  ;;  %906 = vst [vmem:[#allocation3 + $0x28] sm:$0xf] %v615_v52  ;;  %v1071_v58 = vrot.slane %v1069_v48, 4 }
  0x61   : > { %909 = vst [vmem:[#allocation3 + $0x2c] sm:$0x1] %v908_v53  ;;  %v1074_v59 = vrot.slane %v1072_v49, 5  ;;  %v18071_v60 = vld [vmem:[#allocation3 + $0x18] sm:$0xf]  ;;  %v623_v62 = vor.u32 %v621_v35, %v18052_v42  ;;  %v624_v63 = vrot.slane %v18052_v42, 4  ;;  %v631_v28 = vor.u32 %v629_v43, %v628_v16 }
  0x62   : > { %v1080_v0 = vrot.slane %v1078_v54, 5  ;;  %v1084_v1 = vrot.slane %v1082_v55, 4  ;;  %v1090_v2 = vrot.slane %v1088_v56, 5  ;;  %v18075_v4 = vld [vmem:[#allocation3 + $0x1c] sm:$0xf]  ;;  %v1093_v3 = vshrl.u32 %v18071_v60, 16 }
  0x63   : > { %v1075_v7 = vor.u32 %v1074_v59, %v1071_v58  ;;  %v18078_v8 = vld [vmem:[#allocation3 + $0x20] sm:$0x1]  ;;  %v1096_v9 = vshll.u32 %v18071_v60, 16  ;;  %v1102_v11 = vshll.u32 %v18075_v4, 16  ;;  %v1106_v12 = vshrl.u32 %v18075_v4, 16 }
  0x64   : > { %v1085_v13 = vor.u32 %v1084_v1, %v1080_v0  ;;  %v1095_v14 = vrot.slane %v1093_v3, 4  ;;  %v1112_v15 = vshll.u32 %v18078_v8, 16  ;;  %v633_v29 = vrot.slane %v628_v16, 4  ;;  %v910_v30 = vld [vmem:[#allocation3 + $0x30] sm:$0xf]  ;;  %v17392_v42 = vld [vmem:[#allocation4 + $0x8] sm:$0xff]  }
  0x65   : > { %v1076_v18 = vrot.slane %v1075_v7, 4  ;;  %v1098_v19 = vrot.slane %v1096_v9, 5  ;;  %v1104_v20 = vrot.slane %v1102_v11, 5  ;;  %v1108_v21 = vrot.slane %v1106_v12, 4  ;;  %v18084_v27 = vld [vmem:[#allocation3 + $0x24] sm:$0xf] }
  0x66   : > { %v1086_v22 = vrot.slane %v1085_v13, 4  ;;  %v1114_v23 = vrot.slane %v1112_v15, 5  ;;  %v1117_v36 = vshrl.u32 %v18084_v27, 16  ;;  %v1120_v48 = vshll.u32 %v18084_v27, 16  ;;  %v914_v52 = vld [vmem:[#allocation3 + $0x38] sm:$0x1] }
  0x67   : > { %v1081_v32 = vsel %vm17978_vm11, %v1076_v18, %v1080_v0  ;;  %v1099_v33 = vor.u32 %v1098_v19, %v1095_v14  ;;  %v1109_v34 = vor.u32 %v1108_v21, %v1104_v20  ;;  %v18088_v35 = vld [vmem:[#allocation3 + $0x28] sm:$0xf]  ;;  %v271_v59 = vld [vmem:[#allocation3 + $0x50] sm:$0x1]  ;;  %v632_v12 = vsel %vm18010_vm15, %v624_v63, %v631_v28  ;;  %v218_v21 = vld [vmem:[#allocation3 + $0x54] sm:$0x1] }
  0x68   : > { %v18090_v39 = vld [vmem:[#allocation3 + $0x2c] sm:$0x1]  ;;  %v1091_v41 = vsel %vm17978_vm11, %v1086_v22, %v1090_v2  ;;  %v1126_v43 = vshll.u32 %v18088_v35, 16  ;;  %v1130_v49 = vshrl.u32 %v18088_v35, 16  ;;  %v215_v53 = vld [vmem:[#allocation3 + $0x48] sm:$0x1]  ;;  %v911_v13 = vsel %vm18003_vm14, %v623_v62, %v910_v30 }
  0x69   : > { %v14093_v54 = vcombine.low %v1081_v32, %v1091_v41  ;;  %v1100_v55 = vrot.slane %v1099_v33, 4  ;;  %v1110_v56 = vrot.slane %v1109_v34, 4  ;;  %v1119_v58 = vrot.slane %v1117_v36, 4  ;;  %v414_v0 = vld [vmem:[#allocation2 + $0x50] sm:$0xff]  ;;  %v17393_v15 = vld [vmem:[#allocation4 + $0x10] sm:$0xff]   ;;  %v415_v22 = vld [vmem:[#allocation2 + $0x58] sm:$0xff] }
  0x6a   : > { %v1122_v1 = vrot.slane %v1120_v48, 5  ;;  %v1128_v3 = vrot.slane %v1126_v43, 5  ;;  %v1132_v7 = vrot.slane %v1130_v49, 4  ;;  %v1136_v2 = vshll.u32 %v18090_v39, 16  ;;  %912 = vst [vmem:[#allocation3 + $0x30] sm:$0xf] %v911_v13 }
  0x6b   : > { %15585 = vmatmul.mubr.bf16.vlgmr.msra.gmra.mrb[0].mxu0 %v14093_v54  ;;  %v1105_v9 = vsel %vm17978_vm11, %v1100_v55, %v1104_v20  ;;  %v1115_v11 = vsel %vm17978_vm11, %v1110_v56, %v1114_v23  ;;  %913 = vst [vmem:[#allocation3 + $0x34] sm:$0xf] %v632_v12  ;;  %v915_v20 = vsel %vm17909_vm3, %v633_v29, %v914_v52  ;;  %v216_v62 = vsel %vm17909_vm3, 0, %v215_v53  ;;  %v274_v23 = vld [vmem:[#allocation3 + $0x5c] sm:$0x1]  ;;  %v17394_v52 = vld [vmem:[#allocation4 + $0x18] sm:$0xff]  }
  0x6c   : > { %15601 = vmatpush3.bf16.msra.mxu0 %v17999_v25  ;;  %v14094_v14 = vcombine.low %v1105_v9, %v1115_v11  ;;  %v1123_v16 = vor.u32 %v1122_v1, %v1119_v58  ;;  %v1133_v18 = vor.u32 %v1132_v7, %v1128_v3  ;;  %v1138_v19 = vrot.slane %v1136_v2, 5  ;;  %916 = vst [vmem:[#allocation3 + $0x38] sm:$0x1] %v915_v20  ;;  %v917_v36 = vld [vmem:[#allocation3 + $0x3c] sm:$0xf] }
  0x6d   : > { %15602 = vmatprep.subr.bf16.mxu0 %v17392_v42  ;;  %v14872_v63 = vpack.c.bf16 %v444_v44, %v444_v44  ;;  %v14873_v25 = vpack.c.bf16 %v445_v57, %v445_v57  ;;  %217 = vst [vmem:[#allocation3 + $0x48] sm:$0x1] %v216_v62  ;;  %v272_v29 = vsel %vm17915_vm4, 0, %v271_v59  ;;  %v446_v24 = vmax.f32 %v414_v0, 0.0  ;;  %v921_v41 = vld [vmem:[#allocation3 + $0x44] sm:$0x1] }
  0x6e   : > { %15588 = vmatprep.mubr.bf16.mxu0 %v14094_v14  ;;  %v1124_v28 = vrot.slane %v1123_v16, 4  ;;  %v1134_v30 = vrot.slane %v1133_v18, 4  ;;  %273 = vst [vmem:[#allocation3 + $0x50] sm:$0x1] %v272_v29  ;;  %v447_v48 = vmax.f32 %v415_v22, 0.0  ;;  %v219_v55 = vsel %vm17909_vm3, 0, %v218_v21 }
  0x6f   : > { %v635_v32 = vshrl.u32 %v14872_v63, 16  ;;  %v638_v44 = vshll.u32 %v14872_v63, 16  ;;  %v643_v33 = vshrl.u32 %v14873_v25, 16  ;;  %v646_v37 = vshll.u32 %v14873_v25, 16  ;;  %220 = vst [vmem:[#allocation3 + $0x54] sm:$0x1] %v219_v55 }
  0x70   : > { %15603 = vmatpush3.bf16.msra.mxu0 %v17392_v42  ;;  %v1129_v57 = vsel %vm17978_vm11, %v1124_v28, %v1128_v3  ;;  %v1139_v34 = vsel %vm17978_vm11, %v1134_v30, %v1138_v19  ;;  %v14874_v43 = vpack.c.bf16 %v446_v24, %v446_v24  ;;  %v14875_v56 = vpack.c.bf16 %v447_v48, %v447_v48  ;;  %v17395_v3 = vld [vmem:[#allocation4 + $0x20] sm:$0xff]   ;;  %v416_v63 = vld [vmem:[#allocation2 + $0x60] sm:$0xff]  ;;  %v417_v25 = vld [vmem:[#allocation2 + $0x68] sm:$0xff] }
  0x71   : > { %15604 = vmatprep.subr.bf16.mxu0 %v17393_v15  ;;  %v14095_v49 = vcombine.low %v1129_v57, %v1139_v34  ;;  %v637_v53 = vrot.slane %v635_v32, 7  ;;  %v645_v54 = vrot.slane %v643_v33, 7  ;;  %v275_v59 = vsel %vm17915_vm4, 0, %v274_v23  ;;  %v18128_v0 = vld [vmem:[#allocation3 + $0x30] sm:$0xf] }
  0x72   : > { %v652_v42 = vshrl.u32 %v14874_v43, 16  ;;  %v655_v58 = vshll.u32 %v14874_v43, 16  ;;  %v18130_v1 = vld [vmem:[#allocation3 + $0x34] sm:$0xf]  ;;  %276 = vst [vmem:[#allocation3 + $0x5c] sm:$0x1] %v275_v59  ;;  %v14111_v38 = vcombine.low %v18084_v27, %v18088_v35 }
  0x73   : > { %15589 = vmatmul.mubr.bf16.gmra.mrb[4].mxu0 %v14095_v49  ;;  %v640_v7 = vor.u32 %v638_v44, %v637_v53  ;;  %v641_v2 = vrot.slane %v637_v53, 4  ;;  %v648_v9 = vor.u32 %v646_v37, %v645_v54  ;;  %v650_v11 = vrot.slane %v645_v54, 4  ;;  %v18136_v18 = vld [vmem:[#allocation3 + $0x38] sm:$0x1] }
  0x74   : > { %15605 = vmatpush3.bf16.msra.mxu0 %v17393_v15  ;;  %v1141_v12 = vshrl.u32 %v18128_v0, 16  ;;  %v1144_v13 = vshll.u32 %v18128_v0, 16  ;;  %v1150_v14 = vshll.u32 %v18130_v1, 16  ;;  %v1154_v16 = vshrl.u32 %v18130_v1, 16  ;;  %v924_v30 = vld [vmem:[#allocation3 + $0x48] sm:$0xf] }
  0x75   : > { %15606 = vmatprep.subr.bf16.mxu0 %v17394_v52  ;;  %v649_v19 = vsel %vm18010_vm15, %v641_v2, %v648_v9  ;;  %v918_v21 = vsel %vm18003_vm14, %v640_v7, %v917_v36  ;;  %v922_v15 = vsel %vm17909_vm3, %v650_v11, %v921_v41  ;;  %v654_v20 = vrot.slane %v652_v42, 7  ;;  %v17396_v41 = vld [vmem:[#allocation4 + $0x28] sm:$0xff]   ;;  %v928_v55 = vld [vmem:[#allocation3 + $0x50] sm:$0x1]  ;;  %v17397_v2 = vld [vmem:[#allocation4 + $0x30] sm:$0xff]  }
  0x76   : > { %v1143_v62 = vrot.slane %v1141_v12, 4  ;;  %v1146_v22 = vrot.slane %v1144_v13, 5  ;;  %v1152_v23 = vrot.slane %v1150_v14, 5  ;;  %v1156_v28 = vrot.slane %v1154_v16, 4  ;;  %919 = vst [vmem:[#allocation3 + $0x3c] sm:$0xf] %v918_v21 }
  0x77   : > { %920 = vst [vmem:[#allocation3 + $0x40] sm:$0xf] %v649_v19  ;;  %923 = vst [vmem:[#allocation3 + $0x44] sm:$0x1] %v922_v15  ;;  %v1160_v29 = vshll.u32 %v18136_v18, 16  ;;  %v657_v24 = vor.u32 %v655_v58, %v654_v20  ;;  %v658_v32 = vrot.slane %v654_v20, 4 }
  0x78   : > { %v660_v44 = vshrl.u32 %v14875_v56, 16  ;;  %15607 = vmatpush3.bf16.msra.mxu0 %v17394_v52  ;;  %v1147_v33 = vor.u32 %v1146_v22, %v1143_v62  ;;  %v1157_v37 = vor.u32 %v1156_v28, %v1152_v23  ;;  %v663_v57 = vshll.u32 %v14875_v56, 16 }
  0x79   : > { %v448_v34 = vmax.f32 %v416_v63, 0.0  ;;  %v1162_v36 = vrot.slane %v1160_v29, 5  ;;  %15608 = vmatprep.subr.bf16.mxu0 %v17395_v3  ;;  %v925_v43 = vsel %vm18003_vm14, %v657_v24, %v924_v30  ;;  %v449_v49 = vmax.f32 %v417_v25, 0.0  ;;  %v931_v25 = vld [vmem:[#allocation3 + $0x54] sm:$0xf] }
  0x7a   : > { %v662_v48 = vrot.slane %v660_v44, 7  ;;  %v1148_v53 = vrot.slane %v1147_v33, 4  ;;  %v1158_v54 = vrot.slane %v1157_v37, 4  ;;  %926 = vst [vmem:[#allocation3 + $0x48] sm:$0xf] %v925_v43  ;;  %v17398_v43 = vld [vmem:[#allocation4 + $0x38] sm:$0xff]  }
  0x7b   : > { %v14876_v42 = vpack.c.bf16 %v448_v34, %v448_v34  ;;  %v14877_v52 = vpack.c.bf16 %v449_v49, %v449_v49  ;;  %v935_v44 = vld [vmem:[#allocation3 + $0x5c] sm:$0x1]  ;;  %v1623_v33 = vld [vmem:[#allocation3] sm:$0xe] }
  0x7c   : > { %v665_v58 = vor.u32 %v663_v57, %v662_v48  ;;  %v667_v59 = vrot.slane %v662_v48, 4  ;;  %v1153_v56 = vsel %vm17978_vm11, %v1148_v53, %v1152_v23  ;;  %v1163_v7 = vsel %vm17978_vm11, %v1158_v54, %v1162_v36  ;;  %15609 = vmatpush3.bf16.msra.mxu0 %v17395_v3 }
  0x7d   : > { %v669_v9 = vshrl.u32 %v14876_v42, 16  ;;  %v672_v11 = vshll.u32 %v14876_v42, 16  ;;  %v14096_v12 = vcombine.low %v1153_v56, %v1163_v7  ;;  %v18151_v13 = vld [vmem:[#allocation3 + $0x3c] sm:$0xf]  ;;  %15610 = vmatprep.subr.bf16.mxu0 %v17396_v41  ;;  %v677_v23 = vshrl.u32 %v14877_v52, 16 }
  0x7e   : > { %v18153_v14 = vld [vmem:[#allocation3 + $0x40] sm:$0xf]  ;;  %v18155_v16 = vld [vmem:[#allocation3 + $0x44] sm:$0x1]  ;;  %v666_v19 = vsel %vm18010_vm15, %v658_v32, %v665_v58  ;;  %v929_v21 = vsel %vm17909_vm3, %v667_v59, %v928_v55  ;;  %v1165_v15 = vshrl.u32 %v18151_v13, 16  ;;  %v1168_v3 = vshll.u32 %v18151_v13, 16 }
  0x7f   : > { %v1174_v20 = vshll.u32 %v18153_v14, 16  ;;  %v1178_v63 = vshrl.u32 %v18153_v14, 16  ;;  %927 = vst [vmem:[#allocation3 + $0x4c] sm:$0xf] %v666_v19  ;;  %930 = vst [vmem:[#allocation3 + $0x50] sm:$0x1] %v929_v21  ;;  %15592 = vmatprep.mubr.bf16.mxu0 %v14096_v12 }
  0x80   : > { %v1184_v62 = vshll.u32 %v18155_v16, 16  ;;  %v671_v22 = vrot.slane %v669_v9, 7  ;;  %v680_v28 = vshll.u32 %v14877_v52, 16  ;;  %v1167_v30 = vrot.slane %v1165_v15, 4  ;;  %15611 = vmatpush3.bf16.msra.mxu0 %v17396_v41  ;;  %v17399_v21 = vld [vmem:[#allocation4 + $0x80] sm:$0xff]  }
  0x81   : > { %v1170_v29 = vrot.slane %v1168_v3, 5  ;;  %v1176_v24 = vrot.slane %v1174_v20, 5  ;;  %v1180_v32 = vrot.slane %v1178_v63, 4  ;;  %v18166_v57 = vld [vmem:[#allocation3 + $0x48] sm:$0xf]  ;;  %15612 = vmatprep.subr.bf16.mxu0 %v17397_v2  ;;  %v679_v48 = vrot.slane %v677_v23, 7 }
  0x82   : > { %v1186_v37 = vrot.slane %v1184_v62, 5  ;;  %v674_v34 = vor.u32 %v672_v11, %v671_v22  ;;  %v675_v36 = vrot.slane %v671_v22, 4  ;;  %v1189_v54 = vshrl.u32 %v18166_v57, 16 }
  0x83   : > { %v1171_v49 = vor.u32 %v1170_v29, %v1167_v30  ;;  %v1181_v53 = vor.u32 %v1180_v32, %v1176_v24  ;;  %v1192_v55 = vshll.u32 %v18166_v57, 16  ;;  %v682_v42 = vor.u32 %v680_v28, %v679_v48 }
  0x84   : > { %v684_v58 = vrot.slane %v679_v48, 4  ;;  %v932_v41 = vsel %vm18003_vm14, %v674_v34, %v931_v25  ;;  %v1191_v56 = vrot.slane %v1189_v54, 4  ;;  %15613 = vmatpush3.bf16.msra.mxu0 %v17397_v2  ;;  %v14124_v15 = vrot.slane %v1623_v33, 9 }
  0x85   : > { %v1172_v59 = vrot.slane %v1171_v49, 4  ;;  %v1182_v52 = vrot.slane %v1181_v53, 4  ;;  %v1194_v7 = vrot.slane %v1192_v55, 5  ;;  %933 = vst [vmem:[#allocation3 + $0x54] sm:$0xf] %v932_v41  ;;  %v683_v12 = vsel %vm18010_vm15, %v675_v36, %v682_v42  ;;  %15614 = vmatprep.subr.bf16.mxu0 %v17398_v43 }
  0x86   : > { %v18172_v9 = vld [vmem:[#allocation3 + $0x4c] sm:$0xf]  ;;  %v18174_v11 = vld [vmem:[#allocation3 + $0x50] sm:$0x1]  ;;  %v936_v19 = vsel %vm17909_vm3, %v684_v58, %v935_v44  ;;  %934 = vst [vmem:[#allocation3 + $0x58] sm:$0xf] %v683_v12  ;;  %v18191_v28 = vsel %vm17970_vm10, %v14124_v15, %v1652_v26 }
  0x87   : > { %v1177_v3 = vsel %vm17978_vm11, %v1172_v59, %v1176_v24  ;;  %v1187_v20 = vsel %vm17978_vm11, %v1182_v52, %v1186_v37  ;;  %v1195_v2 = vor.u32 %v1194_v7, %v1191_v56  ;;  %v1198_v63 = vshll.u32 %v18172_v9, 16  ;;  %937 = vst [vmem:[#allocation3 + $0x5c] sm:$0x1] %v936_v19  ;;  %v17407_v24 = vld [vmem:[#allocation4 + $0xb8] sm:$0xff]  }
  0x88   : > { %v14097_v25 = vcombine.low %v1177_v3, %v1187_v20  ;;  %v1202_v62 = vshrl.u32 %v18172_v9, 16  ;;  %v1208_v22 = vshll.u32 %v18174_v11, 16  ;;  %15615 = vmatpush3.bf16.msra.mxu0 %v17398_v43 }
  0x89   : > { %v1200_v23 = vrot.slane %v1198_v63, 5  ;;  %v1196_v30 = vrot.slane %v1195_v2, 4  ;;  %15632 = vmatprep.subr.bf16.mxu0 %v17399_v21  ;;  %v14109_v63 = vcombine.low %v18048_v40, %v18057_v45  ;;  %v14112_v40 = vcombine.low %v18128_v0, %v18130_v1 }
  0x8a   : > { %15593 = vmatmul.mubr.bf16.gmra.mrb[8].mxu0 %v14097_v25  ;;  %v1204_v29 = vrot.slane %v1202_v62, 4  ;;  %v1210_v44 = vrot.slane %v1208_v22, 5  ;;  %v221_v25 = vld [vmem:[#allocation3 + $0x60] sm:$0x1]  ;;  %v14110_v62 = vcombine.low %v18071_v60, %v18075_v4  ;;  %v1659_v60 = vrot.slane %v18057_v45, 5 }
  0x8b   : > { %v1201_v36 = vsel %vm17978_vm11, %v1196_v30, %v1200_v23  ;;  %v222_v22 = vsel %vm17909_vm3, 0, %v221_v25  ;;  %v354_v30 = vld [vmem:[%s17926_s6 + $0x78] sm:$0xff]  ;;  %v21607_v0 = vrot.slane %v18088_v35, 5  ;;  %v21720_v45 = vrot.slane %v18075_v4, 5 }
  0x8c   : > { %v1205_v32 = vor.u32 %v1204_v29, %v1200_v23  ;;  %v18195_v33 = vld [vmem:[#allocation3 + $0x54] sm:$0xf]  ;;  %v17400_v29 = vld [vmem:[#allocation4 + $0x88] sm:$0xff]   ;;  %223 = vst [vmem:[#allocation3 + $0x60] sm:$0x1] %v222_v22  ;;  %387 = vst.msk [vmem:[#allocation2 + $0x78] sm:$0xff] %vm371_vm5, %v354_v30 }
  0x8d   : > { %v1213_v37 = vshrl.u32 %v18195_v33, 16  ;;  %v1216_v34 = vshll.u32 %v18195_v33, 16  ;;  %v18201_v48 = vld [vmem:[#allocation3 + $0x58] sm:$0xf]  ;;  %v353_v23 = vld [vmem:[%s17926_s6 + $0x70] sm:$0xff]  ;;  %v17404_v30 = vld [vmem:[#allocation4 + $0xa8] sm:$0xff]  }
  0x8e   : > { %v1206_v26 = vrot.slane %v1205_v32, 4  ;;  %v18203_v43 = vld [vmem:[#allocation3 + $0x5c] sm:$0x1]  ;;  %v1222_v54 = vshll.u32 %v18201_v48, 16  ;;  %v1226_v55 = vshrl.u32 %v18201_v48, 16  ;;  %386 = vst.msk [vmem:[#allocation2 + $0x70] sm:$0xff] %vm371_vm5, %v353_v23  ;;  %v14113_v23 = vcombine.low %v18151_v13, %v18153_v14 }
  0x8f   : > { %v1215_v49 = vrot.slane %v1213_v37, 4  ;;  %v1218_v53 = vrot.slane %v1216_v34, 5  ;;  %v1232_v58 = vshll.u32 %v18203_v43, 16  ;;  %v18234_v32 = vld [vmem:[#allocation3 + $0x18] sm:$0xe]  ;;  %v17402_v34 = vld [vmem:[#allocation4 + $0x98] sm:$0xff]  }
  0x90   : > { %v1211_v42 = vsel %vm17978_vm11, %v1206_v26, %v1210_v44  ;;  %v1224_v52 = vrot.slane %v1222_v54, 5  ;;  %v1228_v56 = vrot.slane %v1226_v55, 4  ;;  %v21610_v44 = vrot.slane %v18075_v4, 5  ;;  %v18242_v54 = vld [vmem:[#allocation3 + $0x30] sm:$0xe]  ;;  %v17408_v4 = vld [vmem:[#allocation4 + $0xc0] sm:$0xff]  }
  0x91   : > { %v14098_v41 = vcombine.low %v1201_v36, %v1211_v42  ;;  %v1219_v59 = vor.u32 %v1218_v53, %v1215_v49  ;;  %v1234_v19 = vrot.slane %v1232_v58, 5  ;;  %v18237_v36 = vld [vmem:[#allocation3 + $0x24] sm:$0xe]  ;;  %v18284_v22 = vld [vmem:[#allocation3 + $0x14] sm:$0x1] }
  0x92   : > { %v1229_v12 = vor.u32 %v1228_v56, %v1224_v52  ;;  %v18252_v56 = vrot.slane %v21610_v44, 4  ;;  %21715 = vst [vmem:[#allocation13_spill] sm:$0xff] %v18284_v22  ;;  %v18322_v49 = vld [vmem:[#allocation3 + $0x28] sm:$0xf]  ;;  %v3140_v17 = vld [vmem:[#allocation3 + $0x54] sm:$0xf] }
  0x93   : > { %15596 = vmatprep.mubr.bf16.mxu0 %v14098_v41  ;;  %v1220_v7 = vrot.slane %v1219_v59, 4  ;;  %v17403_v59 = vld [vmem:[#allocation4 + $0xa0] sm:$0xff]   ;;  %21717 = vst [vmem:[#allocation15_spill] sm:$0xff] %v18322_v49 }
  0x94   : > { %v1230_v3 = vrot.slane %v1229_v12, 4  ;;  %v21608_v12 = vrot.slane %v18130_v1, 5 }
  0x95   : > { %v1225_v15 = vsel %vm17978_vm11, %v1220_v7, %v1224_v52  ;;  %v418_v37 = vld [vmem:[#allocation2 + $0x70] sm:$0xff]  ;;  %v18248_v52 = vrot.slane %v1659_v60, 4  ;;  %v17405_v7 = vld [vmem:[#allocation4 + $0xb0] sm:$0xff]  }
  0x96   : > { %v1235_v20 = vsel %vm17978_vm11, %v1230_v3, %v1234_v19  ;;  %v450_v26 = vmax.f32 %v418_v37, 0.0  ;;  %v18256_v19 = vld [vmem:[#allocation3 + $0x3c] sm:$0xe]  ;;  %v14114_v37 = vcombine.low %v18166_v57, %v18172_v9  ;;  %v18281_v13 = vrot.slane %v21608_v12, 4  ;;  %v2161_v12 = vld [vmem:[#allocation3 + $0x18] sm:$0xf] }
  0x97   : > { %v14099_v2 = vcombine.low %v1225_v15, %v1235_v20 }
  0x98   : > { %v14878_v58 = vpack.c.bf16 %v450_v26, %v450_v26  ;;  %v21609_v26 = vrot.slane %v18153_v14, 5 }
  0x99   : > { %15597 = vmatmul.mubr.bf16.gmra.mrb[12].mxu0 %v14099_v2 }
  0x9a   : > { %15616 = vmatprep.mubr.bf16.mxu0 %v14108_v50  ;;  %v18229_v50 = vld [vmem:[#allocation3 + $0xc] sm:$0xe]  ;;  %v686_v15 = vshrl.u32 %v14878_v58, 16  ;;  %v689_v3 = vshll.u32 %v14878_v58, 16  ;;  %v938_v58 = vld [vmem:[#allocation3 + $0x60] sm:$0xf] }
  0x9b   : > { %v14125_v53 = vrot.slane %v18229_v50, 9  ;;  %v18296_v57 = vrot.slane %v21609_v26, 4  ;;  %v21721_v50 = vrot.slane %v18234_v32, 9 }
  0xa1   : > { %15617 = vmatmul.mubr.bf16.vlgmr.msra.gmra.mrb[0].mxu0 %v14109_v63  ;;  %v18260_v63 = vrot.slane %v21607_v0, 4 }
  0xa2   : > { %15633 = vmatpush3.bf16.msra.mxu0 %v17399_v21  ;;  %15620 = vmatprep.mubr.bf16.mxu0 %v14110_v62  ;;  %v419_v21 = vld [vmem:[#allocation2 + $0x78] sm:$0xff]  ;;  %v21612_v62 = vrot.slane %v18201_v48, 5 }
  0xa3   : > { %15634 = vmatprep.subr.bf16.mxu0 %v17400_v29  ;;  %v451_v27 = vmax.f32 %v419_v21, 0.0  ;;  %v21611_v21 = vrot.slane %v18172_v9, 5 }
  0xa4   : > { %v18314_v26 = vrot.slane %v21612_v62, 4 }
  0xa5   : > { %v14879_v41 = vpack.c.bf16 %v451_v27, %v451_v27  ;;  %v18275_v27 = vld [vmem:[#allocation3 + $0x54] sm:$0xe] }
  0xa6   : > { %15635 = vmatpush3.bf16.msra.mxu0 %v17400_v29  ;;  %v18267_v29 = vld [vmem:[#allocation3 + $0x48] sm:$0xe] }
  0xa7   : > { %15636 = vmatprep.subr.bf16.mxu0 %v17401_v10  ;;  %v694_v20 = vshrl.u32 %v14879_v41, 16  ;;  %v697_v2 = vshll.u32 %v14879_v41, 16  ;;  %v18277_v41 = vld [vmem:[#allocation3 + $0x10] sm:$0xf] }
  0xa8   : > { %21714 = vst [vmem:[#allocation12_spill] sm:$0xff] %v18277_v41 }
  0xa9   : > { %15621 = vmatmul.mubr.bf16.gmra.mrb[4].mxu0 %v14111_v38  ;;  %v18269_v38 = vrot.slane %v694_v20, 7 }
  0xaa   : > { %15637 = vmatpush3.bf16.msra.mxu0 %v17401_v10  ;;  %15624 = vmatprep.mubr.bf16.mxu0 %v14112_v40  ;;  %v688_v10 = vrot.slane %v686_v15, 7  ;;  %v2158_v40 = vld [vmem:[#allocation3 + $0xc] sm:$0xf] }
  0xab   : > { %15638 = vmatprep.subr.bf16.mxu0 %v17402_v34  ;;  %v2183_v25 = vshrl.u32 %v2158_v40, 16 }
  0xac   : > { %v691_v15 = vor.u32 %v689_v3, %v688_v10  ;;  %v692_v20 = vrot.slane %v688_v10, 4  ;;  %v2186_v10 = vshll.u32 %v2158_v40, 16  ;;  %v14115_v40 = vcombine.low %v18195_v33, %v18201_v48 }
  0xad   : > { %v2185_v33 = vrot.slane %v2183_v25, 4  ;;  %v21718_v25 = vrot.slane %v18059_v47, 5  ;;  %v21722_v47 = vrot.slane %v18078_v8, 5 }
  0xae   : > { %15639 = vmatpush3.bf16.msra.mxu0 %v17402_v34  ;;  %v699_v34 = vor.u32 %v697_v2, %v18269_v38  ;;  %v939_v3 = vsel %vm18003_vm14, %v691_v15, %v938_v58  ;;  %v2192_v2 = vshll.u32 %v18277_v41, 16  ;;  %v18309_v15 = vrot.slane %v21611_v21, 4 }
  0xaf   : > { %15640 = vmatprep.subr.bf16.mxu0 %v17403_v59  ;;  %940 = vst [vmem:[#allocation3 + $0x60] sm:$0xf] %v939_v3  ;;  %v2210_v3 = vshll.u32 %v2161_v12, 16  ;;  %v2188_v42 = vrot.slane %v2186_v10, 5  ;;  %v18335_v10 = vld [vmem:[#allocation3 + $0x20] sm:$0x1] }
  0xb0   : > { %v700_v0 = vsel %vm18010_vm15, %v692_v20, %v699_v34  ;;  %v2202_v20 = vshll.u32 %v18284_v22, 16  ;;  %v2207_v34 = vshrl.u32 %v2161_v12, 16  ;;  %v18316_v58 = vrot.slane %v2192_v2, 5  ;;  %21719 = vst [vmem:[#allocation16_spill] sm:$0xff] %v18335_v10 }
  0xb1   : > { %15625 = vmatmul.mubr.bf16.gmra.mrb[8].mxu0 %v14113_v23  ;;  %941 = vst [vmem:[#allocation3 + $0x64] sm:$0xf] %v700_v0  ;;  %v2196_v23 = vshrl.u32 %v18277_v41, 16  ;;  %v1660_v12 = vsel %vm17970_vm10, %v14125_v53, %v1659_v60  ;;  %v1667_v60 = vsel %vm17970_vm10, %v21721_v50, %v21720_v45  ;;  %v1670_v53 = vsel %vm17970_vm10, %v18252_v56, %v21722_v47  ;;  %v18357_v45 = vld [vmem:[#allocation3 + $0x2c] sm:$0x1] }
  0xb2   : > { %15641 = vmatpush3.bf16.msra.mxu0 %v17403_v59  ;;  %15628 = vmatprep.mubr.bf16.mxu0 %v14114_v37  ;;  %v18305_v37 = vld [vmem:[#allocation3 + $0x1c] sm:$0xf]  ;;  %v2164_v59 = vld [vmem:[#allocation3 + $0x24] sm:$0xf]  ;;  %v18318_v44 = vrot.slane %v2202_v20, 5  ;;  %v2209_v2 = vrot.slane %v2207_v34, 4  ;;  %v2189_v32 = vor.u32 %v2188_v42, %v2185_v33 }
  0xb3   : > { %15642 = vmatprep.subr.bf16.mxu0 %v17404_v30  ;;  %21716 = vst [vmem:[#allocation14_spill] sm:$0xff] %v18305_v37  ;;  %v2198_v55 = vrot.slane %v2196_v23, 4  ;;  %v2216_v21 = vshll.u32 %v18305_v37, 16  ;;  %v2220_v0 = vshrl.u32 %v18305_v37, 16  ;;  %v2212_v23 = vrot.slane %v2210_v3, 5  ;;  %21724 = vst [vmem:[#allocation17_spill] sm:$0xff] %v18357_v45 }
  0xb4   : > { %v2231_v20 = vshrl.u32 %v2164_v59, 16  ;;  %v2234_v62 = vshll.u32 %v2164_v59, 16  ;;  %v2244_v34 = vshrl.u32 %v18322_v49, 16  ;;  %v2226_v8 = vshll.u32 %v18335_v10, 16  ;;  %v2167_v50 = vld [vmem:[#allocation3 + $0x30] sm:$0xf] }
  0xb5   : > { %v18353_v59 = vrot.slane %v2216_v21, 5  ;;  %v2222_v3 = vrot.slane %v2220_v0, 4  ;;  %v2199_v56 = vor.u32 %v2198_v55, %v18316_v58  ;;  %v21726_v47 = vrot.slane %v18237_v36, 9  ;;  %v18367_v0 = vld [vmem:[#allocation3 + $0x34] sm:$0xf]  ;;  %v17409_v33 = vld [vmem:[#allocation4 + $0xc8] sm:$0xff]  }
  0xb6   : > { %15643 = vmatpush3.bf16.msra.mxu0 %v17404_v30  ;;  %v1663_v30 = vsel %vm17970_vm10, %v18248_v52, %v21718_v25  ;;  %v2240_v52 = vshll.u32 %v18322_v49, 16  ;;  %v2233_v42 = vrot.slane %v2231_v20, 4  ;;  %v2236_v21 = vrot.slane %v2234_v62, 5  ;;  %21727 = vst [vmem:[#allocation18_spill] sm:$0xff] %v18367_v0 }
  0xb7   : > { %15644 = vmatprep.subr.bf16.mxu0 %v17405_v7  ;;  %v14133_v25 = vcombine.low %v1660_v12, %v1663_v30  ;;  %v14134_v12 = vcombine.low %v1667_v60, %v1670_v53  ;;  %v21728_v55 = vrot.slane %v18090_v39, 5  ;;  %v2246_v36 = vrot.slane %v2244_v34, 4  ;;  %v277_v60 = vld [vmem:[#allocation3 + $0x68] sm:$0x1]  ;;  %v2170_v34 = vld [vmem:[#allocation3 + $0x3c] sm:$0xf] }
  0xb8   : > { %v21732_v62 = vrot.slane %v18242_v54, 9  ;;  %v18388_v39 = vrot.slane %v2189_v32, 4  ;;  %v2223_v20 = vor.u32 %v2222_v3, %v18353_v59  ;;  %v18391_v53 = vrot.slane %v2199_v56, 4  ;;  %v17410_v3 = vld [vmem:[#allocation4 + $0xd0] sm:$0xff]  }
  0xb9   : > { %15629 = vmatmul.mubr.bf16.gmra.mrb[12].mxu0 %v14115_v40  ;;  %v21723_v40 = vcombine.low %v18191_v28, %v17987_v61  ;;  %v2213_v28 = vor.u32 %v2212_v23, %v2209_v2  ;;  %v18374_v30 = vsel %vm17970_vm10, %v18260_v63, %v21728_v55  ;;  %v21731_v2 = vrot.slane %v18130_v1, 5 }
  0xba   : > { %15645 = vmatpush3.bf16.msra.mxu0 %v17405_v7  ;;  %v21725_v7 = vrot.slane %v18088_v35, 5  ;;  %v18376_v35 = vrot.slane %v2240_v52, 5  ;;  %v2255_v63 = vshrl.u32 %v2167_v50, 16  ;;  %v2258_v52 = vshll.u32 %v2167_v50, 16 }
  0xbb   : > { %15648 = vmatprep.mubr.bf16.mxu0 %v21723_v40  ;;  %15646 = vmatprep.subr.bf16.mxu0 %v17407_v24  ;;  %v18378_v40 = vld [vmem:[#allocation3 + $0x38] sm:$0x1]  ;;  %v18386_v23 = vsel %vm17970_vm10, %v21732_v62, %v21731_v2  ;;  %v2268_v1 = vshrl.u32 %v18367_v0, 16  ;;  %v18395_v54 = vrot.slane %v2213_v28, 4  ;;  %v2250_v32 = vshll.u32 %v18357_v45, 16 }
  0xbc   : > { %v18365_v61 = vsel %vm17970_vm10, %v21726_v47, %v21725_v7  ;;  %21729 = vst [vmem:[#allocation19_spill] sm:$0xff] %v18376_v35  ;;  %21730 = vst [vmem:[#allocation20_spill] sm:$0xff] %v18378_v40  ;;  %v18397_v7 = vrot.slane %v2226_v8, 5  ;;  %v2237_v47 = vor.u32 %v2236_v21, %v2233_v42  ;;  %v21734_v55 = vrot.slane %v18136_v18, 5  ;;  %v18407_v62 = vld [vmem:[#allocation3 + $0x40] sm:$0xf] }
  0xbd   : > { %v2247_v50 = vor.u32 %v2246_v36, %v18376_v35  ;;  %v2274_v2 = vshll.u32 %v18378_v40, 16  ;;  %21735 = vst [vmem:[#allocation22_spill] sm:$0xff] %v18407_v62  ;;  %v278_v8 = vsel %vm17915_vm4, 0, %v277_v60  ;;  %v18412_v28 = vrot.slane %v2223_v20, 4  ;;  %v2173_v21 = vld [vmem:[#allocation3 + $0x48] sm:$0xf] }
  0xbe   : > { %15647 = vmatpush3.bf16.msra.mxu0 %v17407_v24  ;;  %v2264_v24 = vshll.u32 %v18367_v0, 16  ;;  %21733 = vst [vmem:[#allocation21_spill] sm:$0xff] %v18397_v7  ;;  %v1684_v56 = vsel %vm17970_vm10, %v18281_v13, %v21734_v55  ;;  %v2257_v18 = vrot.slane %v2255_v63, 4  ;;  %v2279_v42 = vshrl.u32 %v2170_v34, 16  ;;  %279 = vst [vmem:[#allocation3 + $0x68] sm:$0x1] %v278_v8 }
  0xbf   : > { %15664 = vmatprep.subr.bf16.mxu0 %v17408_v4  ;;  %v2260_v13 = vrot.slane %v2258_v52, 5  ;;  %v2270_v55 = vrot.slane %v2268_v1, 4  ;;  %v2282_v35 = vshll.u32 %v2170_v34, 16  ;;  %v18416_v7 = vrot.slane %v2237_v47, 4  ;;  %v17411_v20 = vld [vmem:[#allocation4 + $0xd8] sm:$0xff]  }
  0xc0   : > { %v18414_v36 = vrot.slane %v2264_v24, 5  ;;  %v18418_v6 = vrot.slane %v2250_v32, 5  ;;  %v21737_v63 = vrot.slane %v18153_v14, 5  ;;  %v21738_v60 = vrot.slane %v18256_v19, 9  ;;  %v18436_v34 = vld [vmem:[#allocation3 + $0x4c] sm:$0xf] }
  0xc1   : > { %15649 = vmatmul.mubr.bf16.vlgmr.msra.gmra.mrb[0].mxu0 %v14133_v25  ;;  %v701_v25 = vrot.slane %v18269_v38, 4  ;;  %v2292_v38 = vshrl.u32 %v18407_v62, 16  ;;  %v18432_v24 = vrot.slane %v2247_v50, 4  ;;  %v18434_v1 = vrot.slane %v2274_v2, 5  ;;  %21741 = vst [vmem:[#allocation26_spill] sm:$0xff] %v18436_v34 }
  0xc2   : > { %15665 = vmatpush3.bf16.msra.mxu0 %v17408_v4  ;;  %15652 = vmatprep.mubr.bf16.mxu0 %v14134_v12  ;;  %21736 = vst [vmem:[#allocation23_spill] sm:$0xff] %v18414_v36  ;;  %v2288_v4 = vshll.u32 %v18407_v62, 16  ;;  %v14135_v12 = vcombine.low %v18365_v61, %v18374_v30  ;;  %v18430_v52 = vsel %vm17970_vm10, %v21738_v60, %v21737_v63  ;;  %v21742_v61 = vrot.slane %v18155_v16, 5  ;;  %v2176_v32 = vld [vmem:[#allocation3 + $0x54] sm:$0xf] }
  0xc3   : > { %15666 = vmatprep.subr.bf16.mxu0 %v17409_v33  ;;  %21739 = vst [vmem:[#allocation24_spill] sm:$0xff] %v18432_v24  ;;  %21740 = vst [vmem:[#allocation25_spill] sm:$0xff] %v18434_v1  ;;  %v14136_v47 = vcombine.low %v18386_v23, %v1684_v56  ;;  %v2303_v19 = vshrl.u32 %v2173_v21, 16  ;;  %v2306_v30 = vshll.u32 %v2173_v21, 16  ;;  %v2261_v8 = vor.u32 %v2260_v13, %v2257_v18  ;;  %v18445_v2 = vld [vmem:[#allocation3 + $0x44] sm:$0x1] }
  0xc4   : > { %v1691_v14 = vsel %vm17970_vm10, %v18296_v57, %v21742_v61  ;;  %v2271_v50 = vor.u32 %v2270_v55, %v18414_v36  ;;  %21743 = vst [vmem:[#allocation27_spill] sm:$0xff] %v18445_v2  ;;  %v2281_v63 = vrot.slane %v2279_v42, 4  ;;  %v2284_v60 = vrot.slane %v2282_v35, 5  ;;  %v18451_v1 = vld [vmem:[#allocation3 + $0x58] sm:$0xf] }
  0xc5   : > { %v2294_v23 = vrot.slane %v2292_v38, 4  ;;  %v2312_v16 = vshll.u32 %v18436_v34, 16  ;;  %v2316_v56 = vshrl.u32 %v18436_v34, 16  ;;  %21744 = vst [vmem:[#allocation28_spill] sm:$0xff] %v18451_v1  ;;  %v21745_v57 = vrot.slane %v18172_v9, 5 }
  0xc6   : > { %15667 = vmatpush3.bf16.msra.mxu0 %v17409_v33  ;;  %v18447_v33 = vrot.slane %v2288_v4, 5  ;;  %v21746_v18 = vrot.slane %v18267_v29, 9  ;;  %v21747_v42 = vrot.slane %v18174_v11, 5  ;;  %v18464_v13 = vld [vmem:[#allocation3 + $0x50] sm:$0x1]  ;;  %v2327_v55 = vshrl.u32 %v2176_v32, 16 }
  0xc7   : > { %15668 = vmatprep.subr.bf16.mxu0 %v17410_v3  ;;  %21748 = vst [vmem:[#allocation29_spill] sm:$0xff] %v18464_v13  ;;  %v2330_v4 = vshll.u32 %v2176_v32, 16  ;;  %v942_v38 = vld [vmem:[#allocation3 + $0x68] sm:$0x1]  ;;  %v2298_v9 = vshll.u32 %v18445_v2, 16  ;;  %v2305_v29 = vrot.slane %v2303_v19, 4  ;;  %v14137_v11 = vcombine.low %v18430_v52, %v1691_v14 }
  0xc8   : > { %v1695_v21 = vsel %vm17970_vm10, %v21746_v18, %v21745_v57  ;;  %v1698_v35 = vsel %vm17970_vm10, %v18309_v15, %v21747_v42  ;;  %v2308_v61 = vrot.slane %v2306_v30, 5  ;;  %v943_v57 = vsel %vm17909_vm3, %v701_v25, %v942_v38  ;;  %v18474_v32 = vld [vmem:[#allocation3 + $0x5c] sm:$0x1]  ;;  %v18479_v24 = vld [vmem:[#allocation3 + $0x64] sm:$0xf]  ;;  %v17423_v2 = vld [vmem:[#allocation4 + $0x118] sm:$0xff]  }
  0xc9   : > { %15653 = vmatmul.mubr.bf16.gmra.mrb[4].mxu0 %v14135_v12  ;;  %v17412_v12 = vld [vmem:[#allocation4 + $0xe0] sm:$0xff]   ;;  %v18470_v18 = vrot.slane %v2261_v8, 4  ;;  %v18472_v15 = vrot.slane %v2271_v50, 4  ;;  %v2285_v42 = vor.u32 %v2284_v60, %v2281_v63  ;;  %21749 = vst [vmem:[#allocation30_spill] sm:$0xff] %v18474_v32  ;;  %944 = vst [vmem:[#allocation3 + $0x68] sm:$0x1] %v943_v57  ;;  %v2295_v36 = vor.u32 %v2294_v23, %v18447_v33 }
  0xca   : > { %15669 = vmatpush3.bf16.msra.mxu0 %v17410_v3  ;;  %15656 = vmatprep.mubr.bf16.mxu0 %v14136_v47  ;;  %v2179_v3 = vld [vmem:[#allocation3 + $0x60] sm:$0xf]  ;;  %v14138_v47 = vcombine.low %v1695_v21, %v1698_v35  ;;  %v18477_v19 = vrot.slane %v2312_v16, 5  ;;  %v2318_v30 = vrot.slane %v2316_v56, 4  ;;  %v2329_v25 = vrot.slane %v2327_v55, 4 }
  0xcb   : > { %15670 = vmatprep.subr.bf16.mxu0 %v17411_v20  ;;  %v2332_v38 = vrot.slane %v2330_v4, 5  ;;  %v2336_v52 = vshll.u32 %v18451_v1, 16  ;;  %v2340_v14 = vshrl.u32 %v18451_v1, 16  ;;  %v17413_v8 = vld [vmem:[#allocation4 + $0xe8] sm:$0xff]   ;;  %v2309_v50 = vor.u32 %v2308_v61, %v2305_v29 }
  0xcc   : > { %21750 = vst [vmem:[#allocation31_spill] sm:$0xff] %v18477_v19  ;;  %v2322_v63 = vshll.u32 %v18464_v13, 16  ;;  %v2351_v60 = vshrl.u32 %v2179_v3, 16  ;;  %v2354_v21 = vshll.u32 %v2179_v3, 16  ;;  %v18484_v23 = vrot.slane %v2285_v42, 4 }
  0xcd   : > { %v18486_v16 = vrot.slane %v2298_v9, 5  ;;  %v2360_v56 = vshll.u32 %v18479_v24, 16  ;;  %v2364_v35 = vshrl.u32 %v18479_v24, 16  ;;  %v21751_v55 = vrot.slane %v18201_v48, 5 }
  0xce   : > { %15671 = vmatpush3.bf16.msra.mxu0 %v17411_v20  ;;  %v21752_v4 = vrot.slane %v18275_v27, 9  ;;  %v18496_v29 = vrot.slane %v2295_v36, 4  ;;  %v2319_v61 = vor.u32 %v2318_v30, %v18477_v19  ;;  %v2346_v57 = vshll.u32 %v18474_v32, 16 }
  0xcf   : > { %15672 = vmatprep.subr.bf16.mxu0 %v17412_v12  ;;  %v21754_v9 = vrot.slane %v18203_v43, 5  ;;  %v2333_v3 = vor.u32 %v2332_v38, %v2329_v25  ;;  %v18505_v48 = vrot.slane %v2336_v52, 5  ;;  %v2342_v27 = vrot.slane %v2340_v14, 4 }
  0xd0   : > { %v1702_v20 = vsel %vm17970_vm10, %v21752_v4, %v21751_v55  ;;  %21753 = vst [vmem:[#allocation32_spill] sm:$0xff] %v18496_v29  ;;  %v17414_v55 = vld [vmem:[#allocation4 + $0xf0] sm:$0xff]   ;;  %v18507_v36 = vrot.slane %v2309_v50, 4  ;;  %v18509_v4 = vrot.slane %v2322_v63, 5  ;;  %v2353_v30 = vrot.slane %v2351_v60, 4 }
  0xd1   : > { %15657 = vmatmul.mubr.bf16.gmra.mrb[8].mxu0 %v14137_v11  ;;  %v1705_v42 = vsel %vm17970_vm10, %v18314_v26, %v21754_v9  ;;  %v2356_v19 = vrot.slane %v2354_v21, 5  ;;  %v18511_v11 = vrot.slane %v2360_v56, 5  ;;  %v2366_v43 = vrot.slane %v2364_v35, 4  ;;  %v18513_v29 = vld [vmem:[#allocation3 + $0xc] sm:$0xe] }
  0xd2   : > { %15673 = vmatpush3.bf16.msra.mxu0 %v17412_v12  ;;  %15660 = vmatprep.mubr.bf16.mxu0 %v14138_v47  ;;  %21755 = vst [vmem:[#allocation33_spill] sm:$0xff] %v18513_v29  ;;  %v17416_v26 = vld [vmem:[#allocation3 + $0xc] sm:$0xff]   ;;  %v18515_v25 = vrot.slane %v2319_v61, 4  ;;  %v18517_v38 = vrot.slane %v2346_v57, 5  ;;  %v14139_v12 = vcombine.low %v1702_v20, %v1705_v42  ;;  %v18519_v52 = vrot.slane %v2333_v3, 4  ;;  %v17417_v20 = vld [vmem:[#allocation4 + $0x100] sm:$0xff]  }
  0xd3   : > { %15674 = vmatprep.subr.bf16.mxu0 %v17413_v8  ;;  %v17415_v47 = vld [vmem:[#allocation4 + $0xf8] sm:$0xff]   ;;  %v2343_v14 = vor.u32 %v2342_v27, %v18505_v48  ;;  %v21618_v50 = vrot.slane %v18277_v41, 5  ;;  %v18523_v63 = vld [vmem:[#allocation3 + $0x18] sm:$0xe]  ;;  %v2357_v60 = vor.u32 %v2356_v19, %v2353_v30  ;;  %v2367_v21 = vor.u32 %v2366_v43, %v18511_v11  ;;  %v18531_v9 = vld [vmem:[#allocation3 + $0x24] sm:$0xe] }
  0xd4   : > { %21756 = vst [vmem:[#allocation34_spill] sm:$0xff] %v18523_v63  ;;  %v21619_v35 = vrot.slane %v18305_v37, 5  ;;  %21757 = vst [vmem:[#allocation35_spill] sm:$0xff] %v18531_v9  ;;  %v17418_v3 = vld [vmem:[#allocation3 + $0x18] sm:$0xff]   ;;  %v17420_v43 = vld [vmem:[#allocation3 + $0x24] sm:$0xff]   ;;  %v21771_v40 = vrot.slane %v18407_v62, 5 }
  0xd5   : > { %v18528_v61 = vrot.slane %v2343_v14, 4  ;;  %v18533_v42 = vrot.slane %v2357_v60, 4  ;;  %v18538_v27 = vrot.slane %v2367_v21, 4  ;;  %v18542_v30 = vrot.slane %v21618_v50, 4  ;;  %v17419_v14 = vld [vmem:[#allocation4 + $0x108] sm:$0xff]   ;;  %v17421_v60 = vld [vmem:[#allocation4 + $0x110] sm:$0xff]  }
  0xd6   : > { %15675 = vmatpush3.bf16.msra.mxu0 %v17413_v8  ;;  %v18536_v8 = vld [vmem:[#allocation3 + $0x30] sm:$0xe]  ;;  %v18553_v19 = vld [vmem:[#allocation3 + $0x48] sm:$0xe]  ;;  %v224_v57 = vld [vmem:[#allocation3 + $0x6c] sm:$0x1] }
  0xd7   : > { %15676 = vmatprep.subr.bf16.mxu0 %v17414_v55  ;;  %21758 = vst [vmem:[#allocation36_spill] sm:$0xff] %v18536_v8  ;;  %21759 = vst [vmem:[#allocation37_spill] sm:$0xff] %v18538_v27  ;;  %v18556_v50 = vld [vmem:[#allocation3 + $0x54] sm:$0xe]  ;;  %v18575_v63 = vld [vmem:[#allocation3 + $0x60] sm:$0xe] }
  0xd8   : > { %21760 = vst [vmem:[#allocation38_spill] sm:$0xff] %v18542_v30  ;;  %21763 = vst [vmem:[#allocation41_spill] sm:$0xff] %v18553_v19  ;;  %v21769_v21 = vrot.slane %v18367_v0, 5  ;;  %v3131_v0 = vld [vmem:[#allocation3 + $0x30] sm:$0xf]  ;;  %v17427_v37 = vld [vmem:[#allocation4 + $0x128] sm:$0xff]  }
  0xd9   : > { %15661 = vmatmul.mubr.bf16.gmra.mrb[12].mxu0 %v14139_v12  ;;  %v18549_v12 = vld [vmem:[#allocation3 + $0x3c] sm:$0xe]  ;;  %21764 = vst [vmem:[#allocation42_spill] sm:$0xff] %v18556_v50  ;;  %21768 = vst [vmem:[#allocation45_spill] sm:$0xff] %v18575_v63  ;;  %v21775_v50 = vrot.slane %v18451_v1, 5  ;;  %v17428_v30 = vld [vmem:[#allocation3 + $0x54] sm:$0xff]  }
  0xda   : > { %15677 = vmatpush3.bf16.msra.mxu0 %v17414_v55  ;;  %15680 = vmatprep.mubr.bf16.mxu0 %v17416_v26  ;;  %v18546_v55 = vrot.slane %v21619_v35, 4  ;;  %21762 = vst [vmem:[#allocation40_spill] sm:$0xff] %v18549_v12  ;;  %v225_v35 = vsel %vm17909_vm3, 0, %v224_v57  ;;  %v356_v26 = vld [vmem:[%s17926_s6 + $0x88] sm:$0xff]  ;;  %v21766_v57 = vrot.slane %v18322_v49, 5  ;;  %v18579_v10 = vrot.slane %v21769_v21, 4 }
  0xdb   : > { %15678 = vmatprep.subr.bf16.mxu0 %v17415_v47  ;;  %226 = vst [vmem:[#allocation3 + $0x6c] sm:$0x1] %v225_v35  ;;  %389 = vst.msk [vmem:[#allocation2 + $0x88] sm:$0xff] %vm371_vm5, %v356_v26  ;;  %v18589_v21 = vrot.slane %v21771_v40, 4  ;;  %v21773_v35 = vrot.slane %v18436_v34, 5  ;;  %v17424_v26 = vld [vmem:[#allocation3 + $0x3c] sm:$0xff]   ;;  %v2195_v40 = vsel %vm17978_vm11, %v18388_v39, %v18316_v58 }
  0xdc   : > { %21761 = vst [vmem:[#allocation39_spill] sm:$0xff] %v18546_v55  ;;  %v355_v55 = vld [vmem:[%s17926_s6 + $0x80] sm:$0xff]  ;;  %v18572_v56 = vrot.slane %v21766_v57, 4  ;;  %21770 = vst [vmem:[#allocation46_spill] sm:$0xff] %v18579_v10  ;;  %v17422_v57 = vld [vmem:[#allocation3 + $0x30] sm:$0xff]   ;;  %v18610_v8 = vrot.slane %v21775_v50, 4 }
  0xdd   : > { %388 = vst.msk [vmem:[#allocation2 + $0x80] sm:$0xff] %vm371_vm5, %v355_v55  ;;  %v3125_v55 = vld [vmem:[#allocation3 + $0x18] sm:$0xf]  ;;  %21772 = vst [vmem:[#allocation47_spill] sm:$0xff] %v18589_v21  ;;  %v18593_v12 = vrot.slane %v21773_v35, 4  ;;  %v2205_v35 = vsel %vm17978_vm11, %v18391_v53, %v18318_v44 }
  0xde   : > { %15679 = vmatpush3.bf16.msra.mxu0 %v17415_v47  ;;  %v18568_v47 = vld [vmem:[#allocation3 + $0x68] sm:$0x1]  ;;  %21767 = vst [vmem:[#allocation44_spill] sm:$0xff] %v18572_v56  ;;  %v3150_v13 = vshrl.u32 %v3125_v55, 16  ;;  %v3153_v19 = vshll.u32 %v3125_v55, 16  ;;  %21776 = vst [vmem:[#allocation49_spill] sm:$0xff] %v18610_v8  ;;  %v18624_v21 = vcombine.low %v2195_v40, %v2205_v35 }
  0xdf   : > { %15696 = vmatprep.subr.bf16.mxu0 %v17417_v20  ;;  %21765 = vst [vmem:[#allocation43_spill] sm:$0xff] %v18568_v47  ;;  %21774 = vst [vmem:[#allocation48_spill] sm:$0xff] %v18593_v12  ;;  %v17425_v34 = vld [vmem:[#allocation4 + $0x120] sm:$0xff]   ;;  %v18632_v39 = vld [vmem:[#allocation3 + $0x34] sm:$0xf] }
  0xe0   : > { %v18620_v1 = vrot.slane %v3150_v13, 4  ;;  %v18622_v50 = vrot.slane %v3153_v19, 5  ;;  %v3207_v45 = vshll.u32 %v18632_v39, 16  ;;  %v3211_v49 = vshrl.u32 %v18632_v39, 16 }
  0xe1   : > { %15681 = vmatmul.mubr.bf16.vlgmr.msra.gmra.mrb[0].mxu0 %v17418_v3  ;;  %v2370_v3 = vshll.u32 %v18568_v47, 16 }
  0xe2   : > { %15697 = vmatpush3.bf16.msra.mxu0 %v17417_v20  ;;  %15684 = vmatprep.mubr.bf16.mxu0 %v17420_v43  ;;  %v18596_v43 = vld [vmem:[#allocation3 + $0x1c] sm:$0xf]  ;;  %v3128_v20 = vld [vmem:[#allocation3 + $0x24] sm:$0xf]  ;;  %v421_v63 = vld [vmem:[#allocation2 + $0x88] sm:$0xff] }
  0xe3   : > { %15698 = vmatprep.subr.bf16.mxu0 %v17419_v14  ;;  %v3159_v32 = vshll.u32 %v18596_v43, 16  ;;  %v3163_v12 = vshrl.u32 %v18596_v43, 16  ;;  %v18615_v58 = vrot.slane %v2370_v3, 5  ;;  %v453_v53 = vmax.f32 %v421_v63, 0.0  ;;  %v18626_v3 = vld [vmem:[#allocation3 + $0x20] sm:$0x1] }
  0xe4   : > { %v420_v55 = vld [vmem:[#allocation2 + $0x80] sm:$0xff]  ;;  %v3174_v9 = vshrl.u32 %v3128_v20, 16  ;;  %v3177_v8 = vshll.u32 %v3128_v20, 16  ;;  %v945_v22 = vld [vmem:[#allocation3 + $0x6c] sm:$0xf] }
  0xe5   : > { %21777 = vst [vmem:[#allocation50_spill] sm:$0xff] %v18615_v58  ;;  %v452_v44 = vmax.f32 %v420_v55, 0.0  ;;  %v14881_v10 = vpack.c.bf16 %v453_v53, %v453_v53  ;;  %v18628_v63 = vrot.slane %v3159_v32, 5  ;;  %v3165_v55 = vrot.slane %v3163_v12, 4  ;;  %v18634_v53 = vld [vmem:[#allocation3 + $0x2c] sm:$0x1] }
  0xe6   : > { %15699 = vmatpush3.bf16.msra.mxu0 %v17419_v14  ;;  %v18618_v14 = vld [vmem:[#allocation3 + $0x28] sm:$0xf]  ;;  %v3176_v47 = vrot.slane %v3174_v9, 4  ;;  %v3201_v32 = vshll.u32 %v3131_v0, 16  ;;  %v3169_v9 = vshll.u32 %v18626_v3, 16 }
  0xe7   : > { %15700 = vmatprep.subr.bf16.mxu0 %v17421_v60  ;;  %v14880_v62 = vpack.c.bf16 %v452_v44, %v452_v44  ;;  %21778 = vst [vmem:[#allocation51_spill] sm:$0xff] %v18628_v63  ;;  %v3183_v13 = vshll.u32 %v18618_v14, 16  ;;  %v3187_v19 = vshrl.u32 %v18618_v14, 16  ;;  %v711_v35 = vshrl.u32 %v14881_v10, 16 }
  0xe8   : > { %v714_v44 = vshll.u32 %v14881_v10, 16  ;;  %v3156_v10 = vor.u32 %v18622_v50, %v18620_v1  ;;  %v3203_v58 = vrot.slane %v3201_v32, 5  ;;  %v17429_v1 = vld [vmem:[#allocation4 + $0x130] sm:$0xff]  }
  0xe9   : > { %15685 = vmatmul.mubr.bf16.gmra.mrb[4].mxu0 %v17422_v57  ;;  %v17426_v57 = vld [vmem:[#allocation3 + $0x48] sm:$0xff]   ;;  %v703_v20 = vshrl.u32 %v14880_v62, 16  ;;  %v706_v40 = vshll.u32 %v14880_v62, 16  ;;  %v18636_v12 = vrot.slane %v711_v35, 7  ;;  %v3166_v62 = vor.u32 %v3165_v55, %v18628_v63  ;;  %v18652_v63 = vld [vmem:[#allocation3 + $0x38] sm:$0x1] }
  0xea   : > { %15701 = vmatpush3.bf16.msra.mxu0 %v17421_v60  ;;  %15688 = vmatprep.mubr.bf16.mxu0 %v17424_v26  ;;  %v3179_v60 = vrot.slane %v3177_v8, 5  ;;  %v3198_v26 = vshrl.u32 %v3131_v0, 16  ;;  %v3193_v0 = vshll.u32 %v18634_v53, 16  ;;  %v18646_v46 = vrot.slane %v3183_v13, 5  ;;  %v21781_v13 = vld [vmem:[#allocation21_spill] sm:$0xff] }
  0xeb   : > { %15702 = vmatprep.subr.bf16.mxu0 %v17423_v2  ;;  %v705_v56 = vrot.slane %v703_v20, 7  ;;  %v716_v35 = vor.u32 %v714_v44, %v18636_v12  ;;  %v3189_v41 = vrot.slane %v3187_v19, 4  ;;  %v2229_v19 = vsel %vm17978_vm11, %v18412_v28, %v21781_v13  ;;  %v18680_v44 = vld [vmem:[#allocation3 + $0x44] sm:$0x1] }
  0xec   : > { %21779 = vst [vmem:[#allocation52_spill] sm:$0xff] %v18646_v46  ;;  %v3180_v29 = vor.u32 %v3179_v60, %v3176_v47  ;;  %v3200_v27 = vrot.slane %v3198_v26, 4  ;;  %v2219_v47 = vsel %vm17978_vm11, %v18395_v54, %v18353_v59  ;;  %v21784_v54 = vld [vmem:[#allocation24_spill] sm:$0xff]  ;;  %v18682_v26 = vrot.slane %v3156_v10, 4 }
  0xed   : > { %v708_v8 = vor.u32 %v706_v40, %v705_v56  ;;  %v709_v20 = vrot.slane %v705_v56, 4  ;;  %v18654_v56 = vrot.slane %v3207_v45, 5  ;;  %v3213_v40 = vrot.slane %v3211_v49, 4  ;;  %v18668_v45 = vld [vmem:[#allocation3 + $0x40] sm:$0xf] }
  0xee   : > { %15703 = vmatpush3.bf16.msra.mxu0 %v17423_v2  ;;  %v3134_v2 = vld [vmem:[#allocation3 + $0x3c] sm:$0xf]  ;;  %v2253_v28 = vsel %vm17978_vm11, %v21784_v54, %v18418_v6  ;;  %v18684_v32 = vrot.slane %v3166_v62, 4  ;;  %v18689_v13 = vrot.slane %v3193_v0, 5  ;;  %v3231_v10 = vshll.u32 %v18668_v45, 16  ;;  %v21789_v0 = vld [vmem:[#allocation25_spill] sm:$0xff] }
  0xef   : > { %15704 = vmatprep.subr.bf16.mxu0 %v17425_v34  ;;  %v717_v50 = vsel %vm18010_vm15, %v709_v20, %v716_v35  ;;  %v946_v55 = vsel %vm18003_vm14, %v708_v8, %v945_v22  ;;  %21780 = vst [vmem:[#allocation53_spill] sm:$0xff] %v18654_v56  ;;  %v3222_v49 = vshrl.u32 %v3134_v2, 16  ;;  %v3225_v60 = vshll.u32 %v3134_v2, 16  ;;  %v3137_v35 = vld [vmem:[#allocation3 + $0x48] sm:$0xf] }
  0xf0   : > { %947 = vst [vmem:[#allocation3 + $0x6c] sm:$0xf] %v946_v55  ;;  %948 = vst [vmem:[#allocation3 + $0x70] sm:$0xf] %v717_v50  ;;  %v3190_v8 = vor.u32 %v3189_v41, %v18646_v46  ;;  %v3204_v20 = vor.u32 %v3203_v58, %v3200_v27  ;;  %v17430_v50 = vld [vmem:[#allocation3 + $0x60] sm:$0xff]   ;;  %v18687_v55 = vrot.slane %v3180_v29, 4  ;;  %v3214_v6 = vor.u32 %v3213_v40, %v18654_v56 }
  0xf1   : > { %15689 = vmatmul.mubr.bf16.gmra.mrb[8].mxu0 %v17426_v57  ;;  %v21782_v57 = vrot.slane %v18479_v24, 5  ;;  %21785 = vst [vmem:[#allocation21_spill] sm:$0xff] %v18684_v32  ;;  %21787 = vst [vmem:[#allocation24_spill] sm:$0xff] %v18689_v13  ;;  %v3224_v2 = vrot.slane %v3222_v49, 4  ;;  %v3235_v62 = vshrl.u32 %v18668_v45, 16  ;;  %v3241_v41 = vshll.u32 %v18680_v44, 16 }
  0xf2   : > { %15705 = vmatpush3.bf16.msra.mxu0 %v17425_v34  ;;  %15692 = vmatprep.mubr.bf16.mxu0 %v17428_v30  ;;  %v21783_v34 = vld [vmem:[#allocation19_spill] sm:$0xff]  ;;  %v18678_v30 = vrot.slane %v3169_v9, 5  ;;  %v3217_v9 = vshll.u32 %v18652_v63, 16  ;;  %v18696_v27 = vld [vmem:[#allocation3 + $0x4c] sm:$0xf]  ;;  %v3227_v40 = vrot.slane %v3225_v60, 5 }
  0xf3   : > { %v18666_v22 = vrot.slane %v21782_v57, 4  ;;  %15706 = vmatprep.subr.bf16.mxu0 %v17427_v37  ;;  %v2243_v59 = vsel %vm17978_vm11, %v18416_v7, %v21783_v34  ;;  %v17431_v7 = vld [vmem:[#allocation4 + $0x138] sm:$0xff]   ;;  %21786 = vst [vmem:[#allocation19_spill] sm:$0xff] %v18687_v55  ;;  %v21788_v58 = vld [vmem:[#allocation23_spill] sm:$0xff]  ;;  %v3246_v57 = vshrl.u32 %v3137_v35, 16  ;;  %v18707_v34 = vrot.slane %v3190_v8, 4 }
  0xf4   : > { %v2267_v29 = vsel %vm17978_vm11, %v18470_v18, %v21788_v58  ;;  %v18709_v54 = vrot.slane %v3204_v20, 4  ;;  %v3249_v31 = vshll.u32 %v3137_v35, 16  ;;  %v17432_v56 = vld [vmem:[#allocation4 + $0x140] sm:$0xff]   ;;  %v2291_v18 = vsel %vm17978_vm11, %v18484_v23, %v18447_v33  ;;  %v21792_v58 = vld [vmem:[#allocation32_spill] sm:$0xff] }
  0xf5   : > { %21790 = vst [vmem:[#allocation23_spill] sm:$0xff] %v18707_v34  ;;  %v18719_v60 = vrot.slane %v3214_v6, 4  ;;  %v18721_v8 = vrot.slane %v3217_v9, 5  ;;  %v18724_v20 = vrot.slane %v3231_v10, 5  ;;  %v18726_v35 = vrot.slane %v3235_v62, 4 }
  0xf6   : > { %15707 = vmatpush3.bf16.msra.mxu0 %v17427_v37  ;;  %v2277_v37 = vsel %vm17978_vm11, %v18472_v15, %v21789_v0  ;;  %21791 = vst [vmem:[#allocation25_spill] sm:$0xff] %v18709_v54  ;;  %v2301_v15 = vsel %vm17978_vm11, %v21792_v58, %v18486_v16  ;;  %v18730_v0 = vld [vmem:[#allocation3 + $0x50] sm:$0x1]  ;;  %v3255_v33 = vshll.u32 %v18696_v27, 16  ;;  %v18733_v23 = vld [vmem:[#allocation3 + $0x58] sm:$0xf]  ;;  %v3228_v16 = vor.u32 %v3227_v40, %v3224_v2 }
  0xf7   : > { %15708 = vmatprep.subr.bf16.mxu0 %v17429_v1  ;;  %21793 = vst [vmem:[#allocation32_spill] sm:$0xff] %v18719_v60  ;;  %21794 = vst [vmem:[#allocation54_spill] sm:$0xff] %v18721_v8  ;;  %v18735_v6 = vrot.slane %v3246_v57, 4  ;;  %v3143_v9 = vld [vmem:[#allocation3 + $0x60] sm:$0xf]  ;;  %v14166_v10 = vcombine.low %v2243_v59, %v2253_v28  ;;  %v3251_v58 = vrot.slane %v3249_v31, 5  ;;  %v18742_v60 = vcombine.low %v2291_v18, %v2301_v15 }
  0xf8   : > { %21795 = vst [vmem:[#allocation55_spill] sm:$0xff] %v18724_v20  ;;  %21797 = vst [vmem:[#allocation57_spill] sm:$0xff] %v18730_v0  ;;  %v3270_v62 = vshrl.u32 %v3140_v17, 16  ;;  %v18738_v49 = vld [vmem:[#allocation3 + $0x64] sm:$0xf]  ;;  %v3273_v8 = vshll.u32 %v3140_v17, 16  ;;  %v3238_v17 = vor.u32 %v18726_v35, %v18724_v20 }
  0xf9   : > { %15693 = vmatmul.mubr.bf16.gmra.mrb[12].mxu0 %v17430_v50  ;;  %v18728_v50 = vrot.slane %v3241_v41, 5  ;;  %v17433_v41 = vld [vmem:[#allocation4 + $0x148] sm:$0xff]   ;;  %v3279_v54 = vshll.u32 %v18733_v23, 16  ;;  %v280_v2 = vld [vmem:[#allocation3 + $0x74] sm:$0x1]  ;;  %v18745_v57 = vrot.slane %v3255_v33, 5  ;;  %v3252_v18 = vor.u32 %v3251_v58, %v18735_v6 }
  0xfa   : > { %15709 = vmatpush3.bf16.msra.mxu0 %v17429_v1  ;;  %15712 = vmatprep.mubr.bf16.mxu0 %v18624_v21  ;;  %v3259_v1 = vshrl.u32 %v18696_v27, 16  ;;  %v14165_v21 = vcombine.low %v2219_v47, %v2229_v19  ;;  %v3146_v40 = vld [vmem:[#allocation3 + $0x6c] sm:$0xf]  ;;  %v3283_v47 = vshrl.u32 %v18733_v23, 16  ;;  %v3294_v19 = vshrl.u32 %v3143_v9, 16 }
  0xfb   : > { %21796 = vst [vmem:[#allocation56_spill] sm:$0xff] %v18728_v50  ;;  %15710 = vmatprep.subr.bf16.mxu0 %v17431_v7  ;;  %v18740_v50 = vcombine.low %v2267_v29, %v2277_v37  ;;  %v3297_v31 = vshll.u32 %v3143_v9, 16  ;;  %v18748_v59 = vrot.slane %v3228_v16, 4  ;;  %v3265_v29 = vshll.u32 %v18730_v0, 16  ;;  %v18756_v33 = vld [vmem:[#allocation3 + $0x70] sm:$0xf] }
  0xfc   : > { %v3261_v28 = vrot.slane %v3259_v1, 4  ;;  %v3303_v37 = vshll.u32 %v18738_v49, 16  ;;  %v3307_v15 = vshrl.u32 %v18738_v49, 16  ;;  %v17434_v9 = vld [vmem:[#allocation4 + $0x150] sm:$0xff]   ;;  %v18758_v34 = vld [vmem:[#allocation3 + $0x5c] sm:$0x1] }
  0xfd   : > { %21798 = vst [vmem:[#allocation58_spill] sm:$0xff] %v18748_v59  ;;  %21799 = vst [vmem:[#allocation59_spill] sm:$0xff] %v18758_v34  ;;  %v3275_v16 = vrot.slane %v3273_v8, 5  ;;  %v18760_v1 = vrot.slane %v3279_v54, 5  ;;  %v281_v13 = vsel %vm17915_vm4, 0, %v280_v2  ;;  %v3318_v55 = vshrl.u32 %v3146_v40, 16 }
  0xfe   : > { %15711 = vmatpush3.bf16.msra.mxu0 %v17431_v7  ;;  %v3272_v7 = vrot.slane %v3270_v62, 4  ;;  %v3285_v35 = vrot.slane %v3283_v47, 4  ;;  %v18764_v6 = vld [vmem:[#allocation3 + $0x68] sm:$0x1]  ;;  %v3296_v58 = vrot.slane %v3294_v19, 4  ;;  %v3299_v62 = vrot.slane %v3297_v31, 5 }
  0xff   : > { %15728 = vmatprep.subr.bf16.mxu0 %v17432_v56  ;;  %21801 = vst [vmem:[#allocation60_spill] sm:$0xff] %v18764_v6  ;;  %282 = vst [vmem:[#allocation3 + $0x74] sm:$0x1] %v281_v13  ;;  %v3321_v20 = vshll.u32 %v3146_v40, 16  ;;  %v3309_v46 = vrot.slane %v3307_v15, 4  ;;  %v3327_v54 = vshll.u32 %v18756_v33, 16  ;;  %v2325_v15 = vsel %vm17978_vm11, %v18515_v25, %v18509_v4 }
 0x100   : > { %v3331_v8 = vshrl.u32 %v18756_v33, 16  ;;  %v21802_v59 = vld [vmem:[#allocation31_spill] sm:$0xff]  ;;  %v3320_v2 = vrot.slane %v3318_v55, 4  ;;  %v17435_v19 = vld [vmem:[#allocation4 + $0x158] sm:$0xff]   ;;  %v3276_v13 = vor.u32 %v3275_v16, %v3272_v7  ;;  %v3289_v40 = vshll.u32 %v18758_v34, 16 }
 0x101   : > { %15713 = vmatmul.mubr.bf16.vlgmr.msra.gmra.mrb[0].mxu0 %v14165_v21  ;;  %v18766_v21 = vrot.slane %v3303_v37, 5  ;;  %v3323_v47 = vrot.slane %v3321_v20, 5  ;;  %v18776_v31 = vrot.slane %v3327_v54, 5  ;;  %v18782_v32 = vrot.slane %v3238_v17, 4  ;;  %v17439_v34 = vld [vmem:[#allocation4 + $0x178] sm:$0xff]  }
 0x102   : > { %15729 = vmatpush3.bf16.msra.mxu0 %v17432_v56  ;;  %15716 = vmatprep.mubr.bf16.mxu0 %v14166_v10  ;;  %v2315_v56 = vsel %vm17978_vm11, %v18507_v36, %v21802_v59  ;;  %v3262_v10 = vor.u32 %v3261_v28, %v18745_v57  ;;  %v3333_v37 = vrot.slane %v3331_v8, 4  ;;  %v3286_v36 = vor.u32 %v3285_v35, %v18760_v1  ;;  %v21822_v0 = vld [vmem:[#allocation34_spill] sm:$0xff] }
 0x103   : > { %15730 = vmatprep.subr.bf16.mxu0 %v17433_v41  ;;  %v3313_v55 = vshll.u32 %v18764_v6, 16  ;;  %v18786_v20 = vrot.slane %v3252_v18, 4  ;;  %v18788_v59 = vrot.slane %v3265_v29, 5  ;;  %v3300_v28 = vor.u32 %v3299_v62, %v3296_v58  ;;  %v18810_v58 = vld [vmem:[#allocation3 + $0x24] sm:$0xe] }
 0x104   : > { %v3310_v7 = vor.u32 %v3309_v46, %v18766_v21  ;;  %v18793_v16 = vrot.slane %v3262_v10, 4  ;;  %v3324_v54 = vor.u32 %v3323_v47, %v3320_v2  ;;  %v3334_v4 = vor.u32 %v3333_v37, %v18776_v31  ;;  %v18830_v47 = vld [vmem:[#allocation3 + $0x3c] sm:$0xe]  ;;  %v21808_v2 = vld [vmem:[#allocation12_spill] sm:$0xff] }
 0x105   : > { %v21656_v25 = vrot.slane %v18596_v43, 5  ;;  %v2339_v29 = vsel %vm17978_vm11, %v18519_v52, %v18505_v48  ;;  %v2349_v46 = vsel %vm17978_vm11, %v18528_v61, %v18517_v38  ;;  %v18806_v17 = vrot.slane %v3276_v13, 4  ;;  %v18822_v61 = vld [vmem:[#allocation3 + $0x30] sm:$0xe] }
 0x106   : > { %15731 = vmatpush3.bf16.msra.mxu0 %v17433_v41  ;;  %v18791_v41 = vld [vmem:[#allocation3 + $0x18] sm:$0xe]  ;;  %v18808_v18 = vrot.slane %v3289_v40, 5  ;;  %v949_v35 = vld [vmem:[#allocation3 + $0x74] sm:$0x1]  ;;  %v18813_v62 = vrot.slane %v3286_v36, 4  ;;  %v14169_v36 = vcombine.low %v2315_v56, %v2325_v15 }
 0x107   : > { %15732 = vmatprep.subr.bf16.mxu0 %v17434_v9  ;;  %v18815_v8 = vrot.slane %v3313_v55, 5  ;;  %v21803_v48 = vrot.slane %v18636_v12, 4  ;;  %v21653_v52 = vrot.slane %v18618_v14, 5  ;;  %v18824_v10 = vrot.slane %v3300_v28, 4  ;;  %v17437_v55 = vld [vmem:[#allocation4 + $0x168] sm:$0xff]  }
 0x108   : > { %v18832_v12 = vrot.slane %v3324_v54, 4  ;;  %v18834_v13 = vrot.slane %v3334_v4, 4  ;;  %v18838_v40 = vrot.slane %v21656_v25, 4  ;;  %v21654_v28 = vrot.slane %v18632_v39, 5  ;;  %v18852_v15 = vld [vmem:[#allocation3 + $0x54] sm:$0xe] }
 0x109   : > { %15717 = vmatmul.mubr.bf16.gmra.mrb[4].mxu0 %v18740_v50  ;;  %v17436_v50 = vld [vmem:[#allocation4 + $0x160] sm:$0xff]   ;;  %v950_v38 = vsel %vm17909_vm3, %v21803_v48, %v949_v35  ;;  %v14170_v35 = vcombine.low %v2339_v29, %v2349_v46  ;;  %v18845_v54 = vrot.slane %v21653_v52, 4  ;;  %v18848_v48 = vld [vmem:[#allocation3 + $0x48] sm:$0xe]  ;;  %21805 = vst [vmem:[#allocation61_spill] sm:$0xff] %v18852_v15  ;;  %v21806_v29 = vld [vmem:[#allocation50_spill] sm:$0xff] }
 0x10a   : > { %15733 = vmatpush3.bf16.msra.mxu0 %v17434_v9  ;;  %15720 = vmatprep.mubr.bf16.mxu0 %v18742_v60  ;;  %v18826_v9 = vrot.slane %v3310_v7, 4  ;;  %951 = vst [vmem:[#allocation3 + $0x74] sm:$0x1] %v950_v38  ;;  %v21655_v7 = vrot.slane %v18668_v45, 5  ;;  %21804 = vst [vmem:[#allocation31_spill] sm:$0xff] %v18848_v48  ;;  %v21807_v46 = vld [vmem:[#allocation37_spill] sm:$0xff] }
 0x10b   : > { %15734 = vmatprep.subr.bf16.mxu0 %v17435_v19  ;;  %v2373_v37 = vsel %vm17978_vm11, %v21807_v46, %v21806_v29  ;;  %v18866_v56 = vrot.slane %v21654_v28, 4  ;;  %v17438_v29 = vld [vmem:[#allocation4 + $0x170] sm:$0xff]   ;;  %v21809_v60 = vrot.slane %v21808_v2, 5  ;;  %v21817_v4 = vrot.slane %v18696_v27, 5  ;;  %v18895_v28 = vld [vmem:[#allocation3 + $0x60] sm:$0xe] }
 0x10c   : > { %v18870_v38 = vrot.slane %v21655_v7, 4  ;;  %v21810_v7 = vld [vmem:[#allocation33_spill] sm:$0xff]  ;;  %21819 = vst [vmem:[#allocation12_spill] sm:$0xff] %v18895_v28  ;;  %v21824_v48 = vld [vmem:[#allocation16_spill] sm:$0xff]  ;;  %v17688_v52 = vld [vmem:[#allocation4 + $0x2b8] sm:$0xff]  }
 0x10d   : > { %v21811_v25 = vrot.slane %v21810_v7, 9  ;;  %v18898_v15 = vld [vmem:[#allocation3 + $0x6c] sm:$0xe]  ;;  %v21825_v2 = vrot.slane %v21824_v48, 5  ;;  %v17472_v48 = vld [vmem:[%s21603_s2] sm:$0xff]  }
 0x10e   : > { %15735 = vmatpush3.bf16.msra.mxu0 %v17435_v19  ;;  %v2363_v19 = vsel %vm17978_vm11, %v18533_v42, %v18511_v11  ;;  %v21813_v42 = vld [vmem:[#allocation13_spill] sm:$0xff]  ;;  %15856 = vmatprep.subr.bf16.mxu1 %v17472_v48 }
 0x10f   : > { %15736 = vmatprep.subr.bf16.mxu0 %v17436_v50  ;;  %v2619_v11 = vsel %vm17970_vm10, %v21811_v25, %v21809_v60  ;;  %v14171_v7 = vcombine.low %v2363_v19, %v2373_v37  ;;  %v21826_v37 = vld [vmem:[#allocation39_spill] sm:$0xff]  ;;  %15857 = vmatpush3.bf16.msra.mxu1 %v17472_v48 }
 0x110   : > { %v2629_v19 = vsel %vm17970_vm10, %v21826_v37, %v21825_v2  ;;  %v17473_v2 = vld [vmem:[%s21603_s2 + $0x8] sm:$0xff]   ;;  %v21830_v37 = vrot.slane %v18756_v33, 5 }
 0x111   : > { %15721 = vmatmul.mubr.bf16.gmra.mrb[8].mxu0 %v14169_v36  ;;  %v18889_v5 = vld [vmem:[#allocation3 + $0x74] sm:$0x1]  ;;  %v18893_v36 = vrot.slane %v21817_v4, 4  ;;  %v21823_v4 = vrot.slane %v21822_v0, 9  ;;  %v21832_v0 = vld [vmem:[#allocation15_spill] sm:$0xff]  ;;  %15858 = vmatprep.subr.bf16.mxu1 %v17473_v2 }
 0x112   : > { %15737 = vmatpush3.bf16.msra.mxu0 %v17436_v50  ;;  %15724 = vmatprep.mubr.bf16.mxu0 %v14170_v35  ;;  %v21814_v50 = vrot.slane %v21813_v42, 5  ;;  %v21815_v35 = vld [vmem:[#allocation38_spill] sm:$0xff]  ;;  %21816 = vst [vmem:[#allocation50_spill] sm:$0xff] %v18889_v5  ;;  %v3337_v60 = vshll.u32 %v18889_v5, 16 }
 0x113   : > { %15738 = vmatprep.subr.bf16.mxu0 %v17437_v55  ;;  %21818 = vst [vmem:[#allocation37_spill] sm:$0xff] %v18893_v36  ;;  %15859 = vmatpush3.bf16.msra.mxu1 %v17473_v2  ;;  %v21846_v2 = vld [vmem:[#allocation22_spill] sm:$0xff] }
 0x114   : > { %v2622_v46 = vsel %vm17970_vm10, %v21815_v35, %v21814_v50  ;;  %v21820_v50 = vld [vmem:[#allocation14_spill] sm:$0xff] }
 0x115   : > { %v14188_v25 = vcombine.low %v2619_v11, %v2622_v46  ;;  %v21821_v35 = vrot.slane %v21820_v50, 5  ;;  %v21828_v50 = vrot.slane %v18738_v49, 5  ;;  %v21833_v46 = vrot.slane %v21832_v0, 5 }
 0x116   : > { %15739 = vmatpush3.bf16.msra.mxu0 %v17437_v55  ;;  %v21827_v55 = vrot.slane %v18733_v23, 5 }
 0x117   : > { %15740 = vmatprep.subr.bf16.mxu0 %v17438_v29  ;;  %v2626_v36 = vsel %vm17970_vm10, %v21823_v4, %v21821_v35  ;;  %v18920_v42 = vrot.slane %v21828_v50, 4  ;;  %v18929_v35 = vrot.slane %v3337_v60, 5  ;;  %v21838_v60 = vld [vmem:[#allocation44_spill] sm:$0xff] }
 0x118   : > { %v18915_v11 = vrot.slane %v21827_v55, 4  ;;  %v18934_v55 = vrot.slane %v21830_v37, 4  ;;  %v17474_v37 = vld [vmem:[%s21603_s2 + $0x10] sm:$0xff]   ;;  %v14189_v50 = vcombine.low %v2626_v36, %v2629_v19 }
 0x119   : > { %15725 = vmatmul.mubr.bf16.gmra.mrb[12].mxu0 %v14171_v7  ;;  %21829 = vst [vmem:[#allocation33_spill] sm:$0xff] %v18920_v42  ;;  %v17440_v7 = vld [vmem:[#allocation4 + $0x180] sm:$0xff]   ;;  %15860 = vmatprep.subr.bf16.mxu1 %v17474_v37 }
 0x11a   : > { %15741 = vmatpush3.bf16.msra.mxu0 %v17438_v29  ;;  %15744 = vmatprep.mubr.bf16.mxu0 %v14188_v25  ;;  %21831 = vst [vmem:[#allocation13_spill] sm:$0xff] %v18934_v55  ;;  %v21834_v42 = vld [vmem:[#allocation35_spill] sm:$0xff]  ;;  %v21836_v25 = vld [vmem:[#allocation17_spill] sm:$0xff]  ;;  %v17441_v55 = vld [vmem:[#allocation4 + $0x188] sm:$0xff]  }
 0x11b   : > { %15742 = vmatprep.subr.bf16.mxu0 %v17439_v34  ;;  %v21835_v6 = vrot.slane %v21834_v42, 9  ;;  %v21837_v28 = vrot.slane %v21836_v25, 5  ;;  %v21841_v25 = vld [vmem:[#allocation36_spill] sm:$0xff]  ;;  %15861 = vmatpush3.bf16.msra.mxu1 %v17474_v37 }
 0x11c   : > { %v21842_v48 = vrot.slane %v21841_v25, 9  ;;  %v21852_v25 = vld [vmem:[#allocation47_spill] sm:$0xff] }
 0x11d   : > { %v2633_v29 = vsel %vm17970_vm10, %v21835_v6, %v21833_v46  ;;  %v2636_v4 = vsel %vm17970_vm10, %v21838_v60, %v21837_v28  ;;  %v17475_v6 = vld [vmem:[%s21603_s2 + $0x18] sm:$0xff]   ;;  %v17442_v46 = vld [vmem:[#allocation4 + $0x190] sm:$0xff]   ;;  %v21839_v28 = vld [vmem:[#allocation18_spill] sm:$0xff] }
 0x11e   : > { %15743 = vmatpush3.bf16.msra.mxu0 %v17439_v34  ;;  %v14190_v42 = vcombine.low %v2633_v29, %v2636_v4  ;;  %v21840_v0 = vrot.slane %v21839_v28, 5  ;;  %v21843_v34 = vld [vmem:[#allocation20_spill] sm:$0xff]  ;;  %v21845_v4 = vld [vmem:[#allocation46_spill] sm:$0xff]  ;;  %15862 = vmatprep.subr.bf16.mxu1 %v17475_v6 }
 0x11f   : > { %15760 = vmatprep.subr.bf16.mxu0 %v17440_v7  ;;  %v21844_v19 = vrot.slane %v21843_v34, 5  ;;  %v21848_v60 = vld [vmem:[#allocation40_spill] sm:$0xff]  ;;  %15863 = vmatpush3.bf16.msra.mxu1 %v17475_v6 }
 0x120   : > { %v2640_v36 = vsel %vm17970_vm10, %v21842_v48, %v21840_v0  ;;  %v21849_v5 = vrot.slane %v21848_v60, 9  ;;  %v17476_v48 = vld [vmem:[%s21603_s2 + $0x20] sm:$0xff]  }
 0x121   : > { %15745 = vmatmul.mubr.bf16.vlgmr.msra.gmra.mrb[0].mxu0 %v14189_v50  ;;  %v2643_v29 = vsel %vm17970_vm10, %v21845_v4, %v21844_v19  ;;  %v21847_v50 = vrot.slane %v21846_v2, 5  ;;  %v17443_v19 = vld [vmem:[#allocation4 + $0x198] sm:$0xff]   ;;  %v17444_v2 = vld [vmem:[#allocation4 + $0x1a0] sm:$0xff]   ;;  %15864 = vmatprep.subr.bf16.mxu1 %v17476_v48  ;;  %v21860_v6 = vld [vmem:[#allocation28_spill] sm:$0xff] }
 0x122   : > { %15761 = vmatpush3.bf16.msra.mxu0 %v17440_v7  ;;  %15748 = vmatprep.mubr.bf16.mxu0 %v14190_v42  ;;  %v21850_v42 = vld [vmem:[#allocation27_spill] sm:$0xff]  ;;  %v14191_v34 = vcombine.low %v2640_v36, %v2643_v29 }
 0x123   : > { %15762 = vmatprep.subr.bf16.mxu0 %v17441_v55  ;;  %v2647_v7 = vsel %vm17970_vm10, %v21849_v5, %v21847_v50  ;;  %v21851_v28 = vrot.slane %v21850_v42, 5  ;;  %v17477_v5 = vld [vmem:[%s21603_s2 + $0x28] sm:$0xff]   ;;  %v21853_v50 = vld [vmem:[#allocation26_spill] sm:$0xff]  ;;  %15865 = vmatpush3.bf16.msra.mxu1 %v17476_v48 }
 0x124   : > { %v21854_v60 = vrot.slane %v21853_v50, 5  ;;  %v21855_v42 = vld [vmem:[#allocation41_spill] sm:$0xff]  ;;  %15866 = vmatprep.subr.bf16.mxu1 %v17477_v5 }
 0x125   : > { %v2650_v0 = vsel %vm17970_vm10, %v21852_v25, %v21851_v28  ;;  %v21856_v37 = vrot.slane %v21855_v42, 9  ;;  %v21861_v25 = vrot.slane %v21860_v6, 5  ;;  %v21866_v42 = vld [vmem:[#allocation49_spill] sm:$0xff]  ;;  %v21867_v6 = vrot.slane %v18479_v24, 5 }
 0x126   : > { %15763 = vmatpush3.bf16.msra.mxu0 %v17441_v55  ;;  %v14192_v4 = vcombine.low %v2647_v7, %v2650_v0  ;;  %v21857_v55 = vld [vmem:[#allocation29_spill] sm:$0xff]  ;;  %v21859_v7 = vld [vmem:[#allocation48_spill] sm:$0xff]  ;;  %v21862_v0 = vld [vmem:[#allocation42_spill] sm:$0xff] }
 0x127   : > { %15764 = vmatprep.subr.bf16.mxu0 %v17442_v46  ;;  %v2654_v36 = vsel %vm17970_vm10, %v21856_v37, %v21854_v60  ;;  %v21858_v29 = vrot.slane %v21857_v55, 5  ;;  %v17445_v55 = vld [vmem:[#allocation4 + $0x1a8] sm:$0xff]   ;;  %15867 = vmatpush3.bf16.msra.mxu1 %v17477_v5 }
 0x128   : > { %v17450_v24 = vld [vmem:[#allocation3 + $0x24] sm:$0xff]  }
 0x129   : > { %15749 = vmatmul.mubr.bf16.gmra.mrb[4].mxu0 %v14191_v34  ;;  %v2657_v28 = vsel %vm17970_vm10, %v21859_v7, %v21858_v29  ;;  %v21863_v34 = vrot.slane %v21862_v0, 9  ;;  %v17446_v7 = vld [vmem:[#allocation4 + $0x1b0] sm:$0xff]  }
 0x12a   : > { %15765 = vmatpush3.bf16.msra.mxu0 %v17442_v46  ;;  %15752 = vmatprep.mubr.bf16.mxu0 %v14192_v4  ;;  %v21864_v4 = vld [vmem:[#allocation30_spill] sm:$0xff]  ;;  %v14193_v37 = vcombine.low %v2654_v36, %v2657_v28  ;;  %v17448_v36 = vld [vmem:[#allocation3 + $0x18] sm:$0xff]  }
 0x12b   : > { %15766 = vmatprep.subr.bf16.mxu0 %v17443_v19  ;;  %v2661_v46 = vsel %vm17970_vm10, %v21863_v34, %v21861_v25  ;;  %v21865_v50 = vrot.slane %v21864_v4, 5  ;;  %v21868_v25 = vld [vmem:[#allocation45_spill] sm:$0xff]  ;;  %v21870_v4 = vld [vmem:[#allocation43_spill] sm:$0xff]  ;;  %v17447_v28 = vld [vmem:[#allocation4 + $0x1b8] sm:$0xff]  }
 0x12c   : > { %v21869_v0 = vrot.slane %v21868_v25, 9  ;;  %v21871_v48 = vrot.slane %v21870_v4, 5  ;;  %v17461_v25 = vld [vmem:[#allocation4 + $0x1f0] sm:$0xff]  }
 0x12d   : > { %v2664_v60 = vsel %vm17970_vm10, %v21866_v42, %v21865_v50  ;;  %v17451_v50 = vld [vmem:[#allocation4 + $0x1c8] sm:$0xff]   ;;  %v17453_v42 = vld [vmem:[#allocation4 + $0x1d0] sm:$0xff]  }
 0x12e   : > { %15767 = vmatpush3.bf16.msra.mxu0 %v17443_v19  ;;  %v14194_v29 = vcombine.low %v2661_v46, %v2664_v60  ;;  %v2668_v34 = vsel %vm17970_vm10, %v21869_v0, %v21867_v6  ;;  %v2671_v19 = vsel %vm17970_vm10, %v18666_v22, %v21871_v48  ;;  %v17452_v46 = vld [vmem:[#allocation3 + $0x30] sm:$0xff]   ;;  %v17454_v22 = vld [vmem:[#allocation3 + $0x3c] sm:$0xff]   ;;  %v17456_v60 = vld [vmem:[#allocation3 + $0x48] sm:$0xff]  }
 0x12f   : > { %15768 = vmatprep.subr.bf16.mxu0 %v17444_v2  ;;  %v14195_v5 = vcombine.low %v2668_v34, %v2671_v19  ;;  %v17459_v6 = vld [vmem:[#allocation4 + $0x1e8] sm:$0xff]   ;;  %v17462_v0 = vld [vmem:[#allocation3 + $0x6c] sm:$0xff]   ;;  %v21872_v34 = vld [vmem:[#allocation51_spill] sm:$0xff] }
 0x130   : > { %v3162_v4 = vsel %vm17978_vm11, %v18682_v26, %v21872_v34  ;;  %v21873_v48 = vld [vmem:[#allocation21_spill] sm:$0xff]  ;;  %v21877_v26 = vld [vmem:[#allocation23_spill] sm:$0xff] }
 0x131   : > { %15753 = vmatmul.mubr.bf16.gmra.mrb[8].mxu0 %v14193_v37  ;;  %v17455_v37 = vld [vmem:[#allocation4 + $0x1d8] sm:$0xff]   ;;  %v3172_v19 = vsel %vm17978_vm11, %v21873_v48, %v18678_v30  ;;  %v21878_v30 = vld [vmem:[#allocation53_spill] sm:$0xff]  ;;  %v21882_v34 = vld [vmem:[#allocation55_spill] sm:$0xff] }
 0x132   : > { %15769 = vmatpush3.bf16.msra.mxu0 %v17444_v2  ;;  %15756 = vmatprep.mubr.bf16.mxu0 %v14194_v29  ;;  %v17449_v2 = vld [vmem:[#allocation4 + $0x1c0] sm:$0xff]  }
 0x133   : > { %15770 = vmatprep.subr.bf16.mxu0 %v17445_v55  ;;  %v17458_v29 = vld [vmem:[#allocation3 + $0x54] sm:$0xff]  }
 0x136   : > { %15771 = vmatpush3.bf16.msra.mxu0 %v17445_v55  ;;  %v17457_v55 = vld [vmem:[#allocation4 + $0x1e0] sm:$0xff]  }
 0x137   : > { %15772 = vmatprep.subr.bf16.mxu0 %v17446_v7 }
 0x139   : > { %15757 = vmatmul.mubr.bf16.gmra.mrb[12].mxu0 %v14195_v5  ;;  %v14220_v5 = vcombine.low %v3162_v4, %v3172_v19  ;;  %v21883_v4 = vld [vmem:[#allocation58_spill] sm:$0xff]  ;;  %v21884_v19 = vld [vmem:[#allocation56_spill] sm:$0xff] }
 0x13a   : > { %15773 = vmatpush3.bf16.msra.mxu0 %v17446_v7  ;;  %15776 = vmatprep.mubr.bf16.mxu0 %v17448_v36  ;;  %v17460_v7 = vld [vmem:[#allocation3 + $0x60] sm:$0xff]   ;;  %v17463_v36 = vld [vmem:[#allocation4 + $0x1f8] sm:$0xff]   ;;  %v3234_v48 = vsel %vm17978_vm11, %v21883_v4, %v21882_v34 }
 0x13b   : > { %15774 = vmatprep.subr.bf16.mxu0 %v17447_v28 }
 0x13e   : > { %15775 = vmatpush3.bf16.msra.mxu0 %v17447_v28  ;;  %v17464_v28 = vld [vmem:[#allocation4 + $0x200] sm:$0xff]  }
 0x13f   : > { %15792 = vmatprep.subr.bf16.mxu0 %v17449_v2 }
 0x141   : > { %15777 = vmatmul.mubr.bf16.vlgmr.msra.gmra.mrb[0].mxu0 %v17450_v24  ;;  %v21875_v24 = vld [vmem:[#allocation19_spill] sm:$0xff] }
 0x142   : > { %15793 = vmatpush3.bf16.msra.mxu0 %v17449_v2  ;;  %15780 = vmatprep.mubr.bf16.mxu0 %v17452_v46  ;;  %v21874_v2 = vld [vmem:[#allocation52_spill] sm:$0xff] }
 0x143   : > { %15794 = vmatprep.subr.bf16.mxu0 %v17451_v50  ;;  %v3186_v46 = vsel %vm17978_vm11, %v21875_v24, %v21874_v2  ;;  %v17467_v24 = vld [vmem:[#allocation4 + $0x218] sm:$0xff]  }
 0x146   : > { %15795 = vmatpush3.bf16.msra.mxu0 %v17451_v50  ;;  %v21876_v50 = vld [vmem:[#allocation24_spill] sm:$0xff] }
 0x147   : > { %15796 = vmatprep.subr.bf16.mxu0 %v17453_v42 }
 0x149   : > { %15781 = vmatmul.mubr.bf16.gmra.mrb[4].mxu0 %v17454_v22  ;;  %v21879_v22 = vld [vmem:[#allocation25_spill] sm:$0xff] }
 0x14a   : > { %15797 = vmatpush3.bf16.msra.mxu0 %v17453_v42  ;;  %15784 = vmatprep.mubr.bf16.mxu0 %v17456_v60  ;;  %v3196_v42 = vsel %vm17978_vm11, %v21877_v26, %v21876_v50  ;;  %v3210_v60 = vsel %vm17978_vm11, %v21879_v22, %v21878_v30  ;;  %v17468_v50 = vld [vmem:[#allocation4 + $0x220] sm:$0xff]   ;;  %v17469_v26 = vld [vmem:[#allocation4 + $0x228] sm:$0xff]   ;;  %v21892_v22 = vrot.slane %v18822_v61, 9 }
 0x14b   : > { %15798 = vmatprep.subr.bf16.mxu0 %v17455_v37 }
 0x14e   : > { %15799 = vmatpush3.bf16.msra.mxu0 %v17455_v37  ;;  %v21880_v37 = vld [vmem:[#allocation54_spill] sm:$0xff] }
 0x14f   : > { %15800 = vmatprep.subr.bf16.mxu0 %v17457_v55 }
 0x151   : > { %15785 = vmatmul.mubr.bf16.gmra.mrb[8].mxu0 %v17458_v29 }
 0x152   : > { %15801 = vmatpush3.bf16.msra.mxu0 %v17457_v55  ;;  %15788 = vmatprep.mubr.bf16.mxu0 %v17460_v7  ;;  %v21881_v55 = vld [vmem:[#allocation32_spill] sm:$0xff]  ;;  %v14221_v7 = vcombine.low %v3186_v46, %v3196_v42 }
 0x153   : > { %15802 = vmatprep.subr.bf16.mxu0 %v17459_v6  ;;  %v3220_v29 = vsel %vm17978_vm11, %v21881_v55, %v21880_v37  ;;  %v21896_v55 = vrot.slane %v18680_v44, 5  ;;  %v21903_v44 = vrot.slane %v18733_v23, 5 }
 0x156   : > { %15803 = vmatpush3.bf16.msra.mxu0 %v17459_v6  ;;  %v17465_v6 = vld [vmem:[#allocation4 + $0x208] sm:$0xff]  }
 0x157   : > { %15804 = vmatprep.subr.bf16.mxu0 %v17461_v25 }
 0x159   : > { %15789 = vmatmul.mubr.bf16.gmra.mrb[12].mxu0 %v17462_v0  ;;  %v17466_v0 = vld [vmem:[#allocation4 + $0x210] sm:$0xff]  }
 0x15a   : > { %15805 = vmatpush3.bf16.msra.mxu0 %v17461_v25  ;;  %15808 = vmatprep.mubr.bf16.mxu0 %v14220_v5  ;;  %v14222_v25 = vcombine.low %v3210_v60, %v3220_v29  ;;  %v3244_v5 = vsel %vm17978_vm11, %v18782_v32, %v21884_v19  ;;  %v3282_v32 = vsel %vm17978_vm11, %v18806_v17, %v18760_v1  ;;  %v17470_v17 = vld [vmem:[#allocation4 + $0x230] sm:$0xff]   ;;  %v21898_v29 = vld [vmem:[#allocation31_spill] sm:$0xff] }
 0x15b   : > { %15806 = vmatprep.subr.bf16.mxu0 %v17463_v36  ;;  %v14223_v2 = vcombine.low %v3234_v48, %v3244_v5  ;;  %v21906_v19 = vld [vmem:[#allocation59_spill] sm:$0xff] }
 0x15c   : > { %v21907_v5 = vrot.slane %v21906_v19, 5 }
 0x15e   : > { %15807 = vmatpush3.bf16.msra.mxu0 %v17463_v36  ;;  %v3258_v36 = vsel %vm17978_vm11, %v18786_v20, %v18745_v57  ;;  %v3292_v57 = vsel %vm17978_vm11, %v18813_v62, %v18808_v18  ;;  %v3306_v20 = vsel %vm17978_vm11, %v18824_v10, %v18766_v21  ;;  %v3330_v18 = vsel %vm17978_vm11, %v18832_v12, %v18776_v31  ;;  %v17471_v12 = vld [vmem:[#allocation4 + $0x238] sm:$0xff]  }
 0x15f   : > { %15824 = vmatprep.subr.bf16.mxu0 %v17464_v28  ;;  %v3340_v21 = vsel %vm17978_vm11, %v18834_v13, %v18929_v35  ;;  %v21885_v62 = vrot.slane %v18596_v43, 5  ;;  %v21888_v43 = vrot.slane %v18618_v14, 5  ;;  %v21891_v35 = vrot.slane %v18632_v39, 5 }
 0x160   : > { %v14227_v31 = vcombine.low %v3330_v18, %v3340_v21  ;;  %v21893_v14 = vrot.slane %v18652_v63, 5  ;;  %v21895_v39 = vrot.slane %v18830_v47, 9  ;;  %v3610_v63 = vsel %vm17970_vm10, %v18870_v38, %v21896_v55  ;;  %v21904_v38 = vld [vmem:[#allocation61_spill] sm:$0xff] }
 0x161   : > { %15809 = vmatmul.mubr.bf16.vlgmr.msra.gmra.mrb[0].mxu0 %v14221_v7  ;;  %v3600_v60 = vsel %vm17970_vm10, %v21892_v22, %v21891_v35  ;;  %v21899_v7 = vrot.slane %v21898_v29, 9  ;;  %v21905_v48 = vrot.slane %v21904_v38, 9  ;;  %v364_v55 = vld [vmem:[%s17926_s6 + $0xc8] sm:$0xff]  ;;  %v283_v29 = vld [vmem:[#allocation3 + $0x80] sm:$0x1] }
 0x162   : > { %15825 = vmatpush3.bf16.msra.mxu0 %v17464_v28  ;;  %15812 = vmatprep.mubr.bf16.mxu0 %v14222_v25  ;;  %v3268_v28 = vsel %vm17978_vm11, %v18793_v16, %v18788_v59  ;;  %v3316_v59 = vsel %vm17978_vm11, %v18826_v9, %v18815_v8  ;;  %v14225_v16 = vcombine.low %v3282_v32, %v3292_v57  ;;  %v21886_v8 = vrot.slane %v18791_v41, 9  ;;  %v21900_v25 = vld [vmem:[#allocation57_spill] sm:$0xff] }
 0x163   : > { %15826 = vmatprep.subr.bf16.mxu0 %v17465_v6  ;;  %v14224_v46 = vcombine.low %v3258_v36, %v3268_v28  ;;  %v14226_v1 = vcombine.low %v3306_v20, %v3316_v59  ;;  %v21887_v9 = vrot.slane %v18626_v3, 5  ;;  %v21889_v41 = vrot.slane %v18810_v58, 9  ;;  %v21913_v32 = vld [vmem:[#allocation33_spill] sm:$0xff]  ;;  %397 = vst.msk [vmem:[#allocation2 + $0xc8] sm:$0xff] %vm371_vm5, %v364_v55 }
 0x164   : > { %v3586_v10 = vsel %vm17970_vm10, %v21886_v8, %v21885_v62  ;;  %v21890_v3 = vrot.slane %v18634_v53, 5  ;;  %v3603_v58 = vsel %vm17970_vm10, %v18866_v56, %v21893_v14  ;;  %v21897_v56 = vrot.slane %v18696_v27, 5  ;;  %v17478_v62 = vld [vmem:[%s21603_s2 + $0x30] sm:$0xff]  }
 0x165   : > { %v3589_v42 = vsel %vm17970_vm10, %v18838_v40, %v21887_v9  ;;  %v3593_v13 = vsel %vm17970_vm10, %v21889_v41, %v21888_v43  ;;  %v14246_v53 = vcombine.low %v3600_v60, %v3603_v58  ;;  %v3621_v27 = vsel %vm17970_vm10, %v21905_v48, %v21903_v44  ;;  %15868 = vmatprep.subr.bf16.mxu1 %v17478_v62  ;;  %v357_v8 = vld [vmem:[%s17926_s6 + $0x90] sm:$0xff]  ;;  %v359_v9 = vld [vmem:[%s17926_s6 + $0xa0] sm:$0xff]  ;;  %v227_v43 = vld [vmem:[#allocation3 + $0x78] sm:$0x1] }
 0x166   : > { %15827 = vmatpush3.bf16.msra.mxu0 %v17465_v6  ;;  %v14244_v30 = vcombine.low %v3586_v10, %v3589_v42  ;;  %v3596_v40 = vsel %vm17970_vm10, %v18845_v54, %v21890_v3  ;;  %v21894_v54 = vrot.slane %v18668_v45, 5  ;;  %v3614_v6 = vsel %vm17970_vm10, %v21899_v7, %v21897_v56  ;;  %15869 = vmatpush3.bf16.msra.mxu1 %v17478_v62  ;;  %v358_v10 = vld [vmem:[%s17926_s6 + $0x98] sm:$0xff]  ;;  %v360_v42 = vld [vmem:[%s17926_s6 + $0xa8] sm:$0xff]  ;;  %v230_v60 = vld [vmem:[#allocation3 + $0x84] sm:$0x1] }
 0x167   : > { %15828 = vmatprep.subr.bf16.mxu0 %v17466_v0  ;;  %v14245_v37 = vcombine.low %v3593_v13, %v3596_v40  ;;  %v21901_v45 = vrot.slane %v21900_v25, 5  ;;  %v3624_v36 = vsel %vm17970_vm10, %v18915_v11, %v21907_v5  ;;  %v21908_v28 = vrot.slane %v18738_v49, 5  ;;  %390 = vst.msk [vmem:[#allocation2 + $0x90] sm:$0xff] %vm371_vm5, %v357_v8  ;;  %391 = vst.msk [vmem:[#allocation2 + $0x98] sm:$0xff] %vm371_vm5, %v358_v10 }
 0x168   : > { %v3607_v61 = vsel %vm17970_vm10, %v21895_v39, %v21894_v54  ;;  %v14249_v20 = vcombine.low %v3621_v27, %v3624_v36  ;;  %v21914_v11 = vrot.slane %v18756_v33, 5  ;;  %v21915_v49 = vrot.slane %v18898_v15, 9  ;;  %v17479_v33 = vld [vmem:[%s21603_s2 + $0x38] sm:$0xff]   ;;  %392 = vst.msk [vmem:[#allocation2 + $0xa0] sm:$0xff] %vm371_vm5, %v359_v9  ;;  %393 = vst.msk [vmem:[#allocation2 + $0xa8] sm:$0xff] %vm371_vm5, %v360_v42  ;;  %v365_v36 = vld [vmem:[%s17926_s6 + $0xd0] sm:$0xff] }
 0x169   : > { %15813 = vmatmul.mubr.bf16.gmra.mrb[4].mxu0 %v14223_v2  ;;  %v14247_v34 = vcombine.low %v3607_v61, %v3610_v63  ;;  %v21909_v2 = vld [vmem:[#allocation12_spill] sm:$0xff]  ;;  %15870 = vmatprep.subr.bf16.mxu1 %v17479_v33  ;;  %v19173_v15 = vld [vmem:[#allocation4 + $0x40] sm:$0xff]   ;;  %v228_v22 = vsel %vm17909_vm3, 0, %v227_v43  ;;  %v231_v54 = vsel %vm17909_vm3, 0, %v230_v60  ;;  %398 = vst.msk [vmem:[#allocation2 + $0xd0] sm:$0xff] %vm371_vm5, %v365_v36 }
 0x16a   : > { %15829 = vmatpush3.bf16.msra.mxu0 %v17466_v0  ;;  %15816 = vmatprep.mubr.bf16.mxu0 %v14224_v46  ;;  %v21902_v0 = vld [vmem:[#allocation37_spill] sm:$0xff]  ;;  %229 = vst [vmem:[#allocation3 + $0x78] sm:$0x1] %v228_v22  ;;  %v362_v39 = vld [vmem:[%s17926_s6 + $0xb8] sm:$0xff]  ;;  %v363_v61 = vld [vmem:[%s17926_s6 + $0xc0] sm:$0xff] }
 0x16b   : > { %15830 = vmatprep.subr.bf16.mxu0 %v17467_v24  ;;  %v3617_v47 = vsel %vm17970_vm10, %v21902_v0, %v21901_v45  ;;  %15871 = vmatpush3.bf16.msra.mxu1 %v17479_v33  ;;  %232 = vst [vmem:[#allocation3 + $0x84] sm:$0x1] %v231_v54  ;;  %395 = vst.msk [vmem:[#allocation2 + $0xb8] sm:$0xff] %vm371_vm5, %v362_v39  ;;  %v284_v45 = vsel %vm17915_vm4, 0, %v283_v29  ;;  %v286_v0 = vld [vmem:[#allocation3 + $0x8c] sm:$0x1] }
 0x16c   : > { %v14248_v4 = vcombine.low %v3614_v6, %v3617_v47  ;;  %15888 = vmatprep.subr.bf16.mxu1 %v19173_v15  ;;  %396 = vst.msk [vmem:[#allocation2 + $0xc0] sm:$0xff] %vm371_vm5, %v363_v61  ;;  %285 = vst [vmem:[#allocation3 + $0x80] sm:$0x1] %v284_v45  ;;  %v287_v27 = vsel %vm17915_vm4, 0, %v286_v0  ;;  %v368_v22 = vld [vmem:[%s17926_s6 + $0xe8] sm:$0xff] }
 0x16d   : > { %288 = vst [vmem:[#allocation3 + $0x8c] sm:$0x1] %v287_v27  ;;  %401 = vst.msk [vmem:[#allocation2 + $0xe8] sm:$0xff] %vm371_vm5, %v368_v22  ;;  %v239_v45 = vld [vmem:[#allocation3 + $0xa8] sm:$0x1] }
 0x16e   : > { %15831 = vmatpush3.bf16.msra.mxu0 %v17467_v24  ;;  %v21910_v24 = vrot.slane %v21909_v2, 9 }
 0x16f   : > { %15832 = vmatprep.subr.bf16.mxu0 %v17468_v50  ;;  %v424_v3 = vld [vmem:[#allocation2 + $0xa0] sm:$0xff]  ;;  %v425_v40 = vld [vmem:[#allocation2 + $0xa8] sm:$0xff] }
 0x170   : > { %v3628_v46 = vsel %vm17970_vm10, %v21910_v24, %v21908_v28  ;;  %v456_v14 = vmax.f32 %v424_v3, 0.0  ;;  %v457_v58 = vmax.f32 %v425_v40, 0.0  ;;  %v236_v3 = vld [vmem:[#allocation3 + $0x9c] sm:$0x1]  ;;  %v292_v40 = vld [vmem:[#allocation3 + $0xa4] sm:$0x1] }
 0x171   : > { %15817 = vmatmul.mubr.bf16.gmra.mrb[8].mxu0 %v14225_v16  ;;  %v3635_v16 = vsel %vm17970_vm10, %v21915_v49, %v21914_v11 }
 0x172   : > { %15833 = vmatpush3.bf16.msra.mxu0 %v17468_v50  ;;  %15820 = vmatprep.mubr.bf16.mxu0 %v14226_v1  ;;  %v21911_v50 = vld [vmem:[#allocation60_spill] sm:$0xff]  ;;  %v14884_v63 = vpack.c.bf16 %v456_v14, %v456_v14  ;;  %v14885_v56 = vpack.c.bf16 %v457_v58, %v457_v58 }
 0x173   : > { %15834 = vmatprep.subr.bf16.mxu0 %v17469_v26  ;;  %v21912_v23 = vrot.slane %v21911_v50, 5  ;;  %v233_v50 = vld [vmem:[#allocation3 + $0x90] sm:$0x1]  ;;  %v956_v33 = vld [vmem:[#allocation3 + $0x80] sm:$0x1] }
 0x174   : > { %v737_v47 = vshrl.u32 %v14884_v63, 16  ;;  %v959_v8 = vld [vmem:[#allocation3 + $0x84] sm:$0xf] }
 0x175   : > { %v3631_v57 = vsel %vm17970_vm10, %v21913_v32, %v21912_v23  ;;  %v366_v23 = vld [vmem:[%s17926_s6 + $0xd8] sm:$0xff]  ;;  %v367_v32 = vld [vmem:[%s17926_s6 + $0xe0] sm:$0xff] }
 0x176   : > { %15835 = vmatpush3.bf16.msra.mxu0 %v17469_v26  ;;  %v14250_v59 = vcombine.low %v3628_v46, %v3631_v57  ;;  %v21916_v26 = vld [vmem:[#allocation50_spill] sm:$0xff]  ;;  %v739_v19 = vrot.slane %v737_v47, 7  ;;  %v748_v46 = vshll.u32 %v14885_v56, 16  ;;  %v952_v57 = vld [vmem:[#allocation3 + $0x78] sm:$0xf]  ;;  %399 = vst.msk [vmem:[#allocation2 + $0xd8] sm:$0xff] %vm371_vm5, %v366_v23 }
 0x177   : > { %15836 = vmatprep.subr.bf16.mxu0 %v17470_v17  ;;  %v21917_v1 = vrot.slane %v21916_v26, 5  ;;  %400 = vst.msk [vmem:[#allocation2 + $0xe0] sm:$0xff] %vm371_vm5, %v367_v32  ;;  %v295_v47 = vld [vmem:[#allocation3 + $0xb0] sm:$0x1] }
 0x178   : > { %v296_v23 = vsel %vm17915_vm4, 0, %v295_v47 }
 0x179   : > { %15821 = vmatmul.mubr.bf16.gmra.mrb[12].mxu0 %v14227_v31  ;;  %v422_v31 = vld [vmem:[#allocation2 + $0x90] sm:$0xff]  ;;  %297 = vst [vmem:[#allocation3 + $0xb0] sm:$0x1] %v296_v23 }
 0x17a   : > { %15837 = vmatpush3.bf16.msra.mxu0 %v17470_v17  ;;  %15840 = vmatprep.mubr.bf16.mxu0 %v14244_v30  ;;  %v21918_v17 = vld [vmem:[#allocation13_spill] sm:$0xff]  ;;  %v361_v30 = vld [vmem:[%s17926_s6 + $0xb0] sm:$0xff]  ;;  %v454_v41 = vmax.f32 %v422_v31, 0.0 }
 0x17b   : > { %15838 = vmatprep.subr.bf16.mxu0 %v17471_v12  ;;  %v3638_v18 = vsel %vm17970_vm10, %v21918_v17, %v21917_v1  ;;  %394 = vst.msk [vmem:[#allocation2 + $0xb0] sm:$0xff] %vm371_vm5, %v361_v30  ;;  %v740_v1 = vshll.u32 %v14884_v63, 16  ;;  %v289_v30 = vld [vmem:[#allocation3 + $0x98] sm:$0x1]  ;;  %v428_v63 = vld [vmem:[#allocation2 + $0xc0] sm:$0xff] }
 0x17c   : > { %v14251_v21 = vcombine.low %v3635_v16, %v3638_v18  ;;  %v290_v60 = vsel %vm17915_vm4, 0, %v289_v30 }
 0x17d   : > { %v742_v62 = vor.u32 %v740_v1, %v739_v19  ;;  %291 = vst [vmem:[#allocation3 + $0x98] sm:$0x1] %v290_v60 }
 0x17e   : > { %15839 = vmatpush3.bf16.msra.mxu0 %v17471_v12  ;;  %v423_v12 = vld [vmem:[#allocation2 + $0x98] sm:$0xff] }
 0x17f   : > { %v455_v13 = vmax.f32 %v423_v12, 0.0  ;;  %v960_v31 = vsel %vm18003_vm14, %v742_v62, %v959_v8  ;;  %v963_v12 = vld [vmem:[#allocation3 + $0x8c] sm:$0x1] }
 0x180   : > { %961 = vst [vmem:[#allocation3 + $0x84] sm:$0xf] %v960_v31  ;;  %v984_v47 = vld [vmem:[#allocation3 + $0xb0] sm:$0x1] }
 0x181   : > { %15841 = vmatmul.mubr.bf16.vlgmr.msra.gmra.mrb[0].mxu0 %v14245_v37  ;;  %v14882_v37 = vpack.c.bf16 %v454_v41, %v454_v41 }
 0x182   : > { %15844 = vmatprep.mubr.bf16.mxu0 %v14246_v53  ;;  %v14883_v53 = vpack.c.bf16 %v455_v13, %v455_v13  ;;  %v426_v42 = vld [vmem:[#allocation2 + $0xb0] sm:$0xff]  ;;  %v427_v13 = vld [vmem:[#allocation2 + $0xb8] sm:$0xff] }
 0x183   : > { %v720_v7 = vshrl.u32 %v14882_v37, 16  ;;  %v723_v44 = vshll.u32 %v14882_v37, 16  ;;  %v458_v43 = vmax.f32 %v426_v42, 0.0  ;;  %v459_v14 = vmax.f32 %v427_v13, 0.0 }
 0x184   : > { %v728_v6 = vshrl.u32 %v14883_v53, 16  ;;  %v731_v48 = vshll.u32 %v14883_v53, 16  ;;  %v237_v37 = vsel %vm17909_vm3, 0, %v236_v3  ;;  %v293_v53 = vsel %vm17915_vm4, 0, %v292_v40  ;;  %v970_v27 = vld [vmem:[#allocation3 + $0x98] sm:$0x1] }
 0x185   : > { %v14886_v58 = vpack.c.bf16 %v458_v43, %v458_v43  ;;  %v14887_v54 = vpack.c.bf16 %v459_v14, %v459_v14  ;;  %238 = vst [vmem:[#allocation3 + $0x9c] sm:$0x1] %v237_v37  ;;  %294 = vst [vmem:[#allocation3 + $0xa4] sm:$0x1] %v293_v53 }
 0x186   : > { %v730_v38 = vrot.slane %v728_v6, 7 }
 0x187   : > { %v754_v39 = vshrl.u32 %v14886_v58, 16  ;;  %v757_v55 = vshll.u32 %v14886_v58, 16  ;;  %v762_v29 = vshrl.u32 %v14887_v54, 16 }
 0x188   : > { %v733_v24 = vor.u32 %v731_v48, %v730_v38 }
 0x189   : > { %15845 = vmatmul.mubr.bf16.gmra.mrb[4].mxu0 %v14247_v34  ;;  %v745_v34 = vshrl.u32 %v14885_v56, 16  ;;  %v756_v61 = vrot.slane %v754_v39, 7  ;;  %v429_v56 = vld [vmem:[#allocation2 + $0xc8] sm:$0xff] }
 0x18a   : > { %15848 = vmatprep.mubr.bf16.mxu0 %v14248_v4  ;;  %v722_v4 = vrot.slane %v720_v7, 7  ;;  %v765_v7 = vshll.u32 %v14887_v54, 16 }
 0x18b   : > { %v747_v5 = vrot.slane %v745_v34, 7  ;;  %v759_v0 = vor.u32 %v757_v55, %v756_v61  ;;  %v760_v34 = vrot.slane %v756_v61, 4 }
 0x18c   : > { %v725_v28 = vor.u32 %v723_v44, %v722_v4  ;;  %v726_v2 = vrot.slane %v722_v4, 4  ;;  %v764_v4 = vrot.slane %v762_v29, 7  ;;  %v460_v44 = vmax.f32 %v428_v63, 0.0  ;;  %v973_v42 = vld [vmem:[#allocation3 + $0x9c] sm:$0xf] }
 0x18d   : > { %v750_v17 = vor.u32 %v748_v46, %v747_v5  ;;  %v752_v9 = vrot.slane %v747_v5, 4  ;;  %v240_v5 = vsel %vm17909_vm3, 0, %v239_v45  ;;  %v242_v46 = vld [vmem:[#allocation3 + $0xb4] sm:$0x1] }
 0x18e   : > { %v734_v49 = vsel %vm18010_vm15, %v726_v2, %v733_v24  ;;  %v953_v26 = vsel %vm18003_vm14, %v725_v28, %v952_v57  ;;  %v767_v36 = vor.u32 %v765_v7, %v764_v4  ;;  %v769_v28 = vrot.slane %v764_v4, 4  ;;  %241 = vst [vmem:[#allocation3 + $0xa8] sm:$0x1] %v240_v5  ;;  %v431_v24 = vld [vmem:[#allocation2 + $0xd8] sm:$0xff] }
 0x18f   : > { %954 = vst [vmem:[#allocation3 + $0x78] sm:$0xf] %v953_v26  ;;  %955 = vst [vmem:[#allocation3 + $0x7c] sm:$0xf] %v734_v49  ;;  %v964_v41 = vsel %vm17909_vm3, %v752_v9, %v963_v12  ;;  %v14888_v2 = vpack.c.bf16 %v460_v44, %v460_v44  ;;  %v298_v49 = vld [vmem:[#allocation3 + $0xbc] sm:$0x1] }
 0x190   : > { %965 = vst [vmem:[#allocation3 + $0x8c] sm:$0x1] %v964_v41  ;;  %v768_v57 = vsel %vm18010_vm15, %v760_v34, %v767_v36  ;;  %v432_v26 = vld [vmem:[#allocation2 + $0xe0] sm:$0xff]  ;;  %v463_v62 = vmax.f32 %v431_v24, 0.0  ;;  %v243_v8 = vsel %vm17909_vm3, 0, %v242_v46  ;;  %v299_v31 = vsel %vm17915_vm4, 0, %v298_v49 }
 0x191   : > { %15849 = vmatmul.mubr.bf16.gmra.mrb[8].mxu0 %v14249_v20  ;;  %v743_v20 = vrot.slane %v739_v19, 4  ;;  %v461_v19 = vmax.f32 %v429_v56, 0.0  ;;  %969 = vst [vmem:[#allocation3 + $0x94] sm:$0xf] %v768_v57  ;;  %v774_v1 = vshll.u32 %v14888_v2, 16  ;;  %v464_v12 = vmax.f32 %v432_v26, 0.0 }
 0x192   : > { %15852 = vmatprep.mubr.bf16.mxu0 %v14250_v59  ;;  %v234_v59 = vsel %vm17909_vm3, 0, %v233_v50  ;;  %244 = vst [vmem:[#allocation3 + $0xb4] sm:$0x1] %v243_v8  ;;  %v977_v41 = vld [vmem:[#allocation3 + $0xa4] sm:$0x1]  ;;  %v14891_v13 = vpack.c.bf16 %v463_v62, %v463_v62 }
 0x193   : > { %235 = vst [vmem:[#allocation3 + $0x90] sm:$0x1] %v234_v59  ;;  %v751_v18 = vsel %vm18010_vm15, %v743_v20, %v750_v17  ;;  %v14889_v50 = vpack.c.bf16 %v461_v19, %v461_v19  ;;  %v971_v20 = vsel %vm17909_vm3, %v769_v28, %v970_v27  ;;  %v771_v59 = vshrl.u32 %v14888_v2, 16  ;;  %300 = vst [vmem:[#allocation3 + $0xbc] sm:$0x1] %v299_v31 }
 0x194   : > { %962 = vst [vmem:[#allocation3 + $0x88] sm:$0xf] %v751_v18  ;;  %972 = vst [vmem:[#allocation3 + $0x98] sm:$0x1] %v971_v20  ;;  %v14892_v53 = vpack.c.bf16 %v464_v12, %v464_v12  ;;  %v796_v61 = vshrl.u32 %v14891_v13, 16  ;;  %v799_v56 = vshll.u32 %v14891_v13, 16 }
 0x195   : > { %v779_v17 = vshrl.u32 %v14889_v50, 16  ;;  %v782_v18 = vshll.u32 %v14889_v50, 16  ;;  %v980_v55 = vld [vmem:[#allocation3 + $0xa8] sm:$0xf]  ;;  %v19262_v49 = vld [vmem:[#allocation3 + $0x64] sm:$0xf] }
 0x196   : > { %v4133_v8 = vshll.u32 %v19262_v49, 16 }
 0x197   : > { %v781_v9 = vrot.slane %v779_v17, 7 }
 0x199   : > { %15853 = vmatmul.mubr.bf16.gmra.mrb[12].mxu0 %v14251_v21  ;;  %v735_v21 = vrot.slane %v730_v38, 4  ;;  %v430_v38 = vld [vmem:[#allocation2 + $0xd0] sm:$0xff]  ;;  %v784_v40 = vor.u32 %v782_v18, %v781_v9  ;;  %v786_v22 = vrot.slane %v781_v9, 4 }
 0x19a   : > { %v966_v6 = vld [vmem:[#allocation3 + $0x90] sm:$0xf]  ;;  %v462_v32 = vmax.f32 %v430_v38, 0.0  ;;  %v808_v38 = vshll.u32 %v14892_v53, 16  ;;  %v987_v24 = vld [vmem:[#allocation3 + $0xb4] sm:$0xf] }
 0x19b   : > { %v957_v10 = vsel %vm17909_vm3, %v735_v21, %v956_v33  ;;  %v967_v48 = vsel %vm18003_vm14, %v759_v0, %v966_v6  ;;  %v773_v21 = vrot.slane %v771_v59, 7  ;;  %v978_v39 = vsel %vm17909_vm3, %v786_v22, %v977_v41  ;;  %v991_v50 = vld [vmem:[#allocation3 + $0xbc] sm:$0x1]  ;;  %v19260_v59 = vld [vmem:[#allocation3 + $0x60] sm:$0xf] }
 0x19c   : > { %958 = vst [vmem:[#allocation3 + $0x80] sm:$0x1] %v957_v10  ;;  %968 = vst [vmem:[#allocation3 + $0x90] sm:$0xf] %v967_v48  ;;  %v14890_v33 = vpack.c.bf16 %v462_v32, %v462_v32  ;;  %v433_v10 = vld [vmem:[#allocation2 + $0xe8] sm:$0xff]  ;;  %v798_v6 = vrot.slane %v796_v61, 7 }
 0x19d   : > { %v776_v30 = vor.u32 %v774_v1, %v773_v21  ;;  %v777_v43 = vrot.slane %v773_v21, 4  ;;  %v465_v14 = vmax.f32 %v433_v10, 0.0  ;;  %979 = vst [vmem:[#allocation3 + $0xa4] sm:$0x1] %v978_v39  ;;  %v805_v0 = vshrl.u32 %v14892_v53, 16  ;;  %v370_v22 = vld [vmem:[%s17926_s6 + $0xf8] sm:$0xff] }
 0x19e   : > { %v788_v3 = vshrl.u32 %v14890_v33, 16  ;;  %v791_v60 = vshll.u32 %v14890_v33, 16  ;;  %v801_v34 = vor.u32 %v799_v56, %v798_v6  ;;  %v803_v4 = vrot.slane %v798_v6, 4  ;;  %v19264_v1 = vld [vmem:[#allocation3 + $0x6c] sm:$0xf]  ;;  %403 = vst.msk [vmem:[#allocation2 + $0xf8] sm:$0xff] %vm371_vm5, %v370_v22 }
 0x19f   : > { %v974_v58 = vsel %vm18003_vm14, %v776_v30, %v973_v42  ;;  %v785_v54 = vsel %vm18010_vm15, %v777_v43, %v784_v40  ;;  %v14893_v29 = vpack.c.bf16 %v465_v14, %v465_v14  ;;  %v807_v44 = vrot.slane %v805_v0, 7  ;;  %v19267_v21 = vld [vmem:[#allocation3 + $0x70] sm:$0xf]  ;;  %v17481_v39 = vld [vmem:[#allocation4 + $0x48] sm:$0xff]   ;;  %v19282_v61 = vld [vmem:[#allocation3 + $0x68] sm:$0x1] }
 0x1a0   : > { %v790_v37 = vrot.slane %v788_v3, 7  ;;  %975 = vst [vmem:[#allocation3 + $0x9c] sm:$0xf] %v974_v58  ;;  %976 = vst [vmem:[#allocation3 + $0xa0] sm:$0xf] %v785_v54  ;;  %v985_v19 = vsel %vm17909_vm3, %v803_v4, %v984_v47  ;;  %v4124_v18 = vshrl.u32 %v19260_v59, 16 }
 0x1a1   : > { %v813_v48 = vshrl.u32 %v14893_v29, 16  ;;  %986 = vst [vmem:[#allocation3 + $0xb0] sm:$0x1] %v985_v19  ;;  %v816_v5 = vshll.u32 %v14893_v29, 16  ;;  %v810_v36 = vor.u32 %v808_v38, %v807_v44  ;;  %v811_v28 = vrot.slane %v807_v44, 4  ;;  %v369_v40 = vld [vmem:[%s17926_s6 + $0xf0] sm:$0xff] }
 0x1a2   : > { %v793_v63 = vor.u32 %v791_v60, %v790_v37  ;;  %v794_v7 = vrot.slane %v790_v37, 4  ;;  %v4127_v33 = vshll.u32 %v19260_v59, 16  ;;  %v4137_v10 = vshrl.u32 %v19262_v49, 16  ;;  %402 = vst.msk [vmem:[#allocation2 + $0xf0] sm:$0xff] %vm371_vm5, %v369_v40  ;;  %v19284_v29 = vld [vmem:[#allocation3 + $0x74] sm:$0x1] }
 0x1a3   : > { %v815_v2 = vrot.slane %v813_v48, 7  ;;  %v988_v32 = vsel %vm18003_vm14, %v810_v36, %v987_v24  ;;  %v4148_v12 = vshrl.u32 %v19264_v1, 16  ;;  %v4151_v30 = vshll.u32 %v19264_v1, 16  ;;  %v19288_v0 = vld [vmem:[#allocation3 + $0x78] sm:$0xf] }
 0x1a4   : > { %v981_v45 = vsel %vm18003_vm14, %v793_v63, %v980_v55  ;;  %v802_v27 = vsel %vm18010_vm15, %v794_v7, %v801_v34  ;;  %989 = vst [vmem:[#allocation3 + $0xb4] sm:$0xf] %v988_v32  ;;  %v4157_v13 = vshll.u32 %v19267_v21, 16  ;;  %v4161_v3 = vshrl.u32 %v19267_v21, 16  ;;  %v17482_v34 = vld [vmem:[#allocation4 + $0x50] sm:$0xff]  }
 0x1a5   : > { %982 = vst [vmem:[#allocation3 + $0xa8] sm:$0xf] %v981_v45  ;;  %983 = vst [vmem:[#allocation3 + $0xac] sm:$0xf] %v802_v27  ;;  %v818_v46 = vor.u32 %v816_v5, %v815_v2  ;;  %v820_v23 = vrot.slane %v815_v2, 4  ;;  %v4126_v14 = vrot.slane %v4124_v18, 4 }
 0x1a6   : > { %v4129_v37 = vrot.slane %v4127_v33, 5  ;;  %v19280_v53 = vrot.slane %v4133_v8, 5  ;;  %v4139_v54 = vrot.slane %v4137_v10, 4  ;;  %v4150_v55 = vrot.slane %v4148_v12, 4  ;;  %v17483_v10 = vld [vmem:[#allocation4 + $0x58] sm:$0xff]  }
 0x1a7   : > { %v819_v57 = vsel %vm18010_vm15, %v811_v28, %v818_v46  ;;  %v992_v20 = vsel %vm17909_vm3, %v820_v23, %v991_v50  ;;  %v4153_v63 = vrot.slane %v4151_v30, 5  ;;  %v19286_v7 = vrot.slane %v4157_v13, 5  ;;  %v19294_v28 = vld [vmem:[#allocation3 + $0x7c] sm:$0xf] }
 0x1a8   : > { %990 = vst [vmem:[#allocation3 + $0xb8] sm:$0xf] %v819_v57  ;;  %993 = vst [vmem:[#allocation3 + $0xbc] sm:$0x1] %v992_v20  ;;  %v4163_v6 = vrot.slane %v4161_v3, 4  ;;  %v4130_v4 = vor.u32 %v4129_v37, %v4126_v14  ;;  %v4140_v44 = vor.u32 %v4139_v54, %v19280_v53  ;;  %v4143_v38 = vshll.u32 %v19282_v61, 16 }
 0x1a9   : > { %v4154_v5 = vor.u32 %v4153_v63, %v4150_v55  ;;  %v4167_v36 = vshll.u32 %v19284_v29, 16  ;;  %v4172_v46 = vshrl.u32 %v19288_v0, 16  ;;  %v434_v50 = vld [vmem:[#allocation2 + $0xf0] sm:$0xff]  ;;  %v435_v23 = vld [vmem:[#allocation2 + $0xf8] sm:$0xff]  ;;  %v4175_v57 = vshll.u32 %v19288_v0, 16 }
 0x1aa   : > { %v245_v20 = vld [vmem:[#allocation3 + $0xc0] sm:$0x1]  ;;  %v4181_v33 = vshll.u32 %v19294_v28, 16  ;;  %v4185_v14 = vshrl.u32 %v19294_v28, 16 }
 0x1ab   : > { %v246_v8 = vsel %vm17909_vm3, 0, %v245_v20  ;;  %v19314_v3 = vrot.slane %v4167_v36, 5  ;;  %v19316_v40 = vrot.slane %v4172_v46, 4 }
 0x1ac   : > { %247 = vst [vmem:[#allocation3 + $0xc0] sm:$0x1] %v246_v8  ;;  %v19325_v63 = vrot.slane %v4181_v33, 5  ;;  %v19344_v33 = vld [vmem:[#allocation3 + $0x80] sm:$0x1] }
 0x1af   : > { %v19428_v11 = vld [vmem:[#allocation3 + $0xbc] sm:$0x1] }
 0x254   : > { %v15842_v26 = vpop.f32.mrb[0].mxu0 }
 0x255   : > { %v3770_v17 = vpop.f32.mrb[1].mxu0  ;;  %v3851_v9 = vmax.f32 %v15842_v26, 0.0  ;;  %v466_v26 = vmax.f32 %v434_v50, 0.0 }
 0x256   : > { %v15843_v62 = vpop.f32.mrb[2].mxu0  ;;  %v3849_v43 = vmax.f32 %v3770_v17, 0.0  ;;  %v467_v17 = vmax.f32 %v435_v23, 0.0 }
 0x257   : > { %v3852_v42 = vmax.f32 %v15843_v62, 0.0  ;;  %v3773_v31 = vpop.f32.mrb[3].mxu0  ;;  %v19299_v62 = vrot.slane %v4130_v4, 4  ;;  %v14894_v12 = vpack.c.bf16 %v466_v26, %v466_v26  ;;  %v17484_v4 = vld [vmem:[#allocation4 + $0x60] sm:$0xff]   ;;  %v994_v26 = vld [vmem:[#allocation3 + $0xc0] sm:$0xf] }
 0x258   : > { %v3850_v41 = vmax.f32 %v3773_v31, 0.0  ;;  %v19308_v31 = vld [vmem:[#allocation3 + $0x88] sm:$0xf]  ;;  %v14895_v30 = vpack.c.bf16 %v467_v17, %v467_v17  ;;  %v17485_v17 = vld [vmem:[#allocation4 + $0x68] sm:$0xff]  }
 0x259   : > { %v3866_v60 = vpack.c.bf16 %v3852_v42, %v3851_v9  ;;  %v19304_v9 = vrot.slane %v4140_v44, 4  ;;  %v19306_v42 = vrot.slane %v4143_v38, 5  ;;  %v4136_v55 = vsel %vm17978_vm11, %v19299_v62, %v19280_v53 }
 0x25a   : > { %v3865_v58 = vpack.c.bf16 %v3850_v41, %v3849_v43  ;;  %v19310_v41 = vrot.slane %v4154_v5, 4  ;;  %v830_v37 = vshrl.u32 %v14895_v30, 16  ;;  %v825_v38 = vshll.u32 %v14894_v12, 16  ;;  %v19333_v5 = vld [vmem:[#allocation3 + $0x90] sm:$0xf] }
 0x25b   : > { %v833_v36 = vshll.u32 %v14895_v30, 16  ;;  %v4220_v8 = vshrl.u32 %v19333_v5, 16 }
 0x25c   : > { %v15846_v56 = vpop.f32.mrb[4].mxu0  ;;  %15872 = vmatprep.mubr.bf16.mxu1 %v3865_v58  ;;  %v822_v58 = vshrl.u32 %v14894_v12, 16 }
 0x25d   : > { %v3786_v45 = vpop.f32.mrb[5].mxu0  ;;  %15873 = vmatmul.mubr.bf16.vlgmr.msra.gmra.mrb[0].mxu1 %v3866_v60  ;;  %v3855_v48 = vmax.f32 %v15846_v56, 0.0  ;;  %v19318_v60 = vrot.slane %v4175_v57, 5  ;;  %v19327_v56 = vld [vmem:[#allocation3 + $0x84] sm:$0xf] }
 0x25e   : > { %15889 = vmatpush3.bf16.msra.mxu1 %v19173_v15  ;;  %v15847_v47 = vpop.f32.mrb[6].mxu0  ;;  %v3853_v2 = vmax.f32 %v3786_v45, 0.0  ;;  %v4164_v15 = vor.u32 %v4163_v6, %v19286_v7  ;;  %v4205_v6 = vshll.u32 %v19308_v31, 16  ;;  %v824_v44 = vrot.slane %v822_v58, 7 }
 0x25f   : > { %v3856_v27 = vmax.f32 %v15847_v47, 0.0  ;;  %v3789_v19 = vpop.f32.mrb[7].mxu0  ;;  %15890 = vmatprep.subr.bf16.mxu1 %v17481_v39  ;;  %v4199_v57 = vshll.u32 %v19327_v56, 16 }
 0x260   : > { %v3854_v24 = vmax.f32 %v3789_v19, 0.0  ;;  %v19312_v13 = vrot.slane %v4164_v15, 4  ;;  %v4209_v19 = vshrl.u32 %v19308_v31, 16  ;;  %v19335_v15 = vld [vmem:[#allocation3 + $0x94] sm:$0xf]  ;;  %v827_v46 = vor.u32 %v825_v38, %v824_v44 }
 0x261   : > { %v3868_v32 = vpack.c.bf16 %v3856_v27, %v3855_v48  ;;  %v19330_v48 = vrot.slane %v830_v37, 7  ;;  %v828_v50 = vrot.slane %v824_v44, 4  ;;  %v4178_v37 = vor.u32 %v19318_v60, %v19316_v40 }
 0x262   : > { %v3867_v18 = vpack.c.bf16 %v3854_v24, %v3853_v2  ;;  %15891 = vmatpush3.bf16.msra.mxu1 %v17481_v39  ;;  %v4187_v24 = vrot.slane %v4185_v14, 4  ;;  %v995_v12 = vsel %vm18003_vm14, %v827_v46, %v994_v26  ;;  %v4170_v58 = vsel %vm17978_vm11, %v19312_v13, %v19314_v3  ;;  %v17486_v13 = vld [vmem:[#allocation4 + $0x70] sm:$0xff]   ;;  %v19380_v26 = vld [vmem:[#allocation3 + $0x9c] sm:$0xf] }
 0x263   : > { %15892 = vmatprep.subr.bf16.mxu1 %v17482_v34  ;;  %v835_v20 = vor.u32 %v833_v36, %v19330_v48  ;;  %996 = vst [vmem:[#allocation3 + $0xc0] sm:$0xf] %v995_v12  ;;  %v4201_v44 = vrot.slane %v4199_v57, 5  ;;  %v4222_v3 = vrot.slane %v4220_v8, 4  ;;  %v19382_v8 = vld [vmem:[#allocation3 + $0xa0] sm:$0xf] }
 0x264   : > { %v15850_v43 = vpop.f32.mrb[8].mxu0  ;;  %15876 = vmatprep.mubr.bf16.mxu1 %v3867_v18  ;;  %v4146_v18 = vsel %vm17978_vm11, %v19304_v9, %v19306_v42  ;;  %v4233_v9 = vshrl.u32 %v19335_v15, 16 }
 0x265   : > { %v3802_v22 = vpop.f32.mrb[9].mxu0  ;;  %15877 = vmatmul.mubr.bf16.gmra.mrb[4].mxu1 %v3868_v32  ;;  %v3859_v54 = vmax.f32 %v15850_v43, 0.0  ;;  %v4196_v32 = vshrl.u32 %v19327_v56, 16  ;;  %v4160_v43 = vsel %vm17978_vm11, %v19310_v41, %v19286_v7  ;;  %v836_v42 = vsel %vm18010_vm15, %v828_v50, %v835_v20  ;;  %v19377_v50 = vld [vmem:[#allocation3 + $0x98] sm:$0x1] }
 0x266   : > { %15893 = vmatpush3.bf16.msra.mxu1 %v17482_v34  ;;  %v15851_v39 = vpop.f32.mrb[10].mxu0  ;;  %v3857_v34 = vmax.f32 %v3802_v22, 0.0  ;;  %v4229_v22 = vshll.u32 %v19335_v15, 16  ;;  %v4211_v7 = vrot.slane %v4209_v19, 4  ;;  %997 = vst [vmem:[#allocation3 + $0xc4] sm:$0xf] %v836_v42  ;;  %v14268_v46 = vcombine.low %v4136_v55, %v4146_v18 }
 0x267   : > { %v3860_v45 = vmax.f32 %v15851_v39, 0.0  ;;  %v3805_v47 = vpop.f32.mrb[11].mxu0  ;;  %15894 = vmatprep.subr.bf16.mxu1 %v17483_v10  ;;  %v4188_v39 = vor.u32 %v4187_v24, %v19325_v63  ;;  %v17487_v24 = vld [vmem:[#allocation4 + $0x78] sm:$0xff]   ;;  %v19389_v18 = vld [vmem:[#allocation3 + $0xac] sm:$0xf]  ;;  %v4247_v42 = vshll.u32 %v19380_v26, 16 }
 0x268   : > { %v3858_v27 = vmax.f32 %v3805_v47, 0.0  ;;  %v4198_v47 = vrot.slane %v4196_v32, 4  ;;  %v19370_v19 = vrot.slane %v4229_v22, 5  ;;  %v4179_v32 = vrot.slane %v4178_v37, 4  ;;  %v19385_v22 = vld [vmem:[#allocation3 + $0xa8] sm:$0xf] }
 0x269   : > { %v3870_v2 = vpack.c.bf16 %v3860_v45, %v3859_v54  ;;  %v19364_v54 = vrot.slane %v4205_v6, 5  ;;  %v4191_v45 = vshll.u32 %v19344_v33, 16  ;;  %v19368_v6 = vld [vmem:[#allocation3 + $0x8c] sm:$0x1]  ;;  %v4189_v57 = vrot.slane %v4188_v39, 4  ;;  %v17488_v39 = vld [vmem:[#allocation4] sm:$0xff]  }
 0x26a   : > { %v3869_v23 = vpack.c.bf16 %v3858_v27, %v3857_v34  ;;  %15895 = vmatpush3.bf16.msra.mxu1 %v17483_v10  ;;  %v4223_v10 = vshll.u32 %v19333_v5, 16  ;;  %v4202_v53 = vor.u32 %v4201_v44, %v4198_v47  ;;  %v4277_v44 = vshll.u32 %v19389_v18, 16 }
 0x26b   : > { %15896 = vmatprep.subr.bf16.mxu1 %v17484_v4  ;;  %v4212_v20 = vor.u32 %v4211_v7, %v19364_v54  ;;  %v4193_v12 = vrot.slane %v4191_v45, 5  ;;  %v4268_v7 = vshrl.u32 %v19385_v22, 16 }
 0x26c   : > { %v15854_v30 = vpop.f32.mrb[12].mxu0  ;;  %15880 = vmatprep.mubr.bf16.mxu1 %v3869_v23  ;;  %v4225_v36 = vrot.slane %v4223_v10, 5  ;;  %v14269_v10 = vcombine.low %v4160_v43, %v4170_v58  ;;  %v4253_v43 = vshll.u32 %v19382_v8, 16  ;;  %v4184_v58 = vsel %vm17978_vm11, %v4179_v32, %v19325_v63 }
 0x26d   : > { %v3818_v14 = vpop.f32.mrb[13].mxu0  ;;  %15881 = vmatmul.mubr.bf16.gmra.mrb[8].mxu1 %v3870_v2  ;;  %v3863_v38 = vmax.f32 %v15854_v30, 0.0  ;;  %v4215_v30 = vshll.u32 %v19368_v6, 16  ;;  %v4213_v37 = vrot.slane %v4212_v20, 4  ;;  %v4194_v45 = vsel %vm17978_vm11, %v4189_v57, %v4193_v12  ;;  %v19406_v12 = vld [vmem:[#allocation3 + $0xb4] sm:$0xf] }
 0x26e   : > { %15897 = vmatpush3.bf16.msra.mxu1 %v17484_v4  ;;  %v15855_v41 = vpop.f32.mrb[14].mxu0  ;;  %v3861_v40 = vmax.f32 %v3818_v14, 0.0  ;;  %v4235_v4 = vrot.slane %v4233_v9, 4  ;;  %v4226_v62 = vor.u32 %v4225_v36, %v4222_v3  ;;  %v4244_v9 = vshrl.u32 %v19380_v26, 16 }
 0x26f   : > { %v3864_v34 = vmax.f32 %v15855_v41, 0.0  ;;  %v3821_v27 = vpop.f32.mrb[15].mxu0  ;;  %15898 = vmatprep.subr.bf16.mxu1 %v17485_v17  ;;  %v4257_v14 = vshrl.u32 %v19382_v8, 16  ;;  %v4271_v41 = vshll.u32 %v19385_v22, 16  ;;  %v4217_v47 = vrot.slane %v4215_v30, 5 }
 0x270   : > { %v3862_v60 = vmax.f32 %v3821_v27, 0.0  ;;  %v4236_v55 = vor.u32 %v4235_v4, %v19370_v19  ;;  %v4227_v27 = vrot.slane %v4226_v62, 4  ;;  %v4246_v63 = vrot.slane %v4244_v9, 4  ;;  %v17489_v4 = vld [vmem:[#allocation4 + $0x8] sm:$0xff]   ;;  %v19408_v30 = vld [vmem:[#allocation3 + $0xb8] sm:$0xf] }
 0x271   : > { %v3872_v2 = vpack.c.bf16 %v3864_v34, %v3863_v38  ;;  %v4281_v38 = vshrl.u32 %v19389_v18, 16  ;;  %v4203_v34 = vrot.slane %v4202_v53, 4  ;;  %v4249_v36 = vrot.slane %v4247_v42, 5 }
 0x272   : > { %v3871_v23 = vpack.c.bf16 %v3862_v60, %v3861_v40  ;;  %15899 = vmatpush3.bf16.msra.mxu1 %v17485_v17  ;;  %v4239_v17 = vshll.u32 %v19377_v50, 16  ;;  %v4255_v40 = vrot.slane %v4253_v43, 5  ;;  %v4259_v60 = vrot.slane %v4257_v14, 4 }
 0x273   : > { %15900 = vmatprep.subr.bf16.mxu1 %v17486_v13  ;;  %v4273_v32 = vrot.slane %v4271_v41, 5  ;;  %v4279_v57 = vrot.slane %v4277_v44, 5  ;;  %v4283_v20 = vrot.slane %v4281_v38, 4  ;;  %v4208_v53 = vsel %vm17978_vm11, %v4203_v34, %v19364_v54 }
 0x274   : > { %15884 = vmatprep.mubr.bf16.mxu1 %v3871_v23  ;;  %v4241_v3 = vrot.slane %v4239_v17, 5  ;;  %v4270_v23 = vrot.slane %v4268_v7, 4  ;;  %v4232_v62 = vsel %vm17978_vm11, %v4227_v27, %v19370_v19  ;;  %v4250_v9 = vor.u32 %v4249_v36, %v4246_v63  ;;  %v17491_v63 = vld [vmem:[#allocation4 + $0x18] sm:$0xff]  }
 0x275   : > { %15885 = vmatmul.mubr.bf16.gmra.mrb[12].mxu1 %v3872_v2  ;;  %v14270_v2 = vcombine.low %v4184_v58, %v4194_v45  ;;  %v4260_v42 = vor.u32 %v4259_v60, %v4255_v40  ;;  %v4292_v54 = vshrl.u32 %v19406_v12, 16  ;;  %v4295_v14 = vshll.u32 %v19406_v12, 16 }
 0x276   : > { %15901 = vmatpush3.bf16.msra.mxu1 %v17486_v13  ;;  %15904 = vmatprep.mubr.bf16.mxu1 %v14268_v46  ;;  %v4237_v13 = vrot.slane %v4236_v55, 4  ;;  %v19404_v46 = vld [vmem:[#allocation3 + $0xa4] sm:$0x1]  ;;  %v19418_v55 = vld [vmem:[#allocation3 + $0xb0] sm:$0x1]  ;;  %v4301_v58 = vshll.u32 %v19408_v30, 16  ;;  %v4284_v7 = vor.u32 %v4283_v20, %v4279_v57 }
 0x277   : > { %15902 = vmatprep.subr.bf16.mxu1 %v17487_v24  ;;  %v4263_v43 = vshll.u32 %v19404_v46, 16  ;;  %v4305_v19 = vshrl.u32 %v19408_v30, 16  ;;  %v4287_v41 = vshll.u32 %v19418_v55, 16  ;;  %v4251_v44 = vrot.slane %v4250_v9, 4 }
 0x278   : > { %v4242_v17 = vsel %vm17978_vm11, %v4237_v13, %v4241_v3  ;;  %v4261_v38 = vrot.slane %v4260_v42, 4  ;;  %v4294_v34 = vrot.slane %v4292_v54, 4  ;;  %v4297_v27 = vrot.slane %v4295_v14, 5  ;;  %v301_v42 = vld [vmem:[#allocation3 + $0xc8] sm:$0x1] }
 0x279   : > { %v4303_v13 = vrot.slane %v4301_v58, 5  ;;  %v4307_v3 = vrot.slane %v4305_v19, 4  ;;  %v4285_v60 = vrot.slane %v4284_v7, 4  ;;  %v17493_v58 = vld [vmem:[#allocation4 + $0x28] sm:$0xff]   ;;  %v302_v19 = vsel %vm17915_vm4, 0, %v301_v42  ;;  %v17504_v42 = vld [vmem:[#allocation4 + $0xb8] sm:$0xff]  }
 0x27a   : > { %15903 = vmatpush3.bf16.msra.mxu1 %v17487_v24  ;;  %v4218_v24 = vsel %vm17978_vm11, %v4213_v37, %v4217_v47  ;;  %v17490_v37 = vld [vmem:[#allocation4 + $0x10] sm:$0xff]   ;;  %v14272_v47 = vcombine.low %v4232_v62, %v4242_v17  ;;  %303 = vst [vmem:[#allocation3 + $0xc8] sm:$0x1] %v302_v19 }
 0x27b   : > { %15920 = vmatprep.subr.bf16.mxu1 %v17488_v39  ;;  %v14271_v45 = vcombine.low %v4208_v53, %v4218_v24  ;;  %v4308_v20 = vor.u32 %v4307_v3, %v4303_v13  ;;  %v4311_v53 = vshll.u32 %v19428_v11, 16  ;;  %v17492_v24 = vld [vmem:[#allocation4 + $0x20] sm:$0xff]   ;;  %v14288_v3 = vcombine.low %v19333_v5, %v19335_v15 }
 0x27d   : > { %15905 = vmatmul.mubr.bf16.vlgmr.msra.gmra.mrb[16].mxu1 %v14269_v10  ;;  %v4274_v10 = vor.u32 %v4273_v32, %v4270_v23  ;;  %v4256_v23 = vsel %vm17978_vm11, %v4251_v44, %v4255_v40  ;;  %v4298_v32 = vor.u32 %v4297_v27, %v4294_v34  ;;  %v4309_v54 = vrot.slane %v4308_v20, 4  ;;  %v17498_v27 = vld [vmem:[#allocation4 + $0x90] sm:$0xff]  }
 0x27e   : > { %15921 = vmatpush3.bf16.msra.mxu1 %v17488_v39  ;;  %15908 = vmatprep.mubr.bf16.mxu1 %v14270_v2  ;;  %v4265_v39 = vrot.slane %v4263_v43, 5  ;;  %v4289_v2 = vrot.slane %v4287_v41, 5  ;;  %v4313_v14 = vrot.slane %v4311_v53, 5  ;;  %v837_v41 = vrot.slane %v19330_v48, 4 }
 0x27f   : > { %15922 = vmatprep.subr.bf16.mxu1 %v17489_v4  ;;  %v4275_v36 = vrot.slane %v4274_v10, 4  ;;  %v4299_v43 = vrot.slane %v4298_v32, 4  ;;  %v17494_v10 = vld [vmem:[#allocation4 + $0x30] sm:$0xff]   ;;  %v14285_v34 = vcombine.low %v19264_v1, %v19267_v21  ;;  %v14286_v48 = vcombine.low %v19288_v0, %v19294_v28  ;;  %v17499_v1 = vld [vmem:[#allocation4 + $0x98] sm:$0xff]   ;;  %v17500_v0 = vld [vmem:[#allocation4 + $0xa0] sm:$0xff]  }
 0x280   : > { %v4290_v17 = vsel %vm17978_vm11, %v4285_v60, %v4289_v2  ;;  %v14289_v60 = vcombine.low %v19380_v26, %v19382_v8  ;;  %v17501_v2 = vld [vmem:[#allocation4 + $0xa8] sm:$0xff]   ;;  %v4734_v32 = vrot.slane %v19267_v21, 5  ;;  %v4741_v53 = vrot.slane %v19294_v28, 5 }
 0x281   : > { %v4280_v62 = vsel %vm17978_vm11, %v4275_v36, %v4279_v57  ;;  %v4304_v57 = vsel %vm17978_vm11, %v4299_v43, %v4303_v13  ;;  %v998_v44 = vld [vmem:[#allocation3 + $0xc8] sm:$0x1]  ;;  %v14287_v13 = vcombine.low %v19327_v56, %v19308_v31  ;;  %v4701_v36 = vld [vmem:[#allocation3 + $0x60] sm:$0xe]  ;;  %v14290_v56 = vcombine.low %v19385_v22, %v19389_v18  ;;  %v4702_v22 = vld [vmem:[#allocation3 + $0x6c] sm:$0xe] }
 0x282   : > { %15923 = vmatpush3.bf16.msra.mxu1 %v17489_v4  ;;  %v4266_v4 = vsel %vm17978_vm11, %v4261_v38, %v4265_v39  ;;  %v14274_v40 = vcombine.low %v4280_v62, %v4290_v17  ;;  %v999_v38 = vsel %vm17909_vm3, %v837_v41, %v998_v44  ;;  %v17496_v39 = vld [vmem:[#allocation4 + $0x80] sm:$0xff]   ;;  %v14300_v5 = vrot.slane %v4701_v36, 9 }
 0x283   : > { %15924 = vmatprep.subr.bf16.mxu1 %v17490_v37  ;;  %v14273_v9 = vcombine.low %v4256_v23, %v4266_v4  ;;  %1000 = vst [vmem:[#allocation3 + $0xc8] sm:$0x1] %v999_v38  ;;  %v4730_v4 = vrot.slane %v19282_v61, 5  ;;  %v14291_v61 = vcombine.low %v19406_v12, %v19408_v30  ;;  %v14301_v17 = vrot.slane %v4702_v22, 9 }
 0x284   : > { %v4737_v21 = vrot.slane %v19284_v29, 5  ;;  %v4743_v43 = vrot.slane %v4741_v53, 4 }
 0x285   : > { %15909 = vmatmul.mubr.bf16.gmra.mrb[20].mxu1 %v14271_v45  ;;  %v14284_v45 = vcombine.low %v19260_v59, %v19262_v49  ;;  %v17497_v59 = vld [vmem:[#allocation4 + $0x88] sm:$0xff]   ;;  %v4735_v28 = vsel %vm17970_vm10, %v14301_v17, %v4734_v32  ;;  %v17511_v17 = vld [vmem:[#allocation4 + $0xf0] sm:$0xff]  }
 0x286   : > { %15925 = vmatpush3.bf16.msra.mxu1 %v17490_v37  ;;  %15912 = vmatprep.mubr.bf16.mxu1 %v14272_v47  ;;  %v4314_v37 = vsel %vm17978_vm11, %v4309_v54, %v4313_v14  ;;  %v17495_v47 = vld [vmem:[#allocation4 + $0x38] sm:$0xff]   ;;  %v4744_v54 = vrot.slane %v19344_v33, 5  ;;  %v4748_v14 = vrot.slane %v19308_v31, 5  ;;  %v4704_v33 = vld [vmem:[#allocation3 + $0x84] sm:$0xe] }
 0x287   : > { %15926 = vmatprep.subr.bf16.mxu1 %v17491_v63  ;;  %v14275_v7 = vcombine.low %v4304_v57, %v4314_v37  ;;  %v4755_v57 = vrot.slane %v19335_v15, 5  ;;  %v4705_v37 = vld [vmem:[#allocation3 + $0x90] sm:$0xe]  ;;  %v14303_v41 = vrot.slane %v4704_v33, 9  ;;  %v17506_v31 = vld [vmem:[#allocation4 + $0xc8] sm:$0xff]  }
 0x288   : > { %v4745_v19 = vsel %vm17970_vm10, %v4743_v43, %v4744_v54  ;;  %v14304_v44 = vrot.slane %v4705_v37, 9  ;;  %v17514_v43 = vld [vmem:[#allocation4 + $0x100] sm:$0xff]  }
 0x289   : > { %v4757_v38 = vrot.slane %v4755_v57, 4  ;;  %v4749_v15 = vsel %vm17970_vm10, %v14303_v41, %v4748_v14  ;;  %v17515_v54 = vld [vmem:[#allocation3 + $0x78] sm:$0xff]  }
 0x28a   : > { %15927 = vmatpush3.bf16.msra.mxu1 %v17491_v63  ;;  %v4727_v63 = vrot.slane %v19262_v49, 5  ;;  %v17502_v49 = vld [vmem:[#allocation4 + $0xb0] sm:$0xff]   ;;  %v5235_v33 = vld [vmem:[#allocation3 + $0x78] sm:$0xf] }
 0x28b   : > { %15928 = vmatprep.subr.bf16.mxu1 %v17492_v24  ;;  %v5281_v41 = vshrl.u32 %v5235_v33, 16 }
 0x28c   : > { %v4729_v23 = vrot.slane %v4727_v63, 4  ;;  %v4728_v26 = vsel %vm17970_vm10, %v14300_v5, %v4727_v63  ;;  %v4772_v5 = vrot.slane %v19418_v55, 5  ;;  %v4708_v55 = vld [vmem:[#allocation3 + $0xb4] sm:$0xe] }
 0x28d   : > { %15913 = vmatmul.mubr.bf16.gmra.mrb[24].mxu1 %v14273_v9  ;;  %v4736_v9 = vrot.slane %v4734_v32, 4  ;;  %v17509_v32 = vld [vmem:[#allocation4 + $0xe0] sm:$0xff]   ;;  %v14307_v22 = vrot.slane %v4708_v55, 9  ;;  %v17523_v55 = vld [vmem:[#allocation3 + $0xa8] sm:$0xff]  }
 0x28e   : > { %15929 = vmatpush3.bf16.msra.mxu1 %v17492_v24  ;;  %15916 = vmatprep.mubr.bf16.mxu1 %v14274_v40  ;;  %v4731_v20 = vsel %vm17970_vm10, %v4729_v23, %v4730_v4  ;;  %v4703_v24 = vld [vmem:[#allocation3 + $0x78] sm:$0xe]  ;;  %v4776_v4 = vrot.slane %v19408_v30, 5 }
 0x28f   : > { %15930 = vmatprep.subr.bf16.mxu1 %v17493_v58  ;;  %v14308_v62 = vcombine.low %v4728_v26, %v4731_v20  ;;  %v14302_v40 = vrot.slane %v4703_v24, 9  ;;  %v4738_v12 = vsel %vm17970_vm10, %v4736_v9, %v4737_v21  ;;  %v4779_v24 = vrot.slane %v19428_v11, 5  ;;  %v248_v21 = vld [vmem:[#allocation3 + $0xcc] sm:$0x1] }
 0x290   : > { %v4777_v30 = vsel %vm17970_vm10, %v14307_v22, %v4776_v4  ;;  %v249_v11 = vsel %vm17909_vm3, 0, %v248_v21 }
 0x291   : > { %v4742_v29 = vsel %vm17970_vm10, %v14302_v40, %v4741_v53  ;;  %v4778_v53 = vrot.slane %v4776_v4, 4  ;;  %v17512_v40 = vld [vmem:[#allocation4 + $0xf8] sm:$0xff]   ;;  %250 = vst [vmem:[#allocation3 + $0xcc] sm:$0x1] %v249_v11  ;;  %v19544_v11 = vld [vmem:[#allocation3 + $0xa0] sm:$0xf] }
 0x292   : > { %15931 = vmatpush3.bf16.msra.mxu1 %v17493_v58  ;;  %v17505_v58 = vld [vmem:[#allocation4 + $0xc0] sm:$0xff]  }
 0x293   : > { %15932 = vmatprep.subr.bf16.mxu1 %v17494_v10 }
 0x295   : > { %15917 = vmatmul.mubr.bf16.gmra.mrb[28].mxu1 %v14275_v7  ;;  %v14310_v7 = vcombine.low %v4742_v29, %v4745_v19 }
 0x296   : > { %15933 = vmatpush3.bf16.msra.mxu1 %v17494_v10  ;;  %15936 = vmatprep.mubr.bf16.mxu1 %v14284_v45  ;;  %v14309_v10 = vcombine.low %v4735_v28, %v4738_v12  ;;  %v4750_v45 = vrot.slane %v4748_v14, 4  ;;  %v5232_v28 = vld [vmem:[#allocation3 + $0x6c] sm:$0xf]  ;;  %v17517_v12 = vld [vmem:[#allocation3 + $0x84] sm:$0xff]  }
 0x297   : > { %15934 = vmatprep.subr.bf16.mxu1 %v17495_v47  ;;  %v17516_v14 = vld [vmem:[#allocation4 + $0x108] sm:$0xff]   ;;  %v5257_v29 = vshrl.u32 %v5232_v28, 16  ;;  %v5260_v19 = vshll.u32 %v5232_v28, 16 }
 0x29a   : > { %15935 = vmatpush3.bf16.msra.mxu1 %v17495_v47  ;;  %v4751_v47 = vrot.slane %v19368_v6, 5  ;;  %v4756_v6 = vsel %vm17970_vm10, %v14304_v44, %v4755_v57  ;;  %v19516_v57 = vld [vmem:[#allocation3 + $0x7c] sm:$0xf]  ;;  %v5259_v44 = vrot.slane %v5257_v29, 4 }
 0x29b   : > { %15952 = vmatprep.subr.bf16.mxu1 %v17496_v39 }
 0x29d   : > { %15937 = vmatmul.mubr.bf16.vlgmr.msra.gmra.mrb[16].mxu1 %v14285_v34  ;;  %v4752_v34 = vsel %vm17970_vm10, %v4750_v45, %v4751_v47  ;;  %v5284_v45 = vshll.u32 %v5235_v33, 16  ;;  %v5290_v47 = vshll.u32 %v19516_v57, 16 }
 0x29e   : > { %15953 = vmatpush3.bf16.msra.mxu1 %v17496_v39  ;;  %15940 = vmatprep.mubr.bf16.mxu1 %v14286_v48  ;;  %v4758_v39 = vrot.slane %v19377_v50, 5  ;;  %v4762_v48 = vrot.slane %v19382_v8, 5  ;;  %v4706_v50 = vld [vmem:[#allocation3 + $0x9c] sm:$0xe]  ;;  %v17508_v8 = vld [vmem:[#allocation4 + $0xd8] sm:$0xff]  }
 0x29f   : > { %15954 = vmatprep.subr.bf16.mxu1 %v17497_v59  ;;  %v14305_v63 = vrot.slane %v4706_v50, 9  ;;  %v5283_v50 = vrot.slane %v5281_v41, 4  ;;  %v5366_v41 = vshrl.u32 %v19544_v11, 16 }
 0x2a0   : > { %v4764_v36 = vrot.slane %v4762_v48, 4 }
 0x2a2   : > { %15955 = vmatpush3.bf16.msra.mxu1 %v17497_v59  ;;  %v17507_v59 = vld [vmem:[#allocation4 + $0xd0] sm:$0xff]  }
 0x2a3   : > { %15956 = vmatprep.subr.bf16.mxu1 %v17498_v27 }
 0x2a5   : > { %15941 = vmatmul.mubr.bf16.gmra.mrb[20].mxu1 %v14287_v13  ;;  %v4769_v13 = vrot.slane %v19389_v18, 5  ;;  %v4763_v18 = vsel %vm17970_vm10, %v14305_v63, %v4762_v48  ;;  %v17521_v48 = vld [vmem:[#allocation3 + $0x9c] sm:$0xff]  }
 0x2a6   : > { %15957 = vmatpush3.bf16.msra.mxu1 %v17498_v27  ;;  %15944 = vmatprep.mubr.bf16.mxu1 %v14288_v3  ;;  %v4759_v27 = vsel %vm17970_vm10, %v4757_v38, %v4758_v39  ;;  %v4707_v3 = vld [vmem:[#allocation3 + $0xa8] sm:$0xe]  ;;  %v5262_v38 = vrot.slane %v5260_v19, 5  ;;  %v17519_v39 = vld [vmem:[#allocation3 + $0x90] sm:$0xff]  }
 0x2a7   : > { %15958 = vmatprep.subr.bf16.mxu1 %v17499_v1 }
 0x2a8   : > { %v5263_v63 = vor.u32 %v5262_v38, %v5259_v44  ;;  %v17526_v44 = vld [vmem:[#allocation4 + $0x130] sm:$0xff]   ;;  %v17527_v38 = vld [vmem:[#allocation3 + $0xc0] sm:$0xff]  }
 0x2aa   : > { %15959 = vmatpush3.bf16.msra.mxu1 %v17499_v1  ;;  %v14311_v1 = vcombine.low %v4749_v15, %v4752_v34  ;;  %v19522_v15 = vld [vmem:[#allocation3 + $0x74] sm:$0x1] }
 0x2ab   : > { %15960 = vmatprep.subr.bf16.mxu1 %v17500_v0  ;;  %v17520_v34 = vld [vmem:[#allocation4 + $0x118] sm:$0xff]  }
 0x2ad   : > { %15945 = vmatmul.mubr.bf16.gmra.mrb[24].mxu1 %v14289_v60  ;;  %v4765_v60 = vrot.slane %v19404_v46, 5 }
 0x2ae   : > { %15961 = vmatpush3.bf16.msra.mxu1 %v17500_v0  ;;  %15948 = vmatprep.mubr.bf16.mxu1 %v14290_v56  ;;  %v14312_v0 = vcombine.low %v4756_v6, %v4759_v27  ;;  %v14306_v56 = vrot.slane %v4707_v3, 9  ;;  %v5238_v27 = vld [vmem:[#allocation3 + $0x84] sm:$0xf]  ;;  %v19526_v3 = vrot.slane %v5290_v47, 5 }
 0x2af   : > { %15962 = vmatprep.subr.bf16.mxu1 %v17501_v2  ;;  %v4766_v23 = vsel %vm17970_vm10, %v4764_v36, %v4765_v60  ;;  %v5276_v36 = vshll.u32 %v19522_v15, 16  ;;  %v19531_v60 = vld [vmem:[#allocation3 + $0x80] sm:$0x1] }
 0x2b0   : > { %v4770_v46 = vsel %vm17970_vm10, %v14306_v56, %v4769_v13  ;;  %v14313_v26 = vcombine.low %v4763_v18, %v4766_v23  ;;  %v5308_v56 = vshll.u32 %v5238_v27, 16  ;;  %v17522_v18 = vld [vmem:[#allocation4 + $0x120] sm:$0xff]  }
 0x2b1   : > { %v5278_v22 = vrot.slane %v5276_v36, 5  ;;  %v5247_v36 = vld [vmem:[#allocation3 + $0xa8] sm:$0xf] }
 0x2b2   : > { %15963 = vmatpush3.bf16.msra.mxu1 %v17501_v2  ;;  %v4771_v2 = vrot.slane %v4769_v13, 4  ;;  %v5286_v13 = vrot.slane %v5284_v45, 5 }
 0x2b3   : > { %15964 = vmatprep.subr.bf16.mxu1 %v17502_v49 }
 0x2b4   : > { %v5287_v4 = vor.u32 %v5286_v13, %v5283_v50 }
 0x2b5   : > { %15949 = vmatmul.mubr.bf16.gmra.mrb[28].mxu1 %v14291_v61  ;;  %v17510_v61 = vld [vmem:[#allocation4 + $0xe8] sm:$0xff]  }
 0x2b6   : > { %15965 = vmatpush3.bf16.msra.mxu1 %v17502_v49  ;;  %15968 = vmatprep.mubr.bf16.mxu1 %v14308_v62  ;;  %v4773_v49 = vsel %vm17970_vm10, %v4771_v2, %v4772_v5  ;;  %v4780_v62 = vsel %vm17970_vm10, %v4778_v53, %v4779_v24  ;;  %v19538_v53 = vld [vmem:[#allocation3 + $0x94] sm:$0xf]  ;;  %v19540_v24 = vld [vmem:[#allocation3 + $0x8c] sm:$0x1] }
 0x2b7   : > { %15966 = vmatprep.subr.bf16.mxu1 %v17504_v42  ;;  %v14314_v20 = vcombine.low %v4770_v46, %v4773_v49  ;;  %v14315_v9 = vcombine.low %v4777_v30, %v4780_v62  ;;  %v5300_v46 = vshll.u32 %v19531_v60, 16  ;;  %v5241_v49 = vld [vmem:[#allocation3 + $0x90] sm:$0xf]  ;;  %v5310_v30 = vrot.slane %v5308_v56, 5  ;;  %v5244_v62 = vld [vmem:[#allocation3 + $0x9c] sm:$0xf] }
 0x2b8   : > { %v5329_v21 = vshrl.u32 %v5241_v49, 16  ;;  %v5342_v29 = vshrl.u32 %v19538_v53, 16  ;;  %v5353_v19 = vshrl.u32 %v5244_v62, 16  ;;  %v5356_v33 = vshll.u32 %v5244_v62, 16  ;;  %v19566_v56 = vld [vmem:[#allocation3 + $0xa4] sm:$0x1] }
 0x2b9   : > { %v5250_v62 = vld [vmem:[#allocation3 + $0xb4] sm:$0xf] }
 0x2ba   : > { %15967 = vmatpush3.bf16.msra.mxu1 %v17504_v42  ;;  %v17513_v42 = vld [vmem:[#allocation3 + $0x6c] sm:$0xff]   ;;  %v5331_v47 = vrot.slane %v5329_v21, 4  ;;  %v5344_v13 = vrot.slane %v5342_v29, 4  ;;  %v17529_v29 = vld [vmem:[#allocation4 + $0x140] sm:$0xff]  }
 0x2bb   : > { %15984 = vmatprep.subr.bf16.mxu1 %v17505_v58 }
 0x2bd   : > { %15969 = vmatmul.mubr.bf16.vlgmr.msra.gmra.mrb[16].mxu1 %v14309_v10 }
 0x2be   : > { %15985 = vmatpush3.bf16.msra.mxu1 %v17505_v58  ;;  %15972 = vmatprep.mubr.bf16.mxu1 %v14310_v7  ;;  %v19514_v58 = vld [vmem:[#allocation3 + $0x70] sm:$0xf]  ;;  %v17518_v7 = vld [vmem:[#allocation4 + $0x110] sm:$0xff]  }
 0x2bf   : > { %15986 = vmatprep.subr.bf16.mxu1 %v17506_v31  ;;  %v5266_v37 = vshll.u32 %v19514_v58, 16  ;;  %v5270_v10 = vshrl.u32 %v19514_v58, 16 }
 0x2c1   : > { %v5272_v6 = vrot.slane %v5270_v10, 4  ;;  %v5324_v10 = vshll.u32 %v19540_v24, 16 }
 0x2c2   : > { %15987 = vmatpush3.bf16.msra.mxu1 %v17506_v31  ;;  %v5294_v31 = vshrl.u32 %v19516_v57, 16 }
 0x2c3   : > { %15988 = vmatprep.subr.bf16.mxu1 %v17507_v59 }
 0x2c5   : > { %15973 = vmatmul.mubr.bf16.gmra.mrb[20].mxu1 %v14311_v1  ;;  %v5296_v1 = vrot.slane %v5294_v31, 4 }
 0x2c6   : > { %15989 = vmatpush3.bf16.msra.mxu1 %v17507_v59  ;;  %15976 = vmatprep.mubr.bf16.mxu1 %v14312_v0  ;;  %v19524_v59 = vrot.slane %v5266_v37, 5  ;;  %v19528_v0 = vld [vmem:[#allocation3 + $0x88] sm:$0xf] }
 0x2c7   : > { %15990 = vmatprep.subr.bf16.mxu1 %v17508_v8  ;;  %v5314_v2 = vshll.u32 %v19528_v0, 16  ;;  %v5318_v5 = vshrl.u32 %v19528_v0, 16 }
 0x2c8   : > { %v5273_v23 = vor.u32 %v5272_v6, %v19524_v59 }
 0x2ca   : > { %15991 = vmatpush3.bf16.msra.mxu1 %v17508_v8  ;;  %v5305_v8 = vshrl.u32 %v5238_v27, 16  ;;  %v19562_v27 = vld [vmem:[#allocation3 + $0x98] sm:$0x1] }
 0x2cb   : > { %15992 = vmatprep.subr.bf16.mxu1 %v17509_v32 }
 0x2cd   : > { %15977 = vmatmul.mubr.bf16.gmra.mrb[24].mxu1 %v14313_v26  ;;  %v17525_v26 = vld [vmem:[#allocation3 + $0xb4] sm:$0xff]  }
 0x2ce   : > { %15993 = vmatpush3.bf16.msra.mxu1 %v17509_v32  ;;  %15980 = vmatprep.mubr.bf16.mxu1 %v14314_v20  ;;  %v5297_v32 = vor.u32 %v5296_v1, %v19526_v3  ;;  %v5264_v20 = vrot.slane %v5263_v63, 4  ;;  %v5355_v1 = vrot.slane %v5353_v19, 4  ;;  %v5358_v63 = vrot.slane %v5356_v33, 5 }
 0x2cf   : > { %15994 = vmatprep.subr.bf16.mxu1 %v17510_v61  ;;  %v5401_v19 = vshrl.u32 %v5250_v62, 16  ;;  %v5404_v33 = vshll.u32 %v5250_v62, 16 }
 0x2d0   : > { %v5298_v28 = vrot.slane %v5297_v32, 4  ;;  %v19571_v32 = vld [vmem:[#allocation3 + $0xac] sm:$0xf] }
 0x2d2   : > { %15995 = vmatpush3.bf16.msra.mxu1 %v17510_v61  ;;  %v5307_v61 = vrot.slane %v5305_v8, 4 }
 0x2d3   : > { %15996 = vmatprep.subr.bf16.mxu1 %v17511_v17 }
 0x2d4   : > { %v5311_v37 = vor.u32 %v5310_v30, %v5307_v61  ;;  %v5372_v61 = vshll.u32 %v19566_v56, 16  ;;  %v5380_v30 = vshll.u32 %v5247_v36, 16 }
 0x2d5   : > { %15981 = vmatmul.mubr.bf16.gmra.mrb[28].mxu1 %v14315_v9  ;;  %v5320_v9 = vrot.slane %v5318_v5, 4  ;;  %v5368_v5 = vrot.slane %v5366_v41, 4 }
 0x2d6   : > { %15997 = vmatpush3.bf16.msra.mxu1 %v17511_v17  ;;  %16000 = vmatprep.mubr.bf16.mxu1 %v17513_v42  ;;  %v19542_v17 = vrot.slane %v5314_v2, 5  ;;  %v5332_v42 = vshll.u32 %v5241_v49, 16  ;;  %v5312_v8 = vrot.slane %v5311_v37, 4  ;;  %v17528_v49 = vld [vmem:[#allocation4 + $0x138] sm:$0xff]   ;;  %v5374_v41 = vrot.slane %v5372_v61, 5 }
 0x2d7   : > { %15998 = vmatprep.subr.bf16.mxu1 %v17512_v40 }
 0x2d8   : > { %v5321_v45 = vor.u32 %v5320_v9, %v19542_v17  ;;  %v5334_v31 = vrot.slane %v5332_v42, 5  ;;  %v19575_v9 = vld [vmem:[#allocation3 + $0xb8] sm:$0xf]  ;;  %v5386_v42 = vshll.u32 %v19571_v32, 16 }
 0x2d9   : > { %v5410_v37 = vshll.u32 %v19575_v9, 16  ;;  %v5414_v25 = vshrl.u32 %v19575_v9, 16 }
 0x2da   : > { %15999 = vmatpush3.bf16.msra.mxu1 %v17512_v40  ;;  %v17524_v40 = vld [vmem:[#allocation4 + $0x128] sm:$0xff]  }
 0x2db   : > { %16016 = vmatprep.subr.bf16.mxu1 %v17514_v43 }
 0x2dd   : > { %16001 = vmatmul.mubr.bf16.vlgmr.msra.gmra.mrb[16].mxu1 %v17515_v54  ;;  %v5288_v54 = vrot.slane %v5287_v4, 4  ;;  %v5348_v4 = vshll.u32 %v19562_v27, 16 }
 0x2de   : > { %16017 = vmatpush3.bf16.msra.mxu1 %v17514_v43  ;;  %16004 = vmatprep.mubr.bf16.mxu1 %v17517_v12  ;;  %v5274_v43 = vrot.slane %v5273_v23, 4  ;;  %v5302_v12 = vrot.slane %v5300_v46, 5  ;;  %v5335_v23 = vor.u32 %v5334_v31, %v5331_v47  ;;  %v304_v46 = vld [vmem:[#allocation3 + $0xd4] sm:$0x1]  ;;  %v5382_v31 = vrot.slane %v5380_v30, 5 }
 0x2df   : > { %16018 = vmatprep.subr.bf16.mxu1 %v17516_v14 }
 0x2e0   : > { %v5303_v6 = vsel %vm17978_vm11, %v5298_v28, %v5302_v12  ;;  %v5336_v12 = vrot.slane %v5335_v23, 4 }
 0x2e2   : > { %16019 = vmatpush3.bf16.msra.mxu1 %v17516_v14  ;;  %v5338_v14 = vshll.u32 %v19538_v53, 16 }
 0x2e3   : > { %16020 = vmatprep.subr.bf16.mxu1 %v17518_v7 }
 0x2e4   : > { %v19564_v50 = vrot.slane %v5338_v14, 5  ;;  %v5350_v14 = vrot.slane %v5348_v4, 5 }
 0x2e5   : > { %16005 = vmatmul.mubr.bf16.gmra.mrb[20].mxu1 %v17519_v39  ;;  %v5269_v39 = vsel %vm17978_vm11, %v5264_v20, %v19524_v59  ;;  %v5326_v59 = vrot.slane %v5324_v10, 5 }
 0x2e6   : > { %16021 = vmatpush3.bf16.msra.mxu1 %v17518_v7  ;;  %16008 = vmatprep.mubr.bf16.mxu1 %v17521_v48  ;;  %v5362_v7 = vshll.u32 %v19544_v11, 16  ;;  %v5293_v48 = vsel %vm17978_vm11, %v5288_v54, %v19526_v3  ;;  %v5345_v20 = vor.u32 %v5344_v13, %v19564_v50  ;;  %v5317_v54 = vsel %vm17978_vm11, %v5312_v8, %v19542_v17  ;;  %v19589_v17 = vld [vmem:[#allocation3 + $0xb0] sm:$0x1] }
 0x2e7   : > { %16022 = vmatprep.subr.bf16.mxu1 %v17520_v34  ;;  %v5406_v13 = vrot.slane %v5404_v33, 5  ;;  %v5341_v8 = vsel %vm17978_vm11, %v5336_v12, %v19564_v50 }
 0x2e8   : > { %v19568_v2 = vrot.slane %v5362_v7, 5  ;;  %v5346_v10 = vrot.slane %v5345_v20, 4 }
 0x2ea   : > { %16023 = vmatpush3.bf16.msra.mxu1 %v17520_v34  ;;  %v5279_v34 = vsel %vm17978_vm11, %v5274_v43, %v5278_v22  ;;  %v5359_v22 = vor.u32 %v5358_v63, %v5355_v1  ;;  %v5369_v21 = vor.u32 %v5368_v5, %v19568_v2  ;;  %v305_v43 = vsel %vm17915_vm4, 0, %v304_v46 }
 0x2eb   : > { %16024 = vmatprep.subr.bf16.mxu1 %v17522_v18  ;;  %v14340_v3 = vcombine.low %v5269_v39, %v5279_v34  ;;  %306 = vst [vmem:[#allocation3 + $0xd4] sm:$0x1] %v305_v43  ;;  %v17530_v39 = vld [vmem:[#allocation4 + $0x148] sm:$0xff]   ;;  %v5412_v1 = vrot.slane %v5410_v37, 5  ;;  %v5416_v63 = vrot.slane %v5414_v25, 4  ;;  %v5396_v5 = vshll.u32 %v19589_v17, 16 }
 0x2ec   : > { %v5360_v7 = vrot.slane %v5359_v22, 4  ;;  %v5370_v47 = vrot.slane %v5369_v21, 4  ;;  %v19612_v37 = vld [vmem:[#allocation3 + $0xc8] sm:$0x1] }
 0x2ed   : > { %16009 = vmatmul.mubr.bf16.gmra.mrb[24].mxu1 %v17523_v55  ;;  %v14341_v55 = vcombine.low %v5293_v48, %v5303_v6  ;;  %v5253_v48 = vld [vmem:[#allocation3 + $0xc0] sm:$0xf]  ;;  %v5403_v6 = vrot.slane %v5401_v19, 4  ;;  %v5417_v61 = vor.u32 %v5416_v63, %v5412_v1 }
 0x2ee   : > { %16025 = vmatpush3.bf16.msra.mxu1 %v17522_v18  ;;  %16012 = vmatprep.mubr.bf16.mxu1 %v17525_v26  ;;  %v5322_v18 = vrot.slane %v5321_v45, 4  ;;  %v5377_v26 = vshrl.u32 %v5247_v36, 16  ;;  %v19593_v36 = vld [vmem:[#allocation3 + $0xc4] sm:$0xf]  ;;  %v5375_v23 = vsel %vm17978_vm11, %v5370_v47, %v5374_v41  ;;  %v5425_v50 = vshrl.u32 %v5253_v48, 16  ;;  %v17533_v47 = vld [vmem:[#allocation4 + $0x160] sm:$0xff]  }
 0x2ef   : > { %16026 = vmatprep.subr.bf16.mxu1 %v17524_v40  ;;  %v5438_v20 = vshrl.u32 %v19593_v36, 16  ;;  %v5407_v22 = vor.u32 %v5406_v13, %v5403_v6  ;;  %v5418_v19 = vrot.slane %v5417_v61, 4  ;;  %v5712_v61 = vrot.slane %v19538_v53, 5 }
 0x2f0   : > { %v5327_v28 = vsel %vm17978_vm11, %v5322_v18, %v5326_v59  ;;  %v5379_v45 = vrot.slane %v5377_v26, 4  ;;  %v5351_v59 = vsel %vm17978_vm11, %v5346_v10, %v5350_v14  ;;  %v5365_v18 = vsel %vm17978_vm11, %v5360_v7, %v19568_v2  ;;  %v17532_v14 = vld [vmem:[#allocation4 + $0x158] sm:$0xff]  }
 0x2f1   : > { %v14342_v34 = vcombine.low %v5317_v54, %v5327_v28  ;;  %v5434_v26 = vshll.u32 %v19593_v36, 16  ;;  %v14343_v30 = vcombine.low %v5341_v8, %v5351_v59  ;;  %v14344_v62 = vcombine.low %v5365_v18, %v5375_v23  ;;  %v5658_v23 = vld [vmem:[#allocation3 + $0x78] sm:$0xe] }
 0x2f2   : > { %16027 = vmatpush3.bf16.msra.mxu1 %v17524_v40  ;;  %v5390_v40 = vshrl.u32 %v19571_v32, 16  ;;  %v5383_v4 = vor.u32 %v5382_v31, %v5379_v45  ;;  %v5427_v43 = vrot.slane %v5425_v50, 4  ;;  %v5440_v12 = vrot.slane %v5438_v20, 4 }
 0x2f3   : > { %16028 = vmatprep.subr.bf16.mxu1 %v17526_v44  ;;  %v5436_v28 = vrot.slane %v5434_v26, 5  ;;  %v5444_v45 = vshll.u32 %v19612_v37, 16  ;;  %v5694_v18 = vrot.slane %v19522_v15, 5  ;;  %v17535_v26 = vld [vmem:[#allocation4 + $0x170] sm:$0xff]   ;;  %v5701_v20 = vrot.slane %v19531_v60, 5 }
 0x2f4   : > { %v5384_v21 = vrot.slane %v5383_v4, 4  ;;  %v5705_v4 = vrot.slane %v19528_v0, 5  ;;  %v5726_v53 = vrot.slane %v19571_v32, 5  ;;  %v17570_v32 = vld [vmem:[%s21603_s2 + $0x8] sm:$0xff]  }
 0x2f5   : > { %16013 = vmatmul.mubr.bf16.gmra.mrb[28].mxu1 %v17527_v38  ;;  %v5392_v38 = vrot.slane %v5390_v40, 4  ;;  %v5398_v40 = vrot.slane %v5396_v5, 5  ;;  %v5441_v41 = vor.u32 %v5440_v12, %v5436_v28  ;;  %v5446_v8 = vrot.slane %v5444_v45, 5  ;;  %v6196_v45 = vld [vmem:[#allocation3 + $0x78] sm:$0xf] }
 0x2f6   : > { %16029 = vmatpush3.bf16.msra.mxu1 %v17526_v44  ;;  %16032 = vmatprep.mubr.bf16.mxu1 %v14340_v3  ;;  %v19591_v44 = vrot.slane %v5386_v42, 5  ;;  %v19601_v3 = vld [vmem:[#allocation3 + $0xbc] sm:$0x1] }
 0x2f7   : > { %16030 = vmatprep.subr.bf16.mxu1 %v17528_v49  ;;  %v5420_v2 = vshll.u32 %v19601_v3, 16  ;;  %v5442_v63 = vrot.slane %v5441_v41, 4  ;;  %v5733_v41 = vrot.slane %v19575_v9, 5 }
 0x2f8   : > { %v5393_v46 = vor.u32 %v5392_v38, %v19591_v44  ;;  %v5389_v25 = vsel %vm17978_vm11, %v5384_v21, %v19591_v44  ;;  %v5657_v44 = vld [vmem:[#allocation3 + $0x6c] sm:$0xe]  ;;  %v5661_v21 = vld [vmem:[#allocation3 + $0x9c] sm:$0xe] }
 0x2f9   : > { %v5422_v33 = vrot.slane %v5420_v2, 5  ;;  %v14356_v59 = vrot.slane %v5657_v44, 9  ;;  %v5447_v50 = vsel %vm17978_vm11, %v5442_v63, %v5446_v8  ;;  %v5740_v8 = vrot.slane %v19593_v36, 5 }
 0x2fa   : > { %16031 = vmatpush3.bf16.msra.mxu1 %v17528_v49  ;;  %v5428_v49 = vshll.u32 %v5253_v48, 16  ;;  %v5394_v42 = vrot.slane %v5393_v46, 4  ;;  %v17534_v48 = vld [vmem:[#allocation4 + $0x168] sm:$0xff]  }
 0x2fb   : > { %16048 = vmatprep.subr.bf16.mxu1 %v17529_v29  ;;  %v5423_v38 = vsel %vm17978_vm11, %v5418_v19, %v5422_v33 }
 0x2fc   : > { %v5430_v54 = vrot.slane %v5428_v49, 5  ;;  %v5399_v10 = vsel %vm17978_vm11, %v5394_v42, %v5398_v40  ;;  %v14357_v49 = vrot.slane %v5658_v23, 9  ;;  %v5719_v42 = vrot.slane %v19544_v11, 5  ;;  %v17571_v23 = vld [vmem:[%s21603_s2 + $0x10] sm:$0xff]  }
 0x2fd   : > { %16033 = vmatmul.mubr.bf16.vlgmr.msra.gmra.mrb[16].mxu1 %v14341_v55  ;;  %v17531_v55 = vld [vmem:[#allocation4 + $0x150] sm:$0xff]  }
 0x2fe   : > { %16049 = vmatpush3.bf16.msra.mxu1 %v17529_v29  ;;  %16036 = vmatprep.mubr.bf16.mxu1 %v14342_v34  ;;  %v5408_v29 = vrot.slane %v5407_v22, 4  ;;  %v5431_v7 = vor.u32 %v5430_v54, %v5427_v43  ;;  %v14345_v34 = vcombine.low %v5389_v25, %v5399_v10  ;;  %v5707_v22 = vrot.slane %v5705_v4, 4  ;;  %v17536_v43 = vld [vmem:[#allocation4 + $0x178] sm:$0xff]   ;;  %v17569_v10 = vld [vmem:[%s21603_s2] sm:$0xff]  }
 0x2ff   : > { %16050 = vmatprep.subr.bf16.mxu1 %v17530_v39  ;;  %v5721_v33 = vrot.slane %v5719_v42, 4  ;;  %v5722_v25 = vrot.slane %v19566_v56, 5  ;;  %v5729_v56 = vrot.slane %v19589_v17, 5  ;;  %16176 = vmatprep.subr.bf16.mxu0 %v17569_v10  ;;  %v6199_v17 = vld [vmem:[#allocation3 + $0x84] sm:$0xf] }
 0x300   : > { %v5413_v31 = vsel %vm17978_vm11, %v5408_v29, %v5412_v1  ;;  %v5432_v13 = vrot.slane %v5431_v7, 4  ;;  %v5698_v1 = vrot.slane %v19516_v57, 5  ;;  %v14360_v29 = vrot.slane %v5661_v21, 9  ;;  %16177 = vmatpush3.bf16.msra.mxu0 %v17569_v10 }
 0x301   : > { %v14346_v6 = vcombine.low %v5413_v31, %v5423_v38  ;;  %v5728_v31 = vrot.slane %v5726_v53, 4  ;;  %v19659_v38 = vld [vmem:[#allocation3 + $0xb4] sm:$0xe]  ;;  %v19677_v63 = vsel %vm17970_vm10, %v5721_v33, %v5722_v25  ;;  %16178 = vmatprep.subr.bf16.mxu0 %v17570_v32  ;;  %v19716_v33 = vld [vmem:[#allocation3 + $0x8c] sm:$0x1] }
 0x302   : > { %16051 = vmatpush3.bf16.msra.mxu1 %v17530_v39  ;;  %v5691_v39 = vrot.slane %v19514_v58, 5  ;;  %v5659_v58 = vld [vmem:[#allocation3 + $0x84] sm:$0xe]  ;;  %v5437_v46 = vsel %vm17978_vm11, %v5432_v13, %v5436_v28  ;;  %v5700_v0 = vrot.slane %v5698_v1, 4  ;;  %v5699_v54 = vsel %vm17970_vm10, %v14357_v49, %v5698_v1  ;;  %v5662_v28 = vld [vmem:[#allocation3 + $0xa8] sm:$0xe] }
 0x303   : > { %16052 = vmatprep.subr.bf16.mxu1 %v17531_v55  ;;  %v14347_v2 = vcombine.low %v5437_v46, %v5447_v50  ;;  %v14361_v7 = vrot.slane %v5662_v28, 9  ;;  %v19673_v13 = vld [vmem:[#allocation3 + $0xc0] sm:$0xe] }
 0x304   : > { %v5693_v5 = vrot.slane %v5691_v39, 4  ;;  %v5692_v15 = vsel %vm17970_vm10, %v14356_v59, %v5691_v39  ;;  %v5702_v60 = vsel %vm17970_vm10, %v5700_v0, %v5701_v20  ;;  %v6197_v39 = vld [vmem:[#allocation3 + $0x7c] sm:$0xf]  ;;  %v6221_v59 = vshrl.u32 %v6196_v45, 16  ;;  %v17538_v1 = vld [vmem:[#allocation4 + $0x188] sm:$0xff]   ;;  %16179 = vmatpush3.bf16.msra.mxu0 %v17570_v32 }
 0x305   : > { %16037 = vmatmul.mubr.bf16.gmra.mrb[20].mxu1 %v14343_v30  ;;  %v5708_v30 = vrot.slane %v19540_v24, 5  ;;  %v5715_v24 = vrot.slane %v19562_v27, 5  ;;  %v17537_v27 = vld [vmem:[#allocation4 + $0x180] sm:$0xff]   ;;  %v6230_v46 = vshll.u32 %v6197_v39, 16  ;;  %v6234_v50 = vshrl.u32 %v6197_v39, 16  ;;  %16180 = vmatprep.subr.bf16.mxu0 %v17571_v23 }
 0x306   : > { %16053 = vmatpush3.bf16.msra.mxu1 %v17531_v55  ;;  %16040 = vmatprep.mubr.bf16.mxu1 %v14344_v62  ;;  %v5695_v57 = vsel %vm17970_vm10, %v5693_v5, %v5694_v18  ;;  %v14358_v55 = vrot.slane %v5659_v58, 9  ;;  %v5660_v62 = vld [vmem:[#allocation3 + $0x90] sm:$0xe]  ;;  %v6224_v5 = vshll.u32 %v6196_v45, 16  ;;  %v6200_v18 = vld [vmem:[#allocation3 + $0x88] sm:$0xf]  ;;  %v19688_v49 = vsel %vm17970_vm10, %v14361_v7, %v5726_v53 }
 0x307   : > { %16054 = vmatprep.subr.bf16.mxu1 %v17532_v14  ;;  %v14364_v40 = vcombine.low %v5692_v15, %v5695_v57  ;;  %v14359_v12 = vrot.slane %v5660_v62, 9  ;;  %v5709_v19 = vsel %vm17970_vm10, %v5707_v22, %v5708_v30  ;;  %v5735_v58 = vrot.slane %v5733_v41, 4  ;;  %v6202_v0 = vld [vmem:[#allocation3 + $0x90] sm:$0xf]  ;;  %v6203_v20 = vld [vmem:[#allocation3 + $0x94] sm:$0xf] }
 0x308   : > { %v5706_v11 = vsel %vm17970_vm10, %v14358_v55, %v5705_v4  ;;  %v14362_v4 = vrot.slane %v19659_v38, 9  ;;  %v6245_v15 = vshrl.u32 %v6199_v17, 16  ;;  %v6248_v57 = vshll.u32 %v6199_v17, 16  ;;  %v17539_v53 = vld [vmem:[#allocation4 + $0x190] sm:$0xff]   ;;  %v6205_v32 = vld [vmem:[#allocation3 + $0x9c] sm:$0xf]  ;;  %16181 = vmatpush3.bf16.msra.mxu0 %v17571_v23 }
 0x309   : > { %v14366_v44 = vcombine.low %v5706_v11, %v5709_v19  ;;  %v5736_v55 = vrot.slane %v19601_v3, 5  ;;  %v14363_v22 = vrot.slane %v19673_v13, 9  ;;  %v19698_v30 = vrot.slane %v5740_v8, 4  ;;  %v17572_v3 = vld [vmem:[%s21603_s2 + $0x18] sm:$0xff]   ;;  %v17573_v38 = vld [vmem:[%s21603_s2 + $0x20] sm:$0xff]  }
 0x30a   : > { %16055 = vmatpush3.bf16.msra.mxu1 %v17532_v14  ;;  %v5714_v14 = vrot.slane %v5712_v61, 4  ;;  %v5743_v62 = vrot.slane %v19612_v37, 5  ;;  %v19701_v21 = vrot.slane %v6221_v59, 4  ;;  %v6282_v28 = vshrl.u32 %v6203_v20, 16  ;;  %16182 = vmatprep.subr.bf16.mxu0 %v17572_v3 }
 0x30b   : > { %16056 = vmatprep.subr.bf16.mxu1 %v17533_v47  ;;  %v19726_v7 = vsel %vm17970_vm10, %v14362_v4, %v5733_v41  ;;  %v19730_v45 = vsel %vm17970_vm10, %v5735_v58, %v5736_v55  ;;  %v6264_v59 = vshll.u32 %v19716_v33, 16  ;;  %v6293_v23 = vshrl.u32 %v6205_v32, 16 }
 0x30c   : > { %v6284_v41 = vrot.slane %v6282_v28, 4  ;;  %16183 = vmatpush3.bf16.msra.mxu0 %v17572_v3 }
 0x30d   : > { %16041 = vmatmul.mubr.bf16.gmra.mrb[24].mxu1 %v14345_v34  ;;  %v19663_v34 = vsel %vm17970_vm10, %v14359_v12, %v5712_v61  ;;  %v6254_v61 = vshll.u32 %v6200_v18, 16  ;;  %v19710_v12 = vrot.slane %v6230_v46, 5  ;;  %16184 = vmatprep.subr.bf16.mxu0 %v17573_v38  ;;  %v6266_v3 = vrot.slane %v6264_v59, 5 }
 0x30e   : > { %16057 = vmatpush3.bf16.msra.mxu1 %v17533_v47  ;;  %16044 = vmatprep.mubr.bf16.mxu1 %v14346_v6  ;;  %v14365_v47 = vcombine.low %v5699_v54, %v5702_v60  ;;  %v19671_v6 = vsel %vm17970_vm10, %v14360_v29, %v5719_v42  ;;  %v19703_v42 = vrot.slane %v6224_v5, 5  ;;  %v6272_v54 = vshll.u32 %v6202_v0, 16 }
 0x30f   : > { %16058 = vmatprep.subr.bf16.mxu1 %v17534_v48  ;;  %v6278_v60 = vshll.u32 %v6203_v20, 16  ;;  %v6250_v29 = vrot.slane %v6248_v57, 5  ;;  %v14368_v19 = vcombine.low %v19671_v6, %v19677_v63  ;;  %v19718_v25 = vrot.slane %v6254_v61, 5  ;;  %v17541_v57 = vld [vmem:[#allocation4 + $0x1a0] sm:$0xff]  }
 0x310   : > { %v6274_v39 = vrot.slane %v6272_v54, 5  ;;  %v6227_v6 = vor.u32 %v19703_v42, %v19701_v21  ;;  %v6295_v28 = vrot.slane %v6293_v23, 4  ;;  %16185 = vmatpush3.bf16.msra.mxu0 %v17573_v38  ;;  %v19774_v38 = vsel %vm17970_vm10, %v19698_v30, %v5743_v62  ;;  %v19791_v30 = vld [vmem:[#allocation3 + $0xb0] sm:$0x1] }
 0x311   : > { %21924 = vst [vmem:[#allocation14_spill] sm:$0xff] %v19791_v30 }
 0x312   : > { %16059 = vmatpush3.bf16.msra.mxu1 %v17534_v48  ;;  %v19667_v48 = vsel %vm17970_vm10, %v5714_v14, %v5715_v24  ;;  %v6236_v14 = vrot.slane %v6234_v50, 4  ;;  %v6247_v24 = vrot.slane %v6245_v15, 4  ;;  %v17574_v15 = vld [vmem:[%s21603_s2 + $0x28] sm:$0xff]  }
 0x313   : > { %16060 = vmatprep.subr.bf16.mxu1 %v17535_v26  ;;  %v14367_v11 = vcombine.low %v19663_v34, %v19667_v48  ;;  %v6208_v34 = vld [vmem:[#allocation3 + $0xa8] sm:$0xf]  ;;  %v17540_v48 = vld [vmem:[#allocation4 + $0x198] sm:$0xff]   ;;  %16186 = vmatprep.subr.bf16.mxu0 %v17574_v15 }
 0x314   : > { %v6237_v17 = vor.u32 %v6236_v14, %v19710_v12  ;;  %v6251_v63 = vor.u32 %v6250_v29, %v6247_v24  ;;  %v6317_v46 = vshrl.u32 %v6208_v34, 16  ;;  %v6320_v50 = vshll.u32 %v6208_v34, 16  ;;  %v19755_v14 = vld [vmem:[#allocation3 + $0xa4] sm:$0x1]  ;;  %16187 = vmatpush3.bf16.msra.mxu0 %v17574_v15  ;;  %v4035_v15 = vld [vmem:[#allocation2 + $0x8] sm:$0xff] }
 0x315   : > { %16045 = vmatmul.mubr.bf16.gmra.mrb[28].mxu1 %v14347_v2  ;;  %v6258_v2 = vshrl.u32 %v6200_v18, 16  ;;  %21923 = vst [vmem:[#allocation38_spill] sm:$0xff] %v19755_v14  ;;  %v6312_v13 = vshll.u32 %v19755_v14, 16  ;;  %v4034_v34 = vld [vmem:[#allocation2] sm:$0xff] }
 0x316   : > { %16061 = vmatpush3.bf16.msra.mxu1 %v17535_v26  ;;  %16064 = vmatprep.mubr.bf16.mxu1 %v14364_v40  ;;  %v19692_v26 = vsel %vm17970_vm10, %v5728_v31, %v5729_v56  ;;  %v19708_v40 = vld [vmem:[#allocation3 + $0x80] sm:$0x1]  ;;  %v6204_v31 = vld [vmem:[#allocation3 + $0x98] sm:$0x1]  ;;  %v6238_v21 = vrot.slane %v6237_v17, 4  ;;  %v6252_v42 = vrot.slane %v6251_v63, 4 }
 0x317   : > { %16062 = vmatprep.subr.bf16.mxu1 %v17536_v43  ;;  %v6260_v10 = vrot.slane %v6258_v2, 4  ;;  %v19733_v56 = vld [vmem:[#allocation3 + $0xa0] sm:$0xf]  ;;  %v6288_v18 = vshll.u32 %v6204_v31, 16  ;;  %v6228_v2 = vrot.slane %v6227_v6, 4  ;;  %v19767_v31 = vsel %vm17970_vm10, %v14363_v22, %v5740_v8 }
 0x318   : > { %v6302_v4 = vshll.u32 %v19733_v56, 16  ;;  %v6306_v58 = vshrl.u32 %v19733_v56, 16  ;;  %v6257_v37 = vsel %vm17978_vm11, %v6252_v42, %v19718_v25  ;;  %v14371_v6 = vcombine.low %v19767_v31, %v19774_v38  ;;  %v19804_v63 = vld [vmem:[#allocation3 + $0xb8] sm:$0xf]  ;;  %v7660_v31 = vld [vmem:[#allocation3 + $0x3c] sm:$0xf] }
 0x319   : > { %v6261_v5 = vor.u32 %v6260_v10, %v19718_v25  ;;  %21925 = vst [vmem:[#allocation34_spill] sm:$0xff] %v19804_v63  ;;  %v6350_v42 = vshll.u32 %v19804_v63, 16  ;;  %v17557_v14 = vld [vmem:[#allocation3 + $0xc0] sm:$0xff]  }
 0x31a   : > { %16063 = vmatpush3.bf16.msra.mxu1 %v17536_v43  ;;  %v6269_v43 = vshrl.u32 %v6202_v0, 16  ;;  %v14370_v0 = vcombine.low %v19726_v7, %v19730_v45  ;;  %v19757_v24 = vrot.slane %v6302_v4, 5  ;;  %v6308_v29 = vrot.slane %v6306_v58, 4 }
 0x31b   : > { %16080 = vmatprep.subr.bf16.mxu1 %v17537_v27  ;;  %v6262_v54 = vrot.slane %v6261_v5, 4  ;;  %v19810_v4 = vrot.slane %v6312_v13, 5  ;;  %v6336_v58 = vshll.u32 %v19791_v30, 16  ;;  %v19840_v13 = vrot.slane %v6350_v42, 5 }
 0x31c   : > { %v6271_v9 = vrot.slane %v6269_v43, 4  ;;  %v19753_v43 = vld [vmem:[#allocation3 + $0xac] sm:$0xf]  ;;  %v6309_v22 = vor.u32 %v6308_v29, %v19757_v24 }
 0x31d   : > { %16065 = vmatmul.mubr.bf16.vlgmr.msra.gmra.mrb[16].mxu1 %v14365_v47  ;;  %v6240_v47 = vshll.u32 %v19708_v40, 16  ;;  %v6326_v7 = vshll.u32 %v19753_v43, 16  ;;  %v6330_v45 = vshrl.u32 %v19753_v43, 16  ;;  %v6267_v8 = vsel %vm17978_vm11, %v6262_v54, %v6266_v3 }
 0x31e   : > { %16081 = vmatpush3.bf16.msra.mxu1 %v17537_v27  ;;  %16068 = vmatprep.mubr.bf16.mxu1 %v14366_v44  ;;  %v14369_v27 = vcombine.low %v19688_v49, %v19692_v26  ;;  %v19738_v44 = vrot.slane %v6278_v60, 5  ;;  %v6275_v55 = vor.u32 %v6274_v39, %v6271_v9  ;;  %v6290_v60 = vrot.slane %v6288_v18, 5 }
 0x31f   : > { %16082 = vmatprep.subr.bf16.mxu1 %v17538_v1  ;;  %v6242_v20 = vrot.slane %v6240_v47, 5  ;;  %v17542_v47 = vld [vmem:[#allocation4 + $0x1a8] sm:$0xff]   ;;  %v6233_v9 = vsel %vm17978_vm11, %v6228_v2, %v19710_v12  ;;  %v4036_v12 = vld [vmem:[#allocation2 + $0x10] sm:$0xff]  ;;  %v6332_v25 = vrot.slane %v6330_v45, 4  ;;  %v19806_v23 = vcombine.low %v6257_v37, %v6267_v8  ;;  %v17545_v2 = vld [vmem:[#allocation3 + $0x78] sm:$0xff]  }
 0x320   : > { %v6285_v61 = vor.u32 %v6284_v41, %v19738_v44  ;;  %v6276_v10 = vrot.slane %v6275_v55, 4  ;;  %v6211_v41 = vld [vmem:[#allocation3 + $0xb4] sm:$0xf]  ;;  %v6354_v3 = vshrl.u32 %v19804_v63, 16  ;;  %v4047_v63 = vld [vmem:[#allocation2 + $0x68] sm:$0xff] }
 0x321   : > { %v6243_v36 = vsel %vm17978_vm11, %v6238_v21, %v6242_v20  ;;  %v6341_v59 = vshrl.u32 %v6211_v41, 16  ;;  %v6344_v5 = vshll.u32 %v6211_v41, 16 }
 0x322   : > { %16083 = vmatpush3.bf16.msra.mxu1 %v17538_v1  ;;  %v6296_v1 = vshll.u32 %v6205_v32, 16  ;;  %v6286_v32 = vrot.slane %v6285_v61, 4  ;;  %v6281_v49 = vsel %vm17978_vm11, %v6276_v10, %v19738_v44  ;;  %v19802_v17 = vcombine.low %v6233_v9, %v6243_v36  ;;  %v4037_v44 = vld [vmem:[#allocation2 + $0x18] sm:$0xff] }
 0x323   : > { %16084 = vmatprep.subr.bf16.mxu1 %v17539_v53  ;;  %v19822_v29 = vrot.slane %v6341_v59, 4  ;;  %v19842_v41 = vrot.slane %v6354_v3, 4 }
 0x324   : > { %v6291_v26 = vsel %vm17978_vm11, %v6286_v32, %v6290_v60 }
 0x325   : > { %16069 = vmatmul.mubr.bf16.gmra.mrb[20].mxu1 %v14367_v11  ;;  %v6319_v11 = vrot.slane %v6317_v46, 4 }
 0x326   : > { %16085 = vmatpush3.bf16.msra.mxu1 %v17539_v53  ;;  %16072 = vmatprep.mubr.bf16.mxu1 %v14368_v19  ;;  %v6298_v53 = vrot.slane %v6296_v1, 5  ;;  %v6322_v19 = vrot.slane %v6320_v50, 5 }
 0x327   : > { %16086 = vmatprep.subr.bf16.mxu1 %v17540_v48 }
 0x328   : > { %v6299_v39 = vor.u32 %v6298_v53, %v6295_v28  ;;  %v6323_v62 = vor.u32 %v6322_v19, %v6319_v11  ;;  %v17544_v53 = vld [vmem:[#allocation4 + $0x1b8] sm:$0xff]   ;;  %v19824_v11 = vrot.slane %v6344_v5, 5 }
 0x32a   : > { %16087 = vmatpush3.bf16.msra.mxu1 %v17540_v48  ;;  %v17543_v48 = vld [vmem:[#allocation4 + $0x1b0] sm:$0xff]   ;;  %v19808_v1 = vrot.slane %v6299_v39, 4  ;;  %v19817_v20 = vrot.slane %v6323_v62, 4  ;;  %v4040_v39 = vld [vmem:[#allocation2 + $0x30] sm:$0xff]  ;;  %v17546_v62 = vld [vmem:[#allocation4 + $0x1c0] sm:$0xff]  }
 0x32b   : > { %16088 = vmatprep.subr.bf16.mxu1 %v17541_v57 }
 0x32d   : > { %16073 = vmatmul.mubr.bf16.gmra.mrb[24].mxu1 %v14369_v27  ;;  %v19798_v27 = vrot.slane %v6326_v7, 5  ;;  %v19830_v7 = vrot.slane %v6336_v58, 5 }
 0x32e   : > { %16089 = vmatpush3.bf16.msra.mxu1 %v17541_v57  ;;  %16076 = vmatprep.mubr.bf16.mxu1 %v14370_v0  ;;  %v19813_v57 = vcombine.low %v6281_v49, %v6291_v26  ;;  %v19815_v0 = vrot.slane %v6309_v22, 4  ;;  %v4038_v22 = vld [vmem:[#allocation2 + $0x20] sm:$0xff] }
 0x32f   : > { %16090 = vmatprep.subr.bf16.mxu1 %v17542_v47  ;;  %v6333_v21 = vor.u32 %v6332_v25, %v19798_v27  ;;  %v7639_v25 = vld [vmem:[#allocation3 + $0x18] sm:$0xf] }
 0x330   : > { %v15874_v18 = vpop.f32.mrb[0].mxu1 }
 0x331   : > { %v4052_v46 = vadd.f32 %v15874_v18, %v4036_v12  ;;  %v3971_v50 = vpop.f32.mrb[1].mxu1  ;;  %v19844_v12 = vrot.slane %v6333_v21, 4  ;;  %v7632_v18 = vld [vmem:[#allocation3 + $0xc] sm:$0xf] }
 0x332   : > { %v4050_v55 = vadd.f32 %v4034_v34, %v3971_v50  ;;  %16091 = vmatpush3.bf16.msra.mxu1 %v17542_v47  ;;  %v15875_v61 = vpop.f32.mrb[2].mxu1 }
 0x333   : > { %4068 = vst [vmem:[#allocation2 + $0x10] sm:$0xff] %v4052_v46  ;;  %v7186_v54 = vmax.f32 %v4052_v46, 0.0  ;;  %v4053_v60 = vadd.f32 %v15875_v61, %v4037_v44  ;;  %v3974_v28 = vpop.f32.mrb[3].mxu1  ;;  %16092 = vmatprep.subr.bf16.mxu1 %v17543_v48  ;;  %v7643_v61 = vld [vmem:[#allocation3 + $0x20] sm:$0x1] }
 0x334   : > { %4066 = vst [vmem:[#allocation2] sm:$0xff] %v4050_v55  ;;  %v7184_v19 = vmax.f32 %v4050_v55, 0.0  ;;  %v4051_v10 = vadd.f32 %v4035_v15, %v3974_v28  ;;  %v17547_v15 = vld [vmem:[#allocation3 + $0x84] sm:$0xff]  }
 0x335   : > { %v14898_v45 = vpack.c.bf16 %v7186_v54, %v7186_v54  ;;  %4069 = vst [vmem:[#allocation2 + $0x18] sm:$0xff] %v4053_v60  ;;  %v7187_v47 = vmax.f32 %v4053_v60, 0.0  ;;  %16077 = vmatmul.mubr.bf16.gmra.mrb[28].mxu1 %v14371_v6  ;;  %v17549_v54 = vld [vmem:[#allocation3 + $0x90] sm:$0xff]  }
 0x336   : > { %v14896_v9 = vpack.c.bf16 %v7184_v19, %v7184_v19  ;;  %4067 = vst [vmem:[#allocation2 + $0x8] sm:$0xff] %v4051_v10  ;;  %v7185_v36 = vmax.f32 %v4051_v10, 0.0  ;;  %16093 = vmatpush3.bf16.msra.mxu1 %v17543_v48  ;;  %16096 = vmatprep.mubr.bf16.mxu1 %v17545_v2 }
 0x337   : > { %v7330_v37 = vshrl.u32 %v14898_v45, 16  ;;  %v14899_v8 = vpack.c.bf16 %v7187_v47, %v7187_v47  ;;  %16094 = vmatprep.subr.bf16.mxu1 %v17544_v53  ;;  %v7333_v26 = vshll.u32 %v14898_v45, 16  ;;  %v17548_v47 = vld [vmem:[#allocation4 + $0x1c8] sm:$0xff]  }
 0x338   : > { %v7313_v34 = vshrl.u32 %v14896_v9, 16  ;;  %v7316_v48 = vshll.u32 %v14896_v9, 16  ;;  %v14897_v6 = vpack.c.bf16 %v7185_v36, %v7185_v36  ;;  %v15878_v59 = vpop.f32.mrb[4].mxu1 }
 0x339   : > { %v7332_v5 = vrot.slane %v7330_v37, 7  ;;  %v7338_v44 = vshrl.u32 %v14899_v8, 16  ;;  %v7341_v58 = vshll.u32 %v14899_v8, 16  ;;  %v4056_v46 = vadd.f32 %v15878_v59, %v4040_v39  ;;  %v3987_v50 = vpop.f32.mrb[5].mxu1  ;;  %v19848_v8 = vld [vmem:[#allocation3 + $0xbc] sm:$0x1] }
 0x33a   : > { %v7315_v55 = vrot.slane %v7313_v34, 7  ;;  %v7321_v2 = vshrl.u32 %v14897_v6, 16  ;;  %v7324_v21 = vshll.u32 %v14897_v6, 16  ;;  %v4054_v42 = vadd.f32 %v4038_v22, %v3987_v50  ;;  %16095 = vmatpush3.bf16.msra.mxu1 %v17544_v53  ;;  %v15879_v3 = vpop.f32.mrb[6].mxu1  ;;  %v4039_v50 = vld [vmem:[#allocation2 + $0x28] sm:$0xff] }
 0x33b   : > { %v7335_v60 = vor.u32 %v7333_v26, %v7332_v5  ;;  %v7336_v28 = vrot.slane %v7332_v5, 4  ;;  %v7340_v19 = vrot.slane %v7338_v44, 7  ;;  %4072 = vst [vmem:[#allocation2 + $0x30] sm:$0xff] %v4056_v46  ;;  %v7190_v10 = vmax.f32 %v4056_v46, 0.0  ;;  %v3990_v45 = vpop.f32.mrb[7].mxu1  ;;  %16112 = vmatprep.subr.bf16.mxu1 %v17546_v62  ;;  %v4041_v46 = vld [vmem:[#allocation2 + $0x38] sm:$0xff] }
 0x33c   : > { %v7318_v9 = vor.u32 %v7316_v48, %v7315_v55  ;;  %v7319_v36 = vrot.slane %v7315_v55, 4  ;;  %v7323_v39 = vrot.slane %v7321_v2, 7  ;;  %4070 = vst [vmem:[#allocation2 + $0x20] sm:$0xff] %v4054_v42  ;;  %v7188_v37 = vmax.f32 %v4054_v42, 0.0  ;;  %v7636_v26 = vld [vmem:[#allocation3 + $0x14] sm:$0x1] }
 0x33d   : > { %v7640_v53 = vsel %vm18003_vm14, %v7335_v60, %v7639_v25  ;;  %v7343_v22 = vor.u32 %v7341_v58, %v7340_v19  ;;  %v7345_v34 = vrot.slane %v7340_v19, 4  ;;  %v14902_v6 = vpack.c.bf16 %v7190_v10, %v7190_v10  ;;  %16097 = vmatmul.mubr.bf16.vlgmr.msra.gmra.mrb[16].mxu1 %v17547_v15  ;;  %v4044_v55 = vld [vmem:[#allocation2 + $0x50] sm:$0xff]  ;;  %v4042_v42 = vld [vmem:[#allocation2 + $0x40] sm:$0xff]  ;;  %v17550_v60 = vld [vmem:[#allocation4 + $0x1d0] sm:$0xff]  }
 0x33e   : > { %7641 = vst [vmem:[#allocation3 + $0x18] sm:$0xf] %v7640_v53  ;;  %v7633_v59 = vsel %vm18003_vm14, %v7318_v9, %v7632_v18  ;;  %v7326_v5 = vor.u32 %v7324_v21, %v7323_v39  ;;  %v7328_v48 = vrot.slane %v7323_v39, 4  ;;  %v14900_v44 = vpack.c.bf16 %v7188_v37, %v7188_v37  ;;  %16113 = vmatpush3.bf16.msra.mxu1 %v17546_v62  ;;  %v19859_v21 = vld [vmem:[#allocation3 + $0xc0] sm:$0xf] }
 0x33f   : > { %16100 = vmatprep.mubr.bf16.mxu1 %v17549_v54  ;;  %7634 = vst [vmem:[#allocation3 + $0xc] sm:$0xf] %v7633_v59  ;;  %v7344_v25 = vsel %vm18010_vm15, %v7336_v28, %v7343_v22  ;;  %v7644_v58 = vsel %vm17909_vm3, %v7345_v34, %v7643_v61  ;;  %v7364_v15 = vshrl.u32 %v14902_v6, 16  ;;  %16114 = vmatprep.subr.bf16.mxu1 %v17548_v47  ;;  %v7367_v28 = vshll.u32 %v14902_v6, 16  ;;  %v7653_v19 = vld [vmem:[#allocation3 + $0x30] sm:$0xf] }
 0x340   : > { %7642 = vst [vmem:[#allocation3 + $0x1c] sm:$0xf] %v7344_v25  ;;  %7645 = vst [vmem:[#allocation3 + $0x20] sm:$0x1] %v7644_v58  ;;  %v7327_v62 = vsel %vm18010_vm15, %v7319_v36, %v7326_v5  ;;  %v7637_v54 = vsel %vm17909_vm3, %v7328_v48, %v7636_v26  ;;  %v7347_v10 = vshrl.u32 %v14900_v44, 16  ;;  %v15882_v61 = vpop.f32.mrb[8].mxu1  ;;  %v4057_v37 = vadd.f32 %v15879_v3, %v4041_v46 }
 0x341   : > { %7635 = vst [vmem:[#allocation3 + $0x10] sm:$0xf] %v7327_v62  ;;  %7638 = vst [vmem:[#allocation3 + $0x14] sm:$0x1] %v7637_v54  ;;  %v19865_v9 = vrot.slane %v7364_v15, 7  ;;  %v4055_v53 = vadd.f32 %v4039_v50, %v3990_v45  ;;  %v4060_v22 = vadd.f32 %v15882_v61, %v4044_v55  ;;  %v4003_v34 = vpop.f32.mrb[9].mxu1 }
 0x342   : > { %v7646_v39 = vld [vmem:[#allocation3 + $0x24] sm:$0xf]  ;;  %v17551_v59 = vld [vmem:[#allocation3 + $0x9c] sm:$0xff]   ;;  %v19867_v25 = vrot.slane %v7347_v10, 7  ;;  %v7350_v36 = vshll.u32 %v14900_v44, 16  ;;  %v4058_v5 = vadd.f32 %v4042_v42, %v4003_v34  ;;  %16115 = vmatpush3.bf16.msra.mxu1 %v17548_v47  ;;  %v15883_v26 = vpop.f32.mrb[10].mxu1 }
 0x343   : > { %v4045_v6 = vld [vmem:[#allocation2 + $0x58] sm:$0xff]  ;;  %v4043_v48 = vld [vmem:[#allocation2 + $0x48] sm:$0xff]  ;;  %v7369_v62 = vor.u32 %v7367_v28, %v19865_v9  ;;  %4073 = vst [vmem:[#allocation2 + $0x38] sm:$0xff] %v4057_v37  ;;  %v7191_v3 = vmax.f32 %v4057_v37, 0.0  ;;  %4071 = vst [vmem:[#allocation2 + $0x28] sm:$0xff] %v4055_v53  ;;  %v7189_v45 = vmax.f32 %v4055_v53, 0.0  ;;  %16116 = vmatprep.subr.bf16.mxu1 %v17550_v60 }
 0x344   : > { %4076 = vst [vmem:[#allocation2 + $0x50] sm:$0xff] %v4060_v22  ;;  %v4006_v46 = vpop.f32.mrb[11].mxu1  ;;  %v17552_v50 = vld [vmem:[#allocation4 + $0x1d8] sm:$0xff]   ;;  %v17553_v44 = vld [vmem:[#allocation3 + $0xa8] sm:$0xff]   ;;  %v7352_v47 = vor.u32 %v7350_v36, %v19867_v25  ;;  %v7194_v42 = vmax.f32 %v4060_v22, 0.0  ;;  %4074 = vst [vmem:[#allocation2 + $0x40] sm:$0xff] %v4058_v5  ;;  %v19876_v37 = vadd.f32 %v15883_v26, %v4045_v6 }
 0x345   : > { %v7192_v54 = vmax.f32 %v4058_v5, 0.0  ;;  %v7654_v28 = vsel %vm18003_vm14, %v7369_v62, %v7653_v19  ;;  %v14903_v10 = vpack.c.bf16 %v7191_v3, %v7191_v3  ;;  %v14901_v61 = vpack.c.bf16 %v7189_v45, %v7189_v45  ;;  %16101 = vmatmul.mubr.bf16.gmra.mrb[20].mxu1 %v17551_v59  ;;  %v4048_v53 = vld [vmem:[#allocation2 + $0x70] sm:$0xff]  ;;  %v4046_v22 = vld [vmem:[#allocation2 + $0x60] sm:$0xff]  ;;  %v17554_v5 = vld [vmem:[#allocation4 + $0x1e0] sm:$0xff]  }
 0x346   : > { %7655 = vst [vmem:[#allocation3 + $0x30] sm:$0xf] %v7654_v28  ;;  %v7647_v34 = vsel %vm18003_vm14, %v7352_v47, %v7646_v39  ;;  %v14906_v18 = vpack.c.bf16 %v7194_v42, %v7194_v42  ;;  %v19880_v38 = vadd.f32 %v4043_v48, %v4006_v46  ;;  %16117 = vmatpush3.bf16.msra.mxu1 %v17550_v60  ;;  %4077 = vst [vmem:[#allocation2 + $0x58] sm:$0xff] %v19876_v37  ;;  %v19883_v59 = vld [vmem:[#allocation3 + $0xc4] sm:$0xf] }
 0x347   : > { %v14904_v36 = vpack.c.bf16 %v7192_v54, %v7192_v54  ;;  %7648 = vst [vmem:[#allocation3 + $0x24] sm:$0xf] %v7647_v34  ;;  %v7372_v49 = vshrl.u32 %v14903_v10, 16  ;;  %v7375_v19 = vshll.u32 %v14903_v10, 16  ;;  %v7355_v62 = vshrl.u32 %v14901_v61, 16  ;;  %16118 = vmatprep.subr.bf16.mxu1 %v17552_v50  ;;  %16104 = vmatprep.mubr.bf16.mxu1 %v17553_v44  ;;  %v17555_v44 = vld [vmem:[#allocation3 + $0xb4] sm:$0xff]  }
 0x348   : > { %v7358_v3 = vshll.u32 %v14901_v61, 16  ;;  %v7657_v26 = vld [vmem:[#allocation3 + $0x38] sm:$0x1]  ;;  %v7650_v39 = vld [vmem:[#allocation3 + $0x2c] sm:$0x1]  ;;  %v7398_v6 = vshrl.u32 %v14906_v18, 16 }
 0x349   : > { %v7401_v45 = vshll.u32 %v14906_v18, 16  ;;  %v7381_v48 = vshrl.u32 %v14904_v36, 16  ;;  %v7384_v46 = vshll.u32 %v14904_v36, 16  ;;  %4075 = vst [vmem:[#allocation2 + $0x48] sm:$0xff] %v19880_v38  ;;  %v15886_v60 = vpop.f32.mrb[12].mxu1  ;;  %v7374_v47 = vrot.slane %v7372_v49, 7 }
 0x34a   : > { %v7357_v42 = vrot.slane %v7355_v62, 7  ;;  %v7667_v54 = vld [vmem:[#allocation3 + $0x48] sm:$0xf]  ;;  %v7195_v28 = vmax.f32 %v19876_v37, 0.0  ;;  %v7193_v10 = vmax.f32 %v19880_v38, 0.0  ;;  %v4019_v61 = vpop.f32.mrb[13].mxu1  ;;  %v4064_v18 = vadd.f32 %v15886_v60, %v4048_v53  ;;  %16119 = vmatpush3.bf16.msra.mxu1 %v17552_v50 }
 0x34b   : > { %v19888_v34 = vrot.slane %v7398_v6, 7  ;;  %v19890_v32 = vrot.slane %v7381_v48, 7  ;;  %v4062_v58 = vadd.f32 %v4046_v22, %v4019_v61  ;;  %v15887_v36 = vpop.f32.mrb[14].mxu1  ;;  %v7377_v55 = vor.u32 %v7375_v19, %v7374_v47  ;;  %16120 = vmatprep.subr.bf16.mxu1 %v17554_v5  ;;  %v17556_v37 = vld [vmem:[#allocation4 + $0x1e8] sm:$0xff]   ;;  %v4049_v48 = vld [vmem:[#allocation2 + $0x78] sm:$0xff]  ;;  %v17558_v61 = vld [vmem:[#allocation4 + $0x1f0] sm:$0xff]  }
 0x34c   : > { %v7379_v15 = vrot.slane %v7374_v47, 4  ;;  %v7360_v49 = vor.u32 %v7358_v3, %v7357_v42  ;;  %v7362_v62 = vrot.slane %v7357_v42, 4  ;;  %v4022_v30 = vpop.f32.mrb[15].mxu1  ;;  %4080 = vst [vmem:[#allocation2 + $0x70] sm:$0xff] %v4064_v18  ;;  %v6368_v53 = vshll.u32 %v19859_v21, 16 }
 0x34d   : > { %v7403_v38 = vor.u32 %v7401_v45, %v19888_v34  ;;  %v7386_v6 = vor.u32 %v7384_v46, %v19890_v32  ;;  %4078 = vst [vmem:[#allocation2 + $0x60] sm:$0xff] %v4062_v58  ;;  %v6374_v50 = vshll.u32 %v19883_v59, 16  ;;  %v21927_v22 = vrot.slane %v19865_v9, 4  ;;  %16105 = vmatmul.mubr.bf16.gmra.mrb[24].mxu1 %v17555_v44 }
 0x34e   : > { %v7658_v3 = vsel %vm17909_vm3, %v7379_v15, %v7657_v26  ;;  %v21928_v45 = vrot.slane %v19867_v25, 4  ;;  %v7651_v60 = vsel %vm17909_vm3, %v7362_v62, %v7650_v39  ;;  %v14907_v15 = vpack.c.bf16 %v7195_v28, %v7195_v28  ;;  %16121 = vmatpush3.bf16.msra.mxu1 %v17554_v5  ;;  %16108 = vmatprep.mubr.bf16.mxu1 %v17557_v14  ;;  %v7664_v14 = vld [vmem:[#allocation3 + $0x44] sm:$0x1] }
 0x34f   : > { %v7378_v19 = vsel %vm18010_vm15, %v21927_v22, %v7377_v55  ;;  %7659 = vst [vmem:[#allocation3 + $0x38] sm:$0x1] %v7658_v3  ;;  %7652 = vst [vmem:[#allocation3 + $0x2c] sm:$0x1] %v7651_v60  ;;  %v7668_v9 = vsel %vm18003_vm14, %v7403_v38, %v7667_v54  ;;  %v7661_v55 = vsel %vm18003_vm14, %v7386_v6, %v7660_v31  ;;  %v7198_v25 = vmax.f32 %v4064_v18, 0.0  ;;  %v17559_v18 = vld [vmem:[#allocation3 + $0xcc] sm:$0xff]  }
 0x350   : > { %v7361_v46 = vsel %vm18010_vm15, %v21928_v45, %v7360_v49  ;;  %7656 = vst [vmem:[#allocation3 + $0x34] sm:$0xf] %v7378_v19  ;;  %v14905_v26 = vpack.c.bf16 %v7193_v10, %v7193_v10  ;;  %7669 = vst [vmem:[#allocation3 + $0x48] sm:$0xf] %v7668_v9  ;;  %v7196_v47 = vmax.f32 %v4062_v58, 0.0  ;;  %v4065_v42 = vadd.f32 %v15887_v36, %v4049_v48  ;;  %v17560_v22 = vld [vmem:[#allocation4 + $0x1f8] sm:$0xff]  }
 0x351   : > { %7649 = vst [vmem:[#allocation3 + $0x28] sm:$0xf] %v7361_v46  ;;  %7662 = vst [vmem:[#allocation3 + $0x3c] sm:$0xf] %v7661_v55  ;;  %v4063_v39 = vadd.f32 %v4047_v63, %v4022_v30  ;;  %16122 = vmatprep.subr.bf16.mxu1 %v17556_v37  ;;  %v7404_v44 = vrot.slane %v19888_v34, 4  ;;  %v7387_v49 = vrot.slane %v19890_v32, 4  ;;  %v14910_v31 = vpack.c.bf16 %v7198_v25, %v7198_v25 }
 0x352   : > { %v7406_v54 = vshrl.u32 %v14907_v15, 16  ;;  %v7389_v62 = vshrl.u32 %v14905_v26, 16  ;;  %v7671_v38 = vld [vmem:[#allocation3 + $0x50] sm:$0x1]  ;;  %v14908_v28 = vpack.c.bf16 %v7196_v47, %v7196_v47  ;;  %4081 = vst [vmem:[#allocation2 + $0x78] sm:$0xff] %v4065_v42  ;;  %v7199_v5 = vmax.f32 %v4065_v42, 0.0  ;;  %16123 = vmatpush3.bf16.msra.mxu1 %v17556_v37 }
 0x353   : > { %4079 = vst [vmem:[#allocation2 + $0x68] sm:$0xff] %v4063_v39  ;;  %v7197_v10 = vmax.f32 %v4063_v39, 0.0  ;;  %v7409_v36 = vshll.u32 %v14907_v15, 16  ;;  %v7392_v63 = vshll.u32 %v14905_v26, 16  ;;  %v7432_v6 = vshrl.u32 %v14910_v31, 16  ;;  %16124 = vmatprep.subr.bf16.mxu1 %v17558_v61 }
 0x354   : > { %v7408_v58 = vrot.slane %v7406_v54, 7  ;;  %v7391_v30 = vrot.slane %v7389_v62, 7  ;;  %v7435_v34 = vshll.u32 %v14910_v31, 16  ;;  %v7415_v48 = vshrl.u32 %v14908_v28, 16  ;;  %v7681_v42 = vld [vmem:[#allocation3 + $0x60] sm:$0xf] }
 0x355   : > { %v7418_v32 = vshll.u32 %v14908_v28, 16  ;;  %v7434_v60 = vrot.slane %v7432_v6, 7  ;;  %v14911_v55 = vpack.c.bf16 %v7199_v5, %v7199_v5  ;;  %v14909_v25 = vpack.c.bf16 %v7197_v10, %v7197_v10  ;;  %16109 = vmatmul.mubr.bf16.gmra.mrb[28].mxu1 %v17559_v18  ;;  %v7674_v39 = vld [vmem:[#allocation3 + $0x54] sm:$0xf]  ;;  %v19930_v5 = vld [vmem:[#allocation3 + $0xc8] sm:$0x1] }
 0x356   : > { %v7411_v19 = vor.u32 %v7409_v36, %v7408_v58  ;;  %v7413_v3 = vrot.slane %v7408_v58, 4  ;;  %v7394_v45 = vor.u32 %v7392_v63, %v7391_v30  ;;  %v7396_v46 = vrot.slane %v7391_v30, 4  ;;  %16125 = vmatpush3.bf16.msra.mxu1 %v17558_v61  ;;  %16128 = vmatprep.mubr.bf16.mxu1 %v19802_v17  ;;  %v6217_v58 = vld [vmem:[#allocation3 + $0xcc] sm:$0xf]  ;;  %v7685_v36 = vld [vmem:[#allocation3 + $0x68] sm:$0x1] }
 0x357   : > { %v7417_v9 = vrot.slane %v7415_v48, 7  ;;  %v7437_v54 = vor.u32 %v7435_v34, %v7434_v60  ;;  %16126 = vmatprep.subr.bf16.mxu1 %v17560_v22  ;;  %v7440_v31 = vshrl.u32 %v14911_v55, 16  ;;  %v7423_v28 = vshrl.u32 %v14909_v25, 16  ;;  %v7678_v30 = vld [vmem:[#allocation3 + $0x5c] sm:$0x1]  ;;  %v17562_v63 = vld [vmem:[#allocation4 + $0x208] sm:$0xff]  }
 0x358   : > { %v7412_v15 = vsel %vm18010_vm15, %v7404_v44, %v7411_v19  ;;  %v7672_v37 = vsel %vm17909_vm3, %v7413_v3, %v7671_v38  ;;  %v7395_v26 = vsel %vm18010_vm15, %v7387_v49, %v7394_v45  ;;  %v7665_v47 = vsel %vm17909_vm3, %v7396_v46, %v7664_v14  ;;  %v17561_v44 = vld [vmem:[#allocation4 + $0x200] sm:$0xff]  }
 0x359   : > { %7670 = vst [vmem:[#allocation3 + $0x4c] sm:$0xf] %v7412_v15  ;;  %7673 = vst [vmem:[#allocation3 + $0x50] sm:$0x1] %v7672_v37  ;;  %v7420_v62 = vor.u32 %v7418_v32, %v7417_v9  ;;  %v6357_v38 = vor.u32 %v19842_v41, %v19840_v13  ;;  %v6378_v49 = vshrl.u32 %v19883_v59, 16  ;;  %v6339_v61 = vsel %vm17978_vm11, %v19844_v12, %v19830_v7 }
 0x35a   : > { %7663 = vst [vmem:[#allocation3 + $0x40] sm:$0xf] %v7395_v26  ;;  %7666 = vst [vmem:[#allocation3 + $0x44] sm:$0x1] %v7665_v47  ;;  %v21929_v10 = vshrl.u32 %v19859_v21, 16  ;;  %v7682_v17 = vsel %vm18003_vm14, %v7437_v54, %v7681_v42  ;;  %v6370_v14 = vrot.slane %v6368_v53, 5  ;;  %16127 = vmatpush3.bf16.msra.mxu1 %v17560_v22  ;;  %v21930_v54 = vsel %vm17978_vm11, %v19815_v0, %v19810_v4 }
 0x35b   : > { %v7675_v41 = vsel %vm18003_vm14, %v7420_v62, %v7674_v39  ;;  %v19942_v7 = vrot.slane %v6374_v50, 5  ;;  %v19944_v12 = vld [vmem:[#allocation3 + $0xd0] sm:$0xf]  ;;  %7683 = vst [vmem:[#allocation3 + $0x60] sm:$0xf] %v7682_v17  ;;  %v7442_v6 = vrot.slane %v7440_v31, 7  ;;  %16144 = vmatprep.subr.bf16.mxu1 %v17561_v44  ;;  %v21931_v62 = vsel %vm17978_vm11, %v19808_v1, %v19757_v24 }
 0x35c   : > { %v6367_v18 = vrot.slane %v21929_v10, 4  ;;  %7676 = vst [vmem:[#allocation3 + $0x54] sm:$0xf] %v7675_v41  ;;  %v7443_v34 = vshll.u32 %v14911_v55, 16  ;;  %v7425_v48 = vrot.slane %v7423_v28, 7  ;;  %v7426_v32 = vshll.u32 %v14909_v25, 16 }
 0x35d   : > { %v7438_v19 = vrot.slane %v7434_v60, 4  ;;  %v7421_v3 = vrot.slane %v7417_v9, 4  ;;  %v6380_v45 = vrot.slane %v6378_v49, 4  ;;  %v6384_v21 = vshll.u32 %v19930_v5, 16  ;;  %16129 = vmatmul.mubr.bf16.vlgmr.msra.gmra.mrb[16].mxu1 %v19806_v23  ;;  %v17563_v23 = vld [vmem:[#allocation4 + $0x210] sm:$0xff]  }
 0x35e   : > { %v7445_v53 = vor.u32 %v7443_v34, %v7442_v6  ;;  %v7447_v46 = vrot.slane %v7442_v6, 4  ;;  %v7428_v15 = vor.u32 %v7426_v32, %v7425_v48  ;;  %v7430_v50 = vrot.slane %v7425_v48, 4  ;;  %16145 = vmatpush3.bf16.msra.mxu1 %v17561_v44  ;;  %16132 = vmatprep.mubr.bf16.mxu1 %v19813_v57  ;;  %v6621_v6 = vld [vmem:[#allocation3 + $0x78] sm:$0xe] }
 0x35f   : > { %v6389_v37 = vshrl.u32 %v6217_v58, 16  ;;  %v6392_v26 = vshll.u32 %v6217_v58, 16  ;;  %v6398_v47 = vshll.u32 %v19944_v12, 16  ;;  %v6402_v55 = vshrl.u32 %v19944_v12, 16  ;;  %16146 = vmatprep.subr.bf16.mxu1 %v17562_v63  ;;  %v17564_v58 = vld [vmem:[#allocation4 + $0x218] sm:$0xff]   ;;  %v17565_v34 = vld [vmem:[#allocation4 + $0x220] sm:$0xff]  }
 0x360   : > { %v7446_v22 = vsel %vm18010_vm15, %v7438_v19, %v7445_v53  ;;  %v7686_v60 = vsel %vm17909_vm3, %v7447_v46, %v7685_v36  ;;  %v7429_v9 = vsel %vm18010_vm15, %v7421_v3, %v7428_v15  ;;  %v7679_v25 = vsel %vm17909_vm3, %v7430_v50, %v7678_v30  ;;  %v19980_v36 = vld [vmem:[#allocation3 + $0xd4] sm:$0x1]  ;;  %v6622_v50 = vld [vmem:[#allocation3 + $0x84] sm:$0xe] }
 0x361   : > { %7684 = vst [vmem:[#allocation3 + $0x64] sm:$0xf] %v7446_v22  ;;  %7687 = vst [vmem:[#allocation3 + $0x68] sm:$0x1] %v7686_v60  ;;  %v6371_v42 = vor.u32 %v6370_v14, %v6367_v18  ;;  %v6381_v39 = vor.u32 %v6380_v45, %v19942_v7  ;;  %v14399_v44 = vcombine.low %v21931_v62, %v21930_v54  ;;  %v6358_v10 = vrot.slane %v6357_v38, 4 }
 0x362   : > { %7677 = vst [vmem:[#allocation3 + $0x58] sm:$0xf] %v7429_v9  ;;  %7680 = vst [vmem:[#allocation3 + $0x5c] sm:$0x1] %v7679_v25  ;;  %v21932_v49 = vor.u32 %v19824_v11, %v19822_v29  ;;  %v21933_v57 = vsel %vm17978_vm11, %v19817_v20, %v19798_v27  ;;  %v21934_v18 = vshll.u32 %v19848_v8, 16  ;;  %v6386_v0 = vrot.slane %v6384_v21, 5  ;;  %16147 = vmatpush3.bf16.msra.mxu1 %v17562_v63 }
 0x363   : > { %v14400_v28 = vcombine.low %v21933_v57, %v6339_v61  ;;  %v6391_v17 = vrot.slane %v6389_v37, 4  ;;  %v6394_v24 = vrot.slane %v6392_v26, 5  ;;  %v6400_v1 = vrot.slane %v6398_v47, 5  ;;  %16148 = vmatprep.subr.bf16.mxu1 %v17563_v23  ;;  %v17785_v20 = vld [vmem:[#allocation3 + $0x7c] sm:$0xf]  ;;  %v17566_v37 = vld [vmem:[#allocation4 + $0x228] sm:$0xff]  }
 0x364   : > { %v6348_v31 = vrot.slane %v21932_v49, 4  ;;  %v6362_v4 = vrot.slane %v21934_v18, 5  ;;  %v6404_v41 = vrot.slane %v6402_v55, 4  ;;  %v6372_v29 = vrot.slane %v6371_v42, 4  ;;  %v17786_v22 = vld [vmem:[#allocation3 + $0x88] sm:$0xf] }
 0x365   : > { %v6382_v11 = vrot.slane %v6381_v39, 4  ;;  %16133 = vmatmul.mubr.bf16.gmra.mrb[20].mxu1 %v14399_v44  ;;  %v6655_v38 = vrot.slane %v17785_v20, 5  ;;  %v6395_v30 = vor.u32 %v6394_v24, %v6391_v17  ;;  %v6408_v14 = vshll.u32 %v19980_v36, 16  ;;  %v17787_v9 = vld [vmem:[#allocation3 + $0x94] sm:$0xf] }
 0x366   : > { %v6353_v27 = vsel %vm17978_vm11, %v6348_v31, %v19840_v13  ;;  %16149 = vmatpush3.bf16.msra.mxu1 %v17563_v23  ;;  %16136 = vmatprep.mubr.bf16.mxu1 %v14400_v28  ;;  %v6363_v61 = vsel %vm17978_vm11, %v6358_v10, %v6362_v4  ;;  %v6405_v63 = vor.u32 %v6404_v41, %v6400_v1  ;;  %v14412_v19 = vrot.slane %v6621_v6, 9  ;;  %v17567_v23 = vld [vmem:[#allocation4 + $0x230] sm:$0xff]   ;;  %v6623_v42 = vld [vmem:[#allocation3 + $0x90] sm:$0xe]  ;;  %v6624_v44 = vld [vmem:[#allocation3 + $0x9c] sm:$0xe] }
 0x367   : > { %16150 = vmatprep.subr.bf16.mxu1 %v17564_v58  ;;  %v6377_v48 = vsel %vm17978_vm11, %v6372_v29, %v19942_v7  ;;  %v6387_v13 = vsel %vm17978_vm11, %v6382_v11, %v6386_v0  ;;  %v14401_v32 = vcombine.low %v6353_v27, %v6363_v61  ;;  %v6657_v3 = vrot.slane %v6655_v38, 4  ;;  %v6625_v28 = vld [vmem:[#allocation3 + $0xa8] sm:$0xe]  ;;  %v6626_v10 = vld [vmem:[#allocation3 + $0xb4] sm:$0xe] }
 0x368   : > { %v6658_v45 = vrot.slane %v19708_v40, 5  ;;  %v14402_v21 = vcombine.low %v6377_v48, %v6387_v13  ;;  %v6396_v53 = vrot.slane %v6395_v30, 4  ;;  %v6406_v46 = vrot.slane %v6405_v63, 4  ;;  %v21935_v18 = vld [vmem:[#allocation34_spill] sm:$0xff]  ;;  %v17788_v24 = vld [vmem:[#allocation3 + $0x98] sm:$0x1] }
 0x369   : > { %v6410_v15 = vrot.slane %v6408_v14, 5  ;;  %v6656_v7 = vsel %vm17970_vm10, %v14412_v19, %v6655_v38  ;;  %v14413_v47 = vrot.slane %v6622_v50, 9  ;;  %v6662_v60 = vrot.slane %v17786_v22, 5  ;;  %v21936_v11 = vld [vmem:[#allocation38_spill] sm:$0xff]  ;;  %v8367_v50 = vld [vmem:[#allocation3 + $0x24] sm:$0xe] }
 0x36a   : > { %16151 = vmatpush3.bf16.msra.mxu1 %v17564_v58  ;;  %v6659_v26 = vsel %vm17970_vm10, %v6657_v3, %v6658_v45  ;;  %v6401_v40 = vsel %vm17978_vm11, %v6396_v53, %v6400_v1  ;;  %v6669_v25 = vrot.slane %v17787_v9, 5  ;;  %v6676_v39 = vrot.slane %v19733_v56, 5  ;;  %v21937_v20 = vld [vmem:[#allocation14_spill] sm:$0xff]  ;;  %v20030_v53 = vld [vmem:[#allocation3 + $0x1c] sm:$0xf] }
 0x36b   : > { %16152 = vmatprep.subr.bf16.mxu1 %v17565_v34  ;;  %v6411_v55 = vsel %vm17978_vm11, %v6406_v46, %v6410_v15  ;;  %v14420_v54 = vcombine.low %v6656_v7, %v6659_v26  ;;  %v6665_v62 = vrot.slane %v19716_v33, 5  ;;  %v6683_v49 = vrot.slane %v19753_v43, 5  ;;  %v20009_v33 = vld [vmem:[#allocation3 + $0xc0] sm:$0xe]  ;;  %v17568_v43 = vld [vmem:[#allocation4 + $0x238] sm:$0xff]  }
 0x36c   : > { %v14403_v31 = vcombine.low %v6401_v40, %v6411_v55  ;;  %v6663_v57 = vsel %vm17970_vm10, %v14413_v47, %v6662_v60  ;;  %v6690_v4 = vrot.slane %v21935_v18, 5  ;;  %v6697_v0 = vrot.slane %v19883_v59, 5  ;;  %v20026_v45 = vld [vmem:[#allocation3 + $0x10] sm:$0xf]  ;;  %v8366_v46 = vld [vmem:[#allocation3 + $0x18] sm:$0xe] }
 0x36d   : > { %16137 = vmatmul.mubr.bf16.gmra.mrb[24].mxu1 %v14401_v32  ;;  %v6664_v58 = vrot.slane %v6662_v60, 4  ;;  %v14414_v17 = vrot.slane %v6623_v42, 9  ;;  %v6671_v56 = vrot.slane %v6669_v25, 4  ;;  %v6672_v1 = vrot.slane %v17788_v24, 5  ;;  %v8365_v32 = vld [vmem:[#allocation3 + $0xc] sm:$0xe] }
 0x36e   : > { %16153 = vmatpush3.bf16.msra.mxu1 %v17565_v34  ;;  %16140 = vmatprep.mubr.bf16.mxu1 %v14402_v21  ;;  %v14415_v41 = vrot.slane %v6624_v44, 9  ;;  %v6678_v29 = vrot.slane %v6676_v39, 4  ;;  %v6679_v27 = vrot.slane %v21936_v11, 5  ;;  %v6686_v38 = vrot.slane %v21937_v20, 5  ;;  %v20028_v21 = vld [vmem:[#allocation3 + $0x14] sm:$0x1] }
 0x36f   : > { %16154 = vmatprep.subr.bf16.mxu1 %v17566_v37  ;;  %v14416_v61 = vrot.slane %v6625_v28, 9  ;;  %v6685_v30 = vrot.slane %v6683_v49, 4  ;;  %v14417_v63 = vrot.slane %v6626_v10, 9  ;;  %v6693_v14 = vrot.slane %v19848_v8, 5  ;;  %v20032_v15 = vld [vmem:[#allocation3 + $0x20] sm:$0x1] }
 0x370   : > { %v6692_v6 = vrot.slane %v6690_v4, 4  ;;  %v14418_v34 = vrot.slane %v20009_v33, 9  ;;  %v20017_v48 = vrot.slane %v6697_v0, 4  ;;  %v6700_v13 = vrot.slane %v19930_v5, 5  ;;  %v20040_v55 = vld [vmem:[#allocation3 + $0x2c] sm:$0x1] }
 0x371   : > { %v6666_v19 = vsel %vm17970_vm10, %v6664_v58, %v6665_v62  ;;  %v6670_v3 = vsel %vm17970_vm10, %v14414_v17, %v6669_v25  ;;  %v6673_v8 = vsel %vm17970_vm10, %v6671_v56, %v6672_v1  ;;  %v6677_v47 = vsel %vm17970_vm10, %v14415_v41, %v6676_v39  ;;  %v20048_v9 = vld [vmem:[#allocation3 + $0x34] sm:$0xf]  ;;  %v8368_v42 = vld [vmem:[#allocation3 + $0x30] sm:$0xe]  ;;  %v20051_v39 = vld [vmem:[#allocation3 + $0x38] sm:$0x1] }
 0x372   : > { %16155 = vmatpush3.bf16.msra.mxu1 %v17566_v37  ;;  %v20034_v37 = vld [vmem:[#allocation3 + $0x28] sm:$0xf]  ;;  %v14421_v7 = vcombine.low %v6663_v57, %v6666_v19  ;;  %v14422_v26 = vcombine.low %v6670_v3, %v6673_v8  ;;  %v6680_v40 = vsel %vm17970_vm10, %v6678_v29, %v6679_v27  ;;  %v20044_v22 = vsel %vm17970_vm10, %v14416_v61, %v6683_v49  ;;  %v8369_v24 = vld [vmem:[#allocation3 + $0x3c] sm:$0xe]  ;;  %v20066_v1 = vld [vmem:[#allocation3 + $0x40] sm:$0xf] }
 0x373   : > { %16156 = vmatprep.subr.bf16.mxu1 %v17567_v23  ;;  %v6687_v60 = vsel %vm17970_vm10, %v6685_v30, %v6686_v38  ;;  %v14509_v25 = vrot.slane %v8365_v32, 9  ;;  %v14510_v62 = vrot.slane %v8366_v46, 9  ;;  %v8404_v44 = vrot.slane %v20030_v53, 5  ;;  %v20078_v11 = vld [vmem:[#allocation3 + $0x4c] sm:$0xf] }
 0x374   : > { %v14423_v49 = vcombine.low %v6677_v47, %v6680_v40  ;;  %v20058_v57 = vsel %vm17970_vm10, %v14417_v63, %v6690_v4  ;;  %v14511_v10 = vrot.slane %v8367_v50, 9  ;;  %v14424_v18 = vcombine.low %v20044_v22, %v6687_v60  ;;  %v20088_v63 = vld [vmem:[#allocation3 + $0x44] sm:$0x1]  ;;  %v8370_v8 = vld [vmem:[#allocation3 + $0x48] sm:$0xe] }
 0x375   : > { %16141 = vmatmul.mubr.bf16.gmra.mrb[28].mxu1 %v14403_v31  ;;  %v8407_v31 = vrot.slane %v20032_v15, 5  ;;  %v8406_v17 = vrot.slane %v8404_v44, 4  ;;  %v8411_v56 = vrot.slane %v20034_v37, 5  ;;  %v8414_v41 = vrot.slane %v20040_v55, 5  ;;  %v20093_v46 = vld [vmem:[#allocation3 + $0x50] sm:$0x1] }
 0x376   : > { %16157 = vmatpush3.bf16.msra.mxu1 %v17567_v23  ;;  %16160 = vmatprep.mubr.bf16.mxu1 %v14420_v54  ;;  %v8397_v23 = vrot.slane %v20026_v45, 5  ;;  %v8400_v54 = vrot.slane %v20028_v21, 5  ;;  %v8418_v29 = vrot.slane %v20048_v9, 5  ;;  %v14512_v61 = vrot.slane %v8368_v42, 9  ;;  %v20095_v50 = vld [vmem:[#allocation3 + $0x58] sm:$0xf] }
 0x377   : > { %16158 = vmatprep.subr.bf16.mxu1 %v17568_v43  ;;  %v20084_v20 = vsel %vm17970_vm10, %v8406_v17, %v8407_v31  ;;  %v8413_v38 = vrot.slane %v8411_v56, 4  ;;  %v6694_v30 = vsel %vm17970_vm10, %v6692_v6, %v6693_v14  ;;  %v8421_v3 = vrot.slane %v20051_v39, 5  ;;  %v20203_v5 = vld [vmem:[#allocation3 + $0x8] sm:$0x1]  ;;  %v20210_v27 = vld [vmem:[#allocation3 + $0x18] sm:$0xf] }
 0x378   : > { %v8399_v28 = vrot.slane %v8397_v23, 4  ;;  %v20063_v58 = vsel %vm17970_vm10, %v14509_v25, %v8397_v23  ;;  %v8420_v19 = vrot.slane %v8418_v29, 4  ;;  %v20107_v6 = vsel %vm17970_vm10, %v14512_v61, %v8418_v29  ;;  %v8371_v25 = vld [vmem:[#allocation3 + $0x54] sm:$0xe]  ;;  %v20117_v23 = vld [vmem:[#allocation3 + $0x5c] sm:$0x1] }
 0x379   : > { %v20103_v14 = vsel %vm17970_vm10, %v8413_v38, %v8414_v41  ;;  %v14513_v22 = vrot.slane %v8369_v24, 9  ;;  %v8432_v60 = vrot.slane %v20078_v11, 5  ;;  %v6704_v31 = vrot.slane %v19944_v12, 5 }
 0x37a   : > { %16159 = vmatpush3.bf16.msra.mxu1 %v17568_v43  ;;  %v20070_v4 = vsel %vm17970_vm10, %v8399_v28, %v8400_v54  ;;  %v20074_v43 = vsel %vm17970_vm10, %v14510_v62, %v8404_v44  ;;  %v20114_v40 = vsel %vm17970_vm10, %v8420_v19, %v8421_v3  ;;  %v8428_v62 = vrot.slane %v20088_v63, 5  ;;  %v6628_v3 = vld [vmem:[#allocation3 + $0xcc] sm:$0xe] }
 0x37b   : > { %21938 = vst [vmem:[#allocation16_spill] sm:$0xff] %v20114_v40  ;;  %v14514_v44 = vrot.slane %v8370_v8, 9  ;;  %v8434_v28 = vrot.slane %v8432_v60, 4  ;;  %v8439_v17 = vrot.slane %v20095_v50, 5  ;;  %v14515_v29 = vrot.slane %v8371_v25, 9 }
 0x37c   : > { %v8442_v61 = vrot.slane %v20117_v23, 5  ;;  %v6698_v19 = vsel %vm17970_vm10, %v14418_v34, %v6697_v0  ;;  %v14425_v0 = vcombine.low %v20058_v57, %v6694_v30  ;;  %v14419_v34 = vrot.slane %v6628_v3, 9  ;;  %v17575_v57 = vld [vmem:[%s21603_s2 + $0x30] sm:$0xff]   ;;  %v17577_v30 = vld [vmem:[#allocation4 + $0x280] sm:$0xff]  }
 0x37d   : > { %16161 = vmatmul.mubr.bf16.vlgmr.msra.gmra.mrb[16].mxu1 %v14421_v7  ;;  %v20099_v7 = vsel %vm17970_vm10, %v14511_v10, %v8411_v56  ;;  %v8435_v10 = vrot.slane %v20093_v46, 5  ;;  %v20135_v41 = vsel %vm17970_vm10, %v14514_v44, %v8432_v60  ;;  %v8441_v38 = vrot.slane %v8439_v17, 4  ;;  %16188 = vmatprep.subr.bf16.mxu0 %v17575_v57  ;;  %v11438_v44 = vld [vmem:[#allocation3 + $0x60] sm:$0xe] }
 0x37e   : > { %16164 = vmatprep.mubr.bf16.mxu1 %v14422_v26  ;;  %v8425_v26 = vrot.slane %v20066_v1, 5  ;;  %21941 = vst [vmem:[#allocation35_spill] sm:$0xff] %v20135_v41  ;;  %16189 = vmatpush3.bf16.msra.mxu0 %v17575_v57  ;;  %v20189_v57 = vld [vmem:[#allocation3] sm:$0xf] }
 0x37f   : > { %v20163_v59 = vsel %vm17970_vm10, %v8441_v38, %v8442_v61  ;;  %v17580_v61 = vld [vmem:[#allocation4 + $0x298] sm:$0xff]  }
 0x380   : > { %v8427_v54 = vrot.slane %v8425_v26, 4  ;;  %v20127_v56 = vsel %vm17970_vm10, %v14513_v22, %v8425_v26  ;;  %v20159_v26 = vsel %vm17970_vm10, %v14515_v29, %v8439_v17  ;;  %21944 = vst [vmem:[#allocation18_spill] sm:$0xff] %v20163_v59  ;;  %v6705_v22 = vsel %vm17970_vm10, %v14419_v34, %v6704_v31 }
 0x381   : > { %21939 = vst [vmem:[#allocation39_spill] sm:$0xff] %v20127_v56  ;;  %21943 = vst [vmem:[#allocation44_spill] sm:$0xff] %v20159_v26  ;;  %v7895_v26 = vshrl.u32 %v20048_v9, 16 }
 0x382   : > { %v20131_v24 = vsel %vm17970_vm10, %v8427_v54, %v8428_v62  ;;  %v10821_v54 = vld [vmem:[#allocation3 + $0x64] sm:$0xf]  ;;  %v10852_v62 = vld [vmem:[#allocation3 + $0x68] sm:$0x1] }
 0x383   : > { %21940 = vst [vmem:[#allocation15_spill] sm:$0xff] %v20131_v24  ;;  %v11467_v17 = vrot.slane %v10852_v62, 5 }
 0x385   : > { %16165 = vmatmul.mubr.bf16.gmra.mrb[20].mxu1 %v14423_v49  ;;  %v20141_v49 = vsel %vm17970_vm10, %v8434_v28, %v8435_v10  ;;  %v14700_v28 = vrot.slane %v11438_v44, 9  ;;  %v20193_v44 = vld [vmem:[#allocation3 + $0xc] sm:$0xf] }
 0x386   : > { %16168 = vmatprep.mubr.bf16.mxu1 %v14424_v18  ;;  %21942 = vst [vmem:[#allocation17_spill] sm:$0xff] %v20141_v49  ;;  %v6701_v18 = vsel %vm17970_vm10, %v20017_v48, %v6700_v13  ;;  %v6706_v48 = vrot.slane %v6704_v31, 4  ;;  %v6707_v13 = vrot.slane %v19980_v36, 5  ;;  %v17576_v36 = vld [vmem:[%s21603_s2 + $0x38] sm:$0xff]   ;;  %v11464_v31 = vrot.slane %v10821_v54, 5 }
 0x387   : > { %v14426_v33 = vcombine.low %v6698_v19, %v6701_v18  ;;  %16190 = vmatprep.subr.bf16.mxu0 %v17576_v36  ;;  %v20191_v54 = vld [vmem:[#allocation3 + $0x4] sm:$0xf] }
 0x388   : > { %v6708_v60 = vsel %vm17970_vm10, %v6706_v48, %v6707_v13  ;;  %16191 = vmatpush3.bf16.msra.mxu0 %v17576_v36  ;;  %v11466_v10 = vrot.slane %v11464_v31, 4  ;;  %v20181_v29 = vsel %vm17970_vm10, %v14700_v28, %v11464_v31  ;;  %v7786_v28 = vshrl.u32 %v20189_v57, 16 }
 0x389   : > { %v14427_v25 = vcombine.low %v6705_v22, %v6708_v60  ;;  %16208 = vmatprep.subr.bf16.mxu0 %v17577_v30  ;;  %21945 = vst [vmem:[#allocation36_spill] sm:$0xff] %v20181_v29  ;;  %v7834_v29 = vshrl.u32 %v20210_v27, 16 }
 0x38a   : > { %v20185_v38 = vsel %vm17970_vm10, %v11466_v10, %v11467_v17  ;;  %v7789_v10 = vshll.u32 %v20189_v57, 16  ;;  %v7788_v8 = vrot.slane %v7786_v28, 4 }
 0x38b   : > { %21946 = vst [vmem:[#allocation20_spill] sm:$0xff] %v20185_v38 }
 0x38c   : > { %v7791_v12 = vrot.slane %v7789_v10, 5 }
 0x38d   : > { %16169 = vmatmul.mubr.bf16.gmra.mrb[24].mxu1 %v14425_v0 }
 0x38e   : > { %16172 = vmatprep.mubr.bf16.mxu1 %v14426_v33  ;;  %v7792_v38 = vor.u32 %v7791_v12, %v7788_v8  ;;  %v17582_v12 = vld [vmem:[#allocation4 + $0x2a8] sm:$0xff]  }
 0x390   : > { %v7793_v8 = vrot.slane %v7792_v38, 4 }
 0x395   : > { %16173 = vmatmul.mubr.bf16.gmra.mrb[28].mxu1 %v14427_v25  ;;  %v17578_v25 = vld [vmem:[#allocation4 + $0x288] sm:$0xff]  }
 0x450   : > { %v16162_v19 = vpop.f32.mrb[16].mxu1 }
 0x451   : > { %v6839_v18 = vpop.f32.mrb[17].mxu1  ;;  %v6920_v0 = vmax.f32 %v16162_v19, 0.0 }
 0x452   : > { %v16163_v3 = vpop.f32.mrb[18].mxu1  ;;  %v6918_v48 = vmax.f32 %v6839_v18, 0.0 }
 0x453   : > { %v6921_v33 = vmax.f32 %v16163_v3, 0.0  ;;  %v6842_v34 = vpop.f32.mrb[19].mxu1  ;;  %v17579_v3 = vld [vmem:[#allocation4 + $0x290] sm:$0xff]  }
 0x454   : > { %v6919_v13 = vmax.f32 %v6842_v34, 0.0 }
 0x455   : > { %v6935_v22 = vpack.c.bf16 %v6921_v33, %v6920_v0  ;;  %v7795_v0 = vshll.u32 %v20191_v54, 16  ;;  %v7799_v33 = vshrl.u32 %v20191_v54, 16 }
 0x456   : > { %v6934_v60 = vpack.c.bf16 %v6919_v13, %v6918_v48  ;;  %v7810_v13 = vshrl.u32 %v20193_v44, 16 }
 0x457   : > { %v20205_v42 = vrot.slane %v7795_v0, 5 }
 0x458   : > { %v16166_v36 = vpop.f32.mrb[20].mxu1  ;;  %16192 = vmatprep.mubr.bf16.mxu0 %v6934_v60  ;;  %v7812_v47 = vrot.slane %v7810_v13, 4 }
 0x459   : > { %v6855_v62 = vpop.f32.mrb[21].mxu1  ;;  %16193 = vmatmul.mubr.bf16.vlgmr.msra.gmra.mrb[16].mxu0 %v6935_v22  ;;  %v6924_v17 = vmax.f32 %v16166_v36, 0.0  ;;  %v7819_v36 = vshll.u32 %v20026_v45, 16 }
 0x45a   : > { %16209 = vmatpush3.bf16.msra.mxu0 %v17577_v30  ;;  %v16167_v31 = vpop.f32.mrb[22].mxu1  ;;  %v6922_v34 = vmax.f32 %v6855_v62, 0.0  ;;  %v7813_v30 = vshll.u32 %v20193_v44, 16  ;;  %v7801_v62 = vrot.slane %v7799_v33, 4  ;;  %v17581_v33 = vld [vmem:[#allocation4 + $0x2a0] sm:$0xff]  }
 0x45b   : > { %v6925_v19 = vmax.f32 %v16167_v31, 0.0  ;;  %v6858_v18 = vpop.f32.mrb[23].mxu1  ;;  %16210 = vmatprep.subr.bf16.mxu0 %v17578_v25  ;;  %v7823_v31 = vshrl.u32 %v20026_v45, 16 }
 0x45c   : > { %v6923_v48 = vmax.f32 %v6858_v18, 0.0  ;;  %v7815_v32 = vrot.slane %v7813_v30, 5  ;;  %v7802_v13 = vor.u32 %v7801_v62, %v20205_v42 }
 0x45d   : > { %v6937_v22 = vpack.c.bf16 %v6925_v19, %v6924_v17  ;;  %v7805_v19 = vshll.u32 %v20203_v5, 16 }
 0x45e   : > { %v6936_v60 = vpack.c.bf16 %v6923_v48, %v6922_v34  ;;  %16211 = vmatpush3.bf16.msra.mxu0 %v17578_v25  ;;  %v20208_v34 = vrot.slane %v7819_v36, 5  ;;  %v7825_v48 = vrot.slane %v7823_v31, 4  ;;  %v7843_v36 = vshll.u32 %v20030_v53, 16 }
 0x45f   : > { %16212 = vmatprep.subr.bf16.mxu0 %v17579_v3  ;;  %v7847_v31 = vshrl.u32 %v20030_v53, 16  ;;  %v7803_v62 = vrot.slane %v7802_v13, 4 }
 0x460   : > { %v16170_v18 = vpop.f32.mrb[24].mxu1  ;;  %16196 = vmatprep.mubr.bf16.mxu0 %v6936_v60 }
 0x461   : > { %v6871_v17 = vpop.f32.mrb[25].mxu1  ;;  %16197 = vmatmul.mubr.bf16.gmra.mrb[20].mxu0 %v6937_v22  ;;  %v6928_v28 = vmax.f32 %v16170_v18, 0.0  ;;  %v7816_v22 = vor.u32 %v7815_v32, %v7812_v47  ;;  %v7826_v18 = vor.u32 %v7825_v48, %v20208_v34  ;;  %v7829_v47 = vshll.u32 %v20028_v21, 16  ;;  %v17583_v21 = vld [vmem:[#allocation4 + $0x2b0] sm:$0xff]  }
 0x462   : > { %16213 = vmatpush3.bf16.msra.mxu0 %v17579_v3  ;;  %v16171_v25 = vpop.f32.mrb[26].mxu1  ;;  %v6926_v30 = vmax.f32 %v6871_v17, 0.0  ;;  %v7807_v17 = vrot.slane %v7805_v19, 5  ;;  %v7849_v48 = vrot.slane %v7847_v31, 4  ;;  %v7871_v31 = vshrl.u32 %v20034_v37, 16 }
 0x463   : > { %v6929_v10 = vmax.f32 %v16171_v25, 0.0  ;;  %v6874_v0 = vpop.f32.mrb[27].mxu1  ;;  %16214 = vmatprep.subr.bf16.mxu0 %v17580_v61  ;;  %v7837_v25 = vshll.u32 %v20210_v27, 16  ;;  %v7827_v2 = vrot.slane %v7826_v18, 4  ;;  %v20232_v18 = vld [vmem:[#allocation3 + $0x30] sm:$0xf] }
 0x464   : > { %v6927_v60 = vmax.f32 %v6874_v0, 0.0  ;;  %v20218_v0 = vld [vmem:[#allocation3 + $0x24] sm:$0xf]  ;;  %v7882_v41 = vshrl.u32 %v20232_v18, 16 }
 0x465   : > { %v6939_v3 = vpack.c.bf16 %v6929_v10, %v6928_v28  ;;  %v7817_v10 = vrot.slane %v7816_v22, 4  ;;  %v7839_v16 = vrot.slane %v7837_v25, 5  ;;  %v7858_v38 = vshrl.u32 %v20218_v0, 16 }
 0x466   : > { %v6938_v35 = vpack.c.bf16 %v6927_v60, %v6926_v30  ;;  %16215 = vmatpush3.bf16.msra.mxu0 %v17580_v61  ;;  %v7836_v30 = vrot.slane %v7834_v29, 4  ;;  %v20221_v61 = vrot.slane %v7843_v36, 5  ;;  %v7861_v19 = vshll.u32 %v20218_v0, 16 }
 0x467   : > { %16216 = vmatprep.subr.bf16.mxu0 %v17581_v33  ;;  %v7798_v29 = vsel %vm17978_vm11, %v7793_v8, %v20205_v42  ;;  %v7808_v22 = vsel %vm17978_vm11, %v7803_v62, %v7807_v17  ;;  %v7867_v36 = vshll.u32 %v20034_v37, 16  ;;  %v7831_v8 = vrot.slane %v7829_v47, 5  ;;  %v17584_v17 = vld [vmem:[#allocation4 + $0x2b8] sm:$0xff]  }
 0x468   : > { %v16174_v32 = vpop.f32.mrb[28].mxu1  ;;  %16200 = vmatprep.mubr.bf16.mxu0 %v6938_v35  ;;  %v14476_v42 = vcombine.low %v7798_v29, %v7808_v22  ;;  %v7840_v62 = vor.u32 %v7839_v16, %v7836_v30  ;;  %v7897_v30 = vrot.slane %v7895_v26, 4  ;;  %v7915_v26 = vshll.u32 %v20066_v1, 16 }
 0x469   : > { %v6887_v28 = vpop.f32.mrb[29].mxu1  ;;  %16201 = vmatmul.mubr.bf16.gmra.mrb[24].mxu0 %v6939_v3  ;;  %v6932_v13 = vmax.f32 %v16174_v32, 0.0  ;;  %v7850_v32 = vor.u32 %v7849_v48, %v20221_v61  ;;  %v7832_v48 = vsel %vm17978_vm11, %v7827_v2, %v7831_v8  ;;  %v20242_v24 = vrot.slane %v7867_v36, 5 }
 0x46a   : > { %16217 = vmatpush3.bf16.msra.mxu0 %v17581_v33  ;;  %v16175_v60 = vpop.f32.mrb[30].mxu1  ;;  %v6930_v33 = vmax.f32 %v6887_v28, 0.0  ;;  %v7853_v28 = vshll.u32 %v20032_v15, 16  ;;  %v7822_v15 = vsel %vm17978_vm11, %v7817_v10, %v20208_v34 }
 0x46b   : > { %v6933_v59 = vmax.f32 %v16175_v60, 0.0  ;;  %v6890_v35 = vpop.f32.mrb[31].mxu1  ;;  %16218 = vmatprep.subr.bf16.mxu0 %v17582_v12  ;;  %v7891_v60 = vshll.u32 %v20048_v9, 16  ;;  %v7851_v47 = vrot.slane %v7850_v32, 4  ;;  %v14477_v29 = vcombine.low %v7822_v15, %v7832_v48 }
 0x46c   : > { %v6931_v3 = vmax.f32 %v6890_v35, 0.0  ;;  %v7860_v35 = vrot.slane %v7858_v38, 4  ;;  %v7841_v38 = vrot.slane %v7840_v62, 4  ;;  %v7855_v2 = vrot.slane %v7853_v28, 5  ;;  %v17586_v62 = vld [vmem:[#allocation4 + $0x248] sm:$0xff]  }
 0x46d   : > { %v6941_v25 = vpack.c.bf16 %v6933_v59, %v6932_v13  ;;  %v7885_v59 = vshll.u32 %v20232_v18, 16  ;;  %v7863_v13 = vrot.slane %v7861_v19, 5  ;;  %v20244_v16 = vrot.slane %v7891_v60, 5 }
 0x46e   : > { %v6940_v49 = vpack.c.bf16 %v6931_v3, %v6930_v33  ;;  %16219 = vmatpush3.bf16.msra.mxu0 %v17582_v12  ;;  %v7873_v12 = vrot.slane %v7871_v31, 4  ;;  %v7884_v19 = vrot.slane %v7882_v41, 4  ;;  %v20249_v33 = vld [vmem:[#allocation3 + $0x3c] sm:$0xf]  ;;  %v20254_v31 = vld [vmem:[#allocation3 + $0x48] sm:$0xf]  ;;  %v7856_v34 = vsel %vm17978_vm11, %v7851_v47, %v7855_v2 }
 0x46f   : > { %16220 = vmatprep.subr.bf16.mxu0 %v17583_v21  ;;  %v7887_v22 = vrot.slane %v7885_v59, 5  ;;  %v7864_v3 = vor.u32 %v7863_v13, %v7860_v35  ;;  %v7898_v10 = vor.u32 %v7897_v30, %v20244_v16  ;;  %v7943_v41 = vshrl.u32 %v20078_v11, 16 }
 0x470   : > { %16204 = vmatprep.mubr.bf16.mxu0 %v6940_v49  ;;  %v17585_v49 = vld [vmem:[#allocation4 + $0x240] sm:$0xff]   ;;  %v7874_v36 = vor.u32 %v7873_v12, %v20242_v24  ;;  %v7846_v32 = vsel %vm17978_vm11, %v7841_v38, %v20221_v61  ;;  %v7877_v60 = vshll.u32 %v20040_v55, 16  ;;  %v7909_v8 = vshll.u32 %v20249_v33, 16 }
 0x471   : > { %16205 = vmatmul.mubr.bf16.gmra.mrb[28].mxu0 %v6941_v25  ;;  %v7939_v25 = vshll.u32 %v20078_v11, 16  ;;  %v7888_v28 = vor.u32 %v7887_v22, %v7884_v19  ;;  %v7901_v35 = vshll.u32 %v20051_v39, 16  ;;  %v7930_v59 = vshrl.u32 %v20254_v31, 16  ;;  %v20270_v22 = vld [vmem:[#allocation3 + $0x54] sm:$0xf]  ;;  %v17587_v39 = vld [vmem:[#allocation4 + $0x250] sm:$0xff]  }
 0x472   : > { %16221 = vmatpush3.bf16.msra.mxu0 %v17583_v21  ;;  %16224 = vmatprep.mubr.bf16.mxu0 %v14476_v42  ;;  %v7919_v21 = vshrl.u32 %v20066_v1, 16  ;;  %v7906_v42 = vshrl.u32 %v20249_v33, 16  ;;  %v7933_v48 = vshll.u32 %v20254_v31, 16  ;;  %v7875_v13 = vrot.slane %v7874_v36, 4 }
 0x473   : > { %16222 = vmatprep.subr.bf16.mxu0 %v17584_v17  ;;  %v7917_v12 = vrot.slane %v7915_v26, 5  ;;  %v7865_v61 = vrot.slane %v7864_v3, 4  ;;  %v7899_v55 = vrot.slane %v7898_v10, 4  ;;  %v7941_v30 = vrot.slane %v7939_v25, 5 }
 0x474   : > { %v7921_v47 = vrot.slane %v7919_v21, 4  ;;  %v7945_v15 = vrot.slane %v7943_v41, 4  ;;  %v7879_v38 = vrot.slane %v7877_v60, 5  ;;  %v7908_v2 = vrot.slane %v7906_v42, 4 }
 0x475   : > { %v7911_v19 = vrot.slane %v7909_v8, 5  ;;  %v7889_v56 = vrot.slane %v7888_v28, 4  ;;  %v7903_v40 = vrot.slane %v7901_v35, 5  ;;  %v7935_v36 = vrot.slane %v7933_v48, 5  ;;  %v17588_v35 = vld [vmem:[#allocation4 + $0x258] sm:$0xff]  }
 0x476   : > { %16223 = vmatpush3.bf16.msra.mxu0 %v17584_v17  ;;  %v14478_v17 = vcombine.low %v7846_v32, %v7856_v34  ;;  %v7932_v34 = vrot.slane %v7930_v59, 4  ;;  %v7922_v3 = vor.u32 %v7921_v47, %v7917_v12  ;;  %v7963_v26 = vshll.u32 %v20095_v50, 16 }
 0x477   : > { %16240 = vmatprep.subr.bf16.mxu0 %v17585_v49  ;;  %v7870_v21 = vsel %vm17978_vm11, %v7865_v61, %v20242_v24  ;;  %v7904_v10 = vsel %vm17978_vm11, %v7899_v55, %v7903_v40  ;;  %v7946_v25 = vor.u32 %v7945_v15, %v7941_v30  ;;  %v7912_v41 = vor.u32 %v7911_v19, %v7908_v2  ;;  %v17589_v15 = vld [vmem:[#allocation4 + $0x260] sm:$0xff]  }
 0x478   : > { %v7925_v32 = vshll.u32 %v20088_v63, 16  ;;  %v7954_v60 = vshrl.u32 %v20270_v22, 16  ;;  %v7957_v42 = vshll.u32 %v20270_v22, 16  ;;  %v7894_v28 = vsel %vm17978_vm11, %v7889_v56, %v20244_v16 }
 0x479   : > { %16225 = vmatmul.mubr.bf16.vlgmr.msra.gmra.mrb[32].mxu0 %v14477_v29  ;;  %v7880_v29 = vsel %vm17978_vm11, %v7875_v13, %v7879_v38  ;;  %v7936_v24 = vor.u32 %v7935_v36, %v7932_v34  ;;  %v7949_v59 = vshll.u32 %v20093_v46, 16  ;;  %v14480_v40 = vcombine.low %v7894_v28, %v7904_v10 }
 0x47a   : > { %16241 = vmatpush3.bf16.msra.mxu0 %v17585_v49  ;;  %16228 = vmatprep.mubr.bf16.mxu0 %v14478_v17  ;;  %v7967_v49 = vshrl.u32 %v20095_v50, 16  ;;  %v14479_v8 = vcombine.low %v7870_v21, %v7880_v29  ;;  %v7923_v48 = vrot.slane %v7922_v3, 4  ;;  %v7947_v63 = vrot.slane %v7946_v25, 4  ;;  %v17590_v3 = vld [vmem:[#allocation4 + $0x268] sm:$0xff]   ;;  %v17591_v25 = vld [vmem:[#allocation4 + $0x270] sm:$0xff]  }
 0x47b   : > { %16242 = vmatprep.subr.bf16.mxu0 %v17586_v62  ;;  %v7913_v13 = vrot.slane %v7912_v41, 4  ;;  %v7927_v47 = vrot.slane %v7925_v32, 5  ;;  %v7956_v61 = vrot.slane %v7954_v60, 4  ;;  %v7959_v55 = vrot.slane %v7957_v42, 5  ;;  %v17592_v32 = vld [vmem:[#allocation4 + $0x278] sm:$0xff]   ;;  %v17594_v60 = vld [vmem:[#allocation4 + $0x2c0] sm:$0xff]  }
 0x47c   : > { %v7969_v17 = vrot.slane %v7967_v49, 4  ;;  %v7937_v38 = vrot.slane %v7936_v24, 4  ;;  %v7951_v56 = vrot.slane %v7949_v59, 5  ;;  %v7973_v34 = vshll.u32 %v20117_v23, 16  ;;  %v17601_v24 = vld [vmem:[#allocation4 + $0x2d8] sm:$0xff]  }
 0x47d   : > { %v7928_v16 = vsel %vm17978_vm11, %v7923_v48, %v7927_v47  ;;  %v7918_v19 = vsel %vm17978_vm11, %v7913_v13, %v7917_v12  ;;  %v14493_v42 = vcombine.low %v20193_v44, %v20026_v45  ;;  %v14494_v28 = vcombine.low %v20210_v27, %v20030_v53  ;;  %v17602_v45 = vld [vmem:[#allocation4 + $0x2e0] sm:$0xff]   ;;  %v8364_v27 = vld [vmem:[#allocation3] sm:$0xe] }
 0x47e   : > { %16243 = vmatpush3.bf16.msra.mxu0 %v17586_v62  ;;  %v7965_v62 = vrot.slane %v7963_v26, 5  ;;  %v7952_v2 = vsel %vm17978_vm11, %v7947_v63, %v7951_v56  ;;  %v14481_v36 = vcombine.low %v7918_v19, %v7928_v16  ;;  %v7942_v29 = vsel %vm17978_vm11, %v7937_v38, %v7941_v30  ;;  %v21950_v47 = vld [vmem:[#allocation16_spill] sm:$0xff]  ;;  %v21956_v38 = vld [vmem:[#allocation17_spill] sm:$0xff]  ;;  %v17618_v19 = vld [vmem:[#allocation4 + $0x340] sm:$0xff]  }
 0x47f   : > { %16244 = vmatprep.subr.bf16.mxu0 %v17587_v39  ;;  %v14482_v26 = vcombine.low %v7942_v29, %v7952_v2  ;;  %v7975_v10 = vrot.slane %v7973_v34, 5  ;;  %v14492_v30 = vcombine.low %v20189_v57, %v20191_v54  ;;  %v17598_v57 = vld [vmem:[#allocation4 + $0x2d0] sm:$0xff]   ;;  %v14496_v59 = vcombine.low %v20232_v18, %v20048_v9  ;;  %v21958_v16 = vld [vmem:[#allocation44_spill] sm:$0xff]  ;;  %v20344_v29 = vld [vmem:[#allocation3 + $0x10] sm:$0xf] }
 0x480   : > { %v7970_v46 = vor.u32 %v7969_v17, %v7965_v62  ;;  %v8390_v53 = vrot.slane %v20191_v54, 5  ;;  %v14497_v44 = vcombine.low %v20249_v33, %v20066_v1  ;;  %v14508_v48 = vrot.slane %v8364_v27, 9  ;;  %v17606_v18 = vld [vmem:[#allocation4 + $0x2f0] sm:$0xff]   ;;  %v17608_v33 = vld [vmem:[#allocation4 + $0x2f8] sm:$0xff]   ;;  %v17621_v34 = vld [vmem:[#allocation4 + $0x348] sm:$0xff]  }
 0x481   : > { %16229 = vmatmul.mubr.bf16.gmra.mrb[36].mxu0 %v14479_v8  ;;  %v17597_v8 = vld [vmem:[#allocation4 + $0x2c8] sm:$0xff]   ;;  %v14498_v9 = vcombine.low %v20254_v31, %v20078_v11  ;;  %v17609_v11 = vld [vmem:[#allocation4 + $0x300] sm:$0xff]   ;;  %v21947_v17 = vcombine.low %v20063_v58, %v20070_v4  ;;  %v21948_v63 = vcombine.low %v20074_v43, %v20084_v20  ;;  %v21949_v13 = vcombine.low %v20099_v7, %v20103_v14  ;;  %v17615_v7 = vld [vmem:[#allocation4 + $0x330] sm:$0xff]  }
 0x482   : > { %16245 = vmatpush3.bf16.msra.mxu0 %v17587_v39  ;;  %16232 = vmatprep.mubr.bf16.mxu0 %v14480_v40  ;;  %v7960_v39 = vor.u32 %v7959_v55, %v7956_v61  ;;  %v7971_v49 = vrot.slane %v7970_v46, 4  ;;  %v17605_v40 = vld [vmem:[#allocation4 + $0x2e8] sm:$0xff]   ;;  %v8391_v54 = vsel %vm17970_vm10, %v14508_v48, %v8390_v53  ;;  %v21951_v61 = vcombine.low %v20107_v6, %v21950_v47  ;;  %v17613_v58 = vld [vmem:[#allocation4 + $0x320] sm:$0xff]   ;;  %v17617_v14 = vld [vmem:[#allocation4 + $0x338] sm:$0xff]  }
 0x483   : > { %16246 = vmatprep.subr.bf16.mxu0 %v17588_v35  ;;  %v17610_v31 = vld [vmem:[#allocation4 + $0x308] sm:$0xff]   ;;  %v21952_v43 = vld [vmem:[#allocation39_spill] sm:$0xff]  ;;  %v17616_v6 = vld [vmem:[#allocation3 + $0xc] sm:$0xff]  }
 0x484   : > { %v7961_v21 = vrot.slane %v7960_v39, 4  ;;  %v7976_v12 = vsel %vm17978_vm11, %v7971_v49, %v7975_v10  ;;  %v17614_v4 = vld [vmem:[#allocation4 + $0x328] sm:$0xff]   ;;  %v21953_v20 = vld [vmem:[#allocation15_spill] sm:$0xff]  ;;  %v21959_v46 = vld [vmem:[#allocation18_spill] sm:$0xff]  ;;  %v8930_v49 = vshll.u32 %v20344_v29, 16 }
 0x485   : > { %v21954_v55 = vcombine.low %v21952_v43, %v21953_v20  ;;  %v21960_v2 = vcombine.low %v21958_v16, %v21959_v46  ;;  %v17619_v39 = vld [vmem:[#allocation3 + $0x18] sm:$0xff]   ;;  %v20369_v43 = vld [vmem:[#allocation3 + $0x34] sm:$0xf] }
 0x486   : > { %16247 = vmatpush3.bf16.msra.mxu0 %v17588_v35  ;;  %v7966_v23 = vsel %vm17978_vm11, %v7961_v21, %v7965_v62  ;;  %v14495_v35 = vcombine.low %v20218_v0, %v20034_v37  ;;  %v8392_v37 = vrot.slane %v8390_v53, 4  ;;  %v8393_v0 = vrot.slane %v20203_v5, 5  ;;  %v20356_v53 = vld [vmem:[#allocation3 + $0x28] sm:$0xf]  ;;  %v17626_v27 = vld [vmem:[#allocation4 + $0x360] sm:$0xff]  }
 0x487   : > { %16248 = vmatprep.subr.bf16.mxu0 %v17589_v15  ;;  %v14483_v41 = vcombine.low %v7966_v23, %v7976_v12  ;;  %v14499_v5 = vcombine.low %v20270_v22, %v20095_v50  ;;  %v17611_v50 = vld [vmem:[#allocation4 + $0x310] sm:$0xff]   ;;  %v17612_v22 = vld [vmem:[#allocation4 + $0x318] sm:$0xff]   ;;  %v8934_v21 = vshrl.u32 %v20344_v29, 16  ;;  %v20348_v12 = vld [vmem:[#allocation3 + $0x1c] sm:$0xf] }
 0x488   : > { %v8394_v62 = vsel %vm17970_vm10, %v8392_v37, %v8393_v0  ;;  %v17623_v23 = vld [vmem:[#allocation3 + $0x30] sm:$0xff]  }
 0x489   : > { %16233 = vmatmul.mubr.bf16.gmra.mrb[40].mxu0 %v14481_v36  ;;  %v14516_v1 = vcombine.low %v8391_v54, %v8394_v62  ;;  %v17620_v36 = vld [vmem:[#allocation3 + $0x24] sm:$0xff]   ;;  %v8982_v54 = vshrl.u32 %v20356_v53, 16 }
 0x48a   : > { %16249 = vmatpush3.bf16.msra.mxu0 %v17589_v15  ;;  %16236 = vmatprep.mubr.bf16.mxu0 %v14482_v26  ;;  %v21955_v15 = vld [vmem:[#allocation35_spill] sm:$0xff]  ;;  %v17622_v26 = vld [vmem:[#allocation4 + $0x350] sm:$0xff]  }
 0x48b   : > { %16250 = vmatprep.subr.bf16.mxu0 %v17590_v3  ;;  %v21957_v56 = vcombine.low %v21955_v15, %v21956_v38 }
 0x48e   : > { %16251 = vmatpush3.bf16.msra.mxu0 %v17590_v3  ;;  %v8896_v3 = vld [vmem:[#allocation3 + $0xc] sm:$0xf] }
 0x48f   : > { %16252 = vmatprep.subr.bf16.mxu0 %v17591_v25  ;;  %v8921_v10 = vshrl.u32 %v8896_v3, 16 }
 0x491   : > { %16237 = vmatmul.mubr.bf16.gmra.mrb[44].mxu0 %v14483_v41  ;;  %v20350_v41 = vrot.slane %v8930_v49, 5 }
 0x492   : > { %16253 = vmatpush3.bf16.msra.mxu0 %v17591_v25  ;;  %16256 = vmatprep.mubr.bf16.mxu0 %v14492_v30  ;;  %v8924_v25 = vshll.u32 %v8896_v3, 16  ;;  %v17625_v30 = vld [vmem:[#allocation4 + $0x358] sm:$0xff]  }
 0x493   : > { %16254 = vmatprep.subr.bf16.mxu0 %v17592_v32 }
 0x496   : > { %16255 = vmatpush3.bf16.msra.mxu0 %v17592_v32  ;;  %v8936_v32 = vrot.slane %v8934_v21, 4 }
 0x497   : > { %16272 = vmatprep.subr.bf16.mxu0 %v17594_v60 }
 0x499   : > { %16257 = vmatmul.mubr.bf16.vlgmr.msra.gmra.mrb[32].mxu0 %v14493_v42  ;;  %v17624_v42 = vld [vmem:[#allocation3 + $0x3c] sm:$0xff]  }
 0x49a   : > { %16273 = vmatpush3.bf16.msra.mxu0 %v17594_v60  ;;  %16260 = vmatprep.mubr.bf16.mxu0 %v14494_v28  ;;  %v8899_v60 = vld [vmem:[#allocation3 + $0x18] sm:$0xf]  ;;  %v8958_v28 = vshrl.u32 %v20348_v12, 16 }
 0x49b   : > { %16274 = vmatprep.subr.bf16.mxu0 %v17597_v8 }
 0x49c   : > { %v8960_v37 = vrot.slane %v8958_v28, 4 }
 0x49e   : > { %16275 = vmatpush3.bf16.msra.mxu0 %v17597_v8  ;;  %v8954_v8 = vshll.u32 %v20348_v12, 16 }
 0x49f   : > { %16276 = vmatprep.subr.bf16.mxu0 %v17598_v57 }
 0x4a0   : > { %v20359_v48 = vrot.slane %v8954_v8, 5 }
 0x4a1   : > { %16261 = vmatmul.mubr.bf16.gmra.mrb[36].mxu0 %v14495_v35  ;;  %v8926_v35 = vrot.slane %v8924_v25, 5 }
 0x4a2   : > { %16277 = vmatpush3.bf16.msra.mxu0 %v17598_v57  ;;  %16264 = vmatprep.mubr.bf16.mxu0 %v14496_v59  ;;  %v8923_v57 = vrot.slane %v8921_v10, 4  ;;  %v8945_v59 = vshrl.u32 %v8899_v60, 16 }
 0x4a3   : > { %16278 = vmatprep.subr.bf16.mxu0 %v17601_v24 }
 0x4a4   : > { %v8927_v0 = vor.u32 %v8926_v35, %v8923_v57  ;;  %v8947_v62 = vrot.slane %v8945_v59, 4 }
 0x4a6   : > { %16279 = vmatpush3.bf16.msra.mxu0 %v17601_v24  ;;  %v20354_v24 = vld [vmem:[#allocation3 + $0x14] sm:$0x1]  ;;  %v8928_v47 = vrot.slane %v8927_v0, 4 }
 0x4a7   : > { %16280 = vmatprep.subr.bf16.mxu0 %v17602_v45 }
 0x4a9   : > { %16265 = vmatmul.mubr.bf16.gmra.mrb[40].mxu0 %v14497_v44  ;;  %v8937_v44 = vor.u32 %v8936_v32, %v20350_v41 }
 0x4aa   : > { %16281 = vmatpush3.bf16.msra.mxu0 %v17602_v45  ;;  %16268 = vmatprep.mubr.bf16.mxu0 %v14498_v9  ;;  %v8948_v45 = vshll.u32 %v8899_v60, 16  ;;  %v8940_v9 = vshll.u32 %v20354_v24, 16  ;;  %v17632_v60 = vld [vmem:[#allocation4 + $0x378] sm:$0xff]  }
 0x4ab   : > { %16282 = vmatprep.subr.bf16.mxu0 %v17605_v40 }
 0x4ae   : > { %16283 = vmatpush3.bf16.msra.mxu0 %v17605_v40  ;;  %v8902_v40 = vld [vmem:[#allocation3 + $0x24] sm:$0xf] }
 0x4af   : > { %16284 = vmatprep.subr.bf16.mxu0 %v17606_v18 }
 0x4b1   : > { %16269 = vmatmul.mubr.bf16.gmra.mrb[44].mxu0 %v14499_v5  ;;  %v8969_v5 = vshrl.u32 %v8902_v40, 16 }
 0x4b2   : > { %16285 = vmatpush3.bf16.msra.mxu0 %v17606_v18  ;;  %16288 = vmatprep.mubr.bf16.mxu0 %v14516_v1  ;;  %v8978_v18 = vshll.u32 %v20356_v53, 16  ;;  %v8950_v1 = vrot.slane %v8948_v45, 5 }
 0x4b3   : > { %16286 = vmatprep.subr.bf16.mxu0 %v17608_v33  ;;  %v8971_v15 = vrot.slane %v8969_v5, 4 }
 0x4b4   : > { %v8951_v20 = vor.u32 %v8950_v1, %v8947_v62 }
 0x4b6   : > { %16287 = vmatpush3.bf16.msra.mxu0 %v17608_v33  ;;  %v8972_v33 = vshll.u32 %v8902_v40, 16  ;;  %v8952_v21 = vrot.slane %v8951_v20, 4  ;;  %v20393_v40 = vld [vmem:[#allocation3 + $0x4c] sm:$0xf] }
 0x4b7   : > { %16304 = vmatprep.subr.bf16.mxu0 %v17609_v11 }
 0x4b8   : > { %v8974_v38 = vrot.slane %v8972_v33, 5 }
 0x4b9   : > { %16289 = vmatmul.mubr.bf16.vlgmr.msra.gmra.mrb[32].mxu0 %v21947_v17  ;;  %v8938_v17 = vrot.slane %v8937_v44, 4 }
 0x4ba   : > { %16305 = vmatpush3.bf16.msra.mxu0 %v17609_v11  ;;  %16292 = vmatprep.mubr.bf16.mxu0 %v21948_v63  ;;  %v17627_v11 = vld [vmem:[#allocation3 + $0x48] sm:$0xff]   ;;  %v20364_v63 = vld [vmem:[#allocation3 + $0x20] sm:$0x1]  ;;  %v8975_v25 = vor.u32 %v8974_v38, %v8971_v15 }
 0x4bb   : > { %16306 = vmatprep.subr.bf16.mxu0 %v17610_v31 }
 0x4bc   : > { %v8976_v0 = vrot.slane %v8975_v25, 4  ;;  %v20423_v25 = vld [vmem:[#allocation3 + $0x64] sm:$0xf] }
 0x4be   : > { %16307 = vmatpush3.bf16.msra.mxu0 %v17610_v31  ;;  %v17629_v31 = vld [vmem:[#allocation4 + $0x368] sm:$0xff]  }
 0x4bf   : > { %16308 = vmatprep.subr.bf16.mxu0 %v17611_v50 }
 0x4c1   : > { %16293 = vmatmul.mubr.bf16.gmra.mrb[36].mxu0 %v21949_v13  ;;  %v8905_v13 = vld [vmem:[#allocation3 + $0x30] sm:$0xf] }
 0x4c2   : > { %16309 = vmatpush3.bf16.msra.mxu0 %v17611_v50  ;;  %16296 = vmatprep.mubr.bf16.mxu0 %v21951_v61  ;;  %v17628_v50 = vld [vmem:[#allocation3 + $0x54] sm:$0xff]   ;;  %v8942_v61 = vrot.slane %v8940_v9, 5  ;;  %v8993_v16 = vshrl.u32 %v8905_v13, 16 }
 0x4c3   : > { %16310 = vmatprep.subr.bf16.mxu0 %v17612_v22  ;;  %v20398_v9 = vld [vmem:[#allocation3 + $0x38] sm:$0x1] }
 0x4c4   : > { %v9012_v15 = vshll.u32 %v20398_v9, 16 }
 0x4c6   : > { %16311 = vmatpush3.bf16.msra.mxu0 %v17612_v22  ;;  %v8961_v22 = vor.u32 %v8960_v37, %v20359_v48  ;;  %v8957_v37 = vsel %vm17978_vm11, %v8952_v21, %v20359_v48  ;;  %v9054_v48 = vshrl.u32 %v20393_v40, 16 }
 0x4c7   : > { %16312 = vmatprep.subr.bf16.mxu0 %v17613_v58 }
 0x4c8   : > { %v8962_v46 = vrot.slane %v8961_v22, 4  ;;  %v9050_v22 = vshll.u32 %v20393_v40, 16 }
 0x4c9   : > { %16297 = vmatmul.mubr.bf16.gmra.mrb[40].mxu0 %v21954_v55  ;;  %v8964_v55 = vshll.u32 %v20364_v63, 16 }
 0x4ca   : > { %16313 = vmatpush3.bf16.msra.mxu0 %v17613_v58  ;;  %16300 = vmatprep.mubr.bf16.mxu0 %v21957_v56  ;;  %v20367_v58 = vrot.slane %v8978_v18, 5  ;;  %v20372_v56 = vld [vmem:[#allocation3 + $0x40] sm:$0xf]  ;;  %v20400_v18 = vld [vmem:[#allocation3 + $0x58] sm:$0xf] }
 0x4cb   : > { %16314 = vmatprep.subr.bf16.mxu0 %v17614_v4  ;;  %v9030_v49 = vshrl.u32 %v20372_v56, 16  ;;  %v8966_v10 = vrot.slane %v8964_v55, 5  ;;  %v9078_v20 = vshrl.u32 %v20400_v18, 16 }
 0x4cc   : > { %v8981_v55 = vsel %vm17978_vm11, %v8976_v0, %v20367_v58  ;;  %v9102_v0 = vshrl.u32 %v20423_v25, 16 }
 0x4cd   : > { %v9032_v44 = vrot.slane %v9030_v49, 4 }
 0x4ce   : > { %16315 = vmatpush3.bf16.msra.mxu0 %v17614_v4  ;;  %v8984_v4 = vrot.slane %v8982_v54, 4  ;;  %v17633_v54 = vld [vmem:[#allocation4 + $0x380] sm:$0xff]  }
 0x4cf   : > { %16316 = vmatprep.subr.bf16.mxu0 %v17615_v7 }
 0x4d0   : > { %v8985_v3 = vor.u32 %v8984_v4, %v20367_v58  ;;  %v9074_v4 = vshll.u32 %v20400_v18, 16  ;;  %v20419_v58 = vld [vmem:[#allocation3 + $0x50] sm:$0x1] }
 0x4d1   : > { %16301 = vmatmul.mubr.bf16.gmra.mrb[44].mxu0 %v21960_v2  ;;  %v8996_v2 = vshll.u32 %v8905_v13, 16  ;;  %v8914_v13 = vld [vmem:[#allocation3 + $0x54] sm:$0xf] }
 0x4d2   : > { %16317 = vmatpush3.bf16.msra.mxu0 %v17615_v7  ;;  %16320 = vmatprep.mubr.bf16.mxu0 %v17616_v6  ;;  %v17630_v7 = vld [vmem:[#allocation4 + $0x370] sm:$0xff]   ;;  %v8986_v45 = vrot.slane %v8985_v3, 4  ;;  %v9056_v3 = vrot.slane %v9054_v48, 4  ;;  %v20421_v21 = vrot.slane %v9074_v4, 5  ;;  %v17636_v48 = vld [vmem:[#allocation4 + $0x398] sm:$0xff]  }
 0x4d3   : > { %16318 = vmatprep.subr.bf16.mxu0 %v17617_v14  ;;  %v20376_v6 = vld [vmem:[#allocation3 + $0x2c] sm:$0x1]  ;;  %v8998_v57 = vrot.slane %v8996_v2, 5  ;;  %v9065_v2 = vshrl.u32 %v8914_v13, 16 }
 0x4d6   : > { %16319 = vmatpush3.bf16.msra.mxu0 %v17617_v14  ;;  %v8943_v14 = vsel %vm17978_vm11, %v8938_v17, %v8942_v61 }
 0x4d7   : > { %16336 = vmatprep.subr.bf16.mxu0 %v17618_v19 }
 0x4d9   : > { %16321 = vmatmul.mubr.bf16.vlgmr.msra.gmra.mrb[32].mxu0 %v17619_v39  ;;  %v9006_v39 = vshrl.u32 %v20369_v43, 16 }
 0x4da   : > { %16337 = vmatpush3.bf16.msra.mxu0 %v17618_v19  ;;  %16324 = vmatprep.mubr.bf16.mxu0 %v17620_v36  ;;  %v9002_v19 = vshll.u32 %v20369_v43, 16  ;;  %v8933_v36 = vsel %vm17978_vm11, %v8928_v47, %v20350_v41  ;;  %v8967_v41 = vsel %vm17978_vm11, %v8962_v46, %v8966_v10  ;;  %v9080_v10 = vrot.slane %v9078_v20, 4 }
 0x4db   : > { %16338 = vmatprep.subr.bf16.mxu0 %v17621_v34  ;;  %v14548_v32 = vcombine.low %v8933_v36, %v8943_v14  ;;  %v9008_v59 = vrot.slane %v9006_v39, 4  ;;  %v14549_v62 = vcombine.low %v8957_v37, %v8967_v41  ;;  %v17634_v14 = vld [vmem:[#allocation4 + $0x388] sm:$0xff]   ;;  %v20417_v36 = vrot.slane %v9050_v22, 5 }
 0x4dc   : > { %v20389_v35 = vrot.slane %v9002_v19, 5  ;;  %v9068_v19 = vshll.u32 %v8914_v13, 16  ;;  %v9067_v41 = vrot.slane %v9065_v2, 4  ;;  %v9098_v37 = vshll.u32 %v20423_v25, 16  ;;  %v20443_v2 = vld [vmem:[#allocation3 + $0x68] sm:$0x1] }
 0x4dd   : > { %v9104_v20 = vrot.slane %v9102_v0, 4  ;;  %v9370_v0 = vrot.slane %v20356_v53, 5  ;;  %v9377_v53 = vrot.slane %v20369_v43, 5  ;;  %v9373_v43 = vrot.slane %v20376_v6, 5 }
 0x4de   : > { %16339 = vmatpush3.bf16.msra.mxu0 %v17621_v34  ;;  %v8908_v34 = vld [vmem:[#allocation3 + $0x3c] sm:$0xf]  ;;  %v9009_v17 = vor.u32 %v9008_v59, %v20389_v35  ;;  %v9100_v4 = vrot.slane %v9098_v37, 5 }
 0x4df   : > { %16340 = vmatprep.subr.bf16.mxu0 %v17622_v26  ;;  %v9017_v8 = vshrl.u32 %v8908_v34, 16  ;;  %v9020_v28 = vshll.u32 %v8908_v34, 16 }
 0x4e0   : > { %v9010_v34 = vrot.slane %v9009_v17, 4 }
 0x4e1   : > { %16325 = vmatmul.mubr.bf16.gmra.mrb[36].mxu0 %v17623_v23  ;;  %v8988_v23 = vshll.u32 %v20376_v6, 16  ;;  %v9019_v5 = vrot.slane %v9017_v8, 4  ;;  %v9022_v33 = vrot.slane %v9020_v28, 5  ;;  %v17675_v6 = vld [vmem:[%s21603_s2 + $0x50] sm:$0xff]  }
 0x4e2   : > { %16341 = vmatpush3.bf16.msra.mxu0 %v17622_v26  ;;  %16328 = vmatprep.mubr.bf16.mxu0 %v17624_v42  ;;  %v9026_v26 = vshll.u32 %v20372_v56, 16  ;;  %v8995_v42 = vrot.slane %v8993_v16, 4 }
 0x4e3   : > { %16342 = vmatprep.subr.bf16.mxu0 %v17625_v30  ;;  %v8990_v1 = vrot.slane %v8988_v23, 5  ;;  %v9023_v16 = vor.u32 %v9022_v33, %v9019_v5  ;;  %v9014_v23 = vrot.slane %v9012_v15, 5  ;;  %v9060_v33 = vshll.u32 %v20419_v58, 16 }
 0x4e5   : > { %v8991_v47 = vsel %vm17978_vm11, %v8986_v45, %v8990_v1  ;;  %v9024_v8 = vrot.slane %v9023_v16, 4  ;;  %v9015_v59 = vsel %vm17978_vm11, %v9010_v34, %v9014_v23  ;;  %v9057_v45 = vor.u32 %v9056_v3, %v20417_v36  ;;  %v17637_v16 = vld [vmem:[#allocation4 + $0x3a0] sm:$0xff]  }
 0x4e6   : > { %16343 = vmatpush3.bf16.msra.mxu0 %v17625_v30  ;;  %v17631_v30 = vld [vmem:[#allocation3 + $0x60] sm:$0xff]   ;;  %v14550_v39 = vcombine.low %v8981_v55, %v8991_v47  ;;  %v9081_v1 = vor.u32 %v9080_v10, %v20421_v21  ;;  %v9356_v3 = vrot.slane %v20344_v29, 5  ;;  %v9108_v10 = vshll.u32 %v20443_v2, 16 }
 0x4e7   : > { %16344 = vmatprep.subr.bf16.mxu0 %v17626_v27 }
 0x4e8   : > { %v9082_v55 = vrot.slane %v9081_v1, 4  ;;  %v17640_v1 = vld [vmem:[#allocation4 + $0x3b8] sm:$0xff]  }
 0x4e9   : > { %16329 = vmatmul.mubr.bf16.gmra.mrb[40].mxu0 %v17627_v11  ;;  %v8911_v11 = vld [vmem:[#allocation3 + $0x48] sm:$0xf] }
 0x4ea   : > { %16345 = vmatpush3.bf16.msra.mxu0 %v17626_v27  ;;  %16332 = vmatprep.mubr.bf16.mxu0 %v17628_v50  ;;  %v20391_v27 = vrot.slane %v9026_v26, 5  ;;  %v20403_v50 = vld [vmem:[#allocation3 + $0x44] sm:$0x1]  ;;  %v9041_v38 = vshrl.u32 %v8911_v11, 16 }
 0x4eb   : > { %16346 = vmatprep.subr.bf16.mxu0 %v17629_v31  ;;  %v9036_v46 = vshll.u32 %v20403_v50, 16 }
 0x4ec   : > { %v9033_v61 = vor.u32 %v9032_v44, %v20391_v27  ;;  %v20428_v44 = vld [vmem:[#allocation3 + $0x5c] sm:$0x1]  ;;  %v9029_v22 = vsel %vm17978_vm11, %v9024_v8, %v20391_v27  ;;  %v9358_v8 = vrot.slane %v9356_v3, 4 }
 0x4ed   : > { %v9038_v28 = vrot.slane %v9036_v46, 5 }
 0x4ee   : > { %16347 = vmatpush3.bf16.msra.mxu0 %v17629_v31  ;;  %v8999_v31 = vor.u32 %v8998_v57, %v8995_v42  ;;  %v9034_v49 = vrot.slane %v9033_v61, 4  ;;  %v17635_v42 = vld [vmem:[#allocation4 + $0x390] sm:$0xff]   ;;  %v9070_v57 = vrot.slane %v9068_v19, 5  ;;  %v9058_v61 = vrot.slane %v9057_v45, 4 }
 0x4ef   : > { %16348 = vmatprep.subr.bf16.mxu0 %v17630_v7 }
 0x4f0   : > { %v9000_v26 = vrot.slane %v8999_v31, 4  ;;  %v9071_v13 = vor.u32 %v9070_v57, %v9067_v41  ;;  %v9322_v41 = vld [vmem:[#allocation3 + $0xc] sm:$0xe]  ;;  %v9359_v57 = vrot.slane %v20354_v24, 5 }
 0x4f1   : > { %16333 = vmatmul.mubr.bf16.gmra.mrb[44].mxu0 %v17631_v30  ;;  %v9043_v30 = vrot.slane %v9041_v38, 4  ;;  %v9062_v38 = vrot.slane %v9060_v33, 5 }
 0x4f2   : > { %16349 = vmatpush3.bf16.msra.mxu0 %v17630_v7  ;;  %16352 = vmatprep.mubr.bf16.mxu0 %v14548_v32  ;;  %v9044_v7 = vshll.u32 %v8911_v11, 16  ;;  %v9072_v46 = vrot.slane %v9071_v13, 4  ;;  %v9360_v37 = vsel %vm17970_vm10, %v9358_v8, %v9359_v57  ;;  %v9865_v8 = vld [vmem:[#allocation3 + $0x24] sm:$0xf] }
 0x4f3   : > { %16350 = vmatprep.subr.bf16.mxu0 %v17632_v60  ;;  %v9063_v19 = vsel %vm17978_vm11, %v9058_v61, %v9062_v38  ;;  %v17641_v61 = vld [vmem:[#allocation4 + $0x3c0] sm:$0xff]  }
 0x4f4   : > { %v9046_v32 = vrot.slane %v9044_v7, 5 }
 0x4f6   : > { %16351 = vmatpush3.bf16.msra.mxu0 %v17632_v60  ;;  %v8917_v60 = vld [vmem:[#allocation3 + $0x60] sm:$0xf]  ;;  %v9047_v5 = vor.u32 %v9046_v32, %v9043_v30  ;;  %v9077_v30 = vsel %vm17978_vm11, %v9072_v46, %v20421_v21  ;;  %v14564_v21 = vrot.slane %v9322_v41, 9  ;;  %v9866_v41 = vld [vmem:[#allocation3 + $0x28] sm:$0xf] }
 0x4f7   : > { %16368 = vmatprep.subr.bf16.mxu0 %v17633_v54  ;;  %v9089_v11 = vshrl.u32 %v8917_v60, 16  ;;  %v9092_v31 = vshll.u32 %v8917_v60, 16  ;;  %v17638_v32 = vld [vmem:[#allocation4 + $0x3a8] sm:$0xff]  }
 0x4f8   : > { %v9048_v15 = vrot.slane %v9047_v5, 4  ;;  %v9357_v24 = vsel %vm17970_vm10, %v14564_v21, %v9356_v3  ;;  %v9862_v3 = vld [vmem:[#allocation3 + $0x18] sm:$0xf] }
 0x4f9   : > { %16353 = vmatmul.mubr.bf16.vlgmr.msra.gmra.mrb[32].mxu0 %v14549_v62  ;;  %v9039_v62 = vsel %vm17978_vm11, %v9034_v49, %v9038_v28  ;;  %v9091_v7 = vrot.slane %v9089_v11, 4  ;;  %v9110_v28 = vrot.slane %v9108_v10, 5  ;;  %v14572_v33 = vcombine.low %v9357_v24, %v9360_v37  ;;  %v9324_v11 = vld [vmem:[#allocation3 + $0x24] sm:$0xe]  ;;  %v9868_v37 = vld [vmem:[#allocation3 + $0x30] sm:$0xf] }
 0x4fa   : > { %16369 = vmatpush3.bf16.msra.mxu0 %v17633_v54  ;;  %16356 = vmatprep.mubr.bf16.mxu0 %v14550_v39  ;;  %v9005_v54 = vsel %vm17978_vm11, %v9000_v26, %v20389_v35  ;;  %v9084_v35 = vshll.u32 %v20428_v44, 16  ;;  %v14552_v47 = vcombine.low %v9029_v22, %v9039_v62  ;;  %v9105_v39 = vor.u32 %v9104_v20, %v9100_v4  ;;  %v17673_v22 = vld [vmem:[%s21603_s2 + $0x40] sm:$0xff]  }
 0x4fb   : > { %16370 = vmatprep.subr.bf16.mxu0 %v17634_v14  ;;  %v14551_v17 = vcombine.low %v9005_v54, %v9015_v59  ;;  %v9053_v26 = vsel %vm17978_vm11, %v9048_v15, %v20417_v36  ;;  %v17639_v36 = vld [vmem:[#allocation4 + $0x3b0] sm:$0xff]   ;;  %v9363_v59 = vrot.slane %v20348_v12, 5  ;;  %v9323_v12 = vld [vmem:[#allocation3 + $0x18] sm:$0xe]  ;;  %16496 = vmatprep.subr.bf16.mxu1 %v17673_v22  ;;  %v9863_v15 = vld [vmem:[#allocation3 + $0x1c] sm:$0xf] }
 0x4fc   : > { %v9086_v27 = vrot.slane %v9084_v35, 5  ;;  %v14553_v23 = vcombine.low %v9053_v26, %v9063_v19  ;;  %v14565_v13 = vrot.slane %v9323_v12, 9  ;;  %v9325_v35 = vld [vmem:[#allocation3 + $0x30] sm:$0xe]  ;;  %16497 = vmatpush3.bf16.msra.mxu1 %v17673_v22  ;;  %v17642_v26 = vld [vmem:[#allocation4 + $0x3c8] sm:$0xff]   ;;  %v9896_v10 = vshll.u32 %v9863_v15, 16 }
 0x4fd   : > { %v9365_v5 = vrot.slane %v9363_v59, 4  ;;  %v9890_v21 = vshll.u32 %v9862_v3, 16  ;;  %v9914_v24 = vshll.u32 %v9865_v8, 16  ;;  %v17677_v22 = vld [vmem:[%s21603_s2 + $0x60] sm:$0xff]  }
 0x4fe   : > { %16371 = vmatpush3.bf16.msra.mxu0 %v17634_v14  ;;  %v9094_v14 = vrot.slane %v9092_v31, 5  ;;  %v9087_v34 = vsel %vm17978_vm11, %v9082_v55, %v9086_v27  ;;  %v9366_v31 = vrot.slane %v20364_v63, 5  ;;  %v9364_v20 = vsel %vm17970_vm10, %v14565_v13, %v9363_v59 }
 0x4ff   : > { %16372 = vmatprep.subr.bf16.mxu0 %v17635_v42  ;;  %v14554_v60 = vcombine.low %v9077_v30, %v9087_v34  ;;  %v14566_v55 = vrot.slane %v9324_v11, 9  ;;  %v20490_v34 = vld [vmem:[#allocation3 + $0x54] sm:$0xe]  ;;  %v9398_v59 = vrot.slane %v20400_v18, 5  ;;  %v9401_v11 = vrot.slane %v20428_v44, 5 }
 0x500   : > { %v9095_v49 = vor.u32 %v9094_v14, %v9091_v7  ;;  %v9367_v63 = vsel %vm17970_vm10, %v9365_v5, %v9366_v31  ;;  %v14567_v7 = vrot.slane %v9325_v35, 9  ;;  %v9327_v14 = vld [vmem:[#allocation3 + $0x48] sm:$0xe]  ;;  %v9920_v5 = vshll.u32 %v9866_v41, 16  ;;  %v9869_v31 = vld [vmem:[#allocation3 + $0x34] sm:$0xf] }
 0x501   : > { %16357 = vmatmul.mubr.bf16.gmra.mrb[36].mxu0 %v14551_v17  ;;  %v9372_v17 = vrot.slane %v9370_v0, 4  ;;  %v14573_v46 = vcombine.low %v9364_v20, %v9367_v63  ;;  %v9371_v27 = vsel %vm17970_vm10, %v14566_v55, %v9370_v0  ;;  %v20510_v0 = vrot.slane %v9896_v10, 5  ;;  %v20525_v35 = vld [vmem:[#allocation3 + $0x60] sm:$0xe]  ;;  %v17644_v44 = vld [vmem:[#allocation4 + $0x3d8] sm:$0xff]  }
 0x502   : > { %16373 = vmatpush3.bf16.msra.mxu0 %v17635_v42  ;;  %16360 = vmatprep.mubr.bf16.mxu0 %v14552_v47  ;;  %v9106_v42 = vrot.slane %v9105_v39, 4  ;;  %v9096_v29 = vrot.slane %v9095_v49, 4  ;;  %v9384_v47 = vrot.slane %v20372_v56, 5  ;;  %v9379_v56 = vrot.slane %v9377_v53, 4 }
 0x503   : > { %16374 = vmatprep.subr.bf16.mxu0 %v17636_v48  ;;  %v9374_v38 = vsel %vm17970_vm10, %v9372_v17, %v9373_v43  ;;  %v9380_v49 = vrot.slane %v20398_v9, 5  ;;  %v9935_v17 = vshrl.u32 %v9868_v37, 16  ;;  %v9400_v13 = vrot.slane %v9398_v59, 4  ;;  %v20528_v43 = vld [vmem:[#allocation3 + $0x20] sm:$0x1] }
 0x504   : > { %v9111_v45 = vsel %vm17978_vm11, %v9106_v42, %v9110_v28  ;;  %v9101_v54 = vsel %vm17978_vm11, %v9096_v29, %v9100_v4  ;;  %v9326_v4 = vld [vmem:[#allocation3 + $0x3c] sm:$0xe]  ;;  %v9386_v39 = vrot.slane %v9384_v47, 4  ;;  %v14574_v30 = vcombine.low %v9371_v27, %v9374_v38 }
 0x505   : > { %v14555_v62 = vcombine.low %v9101_v54, %v9111_v45  ;;  %v14568_v19 = vrot.slane %v9326_v4, 9  ;;  %v14569_v42 = vrot.slane %v9327_v14, 9  ;;  %v9381_v29 = vsel %vm17970_vm10, %v9379_v56, %v9380_v49  ;;  %v9871_v14 = vld [vmem:[#allocation3 + $0x3c] sm:$0xf]  ;;  %v20544_v49 = vld [vmem:[#allocation3 + $0x40] sm:$0xf] }
 0x506   : > { %16375 = vmatpush3.bf16.msra.mxu0 %v17636_v48  ;;  %v17674_v48 = vld [vmem:[%s21603_s2 + $0x48] sm:$0xff]   ;;  %v14570_v28 = vrot.slane %v20490_v34, 9  ;;  %v9887_v45 = vshrl.u32 %v9862_v3, 16  ;;  %v9405_v63 = vrot.slane %v20423_v25, 5  ;;  %v9916_v55 = vrot.slane %v9914_v24, 5 }
 0x507   : > { %16376 = vmatprep.subr.bf16.mxu0 %v17637_v16  ;;  %16498 = vmatprep.subr.bf16.mxu1 %v17674_v48  ;;  %v9948_v56 = vshrl.u32 %v9869_v31, 16  ;;  %v9402_v34 = vsel %vm17970_vm10, %v9400_v13, %v9401_v11  ;;  %v9874_v11 = vld [vmem:[#allocation3 + $0x48] sm:$0xf] }
 0x508   : > { %16499 = vmatpush3.bf16.msra.mxu1 %v17674_v48  ;;  %v9407_v10 = vrot.slane %v9405_v63, 4 }
 0x509   : > { %16361 = vmatmul.mubr.bf16.gmra.mrb[40].mxu0 %v14553_v23  ;;  %v9900_v23 = vshrl.u32 %v9863_v15, 16  ;;  %16500 = vmatprep.subr.bf16.mxu1 %v17675_v6  ;;  %v20531_v15 = vrot.slane %v9920_v5, 5 }
 0x50a   : > { %16377 = vmatpush3.bf16.msra.mxu0 %v17637_v16  ;;  %16364 = vmatprep.mubr.bf16.mxu0 %v14554_v60  ;;  %v9391_v16 = vrot.slane %v20393_v40, 5  ;;  %v9387_v40 = vrot.slane %v20403_v50, 5  ;;  %v20498_v60 = vsel %vm17970_vm10, %v14568_v19, %v9384_v47  ;;  %v9394_v50 = vrot.slane %v20419_v58, 5  ;;  %v17643_v58 = vld [vmem:[#allocation4 + $0x3d0] sm:$0xff]  }
 0x50b   : > { %16378 = vmatprep.subr.bf16.mxu0 %v17638_v32  ;;  %v9902_v54 = vrot.slane %v9900_v23, 4  ;;  %v9889_v47 = vrot.slane %v9887_v45, 4  ;;  %v17678_v19 = vld [vmem:[%s21603_s2 + $0x68] sm:$0xff]  }
 0x50c   : > { %v9393_v9 = vrot.slane %v9391_v16, 4  ;;  %v9388_v57 = vsel %vm17970_vm10, %v9386_v39, %v9387_v40  ;;  %v20514_v12 = vsel %vm17970_vm10, %v14569_v42, %v9391_v16  ;;  %16501 = vmatpush3.bf16.msra.mxu1 %v17675_v6  ;;  %v9399_v16 = vsel %vm17970_vm10, %v14570_v28, %v9398_v59  ;;  %v17645_v40 = vld [vmem:[#allocation4 + $0x3e0] sm:$0xff]   ;;  %v20548_v23 = vld [vmem:[#allocation3 + $0x2c] sm:$0x1] }
 0x50d   : > { %v14576_v18 = vcombine.low %v20498_v60, %v9388_v57  ;;  %v9903_v4 = vor.u32 %v9902_v54, %v20510_v0  ;;  %v14571_v6 = vrot.slane %v20525_v35, 9  ;;  %21961 = vst [vmem:[#allocation46_spill] sm:$0xff] %v20548_v23  ;;  %v9962_v60 = vshll.u32 %v9871_v14, 16  ;;  %v20554_v28 = vld [vmem:[#allocation3 + $0x38] sm:$0x1] }
 0x50e   : > { %16379 = vmatpush3.bf16.msra.mxu0 %v17638_v32  ;;  %v9378_v32 = vsel %vm17970_vm10, %v14567_v7, %v9377_v53  ;;  %v9938_v53 = vshll.u32 %v9868_v37, 16  ;;  %v20523_v48 = vsel %vm17970_vm10, %v9393_v9, %v9394_v50  ;;  %v9944_v7 = vshll.u32 %v9869_v31, 16  ;;  %21962 = vst [vmem:[#allocation22_spill] sm:$0xff] %v20554_v28 }
 0x50f   : > { %16380 = vmatprep.subr.bf16.mxu0 %v17639_v36  ;;  %v14577_v39 = vcombine.low %v20514_v12, %v20523_v48  ;;  %v9904_v42 = vrot.slane %v9903_v4, 4  ;;  %v9950_v9 = vrot.slane %v9948_v56, 4  ;;  %v9408_v50 = vrot.slane %v20443_v2, 5  ;;  %v7106_v48 = vld [vmem:[#allocation2 + $0x90] sm:$0xff]  ;;  %v7107_v56 = vld [vmem:[#allocation2 + $0x98] sm:$0xff] }
 0x510   : > { %v9940_v27 = vrot.slane %v9938_v53, 5  ;;  %v9972_v57 = vshrl.u32 %v20544_v49, 16  ;;  %v14578_v59 = vcombine.low %v9399_v16, %v9402_v34  ;;  %v9930_v37 = vshll.u32 %v20548_v23, 16  ;;  %v17661_v23 = vld [vmem:[#allocation4 + $0x428] sm:$0xff]  }
 0x511   : > { %16365 = vmatmul.mubr.bf16.gmra.mrb[44].mxu0 %v14555_v62  ;;  %v9911_v62 = vshrl.u32 %v9865_v8, 16  ;;  %v20561_v54 = vsel %vm17970_vm10, %v9407_v10, %v9408_v50  ;;  %v9406_v31 = vsel %vm17970_vm10, %v14571_v6, %v9405_v63  ;;  %v17647_v63 = vld [vmem:[#allocation4 + $0x3f0] sm:$0xff]   ;;  %v17649_v50 = vld [vmem:[#allocation4 + $0x3f8] sm:$0xff]  }
 0x512   : > { %16381 = vmatpush3.bf16.msra.mxu0 %v17639_v36  ;;  %16384 = vmatprep.mubr.bf16.mxu0 %v14572_v33  ;;  %v17676_v36 = vld [vmem:[%s21603_s2 + $0x58] sm:$0xff]   ;;  %v9924_v33 = vshrl.u32 %v9866_v41, 16  ;;  %v14579_v13 = vcombine.low %v9406_v31, %v20561_v54 }
 0x513   : > { %16382 = vmatprep.subr.bf16.mxu0 %v17640_v1  ;;  %16502 = vmatprep.subr.bf16.mxu1 %v17676_v36  ;;  %v9913_v20 = vrot.slane %v9911_v62, 4  ;;  %v20565_v62 = vld [vmem:[#allocation3 + $0x44] sm:$0x1] }
 0x514   : > { %v9926_v38 = vrot.slane %v9924_v33, 4  ;;  %16503 = vmatpush3.bf16.msra.mxu1 %v17676_v36  ;;  %v9968_v36 = vshll.u32 %v20544_v49, 16  ;;  %21963 = vst [vmem:[#allocation40_spill] sm:$0xff] %v20565_v62  ;;  %v9978_v25 = vshll.u32 %v20565_v62, 16 }
 0x515   : > { %16504 = vmatprep.subr.bf16.mxu1 %v17677_v22 }
 0x516   : > { %16383 = vmatpush3.bf16.msra.mxu0 %v17640_v1  ;;  %v14575_v1 = vcombine.low %v9378_v32, %v9381_v29  ;;  %v9959_v32 = vshrl.u32 %v9871_v14, 16  ;;  %v9927_v8 = vor.u32 %v9926_v38, %v20531_v15  ;;  %v20551_v29 = vrot.slane %v9944_v7, 5  ;;  %v20596_v38 = vld [vmem:[#allocation3 + $0x50] sm:$0x1] }
 0x517   : > { %16400 = vmatprep.subr.bf16.mxu0 %v17641_v61  ;;  %v20579_v53 = vrot.slane %v9968_v36, 5  ;;  %21964 = vst [vmem:[#allocation27_spill] sm:$0xff] %v20596_v38 }
 0x518   : > { %16505 = vmatpush3.bf16.msra.mxu1 %v17677_v22  ;;  %v9961_v24 = vrot.slane %v9959_v32, 4  ;;  %v20569_v5 = vrot.slane %v9927_v8, 4  ;;  %v9951_v33 = vor.u32 %v9950_v9, %v20551_v29  ;;  %v9974_v22 = vrot.slane %v9972_v57, 4 }
 0x519   : > { %16385 = vmatmul.mubr.bf16.vlgmr.msra.gmra.mrb[32].mxu0 %v14573_v46  ;;  %v9937_v46 = vrot.slane %v9935_v17, 4  ;;  %16506 = vmatprep.subr.bf16.mxu1 %v17678_v19 }
 0x51a   : > { %16401 = vmatpush3.bf16.msra.mxu0 %v17641_v61  ;;  %16388 = vmatprep.mubr.bf16.mxu0 %v14574_v30  ;;  %v9892_v61 = vrot.slane %v9890_v21, 5  ;;  %v9917_v30 = vor.u32 %v9916_v55, %v9913_v20  ;;  %v20602_v16 = vrot.slane %v9951_v33, 4 }
 0x51b   : > { %16402 = vmatprep.subr.bf16.mxu0 %v17642_v26  ;;  %v9941_v41 = vor.u32 %v9940_v27, %v9937_v46  ;;  %v9986_v46 = vshll.u32 %v9874_v11, 16 }
 0x51c   : > { %v9893_v3 = vor.u32 %v9892_v61, %v9889_v47  ;;  %v20563_v2 = vrot.slane %v9917_v30, 4  ;;  %16507 = vmatpush3.bf16.msra.mxu1 %v17678_v19  ;;  %v20585_v47 = vrot.slane %v9930_v37, 5  ;;  %v20588_v61 = vld [vmem:[#allocation3 + $0x4c] sm:$0xf]  ;;  %v20612_v30 = vrot.slane %v9978_v25, 5  ;;  %v7108_v25 = vld [vmem:[#allocation2 + $0xa0] sm:$0xff] }
 0x51d   : > { %v20577_v17 = vrot.slane %v9941_v41, 4  ;;  %v9996_v32 = vshrl.u32 %v20588_v61, 16  ;;  %v20624_v37 = vrot.slane %v9986_v46, 5 }
 0x51e   : > { %16403 = vmatpush3.bf16.msra.mxu0 %v17642_v26  ;;  %v9906_v26 = vshll.u32 %v20528_v43, 16  ;;  %v9894_v45 = vrot.slane %v9893_v3, 4  ;;  %v9975_v3 = vor.u32 %v9974_v22, %v20579_v53 }
 0x51f   : > { %16404 = vmatprep.subr.bf16.mxu0 %v17643_v58  ;;  %v20632_v31 = vrot.slane %v9996_v32, 4  ;;  %v7688_v32 = vld [vmem:[#allocation3 + $0x6c] sm:$0xf] }
 0x520   : > { %v9908_v21 = vrot.slane %v9906_v26, 5  ;;  %v9899_v35 = vsel %vm17978_vm11, %v9894_v45, %v20510_v0  ;;  %v9983_v0 = vshrl.u32 %v9874_v11, 16  ;;  %v9992_v26 = vshll.u32 %v20588_v61, 16  ;;  %v17648_v45 = vld [vmem:[#allocation3 + $0x18] sm:$0xff]   ;;  %v7110_v11 = vld [vmem:[#allocation2 + $0xb0] sm:$0xff] }
 0x521   : > { %16389 = vmatmul.mubr.bf16.gmra.mrb[36].mxu0 %v14575_v1  ;;  %v9964_v1 = vrot.slane %v9962_v60, 5  ;;  %v10002_v60 = vshll.u32 %v20596_v38, 16 }
 0x522   : > { %16405 = vmatpush3.bf16.msra.mxu0 %v17643_v58  ;;  %16392 = vmatprep.mubr.bf16.mxu0 %v14576_v18  ;;  %v17646_v58 = vld [vmem:[#allocation4 + $0x3e8] sm:$0xff]   ;;  %v9909_v12 = vsel %vm17978_vm11, %v9904_v42, %v9908_v21  ;;  %v9954_v18 = vshll.u32 %v20554_v28, 16  ;;  %v20618_v36 = vrot.slane %v9983_v0, 4  ;;  %v7111_v21 = vld [vmem:[#allocation2 + $0xb8] sm:$0xff] }
 0x523   : > { %16406 = vmatprep.subr.bf16.mxu0 %v17644_v44  ;;  %v20590_v4 = vcombine.low %v9899_v35, %v9909_v12  ;;  %v9965_v55 = vor.u32 %v9964_v1, %v9961_v24  ;;  %v20628_v1 = vrot.slane %v9975_v3, 4  ;;  %v20630_v12 = vrot.slane %v9992_v26, 5 }
 0x524   : > { %v20604_v6 = vrot.slane %v9954_v18, 5  ;;  %v20634_v22 = vrot.slane %v10002_v60, 5 }
 0x525   : > { %v20616_v41 = vrot.slane %v9965_v55, 4 }
 0x526   : > { %16407 = vmatpush3.bf16.msra.mxu0 %v17644_v44  ;;  %v7104_v44 = vld [vmem:[#allocation2 + $0x80] sm:$0xff] }
 0x527   : > { %16408 = vmatprep.subr.bf16.mxu0 %v17645_v40 }
 0x529   : > { %16393 = vmatmul.mubr.bf16.gmra.mrb[40].mxu0 %v14577_v39  ;;  %v7105_v39 = vld [vmem:[#allocation2 + $0x88] sm:$0xff] }
 0x52a   : > { %16409 = vmatpush3.bf16.msra.mxu0 %v17645_v40  ;;  %16396 = vmatprep.mubr.bf16.mxu0 %v14578_v59 }
 0x52b   : > { %16410 = vmatprep.subr.bf16.mxu0 %v17646_v58 }
 0x52c   : > { %v16194_v7 = vpop.f32.mrb[16].mxu0 }
 0x52d   : > { %v7122_v27 = vadd.f32 %v16194_v7, %v7106_v48  ;;  %v7040_v19 = vpop.f32.mrb[17].mxu0 }
 0x52e   : > { %v7120_v40 = vadd.f32 %v7104_v44, %v7040_v19  ;;  %16411 = vmatpush3.bf16.msra.mxu0 %v17646_v58  ;;  %v16195_v10 = vpop.f32.mrb[18].mxu0  ;;  %v20626_v58 = vld [vmem:[#allocation3 + $0x54] sm:$0xf]  ;;  %v17650_v44 = vld [vmem:[#allocation4 + $0x400] sm:$0xff]  }
 0x52f   : > { %7138 = vst [vmem:[#allocation2 + $0x90] sm:$0xff] %v7122_v27  ;;  %v7202_v42 = vmax.f32 %v7122_v27, 0.0  ;;  %v7123_v8 = vadd.f32 %v16195_v10, %v7107_v56  ;;  %v7043_v9 = vpop.f32.mrb[19].mxu0  ;;  %16412 = vmatprep.subr.bf16.mxu0 %v17647_v63  ;;  %v7695_v19 = vld [vmem:[#allocation3 + $0x78] sm:$0xf] }
 0x530   : > { %7136 = vst [vmem:[#allocation2 + $0x80] sm:$0xff] %v7120_v40  ;;  %v7200_v57 = vmax.f32 %v7120_v40, 0.0  ;;  %v7121_v59 = vadd.f32 %v7105_v39, %v7043_v9 }
 0x531   : > { %v14914_v54 = vpack.c.bf16 %v7202_v42, %v7202_v42  ;;  %7139 = vst [vmem:[#allocation2 + $0x98] sm:$0xff] %v7123_v8  ;;  %v7203_v24 = vmax.f32 %v7123_v8, 0.0  ;;  %16397 = vmatmul.mubr.bf16.gmra.mrb[44].mxu0 %v14579_v13 }
 0x532   : > { %v14912_v33 = vpack.c.bf16 %v7200_v57, %v7200_v57  ;;  %7137 = vst [vmem:[#allocation2 + $0x88] sm:$0xff] %v7121_v59  ;;  %v7201_v18 = vmax.f32 %v7121_v59, 0.0  ;;  %16413 = vmatpush3.bf16.msra.mxu0 %v17647_v63  ;;  %16416 = vmatprep.mubr.bf16.mxu0 %v17648_v45  ;;  %v20638_v57 = vld [vmem:[#allocation3 + $0x58] sm:$0xf] }
 0x533   : > { %v7466_v48 = vshrl.u32 %v14914_v54, 16  ;;  %v14915_v35 = vpack.c.bf16 %v7203_v24, %v7203_v24  ;;  %16414 = vmatprep.subr.bf16.mxu0 %v17649_v50  ;;  %v7469_v0 = vshll.u32 %v14914_v54, 16 }
 0x534   : > { %v7449_v7 = vshrl.u32 %v14912_v33, 16  ;;  %v7452_v56 = vshll.u32 %v14912_v33, 16  ;;  %v14913_v46 = vpack.c.bf16 %v7201_v18, %v7201_v18  ;;  %v16198_v63 = vpop.f32.mrb[20].mxu0  ;;  %v17651_v18 = vld [vmem:[#allocation3 + $0x24] sm:$0xff]  }
 0x535   : > { %v7468_v27 = vrot.slane %v7466_v48, 7  ;;  %v7474_v39 = vshrl.u32 %v14915_v35, 16  ;;  %v7477_v3 = vshll.u32 %v14915_v35, 16  ;;  %v7126_v26 = vadd.f32 %v16198_v63, %v7110_v11  ;;  %v7056_v40 = vpop.f32.mrb[21].mxu0  ;;  %v17653_v48 = vld [vmem:[#allocation4 + $0x408] sm:$0xff]  }
 0x536   : > { %v7451_v10 = vrot.slane %v7449_v7, 7  ;;  %v7457_v60 = vshrl.u32 %v14913_v46, 16  ;;  %v7460_v42 = vshll.u32 %v14913_v46, 16  ;;  %v7124_v8 = vadd.f32 %v7108_v25, %v7056_v40  ;;  %16415 = vmatpush3.bf16.msra.mxu0 %v17649_v50  ;;  %v16199_v9 = vpop.f32.mrb[22].mxu0  ;;  %v7699_v7 = vld [vmem:[#allocation3 + $0x80] sm:$0x1] }
 0x537   : > { %v7471_v59 = vor.u32 %v7469_v0, %v7468_v27  ;;  %v7472_v45 = vrot.slane %v7468_v27, 4  ;;  %v7476_v54 = vrot.slane %v7474_v39, 7  ;;  %7142 = vst [vmem:[#allocation2 + $0xb0] sm:$0xff] %v7126_v26  ;;  %v7206_v24 = vmax.f32 %v7126_v26, 0.0  ;;  %v7059_v33 = vpop.f32.mrb[23].mxu0  ;;  %16432 = vmatprep.subr.bf16.mxu0 %v17650_v44  ;;  %v17652_v25 = vld [vmem:[#allocation3 + $0x30] sm:$0xff]  }
 0x538   : > { %v7454_v11 = vor.u32 %v7452_v56, %v7451_v10  ;;  %v7455_v35 = vrot.slane %v7451_v10, 4  ;;  %v7459_v63 = vrot.slane %v7457_v60, 7  ;;  %7140 = vst [vmem:[#allocation2 + $0xa0] sm:$0xff] %v7124_v8  ;;  %v7204_v46 = vmax.f32 %v7124_v8, 0.0  ;;  %v7692_v27 = vld [vmem:[#allocation3 + $0x74] sm:$0x1] }
 0x539   : > { %v7696_v40 = vsel %vm18003_vm14, %v7471_v59, %v7695_v19  ;;  %v7479_v55 = vor.u32 %v7477_v3, %v7476_v54  ;;  %v7481_v0 = vrot.slane %v7476_v54, 4  ;;  %v14918_v39 = vpack.c.bf16 %v7206_v24, %v7206_v24  ;;  %16417 = vmatmul.mubr.bf16.vlgmr.msra.gmra.mrb[32].mxu0 %v17651_v18  ;;  %v7109_v60 = vld [vmem:[#allocation2 + $0xa8] sm:$0xff]  ;;  %v7114_v8 = vld [vmem:[#allocation2 + $0xd0] sm:$0xff]  ;;  %v7112_v24 = vld [vmem:[#allocation2 + $0xc0] sm:$0xff] }
 0x53a   : > { %7697 = vst [vmem:[#allocation3 + $0x78] sm:$0xf] %v7696_v40  ;;  %v7689_v26 = vsel %vm18003_vm14, %v7454_v11, %v7688_v32  ;;  %v7462_v34 = vor.u32 %v7460_v42, %v7459_v63  ;;  %v7464_v56 = vrot.slane %v7459_v63, 4  ;;  %v14916_v10 = vpack.c.bf16 %v7204_v46, %v7204_v46  ;;  %16433 = vmatpush3.bf16.msra.mxu0 %v17650_v44  ;;  %v17654_v18 = vld [vmem:[#allocation4 + $0x410] sm:$0xff]  }
 0x53b   : > { %16420 = vmatprep.mubr.bf16.mxu0 %v17652_v25  ;;  %7690 = vst [vmem:[#allocation3 + $0x6c] sm:$0xf] %v7689_v26  ;;  %v7480_v19 = vsel %vm18010_vm15, %v7472_v45, %v7479_v55  ;;  %v7700_v59 = vsel %vm17909_vm3, %v7481_v0, %v7699_v7  ;;  %v7500_v54 = vshrl.u32 %v14918_v39, 16  ;;  %16434 = vmatprep.subr.bf16.mxu0 %v17653_v48  ;;  %v7503_v11 = vshll.u32 %v14918_v39, 16  ;;  %v7709_v7 = vld [vmem:[#allocation3 + $0x90] sm:$0xf] }
 0x53c   : > { %7698 = vst [vmem:[#allocation3 + $0x7c] sm:$0xf] %v7480_v19  ;;  %7701 = vst [vmem:[#allocation3 + $0x80] sm:$0x1] %v7700_v59  ;;  %v7463_v44 = vsel %vm18010_vm15, %v7455_v35, %v7462_v34  ;;  %v7693_v42 = vsel %vm17909_vm3, %v7464_v56, %v7692_v27  ;;  %v7483_v63 = vshrl.u32 %v14916_v10, 16  ;;  %v16202_v55 = vpop.f32.mrb[24].mxu0  ;;  %v7127_v46 = vadd.f32 %v16199_v9, %v7111_v21 }
 0x53d   : > { %7691 = vst [vmem:[#allocation3 + $0x70] sm:$0xf] %v7463_v44  ;;  %7694 = vst [vmem:[#allocation3 + $0x74] sm:$0x1] %v7693_v42  ;;  %v20653_v45 = vrot.slane %v7500_v54, 7  ;;  %v7125_v25 = vadd.f32 %v7109_v60, %v7059_v33  ;;  %v7130_v40 = vadd.f32 %v16202_v55, %v7114_v8  ;;  %v7072_v0 = vpop.f32.mrb[25].mxu0  ;;  %v21973_v50 = vsel %vm17978_vm11, %v20569_v5, %v20585_v47 }
 0x53e   : > { %v17655_v26 = vld [vmem:[#allocation3 + $0x3c] sm:$0xff]   ;;  %v20655_v19 = vrot.slane %v7483_v63, 7  ;;  %v7486_v59 = vshll.u32 %v14916_v10, 16  ;;  %v7702_v34 = vld [vmem:[#allocation3 + $0x84] sm:$0xf]  ;;  %v7128_v35 = vadd.f32 %v7112_v24, %v7072_v0  ;;  %16435 = vmatpush3.bf16.msra.mxu0 %v17653_v48  ;;  %v16203_v27 = vpop.f32.mrb[26].mxu0 }
 0x53f   : > { %v7115_v39 = vld [vmem:[#allocation2 + $0xd8] sm:$0xff]  ;;  %v7505_v54 = vor.u32 %v7503_v11, %v20653_v45  ;;  %7143 = vst [vmem:[#allocation2 + $0xb8] sm:$0xff] %v7127_v46  ;;  %v7207_v21 = vmax.f32 %v7127_v46, 0.0  ;;  %7141 = vst [vmem:[#allocation2 + $0xa8] sm:$0xff] %v7125_v25  ;;  %v7205_v9 = vmax.f32 %v7125_v25, 0.0  ;;  %v7075_v33 = vpop.f32.mrb[27].mxu0  ;;  %16436 = vmatprep.subr.bf16.mxu0 %v17654_v18 }
 0x540   : > { %7146 = vst [vmem:[#allocation2 + $0xd0] sm:$0xff] %v7130_v40  ;;  %v7113_v60 = vld [vmem:[#allocation2 + $0xc8] sm:$0xff]  ;;  %v17657_v10 = vld [vmem:[#allocation4 + $0x418] sm:$0xff]   ;;  %v7488_v48 = vor.u32 %v7486_v59, %v20655_v19  ;;  %v7210_v24 = vmax.f32 %v7130_v40, 0.0  ;;  %7144 = vst [vmem:[#allocation2 + $0xc0] sm:$0xff] %v7128_v35  ;;  %v7208_v42 = vmax.f32 %v7128_v35, 0.0  ;;  %v20665_v0 = vadd.f32 %v16203_v27, %v7115_v39 }
 0x541   : > { %v17656_v63 = vld [vmem:[#allocation3 + $0x48] sm:$0xff]   ;;  %v7710_v11 = vsel %vm18003_vm14, %v7505_v54, %v7709_v7  ;;  %v14919_v55 = vpack.c.bf16 %v7207_v21, %v7207_v21  ;;  %v14917_v46 = vpack.c.bf16 %v7205_v9, %v7205_v9  ;;  %16421 = vmatmul.mubr.bf16.gmra.mrb[36].mxu0 %v17655_v26  ;;  %v7118_v25 = vld [vmem:[#allocation2 + $0xf0] sm:$0xff]  ;;  %v20669_v13 = vadd.f32 %v7113_v60, %v7075_v33  ;;  %v7116_v40 = vld [vmem:[#allocation2 + $0xe0] sm:$0xff] }
 0x542   : > { %7711 = vst [vmem:[#allocation3 + $0x90] sm:$0xf] %v7710_v11  ;;  %v7703_v14 = vsel %vm18003_vm14, %v7488_v48, %v7702_v34  ;;  %v14922_v59 = vpack.c.bf16 %v7210_v24, %v7210_v24  ;;  %v14920_v32 = vpack.c.bf16 %v7208_v42, %v7208_v42  ;;  %16437 = vmatpush3.bf16.msra.mxu0 %v17654_v18  ;;  %v17658_v35 = vld [vmem:[#allocation4 + $0x420] sm:$0xff]   ;;  %7147 = vst [vmem:[#allocation2 + $0xd8] sm:$0xff] %v20665_v0  ;;  %v7706_v27 = vld [vmem:[#allocation3 + $0x8c] sm:$0x1] }
 0x543   : > { %7704 = vst [vmem:[#allocation3 + $0x84] sm:$0xf] %v7703_v14  ;;  %v7508_v8 = vshrl.u32 %v14919_v55, 16  ;;  %v7511_v7 = vshll.u32 %v14919_v55, 16  ;;  %v7491_v54 = vshrl.u32 %v14917_v46, 16  ;;  %v7494_v21 = vshll.u32 %v14917_v46, 16  ;;  %16424 = vmatprep.mubr.bf16.mxu0 %v17656_v63  ;;  %16438 = vmatprep.subr.bf16.mxu0 %v17657_v10 }
 0x544   : > { %v7713_v26 = vld [vmem:[#allocation3 + $0x98] sm:$0x1]  ;;  %v7534_v39 = vshrl.u32 %v14922_v59, 16  ;;  %v7537_v34 = vshll.u32 %v14922_v59, 16  ;;  %v7517_v9 = vshrl.u32 %v14920_v32, 16  ;;  %v7520_v48 = vshll.u32 %v14920_v32, 16 }
 0x545   : > { %7145 = vst [vmem:[#allocation2 + $0xc8] sm:$0xff] %v20669_v13  ;;  %v16206_v18 = vpop.f32.mrb[28].mxu0  ;;  %v7510_v33 = vrot.slane %v7508_v8, 7  ;;  %v7493_v60 = vrot.slane %v7491_v54, 7  ;;  %v7723_v14 = vld [vmem:[#allocation3 + $0xa8] sm:$0xf] }
 0x546   : > { %v7211_v24 = vmax.f32 %v20665_v0, 0.0  ;;  %v7209_v42 = vmax.f32 %v20669_v13, 0.0  ;;  %v7088_v11 = vpop.f32.mrb[29].mxu0  ;;  %v20675_v55 = vrot.slane %v7534_v39, 7  ;;  %v20677_v63 = vrot.slane %v7517_v9, 7  ;;  %16439 = vmatpush3.bf16.msra.mxu0 %v17657_v10  ;;  %v17659_v32 = vld [vmem:[#allocation3 + $0x54] sm:$0xff]  }
 0x547   : > { %v7134_v46 = vadd.f32 %v16206_v18, %v7118_v25  ;;  %v7132_v44 = vadd.f32 %v7116_v40, %v7088_v11  ;;  %v16207_v59 = vpop.f32.mrb[30].mxu0  ;;  %v7513_v56 = vor.u32 %v7511_v7, %v7510_v33  ;;  %v7515_v38 = vrot.slane %v7510_v33, 4  ;;  %v7716_v54 = vld [vmem:[#allocation3 + $0x9c] sm:$0xf]  ;;  %16440 = vmatprep.subr.bf16.mxu0 %v17658_v35  ;;  %v17660_v0 = vld [vmem:[#allocation3 + $0x60] sm:$0xff]   ;;  %v7117_v40 = vld [vmem:[#allocation2 + $0xe8] sm:$0xff] }
 0x548   : > { %v7496_v62 = vor.u32 %v7494_v21, %v7493_v60  ;;  %v7498_v8 = vrot.slane %v7493_v60, 4  ;;  %v7091_v28 = vpop.f32.mrb[31].mxu0  ;;  %v7539_v13 = vor.u32 %v7537_v34, %v20675_v55  ;;  %v7522_v39 = vor.u32 %v7520_v48, %v20677_v63  ;;  %v7119_v25 = vld [vmem:[#allocation2 + $0xf8] sm:$0xff]  ;;  %v17662_v60 = vld [vmem:[#allocation4 + $0x430] sm:$0xff]  }
 0x549   : > { %7150 = vst [vmem:[#allocation2 + $0xf0] sm:$0xff] %v7134_v46  ;;  %7148 = vst [vmem:[#allocation2 + $0xe0] sm:$0xff] %v7132_v44  ;;  %v21968_v10 = vor.u32 %v20624_v37, %v20618_v36  ;;  %v10020_v21 = vshrl.u32 %v20638_v57, 16  ;;  %v21969_v9 = vrot.slane %v20653_v45, 4  ;;  %v7714_v34 = vsel %vm17909_vm3, %v7515_v38, %v7713_v26  ;;  %16425 = vmatmul.mubr.bf16.gmra.mrb[40].mxu0 %v17659_v32 }
 0x54a   : > { %v21970_v48 = vrot.slane %v20655_v19, 4  ;;  %v7707_v36 = vsel %vm17909_vm3, %v7498_v8, %v7706_v27  ;;  %7715 = vst [vmem:[#allocation3 + $0x98] sm:$0x1] %v7714_v34  ;;  %v7724_v37 = vsel %vm18003_vm14, %v7539_v13, %v7723_v14  ;;  %v7717_v45 = vsel %vm18003_vm14, %v7522_v39, %v7716_v54  ;;  %16441 = vmatpush3.bf16.msra.mxu0 %v17658_v35  ;;  %v7727_v13 = vld [vmem:[#allocation3 + $0xb0] sm:$0x1] }
 0x54b   : > { %v20684_v7 = vrot.slane %v21968_v10, 4  ;;  %v7514_v18 = vsel %vm18010_vm15, %v21969_v9, %v7513_v56  ;;  %7708 = vst [vmem:[#allocation3 + $0x8c] sm:$0x1] %v7707_v36  ;;  %v14923_v38 = vpack.c.bf16 %v7211_v24, %v7211_v24  ;;  %v14921_v56 = vpack.c.bf16 %v7209_v42, %v7209_v42  ;;  %7725 = vst [vmem:[#allocation3 + $0xa8] sm:$0xf] %v7724_v37  ;;  %v17664_v10 = vld [vmem:[#allocation4 + $0x438] sm:$0xff]  }
 0x54c   : > { %v7497_v33 = vsel %vm18010_vm15, %v21970_v48, %v7496_v62  ;;  %7712 = vst [vmem:[#allocation3 + $0x94] sm:$0xf] %v7514_v18  ;;  %7718 = vst [vmem:[#allocation3 + $0x9c] sm:$0xf] %v7717_v45  ;;  %v7214_v62 = vmax.f32 %v7134_v46, 0.0  ;;  %v7212_v19 = vmax.f32 %v7132_v44, 0.0  ;;  %v7135_v26 = vadd.f32 %v16207_v59, %v7119_v25  ;;  %16428 = vmatprep.mubr.bf16.mxu0 %v17660_v0 }
 0x54d   : > { %7705 = vst [vmem:[#allocation3 + $0x88] sm:$0xf] %v7497_v33  ;;  %v7133_v27 = vadd.f32 %v7117_v40, %v7091_v28  ;;  %16442 = vmatprep.subr.bf16.mxu0 %v17661_v23  ;;  %v7540_v11 = vrot.slane %v20675_v55, 4  ;;  %v7523_v32 = vrot.slane %v20677_v63, 4  ;;  %v7542_v14 = vshrl.u32 %v14923_v38, 16  ;;  %v17663_v63 = vld [vmem:[#allocation3 + $0x6c] sm:$0xff]  }
 0x54e   : > { %v7525_v8 = vshrl.u32 %v14921_v56, 16  ;;  %v14926_v54 = vpack.c.bf16 %v7214_v62, %v7214_v62  ;;  %v14924_v24 = vpack.c.bf16 %v7212_v19, %v7212_v19  ;;  %7151 = vst [vmem:[#allocation2 + $0xf8] sm:$0xff] %v7135_v26  ;;  %v7215_v35 = vmax.f32 %v7135_v26, 0.0  ;;  %v7720_v0 = vld [vmem:[#allocation3 + $0xa4] sm:$0x1]  ;;  %16443 = vmatpush3.bf16.msra.mxu0 %v17661_v23 }
 0x54f   : > { %7149 = vst [vmem:[#allocation2 + $0xe8] sm:$0xff] %v7133_v27  ;;  %v7213_v42 = vmax.f32 %v7133_v27, 0.0  ;;  %v7544_v46 = vrot.slane %v7542_v14, 7  ;;  %v7545_v44 = vshll.u32 %v14923_v38, 16  ;;  %v7528_v28 = vshll.u32 %v14921_v56, 16  ;;  %16444 = vmatprep.subr.bf16.mxu0 %v17662_v60 }
 0x550   : > { %v7527_v59 = vrot.slane %v7525_v8, 7  ;;  %v7568_v39 = vshrl.u32 %v14926_v54, 16  ;;  %v7571_v25 = vshll.u32 %v14926_v54, 16  ;;  %v7551_v55 = vshrl.u32 %v14924_v24, 16  ;;  %v20709_v38 = vld [vmem:[#allocation3 + $0x60] sm:$0xf] }
 0x551   : > { %v7554_v40 = vshll.u32 %v14924_v24, 16  ;;  %v7547_v9 = vor.u32 %v7545_v44, %v7544_v46  ;;  %v7549_v18 = vrot.slane %v7544_v46, 4  ;;  %v20707_v37 = vpack.c.bf16 %v7215_v35, %v7215_v35  ;;  %16429 = vmatmul.mubr.bf16.gmra.mrb[44].mxu0 %v17663_v63  ;;  %v20711_v23 = vld [vmem:[#allocation3 + $0x64] sm:$0xf]  ;;  %v7737_v27 = vld [vmem:[#allocation3 + $0xc0] sm:$0xf] }
 0x552   : > { %v7530_v34 = vor.u32 %v7528_v28, %v7527_v59  ;;  %v7532_v48 = vrot.slane %v7527_v59, 4  ;;  %v20705_v33 = vrot.slane %v7568_v39, 7  ;;  %v7553_v36 = vrot.slane %v7551_v55, 7  ;;  %v7730_v14 = vld [vmem:[#allocation3 + $0xb4] sm:$0xf]  ;;  %16445 = vmatpush3.bf16.msra.mxu0 %v17662_v60  ;;  %16448 = vmatprep.mubr.bf16.mxu0 %v20590_v4 }
 0x553   : > { %v14925_v45 = vpack.c.bf16 %v7213_v42, %v7213_v42  ;;  %v7548_v56 = vsel %vm18010_vm15, %v7540_v11, %v7547_v9  ;;  %v7728_v62 = vsel %vm17909_vm3, %v7549_v18, %v7727_v13  ;;  %16446 = vmatprep.subr.bf16.mxu0 %v17664_v10  ;;  %v17665_v11 = vld [vmem:[#allocation4 + $0x440] sm:$0xff]   ;;  %v21971_v13 = vshrl.u32 %v20626_v58, 16  ;;  %v7741_v55 = vld [vmem:[#allocation3 + $0xc8] sm:$0x1] }
 0x554   : > { %v7531_v19 = vsel %vm18010_vm15, %v7523_v32, %v7530_v34  ;;  %v7721_v26 = vsel %vm17909_vm3, %v7532_v48, %v7720_v0  ;;  %7726 = vst [vmem:[#allocation3 + $0xac] sm:$0xf] %v7548_v56  ;;  %7729 = vst [vmem:[#allocation3 + $0xb0] sm:$0x1] %v7728_v62  ;;  %v7573_v8 = vor.u32 %v7571_v25, %v20705_v33  ;;  %v7576_v60 = vshrl.u32 %v20707_v37, 16  ;;  %v17666_v48 = vld [vmem:[#allocation4 + $0x448] sm:$0xff]  }
 0x555   : > { %7719 = vst [vmem:[#allocation3 + $0xa0] sm:$0xf] %v7531_v19  ;;  %7722 = vst [vmem:[#allocation3 + $0xa4] sm:$0x1] %v7721_v26  ;;  %v7556_v54 = vor.u32 %v7554_v40, %v7553_v36  ;;  %v9999_v32 = vor.u32 %v20632_v31, %v20630_v12  ;;  %v20727_v24 = vrot.slane %v21971_v13, 4  ;;  %v7559_v35 = vshrl.u32 %v14925_v45, 16 }
 0x556   : > { %v21972_v42 = vshll.u32 %v20638_v57, 16  ;;  %v20736_v44 = vrot.slane %v10020_v21, 4  ;;  %v7738_v4 = vsel %vm18003_vm14, %v7573_v8, %v7737_v27  ;;  %v10040_v59 = vshll.u32 %v20711_v23, 16  ;;  %16447 = vmatpush3.bf16.msra.mxu0 %v17664_v10  ;;  %v7734_v40 = vld [vmem:[#allocation3 + $0xbc] sm:$0x1]  ;;  %v17667_v27 = vld [vmem:[#allocation4 + $0x450] sm:$0xff]  }
 0x557   : > { %v7731_v31 = vsel %vm18003_vm14, %v7556_v54, %v7730_v14  ;;  %v10044_v28 = vshrl.u32 %v20711_v23, 16  ;;  %7739 = vst [vmem:[#allocation3 + $0xc0] sm:$0xf] %v7738_v4  ;;  %v20744_v0 = vrot.slane %v7576_v60, 7  ;;  %v7561_v39 = vrot.slane %v7559_v35, 7  ;;  %16464 = vmatprep.subr.bf16.mxu0 %v17665_v11 }
 0x558   : > { %v20732_v46 = vrot.slane %v21972_v42, 5  ;;  %7732 = vst [vmem:[#allocation3 + $0xb4] sm:$0xf] %v7731_v31  ;;  %v7562_v25 = vshll.u32 %v14925_v45, 16  ;;  %v10031_v21 = vshrl.u32 %v20709_v38, 16  ;;  %v21974_v63 = vsel %vm17978_vm11, %v20563_v2, %v20531_v15 }
 0x559   : > { %v14605_v9 = vcombine.low %v21974_v63, %v21973_v50  ;;  %v21975_v10 = vsel %vm17978_vm11, %v20602_v16, %v20604_v6  ;;  %v21976_v18 = vsel %vm17978_vm11, %v20577_v17, %v20551_v29  ;;  %v10034_v5 = vshll.u32 %v20709_v38, 16  ;;  %v20773_v26 = vld [vmem:[#allocation3 + $0x70] sm:$0xf]  ;;  %v20781_v38 = vld [vmem:[#allocation3 + $0x5c] sm:$0x1] }
 0x55a   : > { %v14606_v34 = vcombine.low %v21976_v18, %v21975_v10  ;;  %v7557_v47 = vrot.slane %v7553_v36, 4  ;;  %v7583_v45 = vrot.slane %v20744_v0, 4  ;;  %v7564_v56 = vor.u32 %v7562_v25, %v7561_v39  ;;  %v9883_v8 = vld [vmem:[#allocation3 + $0x6c] sm:$0xf] }
 0x55b   : > { %v7566_v15 = vrot.slane %v7561_v39, 4  ;;  %16449 = vmatmul.mubr.bf16.vlgmr.msra.gmra.mrb[32].mxu0 %v14605_v9  ;;  %v10000_v2 = vrot.slane %v9999_v32, 4  ;;  %v21977_v62 = vshll.u32 %v20626_v58, 16  ;;  %v20771_v16 = vrot.slane %v10040_v59, 5  ;;  %v17669_v9 = vld [vmem:[#allocation4 + $0x460] sm:$0xff]  }
 0x55c   : > { %v10046_v6 = vrot.slane %v10044_v28, 4  ;;  %v7742_v29 = vsel %vm17909_vm3, %v7583_v45, %v7741_v55  ;;  %v7565_v17 = vsel %vm18010_vm15, %v7557_v47, %v7564_v56  ;;  %16465 = vmatpush3.bf16.msra.mxu0 %v17665_v11  ;;  %16452 = vmatprep.mubr.bf16.mxu0 %v14606_v34  ;;  %v10033_v58 = vrot.slane %v10031_v21, 4  ;;  %v20789_v11 = vld [vmem:[#allocation3 + $0x68] sm:$0x1] }
 0x55d   : > { %v10012_v19 = vrot.slane %v21977_v62, 5  ;;  %v7735_v36 = vsel %vm17909_vm3, %v7566_v15, %v7734_v40  ;;  %7743 = vst [vmem:[#allocation3 + $0xc8] sm:$0x1] %v7742_v29  ;;  %7733 = vst [vmem:[#allocation3 + $0xb8] sm:$0xf] %v7565_v17  ;;  %16466 = vmatprep.subr.bf16.mxu0 %v17666_v48  ;;  %v10036_v14 = vrot.slane %v10034_v5, 5  ;;  %v9981_v54 = vsel %vm17978_vm11, %v20628_v1, %v20612_v30 }
 0x55e   : > { %7736 = vst [vmem:[#allocation3 + $0xbc] sm:$0x1] %v7735_v36  ;;  %v10023_v3 = vor.u32 %v20736_v44, %v20732_v46  ;;  %v10064_v32 = vshll.u32 %v20773_v26, 16  ;;  %v10068_v13 = vshrl.u32 %v20773_v26, 16  ;;  %v9971_v60 = vsel %vm17978_vm11, %v20616_v41, %v20579_v53  ;;  %v17668_v41 = vld [vmem:[#allocation4 + $0x458] sm:$0xff]  }
 0x55f   : > { %v10005_v35 = vsel %vm17978_vm11, %v10000_v2, %v20634_v22  ;;  %v10047_v30 = vor.u32 %v10046_v6, %v20771_v16  ;;  %v10013_v1 = vor.u32 %v10012_v19, %v20727_v24  ;;  %v10026_v42 = vshll.u32 %v20781_v38, 16  ;;  %v17789_v5 = vld [vmem:[#allocation3 + $0x1c] sm:$0xf]  ;;  %v17670_v19 = vld [vmem:[#allocation4 + $0x468] sm:$0xff]  }
 0x560   : > { %16467 = vmatpush3.bf16.msra.mxu0 %v17666_v48  ;;  %v10055_v44 = vshrl.u32 %v9883_v8, 16  ;;  %v10058_v4 = vshll.u32 %v9883_v8, 16  ;;  %v14607_v31 = vcombine.low %v9971_v60, %v9981_v54  ;;  %v9995_v53 = vsel %vm17978_vm11, %v20684_v7, %v20630_v12  ;;  %v20808_v7 = vld [vmem:[#allocation3 + $0x74] sm:$0x1]  ;;  %v17790_v54 = vld [vmem:[#allocation3 + $0x28] sm:$0xf] }
 0x561   : > { %16468 = vmatprep.subr.bf16.mxu0 %v17667_v27  ;;  %v10037_v59 = vor.u32 %v10036_v14, %v10033_v58  ;;  %v10050_v22 = vshll.u32 %v20789_v11, 16  ;;  %v14608_v28 = vcombine.low %v9995_v53, %v10005_v35  ;;  %v10024_v39 = vrot.slane %v10023_v3, 4  ;;  %v10290_v53 = vld [vmem:[#allocation3 + $0x30] sm:$0xe] }
 0x562   : > { %v10066_v25 = vrot.slane %v10064_v32, 5  ;;  %v10070_v21 = vrot.slane %v10068_v13, 4  ;;  %v10048_v24 = vrot.slane %v10047_v30, 4  ;;  %v10014_v55 = vrot.slane %v10013_v1, 4  ;;  %v17672_v1 = vld [vmem:[#allocation4 + $0x478] sm:$0xff]  }
 0x563   : > { %16453 = vmatmul.mubr.bf16.gmra.mrb[36].mxu0 %v14607_v31  ;;  %v10028_v40 = vrot.slane %v10026_v42, 5  ;;  %v10057_v50 = vrot.slane %v10055_v44, 4  ;;  %v10060_v63 = vrot.slane %v10058_v4, 5  ;;  %v10038_v10 = vrot.slane %v10037_v59, 4  ;;  %v10289_v44 = vld [vmem:[#allocation3 + $0x24] sm:$0xe] }
 0x564   : > { %16469 = vmatpush3.bf16.msra.mxu0 %v17667_v27  ;;  %16456 = vmatprep.mubr.bf16.mxu0 %v14608_v28  ;;  %v10052_v12 = vrot.slane %v10050_v22, 5  ;;  %v10071_v34 = vor.u32 %v10070_v21, %v10066_v25  ;;  %v10322_v47 = vrot.slane %v17789_v5, 5  ;;  %v10019_v45 = vsel %vm17978_vm11, %v10014_v55, %v20732_v46  ;;  %v10288_v27 = vld [vmem:[#allocation3 + $0x18] sm:$0xe]  ;;  %v17671_v46 = vld [vmem:[#allocation4 + $0x470] sm:$0xff]   ;;  %v21979_v21 = vld [vmem:[#allocation22_spill] sm:$0xff] }
 0x565   : > { %16470 = vmatprep.subr.bf16.mxu0 %v17668_v41  ;;  %v10029_v18 = vsel %vm17978_vm11, %v10024_v39, %v10028_v40  ;;  %v10061_v56 = vor.u32 %v10060_v63, %v10057_v50  ;;  %v10074_v15 = vshll.u32 %v20808_v7, 16  ;;  %v10043_v62 = vsel %vm17978_vm11, %v10038_v10, %v20771_v16  ;;  %v17791_v16 = vld [vmem:[#allocation3 + $0x34] sm:$0xf]  ;;  %v10291_v55 = vld [vmem:[#allocation3 + $0x3c] sm:$0xe] }
 0x566   : > { %v10053_v48 = vsel %vm17978_vm11, %v10048_v24, %v10052_v12  ;;  %v14609_v2 = vcombine.low %v10019_v45, %v10029_v18  ;;  %v10072_v29 = vrot.slane %v10071_v34, 4  ;;  %v10324_v17 = vrot.slane %v10322_v47, 4  ;;  %v21978_v39 = vld [vmem:[#allocation46_spill] sm:$0xff]  ;;  %v10294_v12 = vld [vmem:[#allocation3 + $0x60] sm:$0xe] }
 0x567   : > { %v14610_v6 = vcombine.low %v10043_v62, %v10053_v48  ;;  %v10062_v36 = vrot.slane %v10061_v56, 4  ;;  %v10076_v58 = vrot.slane %v10074_v15, 5  ;;  %v10325_v14 = vrot.slane %v20528_v43, 5  ;;  %v21981_v15 = vld [vmem:[#allocation27_spill] sm:$0xff] }
 0x568   : > { %16471 = vmatpush3.bf16.msra.mxu0 %v17668_v41  ;;  %v10329_v3 = vrot.slane %v17790_v54, 5  ;;  %v10336_v32 = vrot.slane %v17791_v16, 5  ;;  %v14620_v13 = vrot.slane %v10288_v27, 9  ;;  %v10343_v41 = vrot.slane %v20544_v49, 5  ;;  %v20866_v54 = vld [vmem:[#allocation3 + $0x80] sm:$0x1] }
 0x569   : > { %16472 = vmatprep.subr.bf16.mxu0 %v17669_v9  ;;  %v10077_v8 = vsel %vm17978_vm11, %v10072_v29, %v10076_v58  ;;  %v10326_v60 = vsel %vm17970_vm10, %v10324_v17, %v10325_v14  ;;  %v10067_v35 = vsel %vm17978_vm11, %v10062_v36, %v10066_v25  ;;  %v10350_v59 = vrot.slane %v20588_v61, 5  ;;  %v10292_v61 = vld [vmem:[#allocation3 + $0x48] sm:$0xe]  ;;  %v20848_v58 = vld [vmem:[#allocation3 + $0x70] sm:$0xf] }
 0x56a   : > { %v14611_v30 = vcombine.low %v10067_v35, %v10077_v8  ;;  %v10323_v43 = vsel %vm17970_vm10, %v14620_v13, %v10322_v47  ;;  %v10331_v4 = vrot.slane %v10329_v3, 4  ;;  %v10338_v31 = vrot.slane %v10336_v32, 4  ;;  %v21980_v47 = vld [vmem:[#allocation40_spill] sm:$0xff]  ;;  %v20864_v8 = vld [vmem:[#allocation3 + $0x7c] sm:$0xf] }
 0x56b   : > { %16457 = vmatmul.mubr.bf16.gmra.mrb[40].mxu0 %v14609_v2  ;;  %v14628_v42 = vcombine.low %v10323_v43, %v10326_v60  ;;  %v10357_v22 = vrot.slane %v20638_v57, 5  ;;  %v10364_v28 = vrot.slane %v20711_v23, 5  ;;  %v10332_v25 = vrot.slane %v21978_v39, 5  ;;  %v10293_v57 = vld [vmem:[#allocation3 + $0x54] sm:$0xe] }
 0x56c   : > { %16473 = vmatpush3.bf16.msra.mxu0 %v17669_v9  ;;  %16460 = vmatprep.mubr.bf16.mxu0 %v14610_v6  ;;  %v10339_v24 = vrot.slane %v21979_v21, 5  ;;  %v14621_v40 = vrot.slane %v10289_v44, 9  ;;  %v14622_v63 = vrot.slane %v10290_v53, 9  ;;  %v10345_v9 = vrot.slane %v10343_v41, 4  ;;  %v20873_v60 = vld [vmem:[#allocation3 + $0x88] sm:$0xf] }
 0x56d   : > { %16474 = vmatprep.subr.bf16.mxu0 %v17670_v19  ;;  %v10333_v50 = vsel %vm17970_vm10, %v10331_v4, %v10332_v25  ;;  %v10352_v23 = vrot.slane %v10350_v59, 4  ;;  %v10359_v10 = vrot.slane %v10357_v22, 4  ;;  %v10366_v18 = vrot.slane %v10364_v28, 4  ;;  %v11439_v35 = vld [vmem:[#allocation3 + $0x6c] sm:$0xe] }
 0x56e   : > { %v10340_v49 = vsel %vm17970_vm10, %v10338_v31, %v10339_v24  ;;  %v10330_v34 = vsel %vm17970_vm10, %v14621_v40, %v10329_v3  ;;  %v10337_v48 = vsel %vm17970_vm10, %v14622_v63, %v10336_v32  ;;  %v14623_v5 = vrot.slane %v10291_v55, 9  ;;  %v11440_v3 = vld [vmem:[#allocation3 + $0x78] sm:$0xe]  ;;  %v11442_v24 = vld [vmem:[#allocation3 + $0x90] sm:$0xe] }
 0x56f   : > { %v10346_v45 = vrot.slane %v21980_v47, 5  ;;  %v14629_v56 = vcombine.low %v10330_v34, %v10333_v50  ;;  %v10353_v2 = vrot.slane %v21981_v15, 5  ;;  %v10360_v62 = vrot.slane %v20781_v38, 5  ;;  %v20898_v40 = vld [vmem:[#allocation3 + $0x98] sm:$0x1] }
 0x570   : > { %16475 = vmatpush3.bf16.msra.mxu0 %v17670_v19  ;;  %v10367_v19 = vrot.slane %v20789_v11, 5  ;;  %v14630_v6 = vcombine.low %v10337_v48, %v10340_v49  ;;  %v14624_v29 = vrot.slane %v10292_v61, 9  ;;  %v14625_v17 = vrot.slane %v10293_v57, 9  ;;  %v20862_v11 = vld [vmem:[#allocation3 + $0x74] sm:$0x1] }
 0x571   : > { %16476 = vmatprep.subr.bf16.mxu0 %v17671_v46  ;;  %v14626_v36 = vrot.slane %v10294_v12, 9  ;;  %v10347_v27 = vsel %vm17970_vm10, %v10345_v9, %v10346_v45  ;;  %v20856_v14 = vsel %vm17970_vm10, %v10359_v10, %v10360_v62  ;;  %v7574_v16 = vrot.slane %v20705_v33, 4  ;;  %v20902_v61 = vld [vmem:[#allocation3 + $0xac] sm:$0xf]  ;;  %v20916_v47 = vld [vmem:[#allocation3 + $0xa4] sm:$0x1] }
 0x572   : > { %v20860_v38 = vsel %vm17970_vm10, %v10366_v18, %v10367_v19  ;;  %v10344_v32 = vsel %vm17970_vm10, %v14623_v5, %v10343_v41  ;;  %v10351_v13 = vsel %vm17970_vm10, %v14624_v29, %v10350_v59  ;;  %v20878_v43 = vsel %vm17970_vm10, %v14625_v17, %v10357_v22  ;;  %v20891_v41 = vld [vmem:[#allocation3 + $0x94] sm:$0xf]  ;;  %v11441_v59 = vld [vmem:[#allocation3 + $0x84] sm:$0xe]  ;;  %v20893_v22 = vld [vmem:[#allocation3 + $0xa0] sm:$0xf] }
 0x573   : > { %16461 = vmatmul.mubr.bf16.gmra.mrb[44].mxu0 %v14611_v30  ;;  %v7579_v30 = vshll.u32 %v20707_v37, 16  ;;  %v11471_v44 = vrot.slane %v20848_v58, 5  ;;  %v14631_v4 = vcombine.low %v10344_v32, %v10347_v27  ;;  %v14633_v53 = vcombine.low %v20878_v43, %v20856_v14  ;;  %v11443_v5 = vld [vmem:[#allocation3 + $0x9c] sm:$0xe]  ;;  %v20918_v45 = vld [vmem:[#allocation3 + $0xb0] sm:$0x1] }
 0x574   : > { %16477 = vmatpush3.bf16.msra.mxu0 %v17671_v46  ;;  %16480 = vmatprep.mubr.bf16.mxu0 %v14628_v42  ;;  %v10354_v46 = vsel %vm17970_vm10, %v10352_v23, %v10353_v2  ;;  %v20884_v42 = vld [vmem:[#allocation3 + $0x8c] sm:$0x1]  ;;  %v14701_v39 = vrot.slane %v11439_v35, 9  ;;  %v11474_v25 = vrot.slane %v20862_v11, 5  ;;  %v11478_v21 = vrot.slane %v20864_v8, 5 }
 0x575   : > { %16478 = vmatprep.subr.bf16.mxu0 %v17672_v1  ;;  %v14632_v31 = vcombine.low %v10351_v13, %v10354_v46  ;;  %v10371_v55 = vrot.slane %v20773_v26, 5  ;;  %v14702_v50 = vrot.slane %v11440_v3, 9  ;;  %v11481_v63 = vrot.slane %v20866_v54, 5  ;;  %v20933_v62 = vld [vmem:[#allocation3 + $0xb8] sm:$0xf] }
 0x576   : > { %v11485_v49 = vrot.slane %v20873_v60, 5  ;;  %v20906_v57 = vsel %vm17970_vm10, %v14701_v39, %v11471_v44  ;;  %v11480_v23 = vrot.slane %v11478_v21, 4  ;;  %v14703_v10 = vrot.slane %v11441_v59, 9  ;;  %v11445_v13 = vld [vmem:[#allocation3 + $0xb4] sm:$0xe] }
 0x577   : > { %v7581_v12 = vor.u32 %v7579_v30, %v20744_v0  ;;  %v11488_v48 = vrot.slane %v20884_v42, 5  ;;  %v11492_v2 = vrot.slane %v20891_v41, 5  ;;  %v14704_v29 = vrot.slane %v11442_v24, 9  ;;  %v20945_v35 = vld [vmem:[#allocation3 + $0xbc] sm:$0x1] }
 0x578   : > { %16479 = vmatpush3.bf16.msra.mxu0 %v17672_v1  ;;  %v20882_v1 = vsel %vm17970_vm10, %v14626_v36, %v10364_v28  ;;  %v11473_v28 = vrot.slane %v11471_v44, 4  ;;  %v11487_v34 = vrot.slane %v11485_v49, 4  ;;  %v20926_v15 = vsel %vm17970_vm10, %v11480_v23, %v11481_v63  ;;  %v11444_v36 = vld [vmem:[#allocation3 + $0xa8] sm:$0xe] }
 0x579   : > { %v14634_v37 = vcombine.low %v20882_v1, %v20860_v38  ;;  %v20930_v0 = vsel %vm17970_vm10, %v14703_v10, %v11485_v49  ;;  %v11499_v17 = vrot.slane %v20893_v22, 5  ;;  %v11494_v46 = vrot.slane %v11492_v2, 4  ;;  %v17679_v38 = vld [vmem:[%s21603_s2 + $0x70] sm:$0xff]   ;;  %v17681_v1 = vld [vmem:[#allocation4 + $0x280] sm:$0xff]  }
 0x57a   : > { %v20910_v9 = vsel %vm17970_vm10, %v11473_v28, %v11474_v25  ;;  %v11495_v3 = vrot.slane %v20898_v40, 5  ;;  %v14705_v32 = vrot.slane %v11443_v5, 9  ;;  %v20949_v30 = vsel %vm17970_vm10, %v14704_v29, %v11492_v2  ;;  %16508 = vmatprep.subr.bf16.mxu1 %v17679_v38 }
 0x57b   : > { %16481 = vmatmul.mubr.bf16.vlgmr.msra.gmra.mrb[32].mxu0 %v14629_v56  ;;  %v20922_v56 = vsel %vm17970_vm10, %v14702_v50, %v11478_v21  ;;  %v11501_v44 = vrot.slane %v11499_v17, 4  ;;  %v14706_v28 = vrot.slane %v11444_v36, 9  ;;  %v11513_v25 = vrot.slane %v20933_v62, 5  ;;  %16509 = vmatpush3.bf16.msra.mxu1 %v17679_v38 }
 0x57c   : > { %16484 = vmatprep.mubr.bf16.mxu0 %v14630_v6  ;;  %v20939_v6 = vsel %vm17970_vm10, %v11487_v34, %v11488_v48  ;;  %v20955_v59 = vsel %vm17970_vm10, %v11494_v46, %v11495_v3  ;;  %v20959_v39 = vsel %vm17970_vm10, %v14705_v32, %v11499_v17  ;;  %v11509_v63 = vrot.slane %v20918_v45, 5  ;;  %v10295_v17 = vld [vmem:[#allocation3 + $0x6c] sm:$0xe] }
 0x57d   : > { %v14707_v23 = vrot.slane %v11445_v13, 9  ;;  %v11515_v10 = vrot.slane %v11513_v25, 4  ;;  %v11516_v34 = vrot.slane %v20945_v35, 5  ;;  %v10373_v48 = vrot.slane %v10371_v55, 4 }
 0x57e   : > { %v7582_v29 = vsel %vm18010_vm15, %v7574_v16, %v7581_v12  ;;  %v10374_v20 = vrot.slane %v20808_v7, 5  ;;  %v14627_v14 = vrot.slane %v10295_v17, 9  ;;  %v17680_v7 = vld [vmem:[%s21603_s2 + $0x78] sm:$0xff]   ;;  %v10922_v49 = vshrl.u32 %v20864_v8, 16 }
 0x57f   : > { %v20993_v46 = vsel %vm17970_vm10, %v14707_v23, %v11513_v25  ;;  %v20997_v3 = vsel %vm17970_vm10, %v11515_v10, %v11516_v34  ;;  %7740 = vst [vmem:[#allocation3 + $0xc4] sm:$0xf] %v7582_v29  ;;  %16510 = vmatprep.subr.bf16.mxu1 %v17680_v7  ;;  %v17682_v23 = vld [vmem:[#allocation4 + $0x288] sm:$0xff]  }
 0x580   : > { %21985 = vst [vmem:[#allocation29_spill] sm:$0xff] %v20993_v46  ;;  %21986 = vst [vmem:[#allocation48_spill] sm:$0xff] %v20997_v3  ;;  %v10375_v16 = vsel %vm17970_vm10, %v10373_v48, %v10374_v20  ;;  %v10372_v43 = vsel %vm17970_vm10, %v14627_v14, %v10371_v55  ;;  %16511 = vmatpush3.bf16.msra.mxu1 %v17680_v7  ;;  %v21021_v10 = vld [vmem:[#allocation3 + $0x64] sm:$0xf]  ;;  %v17683_v7 = vld [vmem:[#allocation4 + $0x290] sm:$0xff]  }
 0x581   : > { %16528 = vmatprep.subr.bf16.mxu1 %v17681_v1  ;;  %v10870_v34 = vshll.u32 %v21021_v10, 16  ;;  %v10874_v48 = vshrl.u32 %v21021_v10, 16 }
 0x583   : > { %16485 = vmatmul.mubr.bf16.gmra.mrb[36].mxu0 %v14631_v4  ;;  %v11502_v4 = vrot.slane %v20916_v47, 5 }
 0x584   : > { %16488 = vmatprep.mubr.bf16.mxu0 %v14632_v31  ;;  %v11506_v31 = vrot.slane %v20902_v61, 5 }
 0x585   : > { %v20966_v24 = vsel %vm17970_vm10, %v11501_v44, %v11502_v4  ;;  %v21017_v44 = vld [vmem:[#allocation3 + $0x60] sm:$0xf] }
 0x586   : > { %21982 = vst [vmem:[#allocation47_spill] sm:$0xff] %v20966_v24  ;;  %v11508_v50 = vrot.slane %v11506_v31, 4  ;;  %v20976_v5 = vsel %vm17970_vm10, %v14706_v28, %v11506_v31 }
 0x587   : > { %21983 = vst [vmem:[#allocation26_spill] sm:$0xff] %v20976_v5 }
 0x588   : > { %v20980_v2 = vsel %vm17970_vm10, %v11508_v50, %v11509_v63  ;;  %v10861_v50 = vshrl.u32 %v21017_v44, 16  ;;  %v10864_v63 = vshll.u32 %v21017_v44, 16 }
 0x589   : > { %21984 = vst [vmem:[#allocation41_spill] sm:$0xff] %v20980_v2 }
 0x58a   : > { %v10863_v14 = vrot.slane %v10861_v50, 4 }
 0x58b   : > { %16489 = vmatmul.mubr.bf16.gmra.mrb[40].mxu0 %v14633_v53  ;;  %v14635_v53 = vcombine.low %v10372_v43, %v10375_v16  ;;  %v10866_v16 = vrot.slane %v10864_v63, 5 }
 0x58c   : > { %16492 = vmatprep.mubr.bf16.mxu0 %v14634_v37 }
 0x593   : > { %16493 = vmatmul.mubr.bf16.gmra.mrb[44].mxu0 %v14635_v53 }
 0x64e   : > { %v16482_v26 = vpop.f32.mrb[32].mxu0 }
 0x64f   : > { %v10507_v37 = vpop.f32.mrb[33].mxu0  ;;  %v10588_v55 = vmax.f32 %v16482_v26, 0.0  ;;  %v21025_v26 = vrot.slane %v10870_v34, 5 }
 0x650   : > { %v16483_v12 = vpop.f32.mrb[34].mxu0  ;;  %v10586_v4 = vmax.f32 %v10507_v37, 0.0  ;;  %v10876_v37 = vrot.slane %v10874_v48, 4  ;;  %v21032_v48 = vld [vmem:[#allocation3 + $0x78] sm:$0xf] }
 0x651   : > { %v10589_v32 = vmax.f32 %v16483_v12, 0.0  ;;  %v10510_v13 = vpop.f32.mrb[35].mxu0  ;;  %v10909_v33 = vshrl.u32 %v21032_v48, 16  ;;  %v10912_v27 = vshll.u32 %v21032_v48, 16 }
 0x652   : > { %v10587_v31 = vmax.f32 %v10510_v13, 0.0  ;;  %v21027_v13 = vld [vmem:[#allocation3 + $0x6c] sm:$0xf] }
 0x653   : > { %v10603_v28 = vpack.c.bf16 %v10589_v32, %v10588_v55  ;;  %v10885_v50 = vshrl.u32 %v21027_v13, 16  ;;  %v10888_v34 = vshll.u32 %v21027_v13, 16 }
 0x654   : > { %v10602_v25 = vpack.c.bf16 %v10587_v31, %v10586_v4  ;;  %v10867_v31 = vor.u32 %v10866_v16, %v10863_v14  ;;  %v10898_v14 = vshrl.u32 %v20848_v58, 16 }
 0x655   : > { %v10890_v36 = vrot.slane %v10888_v34, 5  ;;  %v21045_v34 = vld [vmem:[#allocation3 + $0x84] sm:$0xf] }
 0x656   : > { %v16486_v29 = vpop.f32.mrb[36].mxu0  ;;  %16512 = vmatprep.mubr.bf16.mxu1 %v10602_v25  ;;  %v10933_v18 = vshrl.u32 %v21045_v34, 16 }
 0x657   : > { %v10523_v17 = vpop.f32.mrb[37].mxu0  ;;  %16513 = vmatmul.mubr.bf16.vlgmr.msra.gmra.mrb[32].mxu1 %v10603_v28  ;;  %v10592_v43 = vmax.f32 %v16486_v29, 0.0  ;;  %v10877_v28 = vor.u32 %v10876_v37, %v21025_v26  ;;  %v10868_v37 = vrot.slane %v10867_v31, 4  ;;  %v17686_v31 = vld [vmem:[#allocation4 + $0x2a8] sm:$0xff]  }
 0x658   : > { %16529 = vmatpush3.bf16.msra.mxu1 %v17681_v1  ;;  %v16487_v20 = vpop.f32.mrb[38].mxu0  ;;  %v10590_v12 = vmax.f32 %v10523_v17, 0.0  ;;  %v17684_v1 = vld [vmem:[#allocation4 + $0x298] sm:$0xff]   ;;  %v17793_v17 = vld [vmem:[#allocation3 + $0x68] sm:$0x1] }
 0x659   : > { %v10593_v53 = vmax.f32 %v16487_v20, 0.0  ;;  %v10526_v38 = vpop.f32.mrb[39].mxu0  ;;  %16530 = vmatprep.subr.bf16.mxu1 %v17682_v23  ;;  %v10880_v20 = vshll.u32 %v17793_v17, 16  ;;  %v10918_v17 = vshll.u32 %v20864_v8, 16 }
 0x65a   : > { %v10591_v55 = vmax.f32 %v10526_v38, 0.0  ;;  %v17685_v38 = vld [vmem:[#allocation4 + $0x2a0] sm:$0xff]  }
 0x65b   : > { %v10605_v32 = vpack.c.bf16 %v10593_v53, %v10592_v43 }
 0x65c   : > { %v10604_v4 = vpack.c.bf16 %v10591_v55, %v10590_v12  ;;  %16531 = vmatpush3.bf16.msra.mxu1 %v17682_v23  ;;  %v10894_v23 = vshll.u32 %v20848_v58, 16  ;;  %v10878_v12 = vrot.slane %v10877_v28, 4  ;;  %v10882_v28 = vrot.slane %v10880_v20, 5 }
 0x65d   : > { %16532 = vmatprep.subr.bf16.mxu1 %v17683_v7 }
 0x65e   : > { %v16490_v25 = vpop.f32.mrb[40].mxu0  ;;  %16516 = vmatprep.mubr.bf16.mxu1 %v10604_v4  ;;  %v10887_v4 = vrot.slane %v10885_v50, 4  ;;  %v10873_v50 = vsel %vm17978_vm11, %v10868_v37, %v21025_v26 }
 0x65f   : > { %v10539_v63 = vpop.f32.mrb[41].mxu0  ;;  %16517 = vmatmul.mubr.bf16.gmra.mrb[36].mxu1 %v10605_v32  ;;  %v10596_v16 = vmax.f32 %v16490_v25, 0.0  ;;  %v21039_v25 = vrot.slane %v10894_v23, 5  ;;  %v10904_v23 = vshll.u32 %v20862_v11, 16 }
 0x660   : > { %16533 = vmatpush3.bf16.msra.mxu1 %v17683_v7  ;;  %v16491_v29 = vpop.f32.mrb[42].mxu0  ;;  %v10594_v55 = vmax.f32 %v10539_v63, 0.0 }
 0x661   : > { %v10597_v43 = vmax.f32 %v16491_v29, 0.0  ;;  %v10542_v53 = vpop.f32.mrb[43].mxu0  ;;  %16534 = vmatprep.subr.bf16.mxu1 %v17684_v1  ;;  %v10900_v29 = vrot.slane %v10898_v14, 4  ;;  %v21050_v14 = vrot.slane %v10918_v17, 5 }
 0x662   : > { %v10595_v32 = vmax.f32 %v10542_v53, 0.0  ;;  %v10891_v53 = vor.u32 %v10890_v36, %v10887_v4  ;;  %v21057_v36 = vld [vmem:[#allocation3 + $0x90] sm:$0xf] }
 0x663   : > { %v10607_v7 = vpack.c.bf16 %v10597_v43, %v10596_v16  ;;  %v10924_v43 = vrot.slane %v10922_v49, 4  ;;  %v10942_v49 = vshll.u32 %v20873_v60, 16  ;;  %v10957_v46 = vshrl.u32 %v21057_v36, 16 }
 0x664   : > { %v10606_v21 = vpack.c.bf16 %v10595_v32, %v10594_v55  ;;  %16535 = vmatpush3.bf16.msra.mxu1 %v17684_v1  ;;  %v10883_v1 = vsel %vm17978_vm11, %v10878_v12, %v10882_v28  ;;  %v10911_v55 = vrot.slane %v10909_v33, 4  ;;  %v10914_v32 = vrot.slane %v10912_v27, 5 }
 0x665   : > { %16536 = vmatprep.subr.bf16.mxu1 %v17685_v38  ;;  %v10936_v12 = vshll.u32 %v21045_v34, 16  ;;  %v10925_v27 = vor.u32 %v10924_v43, %v21050_v14  ;;  %v10966_v33 = vshll.u32 %v20891_v41, 16  ;;  %v10935_v43 = vrot.slane %v10933_v18, 4  ;;  %v17689_v18 = vld [vmem:[#allocation4 + $0x240] sm:$0xff]  }
 0x666   : > { %v16494_v63 = vpop.f32.mrb[44].mxu0  ;;  %16520 = vmatprep.mubr.bf16.mxu1 %v10606_v21  ;;  %v10901_v21 = vor.u32 %v10900_v29, %v21039_v25  ;;  %v10970_v29 = vshrl.u32 %v20891_v41, 16  ;;  %v21065_v2 = vrot.slane %v10942_v49, 5 }
 0x667   : > { %v10555_v16 = vpop.f32.mrb[45].mxu0  ;;  %16521 = vmatmul.mubr.bf16.gmra.mrb[40].mxu1 %v10607_v7  ;;  %v10600_v26 = vmax.f32 %v16494_v63, 0.0  ;;  %v17687_v7 = vld [vmem:[#allocation4 + $0x2b0] sm:$0xff]   ;;  %v10892_v63 = vrot.slane %v10891_v53, 4  ;;  %v10926_v53 = vrot.slane %v10925_v27, 4 }
 0x668   : > { %16537 = vmatpush3.bf16.msra.mxu1 %v17685_v38  ;;  %v16495_v20 = vpop.f32.mrb[46].mxu0  ;;  %v10598_v11 = vmax.f32 %v10555_v16, 0.0  ;;  %v10946_v38 = vshrl.u32 %v20873_v60, 16  ;;  %v10928_v16 = vshll.u32 %v20866_v54, 16  ;;  %v10902_v3 = vrot.slane %v10901_v21, 4 }
 0x669   : > { %v10601_v37 = vmax.f32 %v16495_v20, 0.0  ;;  %v10558_v19 = vpop.f32.mrb[47].mxu0  ;;  %16538 = vmatprep.subr.bf16.mxu1 %v17686_v31  ;;  %v10915_v20 = vor.u32 %v10914_v32, %v10911_v55  ;;  %v21067_v55 = vrot.slane %v10966_v33, 5  ;;  %v10972_v54 = vrot.slane %v10970_v29, 4 }
 0x66a   : > { %v10599_v17 = vmax.f32 %v10558_v19, 0.0  ;;  %v14668_v19 = vcombine.low %v10873_v50, %v10883_v1  ;;  %v10948_v5 = vrot.slane %v10946_v38, 4  ;;  %v10897_v50 = vsel %vm17978_vm11, %v10892_v63, %v21039_v25  ;;  %v17690_v63 = vld [vmem:[#allocation4 + $0x248] sm:$0xff]  }
 0x66b   : > { %v10609_v4 = vpack.c.bf16 %v10601_v37, %v10600_v26  ;;  %v10960_v26 = vshll.u32 %v21057_v36, 16  ;;  %v10938_v37 = vrot.slane %v10936_v12, 5  ;;  %v10916_v1 = vrot.slane %v10915_v20, 4 }
 0x66c   : > { %v10608_v28 = vpack.c.bf16 %v10599_v17, %v10598_v11  ;;  %16539 = vmatpush3.bf16.msra.mxu1 %v17686_v31  ;;  %v10906_v31 = vrot.slane %v10904_v23, 5  ;;  %v10930_v21 = vrot.slane %v10928_v16, 5  ;;  %v10952_v12 = vshll.u32 %v20884_v42, 16  ;;  %v21075_v17 = vld [vmem:[#allocation3 + $0x9c] sm:$0xf] }
 0x66d   : > { %16540 = vmatprep.subr.bf16.mxu1 %v17687_v7  ;;  %v10959_v23 = vrot.slane %v10957_v46, 4  ;;  %v10962_v11 = vrot.slane %v10960_v26, 5  ;;  %v10939_v49 = vor.u32 %v10938_v37, %v10935_v43  ;;  %v10990_v38 = vshll.u32 %v20893_v22, 16 }
 0x66e   : > { %16524 = vmatprep.mubr.bf16.mxu1 %v10608_v28  ;;  %v10907_v32 = vsel %vm17978_vm11, %v10902_v3, %v10906_v31  ;;  %v10994_v25 = vshrl.u32 %v20893_v22, 16  ;;  %v10931_v27 = vsel %vm17978_vm11, %v10926_v53, %v10930_v21  ;;  %v10973_v3 = vor.u32 %v10972_v54, %v21067_v55 }
 0x66f   : > { %16525 = vmatmul.mubr.bf16.gmra.mrb[44].mxu1 %v10609_v4  ;;  %v21080_v4 = vld [vmem:[#allocation3 + $0xa8] sm:$0xf]  ;;  %v11014_v42 = vshll.u32 %v20902_v61, 16  ;;  %v11018_v46 = vshrl.u32 %v20902_v61, 16  ;;  %v14669_v33 = vcombine.low %v10897_v50, %v10907_v32  ;;  %v10981_v29 = vshrl.u32 %v21075_v17, 16 }
 0x670   : > { %16541 = vmatpush3.bf16.msra.mxu1 %v17687_v7  ;;  %16544 = vmatprep.mubr.bf16.mxu1 %v14668_v19  ;;  %v10949_v7 = vor.u32 %v10948_v5, %v21065_v2  ;;  %v10921_v5 = vsel %vm17978_vm11, %v10916_v1, %v21050_v14  ;;  %v10984_v28 = vshll.u32 %v21075_v17, 16  ;;  %v10963_v20 = vor.u32 %v10962_v11, %v10959_v23  ;;  %v21095_v23 = vld [vmem:[#allocation3 + $0xb4] sm:$0xf] }
 0x671   : > { %16542 = vmatprep.subr.bf16.mxu1 %v17688_v52  ;;  %v10976_v16 = vshll.u32 %v20898_v40, 16  ;;  %v11005_v19 = vshrl.u32 %v21080_v4, 16  ;;  %v11008_v26 = vshll.u32 %v21080_v4, 16  ;;  %v14670_v43 = vcombine.low %v10921_v5, %v10931_v27  ;;  %v17691_v40 = vld [vmem:[#allocation4 + $0x250] sm:$0xff]  }
 0x672   : > { %v10992_v37 = vrot.slane %v10990_v38, 5  ;;  %v10996_v31 = vrot.slane %v10994_v25, 4  ;;  %v10940_v53 = vrot.slane %v10939_v49, 4  ;;  %v10974_v14 = vrot.slane %v10973_v3, 4 }
 0x673   : > { %v11016_v54 = vrot.slane %v11014_v42, 5  ;;  %v11020_v50 = vrot.slane %v11018_v46, 4  ;;  %v10954_v1 = vrot.slane %v10952_v12, 5  ;;  %v10983_v21 = vrot.slane %v10981_v29, 4 }
 0x674   : > { %16543 = vmatpush3.bf16.msra.mxu1 %v17688_v52  ;;  %v10950_v52 = vrot.slane %v10949_v7, 4  ;;  %v10986_v32 = vrot.slane %v10984_v28, 5  ;;  %v10964_v11 = vrot.slane %v10963_v20, 4  ;;  %v10978_v24 = vrot.slane %v10976_v16, 5  ;;  %v17692_v16 = vld [vmem:[#allocation4 + $0x258] sm:$0xff]  }
 0x675   : > { %16560 = vmatprep.subr.bf16.mxu1 %v17689_v18  ;;  %v11007_v27 = vrot.slane %v11005_v19, 4  ;;  %v11010_v7 = vrot.slane %v11008_v26, 5  ;;  %v10997_v49 = vor.u32 %v10996_v31, %v10992_v37  ;;  %v11038_v25 = vshll.u32 %v20933_v62, 16 }
 0x676   : > { %v10955_v38 = vsel %vm17978_vm11, %v10950_v52, %v10954_v1  ;;  %v10945_v12 = vsel %vm17978_vm11, %v10940_v53, %v21065_v2  ;;  %v10979_v3 = vsel %vm17978_vm11, %v10974_v14, %v10978_v24  ;;  %v11021_v42 = vor.u32 %v11020_v50, %v11016_v54  ;;  %v17693_v50 = vld [vmem:[#allocation4 + $0x260] sm:$0xff]  }
 0x677   : > { %16545 = vmatmul.mubr.bf16.vlgmr.msra.gmra.mrb[48].mxu1 %v14669_v33  ;;  %v10987_v46 = vor.u32 %v10986_v32, %v10983_v21  ;;  %v11000_v33 = vshll.u32 %v20916_v47, 16  ;;  %v11029_v5 = vshrl.u32 %v21095_v23, 16  ;;  %v11032_v29 = vshll.u32 %v21095_v23, 16 }
 0x678   : > { %16561 = vmatpush3.bf16.msra.mxu1 %v17689_v18  ;;  %16548 = vmatprep.mubr.bf16.mxu1 %v14670_v43  ;;  %v11042_v18 = vshrl.u32 %v20933_v62, 16  ;;  %v14671_v28 = vcombine.low %v10945_v12, %v10955_v38  ;;  %v10969_v20 = vsel %vm17978_vm11, %v10964_v11, %v21067_v55  ;;  %v11011_v2 = vor.u32 %v11010_v7, %v11007_v27 }
 0x679   : > { %16562 = vmatprep.subr.bf16.mxu1 %v17690_v63  ;;  %v11024_v19 = vshll.u32 %v20918_v45, 16  ;;  %v14672_v24 = vcombine.low %v10969_v20, %v10979_v3  ;;  %v10998_v26 = vrot.slane %v10997_v49, 4  ;;  %v11022_v47 = vrot.slane %v11021_v42, 4  ;;  %v17694_v49 = vld [vmem:[#allocation4 + $0x268] sm:$0xff]   ;;  %v17695_v42 = vld [vmem:[#allocation4 + $0x270] sm:$0xff]  }
 0x67a   : > { %v11044_v43 = vrot.slane %v11042_v18, 4  ;;  %v10988_v52 = vrot.slane %v10987_v46, 4  ;;  %v11002_v31 = vrot.slane %v11000_v33, 5  ;;  %v11031_v53 = vrot.slane %v11029_v5, 4  ;;  %v17698_v5 = vld [vmem:[#allocation4 + $0x2c0] sm:$0xff]  }
 0x67b   : > { %v11034_v14 = vrot.slane %v11032_v29, 5  ;;  %v11012_v1 = vrot.slane %v11011_v2, 4  ;;  %v11026_v55 = vrot.slane %v11024_v19, 5  ;;  %v11048_v27 = vshll.u32 %v20945_v35, 16  ;;  %v21988_v19 = vld [vmem:[#allocation20_spill] sm:$0xff] }
 0x67c   : > { %16563 = vmatpush3.bf16.msra.mxu1 %v17690_v63  ;;  %v11040_v63 = vrot.slane %v11038_v25, 5  ;;  %v11003_v21 = vsel %vm17978_vm11, %v10998_v26, %v11002_v31  ;;  %v14684_v33 = vcombine.low %v21017_v44, %v21021_v10  ;;  %v14685_v29 = vcombine.low %v21027_v13, %v20848_v58  ;;  %v17705_v10 = vld [vmem:[#allocation4 + $0x2d8] sm:$0xff]   ;;  %v17706_v58 = vld [vmem:[#allocation4 + $0x2e0] sm:$0xff]   ;;  %v17709_v13 = vld [vmem:[#allocation4 + $0x2e8] sm:$0xff]  }
 0x67d   : > { %16564 = vmatprep.subr.bf16.mxu1 %v17691_v40  ;;  %v11027_v32 = vsel %vm17978_vm11, %v11022_v47, %v11026_v55  ;;  %v11035_v11 = vor.u32 %v11034_v14, %v11031_v53  ;;  %v11017_v38 = vsel %vm17978_vm11, %v11012_v1, %v11016_v54  ;;  %v11050_v3 = vrot.slane %v11048_v27, 5  ;;  %v17697_v54 = vld [vmem:[#allocation4 + $0x278] sm:$0xff]   ;;  %v21997_v47 = vld [vmem:[#allocation41_spill] sm:$0xff]  ;;  %v22000_v31 = vld [vmem:[#allocation48_spill] sm:$0xff] }
 0x67e   : > { %v11045_v45 = vor.u32 %v11044_v43, %v11040_v63  ;;  %v14674_v25 = vcombine.low %v11017_v38, %v11027_v32  ;;  %v14686_v20 = vcombine.low %v21032_v48, %v20864_v8  ;;  %v14687_v44 = vcombine.low %v21045_v34, %v20873_v60  ;;  %v17710_v60 = vld [vmem:[#allocation4 + $0x2f0] sm:$0xff]   ;;  %v17712_v34 = vld [vmem:[#allocation4 + $0x2f8] sm:$0xff]   ;;  %v17723_v14 = vld [vmem:[#allocation3 + $0x78] sm:$0xff]  }
 0x67f   : > { %16549 = vmatmul.mubr.bf16.gmra.mrb[52].mxu1 %v14671_v28  ;;  %v11036_v12 = vrot.slane %v11035_v11, 4  ;;  %v17701_v28 = vld [vmem:[#allocation4 + $0x2c8] sm:$0xff]   ;;  %v14688_v2 = vcombine.low %v21057_v36, %v20891_v41  ;;  %v14689_v8 = vcombine.low %v21075_v17, %v20893_v22  ;;  %v14690_v48 = vcombine.low %v21080_v4, %v20902_v61  ;;  %v17713_v17 = vld [vmem:[#allocation4 + $0x300] sm:$0xff]   ;;  %v21996_v43 = vld [vmem:[#allocation26_spill] sm:$0xff] }
 0x680   : > { %16565 = vmatpush3.bf16.msra.mxu1 %v17691_v40  ;;  %16552 = vmatprep.mubr.bf16.mxu1 %v14672_v24  ;;  %v10993_v40 = vsel %vm17978_vm11, %v10988_v52, %v10992_v37  ;;  %v11046_v18 = vrot.slane %v11045_v45, 4  ;;  %v14691_v41 = vcombine.low %v21095_v23, %v20933_v62  ;;  %v21987_v36 = vld [vmem:[#allocation36_spill] sm:$0xff]  ;;  %v21990_v4 = vcombine.low %v20906_v57, %v20910_v9  ;;  %v17715_v23 = vld [vmem:[#allocation4 + $0x310] sm:$0xff]   ;;  %v17716_v24 = vld [vmem:[#allocation4 + $0x318] sm:$0xff]  }
 0x681   : > { %16566 = vmatprep.subr.bf16.mxu1 %v17692_v16  ;;  %v14673_v7 = vcombine.low %v10993_v40, %v11003_v21  ;;  %v11041_v35 = vsel %vm17978_vm11, %v11036_v12, %v11040_v63  ;;  %v21989_v22 = vcombine.low %v21987_v36, %v21988_v19  ;;  %v17714_v61 = vld [vmem:[#allocation4 + $0x308] sm:$0xff]   ;;  %v21991_v62 = vcombine.low %v20922_v56, %v20926_v15  ;;  %v17717_v57 = vld [vmem:[#allocation4 + $0x320] sm:$0xff]   ;;  %v21166_v55 = vld [vmem:[#allocation3 + $0x70] sm:$0xf] }
 0x682   : > { %v11051_v37 = vsel %vm17978_vm11, %v11046_v18, %v11050_v3  ;;  %v21992_v26 = vcombine.low %v20930_v0, %v20939_v6  ;;  %v21993_v63 = vcombine.low %v20949_v30, %v20955_v59  ;;  %v17718_v9 = vld [vmem:[#allocation4 + $0x328] sm:$0xff]   ;;  %v21994_v56 = vld [vmem:[#allocation47_spill] sm:$0xff]  ;;  %v21998_v52 = vcombine.low %v21996_v43, %v21997_v47  ;;  %v17719_v0 = vld [vmem:[#allocation4 + $0x330] sm:$0xff]  }
 0x683   : > { %v14675_v46 = vcombine.low %v11041_v35, %v11051_v37  ;;  %v21995_v15 = vcombine.low %v20959_v39, %v21994_v56  ;;  %v17721_v6 = vld [vmem:[#allocation4 + $0x338] sm:$0xff]   ;;  %v21999_v59 = vld [vmem:[#allocation29_spill] sm:$0xff]  ;;  %v17722_v39 = vld [vmem:[#allocation4 + $0x340] sm:$0xff]   ;;  %v12002_v32 = vshll.u32 %v21166_v55, 16  ;;  %v12006_v40 = vshrl.u32 %v21166_v55, 16 }
 0x684   : > { %16567 = vmatpush3.bf16.msra.mxu1 %v17692_v16  ;;  %v17702_v16 = vld [vmem:[#allocation4 + $0x2d0] sm:$0xff]   ;;  %v22001_v53 = vcombine.low %v21999_v59, %v22000_v31  ;;  %v21170_v11 = vld [vmem:[#allocation3 + $0x7c] sm:$0xf]  ;;  %v11971_v38 = vld [vmem:[#allocation3 + $0x78] sm:$0xf] }
 0x685   : > { %16568 = vmatprep.subr.bf16.mxu1 %v17693_v50  ;;  %v17720_v30 = vld [vmem:[#allocation3 + $0x6c] sm:$0xff]   ;;  %v17724_v1 = vld [vmem:[#allocation3 + $0x84] sm:$0xff]   ;;  %v21172_v18 = vrot.slane %v12002_v32, 5  ;;  %v12008_v12 = vrot.slane %v12006_v40, 4  ;;  %v12026_v3 = vshll.u32 %v21170_v11, 16  ;;  %v17728_v37 = vld [vmem:[#allocation3 + $0x9c] sm:$0xff]  }
 0x686   : > { %v11968_v21 = vld [vmem:[#allocation3 + $0x6c] sm:$0xf]  ;;  %v21194_v47 = vld [vmem:[#allocation3 + $0xa0] sm:$0xf] }
 0x687   : > { %16553 = vmatmul.mubr.bf16.gmra.mrb[56].mxu1 %v14673_v7  ;;  %v17726_v45 = vld [vmem:[#allocation4 + $0x350] sm:$0xff]   ;;  %v11993_v27 = vshrl.u32 %v11968_v21, 16  ;;  %v11996_v7 = vshll.u32 %v11968_v21, 16  ;;  %v12102_v32 = vshrl.u32 %v21194_v47, 16 }
 0x688   : > { %16569 = vmatpush3.bf16.msra.mxu1 %v17693_v50  ;;  %16556 = vmatprep.mubr.bf16.mxu1 %v14674_v25  ;;  %v17725_v50 = vld [vmem:[#allocation4 + $0x348] sm:$0xff]   ;;  %v17729_v25 = vld [vmem:[#allocation4 + $0x358] sm:$0xff]   ;;  %v17731_v19 = vld [vmem:[#allocation3 + $0xa8] sm:$0xff]  }
 0x689   : > { %16570 = vmatprep.subr.bf16.mxu1 %v17694_v49  ;;  %v11995_v35 = vrot.slane %v11993_v27, 4  ;;  %v21198_v59 = vld [vmem:[#allocation3 + $0x8c] sm:$0x1] }
 0x68c   : > { %16571 = vmatpush3.bf16.msra.mxu1 %v17694_v49  ;;  %v17727_v49 = vld [vmem:[#allocation3 + $0x90] sm:$0xff]  }
 0x68d   : > { %16572 = vmatprep.subr.bf16.mxu1 %v17695_v42 }
 0x68f   : > { %16557 = vmatmul.mubr.bf16.gmra.mrb[60].mxu1 %v14675_v46  ;;  %v11998_v46 = vrot.slane %v11996_v7, 5 }
 0x690   : > { %16573 = vmatpush3.bf16.msra.mxu1 %v17695_v42  ;;  %16576 = vmatprep.mubr.bf16.mxu1 %v14684_v33  ;;  %v12030_v42 = vshrl.u32 %v21170_v11, 16  ;;  %v12017_v33 = vshrl.u32 %v11971_v38, 16 }
 0x691   : > { %16574 = vmatprep.subr.bf16.mxu1 %v17697_v54 }
 0x694   : > { %16575 = vmatpush3.bf16.msra.mxu1 %v17697_v54  ;;  %v21176_v54 = vld [vmem:[#allocation3 + $0x74] sm:$0x1] }
 0x695   : > { %16592 = vmatprep.subr.bf16.mxu1 %v17698_v5 }
 0x697   : > { %16577 = vmatmul.mubr.bf16.vlgmr.msra.gmra.mrb[48].mxu1 %v14685_v29  ;;  %v21178_v29 = vld [vmem:[#allocation3 + $0x88] sm:$0xf] }
 0x698   : > { %16593 = vmatpush3.bf16.msra.mxu1 %v17698_v5  ;;  %16580 = vmatprep.mubr.bf16.mxu1 %v14686_v20  ;;  %v12020_v5 = vshll.u32 %v11971_v38, 16  ;;  %v12009_v20 = vor.u32 %v12008_v12, %v21172_v18  ;;  %v17735_v38 = vld [vmem:[#allocation3 + $0xc0] sm:$0xff]   ;;  %v12060_v12 = vshll.u32 %v21198_v59, 16 }
 0x699   : > { %16594 = vmatprep.subr.bf16.mxu1 %v17701_v28 }
 0x69c   : > { %16595 = vmatpush3.bf16.msra.mxu1 %v17701_v28  ;;  %v17730_v28 = vld [vmem:[#allocation4 + $0x360] sm:$0xff]  }
 0x69d   : > { %16596 = vmatprep.subr.bf16.mxu1 %v17702_v16 }
 0x69f   : > { %16581 = vmatmul.mubr.bf16.gmra.mrb[52].mxu1 %v14687_v44  ;;  %v12032_v44 = vrot.slane %v12030_v42, 4 }
 0x6a0   : > { %16597 = vmatpush3.bf16.msra.mxu1 %v17702_v16  ;;  %16584 = vmatprep.mubr.bf16.mxu1 %v14688_v2  ;;  %v21181_v16 = vrot.slane %v12026_v3, 5  ;;  %v21183_v2 = vld [vmem:[#allocation3 + $0x80] sm:$0x1] }
 0x6a1   : > { %16598 = vmatprep.subr.bf16.mxu1 %v17705_v10 }
 0x6a4   : > { %16599 = vmatpush3.bf16.msra.mxu1 %v17705_v10  ;;  %v11974_v10 = vld [vmem:[#allocation3 + $0x84] sm:$0xf] }
 0x6a5   : > { %16600 = vmatprep.subr.bf16.mxu1 %v17706_v58  ;;  %v12044_v36 = vshll.u32 %v11974_v10, 16 }
 0x6a7   : > { %16585 = vmatmul.mubr.bf16.gmra.mrb[56].mxu1 %v14689_v8  ;;  %v12012_v8 = vshll.u32 %v21176_v54, 16  ;;  %v12046_v43 = vrot.slane %v12044_v36, 5  ;;  %v11983_v36 = vld [vmem:[#allocation3 + $0xa8] sm:$0xf] }
 0x6a8   : > { %16601 = vmatpush3.bf16.msra.mxu1 %v17706_v58  ;;  %16588 = vmatprep.mubr.bf16.mxu1 %v14690_v48  ;;  %v11999_v58 = vor.u32 %v11998_v46, %v11995_v35  ;;  %v12054_v48 = vshrl.u32 %v21178_v29, 16 }
 0x6a9   : > { %16602 = vmatprep.subr.bf16.mxu1 %v17709_v13 }
 0x6ac   : > { %16603 = vmatpush3.bf16.msra.mxu1 %v17709_v13  ;;  %v12050_v13 = vshll.u32 %v21178_v29, 16 }
 0x6ad   : > { %16604 = vmatprep.subr.bf16.mxu1 %v17710_v60 }
 0x6af   : > { %16589 = vmatmul.mubr.bf16.gmra.mrb[60].mxu1 %v14691_v41  ;;  %v12022_v41 = vrot.slane %v12020_v5, 5 }
 0x6b0   : > { %16605 = vmatpush3.bf16.msra.mxu1 %v17710_v60  ;;  %16608 = vmatprep.mubr.bf16.mxu1 %v21989_v22  ;;  %v12019_v60 = vrot.slane %v12017_v33, 4  ;;  %v17733_v22 = vld [vmem:[#allocation4 + $0x368] sm:$0xff]  }
 0x6b1   : > { %16606 = vmatprep.subr.bf16.mxu1 %v17712_v34 }
 0x6b2   : > { %v12023_v56 = vor.u32 %v12022_v41, %v12019_v60  ;;  %v12062_v60 = vrot.slane %v12060_v12, 5 }
 0x6b4   : > { %16607 = vmatpush3.bf16.msra.mxu1 %v17712_v34  ;;  %v12041_v34 = vshrl.u32 %v11974_v10, 16  ;;  %v12024_v27 = vrot.slane %v12023_v56, 4 }
 0x6b5   : > { %16624 = vmatprep.subr.bf16.mxu1 %v17713_v17 }
 0x6b7   : > { %16609 = vmatmul.mubr.bf16.vlgmr.msra.gmra.mrb[48].mxu1 %v21990_v4  ;;  %v12036_v4 = vshll.u32 %v21183_v2, 16 }
 0x6b8   : > { %16625 = vmatpush3.bf16.msra.mxu1 %v17713_v17  ;;  %16612 = vmatprep.mubr.bf16.mxu1 %v21991_v62  ;;  %v12010_v17 = vrot.slane %v12009_v20, 4  ;;  %v17732_v62 = vld [vmem:[#allocation3 + $0xb4] sm:$0xff]   ;;  %v21215_v20 = vld [vmem:[#allocation3 + $0xac] sm:$0xf] }
 0x6b9   : > { %16626 = vmatprep.subr.bf16.mxu1 %v17714_v61 }
 0x6bc   : > { %16627 = vmatpush3.bf16.msra.mxu1 %v17714_v61  ;;  %v12033_v61 = vor.u32 %v12032_v44, %v21181_v16  ;;  %v12029_v44 = vsel %vm17978_vm11, %v12024_v27, %v21181_v16  ;;  %v12126_v16 = vshrl.u32 %v21215_v20, 16 }
 0x6bd   : > { %16628 = vmatprep.subr.bf16.mxu1 %v17715_v23 }
 0x6bf   : > { %16613 = vmatmul.mubr.bf16.gmra.mrb[52].mxu1 %v21992_v26  ;;  %v12014_v26 = vrot.slane %v12012_v8, 5  ;;  %v21222_v8 = vld [vmem:[#allocation3 + $0xb8] sm:$0xf] }
 0x6c0   : > { %16629 = vmatpush3.bf16.msra.mxu1 %v17715_v23  ;;  %16616 = vmatprep.mubr.bf16.mxu1 %v21993_v63  ;;  %v11977_v23 = vld [vmem:[#allocation3 + $0x90] sm:$0xf]  ;;  %v21190_v63 = vrot.slane %v12050_v13, 5  ;;  %v17737_v13 = vld [vmem:[#allocation4 + $0x380] sm:$0xff]  }
 0x6c1   : > { %16630 = vmatprep.subr.bf16.mxu1 %v17716_v24  ;;  %v12065_v31 = vshrl.u32 %v11977_v23, 16 }
 0x6c3   : > { %v12067_v42 = vrot.slane %v12065_v31, 4 }
 0x6c4   : > { %16631 = vmatpush3.bf16.msra.mxu1 %v17716_v24  ;;  %v12000_v24 = vrot.slane %v11999_v58, 4  ;;  %v21220_v58 = vld [vmem:[#allocation3 + $0x98] sm:$0x1] }
 0x6c5   : > { %16632 = vmatprep.subr.bf16.mxu1 %v17717_v57  ;;  %v12084_v56 = vshll.u32 %v21220_v58, 16 }
 0x6c7   : > { %16617 = vmatmul.mubr.bf16.gmra.mrb[56].mxu1 %v21995_v15  ;;  %v12043_v15 = vrot.slane %v12041_v34, 4  ;;  %v12086_v27 = vrot.slane %v12084_v56, 5 }
 0x6c8   : > { %16633 = vmatpush3.bf16.msra.mxu1 %v17717_v57  ;;  %16620 = vmatprep.mubr.bf16.mxu1 %v21998_v52  ;;  %v12056_v57 = vrot.slane %v12054_v48, 4  ;;  %v17734_v52 = vld [vmem:[#allocation4 + $0x370] sm:$0xff]  }
 0x6c9   : > { %16634 = vmatprep.subr.bf16.mxu1 %v17718_v9  ;;  %v12047_v7 = vor.u32 %v12046_v43, %v12043_v15  ;;  %v12113_v15 = vshrl.u32 %v11983_v36, 16  ;;  %v12116_v43 = vshll.u32 %v11983_v36, 16 }
 0x6ca   : > { %v12057_v21 = vor.u32 %v12056_v57, %v21190_v63 }
 0x6cb   : > { %v12048_v10 = vrot.slane %v12047_v7, 4  ;;  %v12115_v7 = vrot.slane %v12113_v15, 4 }
 0x6cc   : > { %16635 = vmatpush3.bf16.msra.mxu1 %v17718_v9  ;;  %v21192_v9 = vld [vmem:[#allocation3 + $0x94] sm:$0xf]  ;;  %v12058_v33 = vrot.slane %v12057_v21, 4 }
 0x6cd   : > { %16636 = vmatprep.subr.bf16.mxu1 %v17719_v0  ;;  %v12053_v57 = vsel %vm17978_vm11, %v12048_v10, %v21190_v63  ;;  %v21241_v63 = vld [vmem:[#allocation3 + $0xb0] sm:$0x1] }
 0x6cf   : > { %16621 = vmatmul.mubr.bf16.gmra.mrb[60].mxu1 %v22001_v53  ;;  %v12068_v53 = vshll.u32 %v11977_v23, 16 }
 0x6d0   : > { %16637 = vmatpush3.bf16.msra.mxu1 %v17719_v0  ;;  %16640 = vmatprep.mubr.bf16.mxu1 %v17720_v30  ;;  %v12015_v0 = vsel %vm17978_vm11, %v12010_v17, %v12014_v26  ;;  %v12038_v30 = vrot.slane %v12036_v4, 5  ;;  %v21225_v17 = vld [vmem:[#allocation3 + $0xa4] sm:$0x1]  ;;  %v11986_v4 = vld [vmem:[#allocation3 + $0xb4] sm:$0xf]  ;;  %v12150_v26 = vshrl.u32 %v21222_v8, 16 }
 0x6d1   : > { %16638 = vmatprep.subr.bf16.mxu1 %v17721_v6  ;;  %v12140_v31 = vshll.u32 %v11986_v4, 16 }
 0x6d4   : > { %16639 = vmatpush3.bf16.msra.mxu1 %v17721_v6  ;;  %v12034_v6 = vrot.slane %v12033_v61, 4  ;;  %v12122_v61 = vshll.u32 %v21215_v20, 16 }
 0x6d5   : > { %16656 = vmatprep.subr.bf16.mxu1 %v17722_v39 }
 0x6d7   : > { %16641 = vmatmul.mubr.bf16.vlgmr.msra.gmra.mrb[48].mxu1 %v17723_v14  ;;  %v12078_v14 = vshrl.u32 %v21192_v9, 16 }
 0x6d8   : > { %16657 = vmatpush3.bf16.msra.mxu1 %v17722_v39  ;;  %16644 = vmatprep.mubr.bf16.mxu1 %v17724_v1  ;;  %v12074_v39 = vshll.u32 %v21192_v9, 16  ;;  %v12005_v1 = vsel %vm17978_vm11, %v12000_v24, %v21172_v18  ;;  %v12146_v24 = vshll.u32 %v21222_v8, 16 }
 0x6d9   : > { %16658 = vmatprep.subr.bf16.mxu1 %v17725_v50  ;;  %v14740_v40 = vcombine.low %v12005_v1, %v12015_v0  ;;  %v12080_v46 = vrot.slane %v12078_v14, 4  ;;  %v21239_v14 = vrot.slane %v12122_v61, 5  ;;  %v17740_v61 = vld [vmem:[#allocation4 + $0x398] sm:$0xff]  }
 0x6da   : > { %v21211_v35 = vrot.slane %v12074_v39, 5 }
 0x6dc   : > { %16659 = vmatpush3.bf16.msra.mxu1 %v17725_v50  ;;  %v11980_v50 = vld [vmem:[#allocation3 + $0x9c] sm:$0xf] }
 0x6dd   : > { %16660 = vmatprep.subr.bf16.mxu1 %v17726_v45  ;;  %v12089_v3 = vshrl.u32 %v11980_v50, 16  ;;  %v12092_v18 = vshll.u32 %v11980_v50, 16  ;;  %v12128_v50 = vrot.slane %v12126_v16, 4 }
 0x6df   : > { %16645 = vmatmul.mubr.bf16.gmra.mrb[52].mxu1 %v17727_v49  ;;  %v17736_v49 = vld [vmem:[#allocation4 + $0x378] sm:$0xff]   ;;  %v12091_v41 = vrot.slane %v12089_v3, 4  ;;  %v12094_v34 = vrot.slane %v12092_v18, 5 }
 0x6e0   : > { %16661 = vmatpush3.bf16.msra.mxu1 %v17726_v45  ;;  %16648 = vmatprep.mubr.bf16.mxu1 %v17728_v37  ;;  %v12098_v45 = vshll.u32 %v21194_v47, 16  ;;  %v12070_v37 = vrot.slane %v12068_v53, 5 }
 0x6e1   : > { %16662 = vmatprep.subr.bf16.mxu1 %v17729_v25  ;;  %v12095_v0 = vor.u32 %v12094_v34, %v12091_v41  ;;  %v12132_v41 = vshll.u32 %v21241_v63, 16 }
 0x6e2   : > { %v21213_v5 = vrot.slane %v12098_v45, 5  ;;  %v21243_v45 = vrot.slane %v12146_v24, 5 }
 0x6e3   : > { %v12096_v12 = vrot.slane %v12095_v0, 4  ;;  %v12134_v56 = vrot.slane %v12132_v41, 5 }
 0x6e4   : > { %16663 = vmatpush3.bf16.msra.mxu1 %v17729_v25  ;;  %v12039_v25 = vsel %vm17978_vm11, %v12034_v6, %v12038_v30  ;;  %v12108_v6 = vshll.u32 %v21225_v17, 16  ;;  %v12137_v30 = vshrl.u32 %v11986_v4, 16 }
 0x6e5   : > { %16664 = vmatprep.subr.bf16.mxu1 %v17730_v28  ;;  %v14741_v48 = vcombine.low %v12029_v44, %v12039_v25  ;;  %v17739_v25 = vld [vmem:[#allocation4 + $0x390] sm:$0xff]  }
 0x6e6   : > { %v12110_v3 = vrot.slane %v12108_v6, 5  ;;  %v12139_v18 = vrot.slane %v12137_v30, 4  ;;  %v21265_v6 = vld [vmem:[#allocation3 + $0xc8] sm:$0x1] }
 0x6e7   : > { %16649 = vmatmul.mubr.bf16.gmra.mrb[56].mxu1 %v17731_v19  ;;  %v12071_v19 = vor.u32 %v12070_v37, %v12067_v42  ;;  %v12142_v42 = vrot.slane %v12140_v31, 5 }
 0x6e8   : > { %16665 = vmatpush3.bf16.msra.mxu1 %v17730_v28  ;;  %16652 = vmatprep.mubr.bf16.mxu1 %v17732_v62  ;;  %v12104_v28 = vrot.slane %v12102_v32, 4  ;;  %v12063_v62 = vsel %vm17978_vm11, %v12058_v33, %v12062_v60  ;;  %v12152_v32 = vrot.slane %v12150_v26, 4  ;;  %v21250_v33 = vld [vmem:[#allocation3 + $0xbc] sm:$0x1] }
 0x6e9   : > { %16666 = vmatprep.subr.bf16.mxu1 %v17733_v22  ;;  %v14742_v53 = vcombine.low %v12053_v57, %v12063_v62  ;;  %v12072_v1 = vrot.slane %v12071_v19, 4  ;;  %v12143_v16 = vor.u32 %v12142_v42, %v12139_v18  ;;  %v12430_v18 = vrot.slane %v21176_v54, 5 }
 0x6ea   : > { %v12105_v23 = vor.u32 %v12104_v28, %v21213_v5 }
 0x6eb   : > { %v12077_v10 = vsel %vm17978_vm11, %v12072_v1, %v21211_v35  ;;  %v12144_v0 = vrot.slane %v12143_v16, 4  ;;  %v12444_v16 = vrot.slane %v21198_v59, 5 }
 0x6ec   : > { %16667 = vmatpush3.bf16.msra.mxu1 %v17733_v22  ;;  %v12081_v22 = vor.u32 %v12080_v46, %v21211_v35  ;;  %v12106_v21 = vrot.slane %v12105_v23, 4  ;;  %v12129_v46 = vor.u32 %v12128_v50, %v21239_v14  ;;  %v12156_v35 = vshll.u32 %v21250_v33, 16 }
 0x6ed   : > { %16668 = vmatprep.subr.bf16.mxu1 %v17734_v52 }
 0x6ee   : > { %v12082_v39 = vrot.slane %v12081_v22, 4  ;;  %v12101_v22 = vsel %vm17978_vm11, %v12096_v12, %v21213_v5  ;;  %v12130_v62 = vrot.slane %v12129_v46, 4  ;;  %v12158_v5 = vrot.slane %v12156_v35, 5 }
 0x6ef   : > { %16653 = vmatmul.mubr.bf16.gmra.mrb[60].mxu1 %v17735_v38  ;;  %v12118_v38 = vrot.slane %v12116_v43, 5 }
 0x6f0   : > { %16669 = vmatpush3.bf16.msra.mxu1 %v17734_v52  ;;  %16672 = vmatprep.mubr.bf16.mxu1 %v14740_v40  ;;  %v17738_v52 = vld [vmem:[#allocation4 + $0x388] sm:$0xff]   ;;  %v12087_v37 = vsel %vm17978_vm11, %v12082_v39, %v12086_v27  ;;  %v12135_v30 = vsel %vm17978_vm11, %v12130_v62, %v12134_v56  ;;  %v12427_v39 = vrot.slane %v21166_v55, 5  ;;  %v12149_v27 = vsel %vm17978_vm11, %v12144_v0, %v21243_v45  ;;  %v17780_v0 = vld [vmem:[%s21603_s2 + $0x58] sm:$0xff]  }
 0x6f1   : > { %16670 = vmatprep.subr.bf16.mxu1 %v17736_v49  ;;  %v21245_v40 = vld [vmem:[#allocation3 + $0xc4] sm:$0xf]  ;;  %v12119_v60 = vor.u32 %v12118_v38, %v12115_v7  ;;  %v14743_v19 = vcombine.low %v12077_v10, %v12087_v37  ;;  %v12434_v37 = vrot.slane %v21170_v11, 5  ;;  %v12394_v11 = vld [vmem:[#allocation3 + $0x78] sm:$0xe]  ;;  %v12448_v62 = vrot.slane %v21192_v9, 5 }
 0x6f2   : > { %v12170_v28 = vshll.u32 %v21245_v40, 16  ;;  %v12174_v44 = vshrl.u32 %v21245_v40, 16  ;;  %v17742_v7 = vld [vmem:[#allocation4 + $0x3a8] sm:$0xff]   ;;  %v14757_v35 = vrot.slane %v12394_v11, 9  ;;  %v17751_v11 = vld [vmem:[#allocation4 + $0x3f0] sm:$0xff]  }
 0x6f3   : > { %v12120_v57 = vrot.slane %v12119_v60, 4  ;;  %v12436_v41 = vrot.slane %v12434_v37, 4  ;;  %v17746_v56 = vld [vmem:[#allocation4 + $0x3c8] sm:$0xff]  }
 0x6f4   : > { %16671 = vmatpush3.bf16.msra.mxu1 %v17736_v49  ;;  %v11989_v49 = vld [vmem:[#allocation3 + $0xc0] sm:$0xf]  ;;  %v12172_v23 = vrot.slane %v12170_v28, 5  ;;  %v12176_v24 = vrot.slane %v12174_v44, 4  ;;  %v12441_v44 = vrot.slane %v21178_v29, 5  ;;  %v17778_v29 = vld [vmem:[%s21603_s2 + $0x48] sm:$0xff]   ;;  %v12435_v59 = vsel %vm17970_vm10, %v14757_v35, %v12434_v37 }
 0x6f5   : > { %16688 = vmatprep.subr.bf16.mxu1 %v17737_v13  ;;  %v12161_v34 = vshrl.u32 %v11989_v49, 16  ;;  %v12164_v36 = vshll.u32 %v11989_v49, 16  ;;  %v12125_v50 = vsel %vm17978_vm11, %v12120_v57, %v21239_v14  ;;  %v17743_v14 = vld [vmem:[#allocation4 + $0x3b0] sm:$0xff]  }
 0x6f6   : > { %v12177_v31 = vor.u32 %v12176_v24, %v12172_v23 }
 0x6f7   : > { %16673 = vmatmul.mubr.bf16.vlgmr.msra.gmra.mrb[48].mxu1 %v14741_v48  ;;  %v12153_v48 = vor.u32 %v12152_v32, %v21243_v45  ;;  %v12163_v15 = vrot.slane %v12161_v34, 4  ;;  %v12166_v43 = vrot.slane %v12164_v36, 5  ;;  %v14745_v32 = vcombine.low %v12125_v50, %v12135_v30  ;;  %v17777_v36 = vld [vmem:[%s21603_s2 + $0x40] sm:$0xff]   ;;  %v12397_v30 = vld [vmem:[#allocation3 + $0x9c] sm:$0xe] }
 0x6f8   : > { %16689 = vmatpush3.bf16.msra.mxu1 %v17737_v13  ;;  %16676 = vmatprep.mubr.bf16.mxu1 %v14742_v53  ;;  %v12111_v13 = vsel %vm17978_vm11, %v12106_v21, %v12110_v3  ;;  %v12180_v21 = vshll.u32 %v21265_v6, 16  ;;  %v12178_v49 = vrot.slane %v12177_v31, 4  ;;  %v12393_v3 = vld [vmem:[#allocation3 + $0x6c] sm:$0xe]  ;;  %v12443_v34 = vrot.slane %v12441_v44, 4 }
 0x6f9   : > { %16690 = vmatprep.subr.bf16.mxu1 %v17738_v52  ;;  %v14744_v4 = vcombine.low %v12101_v22, %v12111_v13  ;;  %v12154_v26 = vrot.slane %v12153_v48, 4  ;;  %v12167_v1 = vor.u32 %v12166_v43, %v12163_v15  ;;  %v14756_v45 = vrot.slane %v12393_v3, 9  ;;  %v17744_v48 = vld [vmem:[#allocation4 + $0x3b8] sm:$0xff]   ;;  %v12395_v22 = vld [vmem:[#allocation3 + $0x84] sm:$0xe]  ;;  %16816 = vmatprep.subr.bf16.mxu0 %v17777_v36  ;;  %v17747_v31 = vld [vmem:[#allocation4 + $0x3d0] sm:$0xff]  }
 0x6fa   : > { %v12182_v12 = vrot.slane %v12180_v21, 5  ;;  %16817 = vmatpush3.bf16.msra.mxu0 %v17777_v36  ;;  %v12445_v24 = vsel %vm17970_vm10, %v12443_v34, %v12444_v16  ;;  %v12450_v43 = vrot.slane %v12448_v62, 4  ;;  %v14760_v21 = vrot.slane %v12397_v30, 9  ;;  %v10774_v36 = vld [vmem:[#allocation2 + $0x10] sm:$0xff]  ;;  %v10772_v16 = vld [vmem:[#allocation2] sm:$0xff] }
 0x6fb   : > { %v12159_v53 = vsel %vm17978_vm11, %v12154_v26, %v12158_v5  ;;  %v12168_v55 = vrot.slane %v12167_v1, 4  ;;  %v12428_v54 = vsel %vm17970_vm10, %v14756_v45, %v12427_v39  ;;  %v12455_v26 = vrot.slane %v21194_v47, 5  ;;  %16818 = vmatprep.subr.bf16.mxu0 %v17778_v29  ;;  %v12396_v47 = vld [vmem:[#allocation3 + $0x90] sm:$0xe] }
 0x6fc   : > { %16691 = vmatpush3.bf16.msra.mxu1 %v17738_v52  ;;  %v17741_v52 = vld [vmem:[#allocation4 + $0x3a0] sm:$0xff]   ;;  %v14746_v38 = vcombine.low %v12149_v27, %v12159_v53  ;;  %v12183_v42 = vsel %vm17978_vm11, %v12178_v49, %v12182_v12  ;;  %v12451_v5 = vrot.slane %v21220_v58, 5  ;;  %v12458_v53 = vrot.slane %v21225_v17, 5  ;;  %v17781_v58 = vld [vmem:[%s21603_s2 + $0x60] sm:$0xff]   ;;  %v17782_v12 = vld [vmem:[%s21603_s2 + $0x68] sm:$0xff]  }
 0x6fd   : > { %16692 = vmatprep.subr.bf16.mxu1 %v17739_v25  ;;  %v12173_v10 = vsel %vm17978_vm11, %v12168_v55, %v12172_v23  ;;  %v14758_v23 = vrot.slane %v12395_v22, 9  ;;  %v12462_v1 = vrot.slane %v21215_v20, 5  ;;  %v12469_v27 = vrot.slane %v21222_v8, 5  ;;  %v12398_v8 = vld [vmem:[#allocation3 + $0xa8] sm:$0xe] }
 0x6fe   : > { %v14747_v13 = vcombine.low %v12173_v10, %v12183_v42  ;;  %16819 = vmatpush3.bf16.msra.mxu0 %v17778_v29  ;;  %v12452_v50 = vsel %vm17970_vm10, %v12450_v43, %v12451_v5  ;;  %v12456_v20 = vsel %vm17970_vm10, %v14760_v21, %v12455_v26  ;;  %v12465_v3 = vrot.slane %v21241_v63, 5  ;;  %v10778_v5 = vld [vmem:[#allocation2 + $0x30] sm:$0xff]  ;;  %v10777_v21 = vld [vmem:[#allocation2 + $0x28] sm:$0xff] }
 0x6ff   : > { %16677 = vmatmul.mubr.bf16.gmra.mrb[52].mxu1 %v14743_v19  ;;  %v12437_v19 = vrot.slane %v21183_v2, 5  ;;  %v17779_v2 = vld [vmem:[%s21603_s2 + $0x50] sm:$0xff]   ;;  %v12442_v9 = vsel %vm17970_vm10, %v14758_v23, %v12441_v44  ;;  %v12471_v55 = vrot.slane %v12469_v27, 4  ;;  %v12472_v42 = vrot.slane %v21250_v33, 5 }
 0x700   : > { %16693 = vmatpush3.bf16.msra.mxu1 %v17739_v25  ;;  %16680 = vmatprep.mubr.bf16.mxu1 %v14744_v4  ;;  %v12429_v25 = vrot.slane %v12427_v39, 4  ;;  %v14766_v15 = vcombine.low %v12442_v9, %v12445_v24  ;;  %v14759_v39 = vrot.slane %v12396_v47, 9  ;;  %v14761_v37 = vrot.slane %v12398_v8, 9  ;;  %v21363_v8 = vld [vmem:[#allocation3 + $0x7c] sm:$0xf] }
 0x701   : > { %16694 = vmatprep.subr.bf16.mxu1 %v17740_v61  ;;  %v12438_v4 = vsel %vm17970_vm10, %v12436_v41, %v12437_v19  ;;  %16820 = vmatprep.subr.bf16.mxu0 %v17779_v2  ;;  %v12473_v10 = vsel %vm17970_vm10, %v12471_v55, %v12472_v42  ;;  %v12479_v41 = vrot.slane %v21265_v6, 5  ;;  %v12965_v42 = vshll.u32 %v21363_v8, 16 }
 0x702   : > { %v12431_v28 = vsel %vm17970_vm10, %v12429_v25, %v12430_v18  ;;  %v14765_v57 = vcombine.low %v12435_v59, %v12438_v4  ;;  %16821 = vmatpush3.bf16.msra.mxu0 %v17779_v2  ;;  %v12449_v17 = vsel %vm17970_vm10, %v14759_v39, %v12448_v62  ;;  %v12464_v25 = vrot.slane %v12462_v1, 4  ;;  %v17749_v18 = vld [vmem:[#allocation4 + $0x3e0] sm:$0xff]   ;;  %v10773_v2 = vld [vmem:[#allocation2 + $0x8] sm:$0xff] }
 0x703   : > { %v14764_v60 = vcombine.low %v12428_v54, %v12431_v28  ;;  %16822 = vmatprep.subr.bf16.mxu0 %v17780_v0  ;;  %v12476_v28 = vrot.slane %v21245_v40, 5  ;;  %v12463_v63 = vsel %vm17970_vm10, %v14761_v37, %v12462_v1  ;;  %v17750_v54 = vld [vmem:[#allocation4 + $0x3e8] sm:$0xff]   ;;  %v10775_v4 = vld [vmem:[#allocation2 + $0x18] sm:$0xff]  ;;  %v12969_v37 = vshrl.u32 %v21363_v8, 16 }
 0x704   : > { %16695 = vmatpush3.bf16.msra.mxu1 %v17740_v61  ;;  %v17745_v61 = vld [vmem:[#allocation4 + $0x3c0] sm:$0xff]   ;;  %v12466_v45 = vsel %vm17970_vm10, %v12464_v25, %v12465_v3  ;;  %v12400_v40 = vld [vmem:[#allocation3 + $0xc0] sm:$0xe]  ;;  %v17756_v25 = vld [vmem:[#allocation3 + $0x90] sm:$0xff]  }
 0x705   : > { %16696 = vmatprep.subr.bf16.mxu1 %v17741_v52  ;;  %v14763_v29 = vrot.slane %v12400_v40, 9  ;;  %v10779_v1 = vld [vmem:[#allocation2 + $0x38] sm:$0xff]  ;;  %v10781_v40 = vld [vmem:[#allocation2 + $0x48] sm:$0xff] }
 0x706   : > { %16823 = vmatpush3.bf16.msra.mxu0 %v17780_v0 }
 0x707   : > { %16681 = vmatmul.mubr.bf16.gmra.mrb[56].mxu1 %v14745_v32  ;;  %16824 = vmatprep.subr.bf16.mxu0 %v17781_v58  ;;  %v12477_v62 = vsel %vm17970_vm10, %v14763_v29, %v12476_v28 }
 0x708   : > { %16697 = vmatpush3.bf16.msra.mxu1 %v17741_v52  ;;  %16684 = vmatprep.mubr.bf16.mxu1 %v14746_v38  ;;  %v12457_v52 = vrot.slane %v12455_v26, 4  ;;  %v17748_v38 = vld [vmem:[#allocation4 + $0x3d8] sm:$0xff]  }
 0x709   : > { %16698 = vmatprep.subr.bf16.mxu1 %v17742_v7 }
 0x70a   : > { %v12459_v32 = vsel %vm17970_vm10, %v12457_v52, %v12458_v53  ;;  %16825 = vmatpush3.bf16.msra.mxu0 %v17781_v58  ;;  %v17754_v52 = vld [vmem:[#allocation4 + $0x400] sm:$0xff]   ;;  %v10776_v53 = vld [vmem:[#allocation2 + $0x20] sm:$0xff] }
 0x70b   : > { %v14768_v49 = vcombine.low %v12456_v20, %v12459_v32  ;;  %16826 = vmatprep.subr.bf16.mxu0 %v17782_v12  ;;  %v12931_v20 = vld [vmem:[#allocation3 + $0x78] sm:$0xf] }
 0x70c   : > { %16699 = vmatpush3.bf16.msra.mxu1 %v17742_v7  ;;  %v14767_v7 = vcombine.low %v12449_v17, %v12452_v50  ;;  %v17755_v17 = vld [vmem:[#allocation3 + $0x84] sm:$0xff]   ;;  %v12956_v3 = vshrl.u32 %v12931_v20, 16 }
 0x70d   : > { %16700 = vmatprep.subr.bf16.mxu1 %v17743_v14 }
 0x70e   : > { %16827 = vmatpush3.bf16.msra.mxu0 %v17782_v12 }
 0x70f   : > { %16685 = vmatmul.mubr.bf16.gmra.mrb[60].mxu1 %v14747_v13  ;;  %v14769_v13 = vcombine.low %v12463_v63, %v12466_v45 }
 0x710   : > { %16701 = vmatpush3.bf16.msra.mxu1 %v17743_v14  ;;  %16704 = vmatprep.mubr.bf16.mxu1 %v14764_v60  ;;  %v12399_v14 = vld [vmem:[#allocation3 + $0xb4] sm:$0xe]  ;;  %v12478_v60 = vrot.slane %v12476_v28, 4 }
 0x711   : > { %16702 = vmatprep.subr.bf16.mxu1 %v17744_v48  ;;  %v14762_v44 = vrot.slane %v12399_v14, 9  ;;  %v12959_v14 = vshll.u32 %v12931_v20, 16  ;;  %v10782_v28 = vld [vmem:[#allocation2 + $0x50] sm:$0xff] }
 0x712   : > { %v12480_v19 = vsel %vm17970_vm10, %v12478_v60, %v12479_v41  ;;  %v21377_v41 = vrot.slane %v12956_v3, 4 }
 0x713   : > { %v12470_v33 = vsel %vm17970_vm10, %v14762_v44, %v12469_v27  ;;  %v14771_v59 = vcombine.low %v12477_v62, %v12480_v19  ;;  %v10780_v44 = vld [vmem:[#allocation2 + $0x40] sm:$0xff]  ;;  %v17760_v62 = vld [vmem:[#allocation3 + $0xa8] sm:$0xff]  }
 0x714   : > { %16703 = vmatpush3.bf16.msra.mxu1 %v17744_v48  ;;  %v14770_v48 = vcombine.low %v12470_v33, %v12473_v10  ;;  %v12934_v33 = vld [vmem:[#allocation3 + $0x84] sm:$0xf] }
 0x715   : > { %16720 = vmatprep.subr.bf16.mxu1 %v17745_v61 }
 0x717   : > { %16705 = vmatmul.mubr.bf16.vlgmr.msra.gmra.mrb[48].mxu1 %v14765_v57  ;;  %v17753_v57 = vld [vmem:[#allocation4 + $0x3f8] sm:$0xff]  }
 0x718   : > { %16721 = vmatpush3.bf16.msra.mxu1 %v17745_v61  ;;  %16708 = vmatprep.mubr.bf16.mxu1 %v14766_v15  ;;  %v17752_v15 = vld [vmem:[#allocation3 + $0x78] sm:$0xff]  }
 0x719   : > { %16722 = vmatprep.subr.bf16.mxu1 %v17746_v56 }
 0x71c   : > { %16723 = vmatpush3.bf16.msra.mxu1 %v17746_v56 }
 0x71d   : > { %16724 = vmatprep.subr.bf16.mxu1 %v17747_v31 }
 0x71f   : > { %16709 = vmatmul.mubr.bf16.gmra.mrb[52].mxu1 %v14767_v7  ;;  %v17757_v7 = vld [vmem:[#allocation4 + $0x408] sm:$0xff]  }
 0x720   : > { %16725 = vmatpush3.bf16.msra.mxu1 %v17747_v31  ;;  %16712 = vmatprep.mubr.bf16.mxu1 %v14768_v49 }
 0x721   : > { %16726 = vmatprep.subr.bf16.mxu1 %v17748_v38 }
 0x724   : > { %16727 = vmatpush3.bf16.msra.mxu1 %v17748_v38 }
 0x725   : > { %16728 = vmatprep.subr.bf16.mxu1 %v17749_v18 }
 0x727   : > { %16713 = vmatmul.mubr.bf16.gmra.mrb[56].mxu1 %v14769_v13  ;;  %v10783_v13 = vld [vmem:[#allocation2 + $0x58] sm:$0xff] }
 0x728   : > { %16729 = vmatpush3.bf16.msra.mxu1 %v17749_v18  ;;  %16716 = vmatprep.mubr.bf16.mxu1 %v14770_v48  ;;  %v17758_v18 = vld [vmem:[#allocation4 + $0x410] sm:$0xff]  }
 0x729   : > { %16730 = vmatprep.subr.bf16.mxu1 %v17750_v54 }
 0x72a   : > { %v16514_v34 = vpop.f32.mrb[32].mxu1 }
 0x72b   : > { %v10790_v22 = vadd.f32 %v16514_v34, %v10774_v36  ;;  %v10709_v61 = vpop.f32.mrb[33].mxu1  ;;  %v12937_v34 = vld [vmem:[#allocation3 + $0x90] sm:$0xf] }
 0x72c   : > { %v10788_v35 = vadd.f32 %v10772_v16, %v10709_v61  ;;  %16731 = vmatpush3.bf16.msra.mxu1 %v17750_v54  ;;  %v16515_v6 = vpop.f32.mrb[34].mxu1  ;;  %v21375_v54 = vld [vmem:[#allocation3 + $0x88] sm:$0xf]  ;;  %v17761_v61 = vld [vmem:[#allocation4 + $0x418] sm:$0xff]   ;;  %v21381_v16 = vrot.slane %v12965_v42, 5 }
 0x72d   : > { %10806 = vst [vmem:[#allocation2 + $0x10] sm:$0xff] %v10790_v22  ;;  %v13920_v23 = vmax.f32 %v10790_v22, 0.0  ;;  %v10791_v24 = vadd.f32 %v16515_v6, %v10775_v4  ;;  %v10712_v26 = vpop.f32.mrb[35].mxu1  ;;  %16732 = vmatprep.subr.bf16.mxu1 %v17751_v11  ;;  %v17759_v22 = vld [vmem:[#allocation3 + $0x9c] sm:$0xff]   ;;  %v17763_v42 = vld [vmem:[#allocation3 + $0xb4] sm:$0xff]  }
 0x72e   : > { %10804 = vst [vmem:[#allocation2] sm:$0xff] %v10788_v35  ;;  %v13918_v9 = vmax.f32 %v10788_v35, 0.0  ;;  %v10789_v56 = vadd.f32 %v10773_v2, %v10712_v26  ;;  %v12971_v35 = vrot.slane %v12969_v37, 4  ;;  %v12983_v2 = vshll.u32 %v12934_v33, 16  ;;  %v17765_v37 = vld [vmem:[#allocation4 + $0x428] sm:$0xff]  }
 0x72f   : > { %13952 = vst.msk [vmem:[%s21351_s23 + $0x10] sm:$0xff] %vm371_vm5, %v13920_v23  ;;  %10807 = vst [vmem:[#allocation2 + $0x18] sm:$0xff] %v10791_v24  ;;  %v13921_v43 = vmax.f32 %v10791_v24, 0.0  ;;  %16717 = vmatmul.mubr.bf16.gmra.mrb[60].mxu1 %v14771_v59  ;;  %v21383_v23 = vld [vmem:[#allocation3 + $0x80] sm:$0x1]  ;;  %v12980_v24 = vshrl.u32 %v12934_v33, 16 }
 0x730   : > { %13950 = vst.msk [vmem:[%s21351_s23] sm:$0xff] %vm371_vm5, %v13918_v9  ;;  %10805 = vst [vmem:[#allocation2 + $0x8] sm:$0xff] %v10789_v56  ;;  %v13919_v47 = vmax.f32 %v10789_v56, 0.0  ;;  %16733 = vmatpush3.bf16.msra.mxu1 %v17751_v11  ;;  %16736 = vmatprep.mubr.bf16.mxu1 %v17752_v15  ;;  %v21379_v11 = vrot.slane %v12959_v14, 5  ;;  %v12989_v59 = vshll.u32 %v21375_v54, 16  ;;  %v13004_v15 = vshrl.u32 %v12937_v34, 16 }
 0x731   : > { %13953 = vst.msk [vmem:[%s21351_s23 + $0x18] sm:$0xff] %vm371_vm5, %v13921_v43  ;;  %16734 = vmatprep.subr.bf16.mxu1 %v17753_v57  ;;  %v21389_v9 = vld [vmem:[#allocation3 + $0x94] sm:$0xf]  ;;  %v13007_v43 = vshll.u32 %v12937_v34, 16 }
 0x732   : > { %13951 = vst.msk [vmem:[%s21351_s23 + $0x8] sm:$0xff] %vm371_vm5, %v13919_v47  ;;  %v16518_v0 = vpop.f32.mrb[36].mxu1  ;;  %v17762_v47 = vld [vmem:[#allocation4 + $0x420] sm:$0xff]  }
 0x733   : > { %v10794_v30 = vadd.f32 %v16518_v0, %v10778_v5  ;;  %v10725_v31 = vpop.f32.mrb[37].mxu1  ;;  %v12972_v0 = vor.u32 %v12971_v35, %v21381_v16  ;;  %v21421_v35 = vld [vmem:[#allocation3 + $0xac] sm:$0xf] }
 0x734   : > { %v10792_v39 = vadd.f32 %v10776_v53, %v10725_v31  ;;  %16735 = vmatpush3.bf16.msra.mxu1 %v17753_v57  ;;  %v16519_v50 = vpop.f32.mrb[38].mxu1  ;;  %v12993_v57 = vshrl.u32 %v21375_v54, 16  ;;  %v12975_v31 = vshll.u32 %v21383_v23, 16  ;;  %v21401_v53 = vrot.slane %v12980_v24, 4 }
 0x735   : > { %10810 = vst [vmem:[#allocation2 + $0x30] sm:$0xff] %v10794_v30  ;;  %v13924_v32 = vmax.f32 %v10794_v30, 0.0  ;;  %v10795_v27 = vadd.f32 %v16519_v50, %v10779_v1  ;;  %v10728_v58 = vpop.f32.mrb[39].mxu1  ;;  %16752 = vmatprep.subr.bf16.mxu1 %v17754_v52  ;;  %v10786_v30 = vld [vmem:[#allocation2 + $0x70] sm:$0xff]  ;;  %v13017_v50 = vshrl.u32 %v21389_v9, 16 }
 0x736   : > { %10808 = vst [vmem:[#allocation2 + $0x20] sm:$0xff] %v10792_v39  ;;  %v13922_v38 = vmax.f32 %v10792_v39, 0.0  ;;  %v10793_v49 = vadd.f32 %v10777_v21, %v10728_v58  ;;  %v13013_v39 = vshll.u32 %v21389_v9, 16  ;;  %v12985_v58 = vrot.slane %v12983_v2, 5 }
 0x737   : > { %13956 = vst.msk [vmem:[%s21351_s23 + $0x30] sm:$0xff] %vm371_vm5, %v13924_v32  ;;  %10811 = vst [vmem:[#allocation2 + $0x38] sm:$0xff] %v10795_v27  ;;  %v13925_v55 = vmax.f32 %v10795_v27, 0.0  ;;  %16737 = vmatmul.mubr.bf16.vlgmr.msra.gmra.mrb[48].mxu1 %v17755_v17  ;;  %v10784_v32 = vld [vmem:[#allocation2 + $0x60] sm:$0xff]  ;;  %v10787_v27 = vld [vmem:[#allocation2 + $0x78] sm:$0xff]  ;;  %v21405_v17 = vrot.slane %v12989_v59, 5 }
 0x738   : > { %13954 = vst.msk [vmem:[%s21351_s23 + $0x20] sm:$0xff] %vm371_vm5, %v13922_v38  ;;  %10809 = vst [vmem:[#allocation2 + $0x28] sm:$0xff] %v10793_v49  ;;  %v13923_v12 = vmax.f32 %v10793_v49, 0.0  ;;  %16753 = vmatpush3.bf16.msra.mxu1 %v17754_v52  ;;  %16740 = vmatprep.mubr.bf16.mxu1 %v17756_v25  ;;  %v12962_v52 = vor.u32 %v21379_v11, %v21377_v41  ;;  %v10785_v49 = vld [vmem:[#allocation2 + $0x68] sm:$0xff]  ;;  %v13006_v25 = vrot.slane %v13004_v15, 4  ;;  %v13019_v33 = vrot.slane %v13017_v50, 4 }
 0x739   : > { %13957 = vst.msk [vmem:[%s21351_s23 + $0x38] sm:$0xff] %vm371_vm5, %v13925_v55  ;;  %16754 = vmatprep.subr.bf16.mxu1 %v17757_v7  ;;  %v13009_v55 = vrot.slane %v13007_v43, 5  ;;  %v21413_v41 = vld [vmem:[#allocation3 + $0x8c] sm:$0x1]  ;;  %v12986_v11 = vor.u32 %v12985_v58, %v21401_v53  ;;  %v17768_v53 = vld [vmem:[#allocation4 + $0x438] sm:$0xff]  }
 0x73a   : > { %13955 = vst.msk [vmem:[%s21351_s23 + $0x28] sm:$0xff] %vm371_vm5, %v13923_v12  ;;  %v16522_v45 = vpop.f32.mrb[40].mxu1  ;;  %v12940_v12 = vld [vmem:[#allocation3 + $0x9c] sm:$0xf]  ;;  %v12999_v2 = vshll.u32 %v21413_v41, 16 }
 0x73b   : > { %v10798_v10 = vadd.f32 %v16522_v45, %v10782_v28  ;;  %v10741_v63 = vpop.f32.mrb[41].mxu1  ;;  %v12963_v45 = vrot.slane %v12962_v52, 4  ;;  %v12973_v28 = vrot.slane %v12972_v0, 4  ;;  %v12987_v15 = vrot.slane %v12986_v11, 4 }
 0x73c   : > { %v10796_v48 = vadd.f32 %v10780_v44, %v10741_v63  ;;  %16755 = vmatpush3.bf16.msra.mxu1 %v17757_v7  ;;  %v16523_v60 = vpop.f32.mrb[42].mxu1  ;;  %v12995_v7 = vrot.slane %v12993_v57, 4  ;;  %v17764_v63 = vld [vmem:[#allocation3 + $0xc0] sm:$0xff]   ;;  %v12943_v57 = vld [vmem:[#allocation3 + $0xa8] sm:$0xf]  ;;  %v13065_v52 = vshrl.u32 %v21421_v35, 16 }
 0x73d   : > { %10814 = vst [vmem:[#allocation2 + $0x50] sm:$0xff] %v10798_v10  ;;  %v13928_v36 = vmax.f32 %v10798_v10, 0.0  ;;  %v10799_v29 = vadd.f32 %v16523_v60, %v10783_v13  ;;  %v10744_v19 = vpop.f32.mrb[43].mxu1  ;;  %16756 = vmatprep.subr.bf16.mxu1 %v17758_v18  ;;  %v21407_v13 = vrot.slane %v13013_v39, 5  ;;  %v12968_v24 = vsel %vm17978_vm11, %v12963_v45, %v21381_v16  ;;  %v21439_v16 = vld [vmem:[#allocation3 + $0xa4] sm:$0x1] }
 0x73e   : > { %10812 = vst [vmem:[#allocation2 + $0x40] sm:$0xff] %v10796_v48  ;;  %v13926_v6 = vmax.f32 %v10796_v48, 0.0  ;;  %v10797_v4 = vadd.f32 %v10781_v40, %v10744_v19  ;;  %v21409_v48 = vld [vmem:[#allocation3 + $0xa0] sm:$0xf]  ;;  %v12977_v40 = vrot.slane %v12975_v31, 5  ;;  %v12996_v34 = vor.u32 %v12995_v7, %v21405_v17 }
 0x73f   : > { %13960 = vst.msk [vmem:[%s21351_s23 + $0x50] sm:$0xff] %vm371_vm5, %v13928_v36  ;;  %10815 = vst [vmem:[#allocation2 + $0x58] sm:$0xff] %v10799_v29  ;;  %v13929_v26 = vmax.f32 %v10799_v29, 0.0  ;;  %16741 = vmatmul.mubr.bf16.gmra.mrb[52].mxu1 %v17759_v22  ;;  %v21417_v36 = vld [vmem:[#allocation3 + $0x98] sm:$0x1]  ;;  %v13010_v19 = vor.u32 %v13009_v55, %v13006_v25  ;;  %v13028_v22 = vshrl.u32 %v12940_v12, 16  ;;  %v13020_v59 = vor.u32 %v13019_v33, %v21407_v13 }
 0x740   : > { %13958 = vst.msk [vmem:[%s21351_s23 + $0x40] sm:$0xff] %vm371_vm5, %v13926_v6  ;;  %10813 = vst [vmem:[#allocation2 + $0x48] sm:$0xff] %v10797_v4  ;;  %v13927_v56 = vmax.f32 %v10797_v4, 0.0  ;;  %16757 = vmatpush3.bf16.msra.mxu1 %v17758_v18  ;;  %16744 = vmatprep.mubr.bf16.mxu1 %v17760_v62  ;;  %v17766_v6 = vld [vmem:[#allocation4 + $0x430] sm:$0xff]   ;;  %v13037_v4 = vshll.u32 %v21409_v48, 16  ;;  %v13041_v62 = vshrl.u32 %v21409_v48, 16  ;;  %v12992_v7 = vsel %vm17978_vm11, %v12987_v15, %v21405_v17 }
 0x741   : > { %13961 = vst.msk [vmem:[%s21351_s23 + $0x58] sm:$0xff] %vm371_vm5, %v13929_v26  ;;  %16758 = vmatprep.subr.bf16.mxu1 %v17761_v61  ;;  %v12978_v26 = vsel %vm17978_vm11, %v12973_v28, %v12977_v40  ;;  %v13023_v43 = vshll.u32 %v21417_v36, 16  ;;  %v12997_v0 = vrot.slane %v12996_v34, 4  ;;  %v13021_v58 = vrot.slane %v13020_v59, 4  ;;  %v21448_v25 = vld [vmem:[#allocation3 + $0xb8] sm:$0xf] }
 0x742   : > { %13959 = vst.msk [vmem:[%s21351_s23 + $0x48] sm:$0xff] %vm371_vm5, %v13927_v56  ;;  %v16526_v5 = vpop.f32.mrb[44].mxu1  ;;  %v17767_v56 = vld [vmem:[#allocation3 + $0xcc] sm:$0xff]   ;;  %v21441_v39 = vrot.slane %v13037_v4, 5  ;;  %v13043_v50 = vrot.slane %v13041_v62, 4  ;;  %v17769_v17 = vld [vmem:[#allocation4 + $0x440] sm:$0xff]  }
 0x743   : > { %v10802_v1 = vadd.f32 %v16526_v5, %v10786_v30  ;;  %v10757_v21 = vpop.f32.mrb[45].mxu1  ;;  %v13011_v5 = vrot.slane %v13010_v19, 4  ;;  %v13030_v30 = vrot.slane %v13028_v22, 4  ;;  %v13089_v40 = vshrl.u32 %v21448_v25, 16  ;;  %v12952_v59 = vld [vmem:[#allocation3 + $0xcc] sm:$0xf] }
 0x744   : > { %v10800_v20 = vadd.f32 %v10784_v32, %v10757_v21  ;;  %16759 = vmatpush3.bf16.msra.mxu1 %v17761_v61  ;;  %v16527_v38 = vpop.f32.mrb[46].mxu1  ;;  %v13031_v61 = vshll.u32 %v12940_v12, 16  ;;  %v13055_v21 = vshll.u32 %v12943_v57, 16  ;;  %v14796_v32 = vcombine.low %v12968_v24, %v12978_v26  ;;  %v17770_v24 = vld [vmem:[#allocation4 + $0x448] sm:$0xff]  }
 0x745   : > { %10818 = vst [vmem:[#allocation2 + $0x70] sm:$0xff] %v10802_v1  ;;  %v13932_v3 = vmax.f32 %v10802_v1, 0.0  ;;  %v10803_v14 = vadd.f32 %v16527_v38, %v10787_v27  ;;  %v10760_v18 = vpop.f32.mrb[47].mxu1  ;;  %16760 = vmatprep.subr.bf16.mxu1 %v17762_v47  ;;  %v13052_v1 = vshrl.u32 %v12943_v57, 16  ;;  %v13001_v27 = vrot.slane %v12999_v2, 5 }
 0x746   : > { %10816 = vst [vmem:[#allocation2 + $0x60] sm:$0xff] %v10800_v20  ;;  %v13930_v44 = vmax.f32 %v10800_v20, 0.0  ;;  %v10801_v10 = vadd.f32 %v10785_v49, %v10760_v18  ;;  %v13033_v31 = vrot.slane %v13031_v61, 5  ;;  %v13067_v38 = vrot.slane %v13065_v52, 4  ;;  %v12946_v49 = vld [vmem:[#allocation3 + $0xb4] sm:$0xf] }
 0x747   : > { %13964 = vst.msk [vmem:[%s21351_s23 + $0x70] sm:$0xff] %vm371_vm5, %v13932_v3  ;;  %10819 = vst [vmem:[#allocation2 + $0x78] sm:$0xff] %v10803_v14  ;;  %v13933_v60 = vmax.f32 %v10803_v14, 0.0  ;;  %16745 = vmatmul.mubr.bf16.gmra.mrb[56].mxu1 %v17763_v42  ;;  %v13002_v55 = vsel %vm17978_vm11, %v12997_v0, %v13001_v27  ;;  %v13025_v12 = vrot.slane %v13023_v43, 5  ;;  %v13047_v14 = vshll.u32 %v21439_v16, 16 }
 0x748   : > { %13962 = vst.msk [vmem:[%s21351_s23 + $0x60] sm:$0xff] %vm371_vm5, %v13930_v44  ;;  %10817 = vst [vmem:[#allocation2 + $0x68] sm:$0xff] %v10801_v10  ;;  %v13931_v29 = vmax.f32 %v10801_v10, 0.0  ;;  %16761 = vmatpush3.bf16.msra.mxu1 %v17762_v47  ;;  %16748 = vmatprep.mubr.bf16.mxu1 %v17764_v63  ;;  %v13061_v47 = vshll.u32 %v21421_v35, 16  ;;  %v13034_v3 = vor.u32 %v13033_v31, %v13030_v30  ;;  %v21453_v18 = vld [vmem:[#allocation3 + $0xb0] sm:$0x1] }
 0x749   : > { %13965 = vst.msk [vmem:[%s21351_s23 + $0x78] sm:$0xff] %vm371_vm5, %v13933_v60  ;;  %16762 = vmatprep.subr.bf16.mxu1 %v17765_v37  ;;  %v21455_v42 = vld [vmem:[#allocation3 + $0xc4] sm:$0xf]  ;;  %v13044_v45 = vor.u32 %v13043_v50, %v21441_v39  ;;  %v13054_v28 = vrot.slane %v13052_v1, 4  ;;  %v13057_v44 = vrot.slane %v13055_v21, 5  ;;  %v13026_v63 = vsel %vm17978_vm11, %v13021_v58, %v13025_v12 }
 0x74a   : > { %13963 = vst.msk [vmem:[%s21351_s23 + $0x68] sm:$0xff] %vm371_vm5, %v13931_v29  ;;  %v21446_v20 = vrot.slane %v13061_v47, 5  ;;  %v12949_v10 = vld [vmem:[#allocation3 + $0xc0] sm:$0xf]  ;;  %v13076_v33 = vshrl.u32 %v12946_v49, 16  ;;  %v13085_v60 = vshll.u32 %v21448_v25, 16  ;;  %v14797_v4 = vcombine.low %v12992_v7, %v13002_v55 }
 0x74b   : > { %v13079_v34 = vshll.u32 %v12946_v49, 16  ;;  %v13109_v29 = vshll.u32 %v21455_v42, 16  ;;  %v13035_v19 = vrot.slane %v13034_v3, 4  ;;  %v13049_v22 = vrot.slane %v13047_v14, 5  ;;  %v21469_v57 = vld [vmem:[#allocation3 + $0xd0] sm:$0xf] }
 0x74c   : > { %16763 = vmatpush3.bf16.msra.mxu1 %v17765_v37  ;;  %v13016_v37 = vsel %vm17978_vm11, %v13011_v5, %v21407_v13  ;;  %v13068_v11 = vor.u32 %v13067_v38, %v21446_v20  ;;  %v13113_v13 = vshrl.u32 %v21455_v42, 16  ;;  %v13071_v61 = vshll.u32 %v21453_v18, 16  ;;  %v21475_v31 = vld [vmem:[#allocation3 + $0xbc] sm:$0x1]  ;;  %v21485_v3 = vld [vmem:[#allocation3 + $0xc8] sm:$0x1] }
 0x74d   : > { %16764 = vmatprep.subr.bf16.mxu1 %v17766_v6  ;;  %v14798_v62 = vcombine.low %v13016_v37, %v13026_v63  ;;  %v13058_v26 = vor.u32 %v13057_v44, %v13054_v28  ;;  %v13103_v2 = vshll.u32 %v12949_v10, 16  ;;  %v13078_v15 = vrot.slane %v13076_v33, 4 }
 0x74e   : > { %v21471_v43 = vrot.slane %v13085_v60, 5  ;;  %v13091_v47 = vrot.slane %v13089_v40, 4  ;;  %v13069_v52 = vrot.slane %v13068_v11, 4  ;;  %v13081_v0 = vrot.slane %v13079_v34, 5  ;;  %v17772_v60 = vld [vmem:[#allocation4 + $0x458] sm:$0xff]  }
 0x74f   : > { %16749 = vmatmul.mubr.bf16.gmra.mrb[60].mxu1 %v17767_v56  ;;  %v13045_v56 = vrot.slane %v13044_v45, 4  ;;  %v21473_v5 = vrot.slane %v13109_v29, 5  ;;  %v13115_v30 = vrot.slane %v13113_v13, 4  ;;  %v13127_v50 = vshll.u32 %v12952_v59, 16  ;;  %v21495_v34 = vld [vmem:[#allocation3 + $0xd4] sm:$0x1] }
 0x750   : > { %16765 = vmatpush3.bf16.msra.mxu1 %v17766_v6  ;;  %16768 = vmatprep.mubr.bf16.mxu1 %v14796_v32  ;;  %v13100_v6 = vshrl.u32 %v12949_v10, 16  ;;  %v13133_v1 = vshll.u32 %v21469_v57, 16  ;;  %v13137_v21 = vshrl.u32 %v21469_v57, 16  ;;  %v17771_v32 = vld [vmem:[#allocation4 + $0x450] sm:$0xff]   ;;  %v13059_v27 = vrot.slane %v13058_v26, 4 }
 0x751   : > { %16766 = vmatprep.subr.bf16.mxu1 %v17768_v53  ;;  %v13073_v58 = vrot.slane %v13071_v61, 5  ;;  %v13105_v38 = vrot.slane %v13103_v2, 5  ;;  %v13040_v49 = vsel %vm17978_vm11, %v13035_v19, %v21441_v39  ;;  %v13050_v55 = vsel %vm17978_vm11, %v13045_v56, %v13049_v22 }
 0x752   : > { %v13102_v7 = vrot.slane %v13100_v6, 4  ;;  %v13092_v12 = vor.u32 %v13091_v47, %v21471_v43  ;;  %v13095_v37 = vshll.u32 %v21475_v31, 16  ;;  %v13116_v45 = vor.u32 %v13115_v30, %v21473_v5 }
 0x753   : > { %v13074_v14 = vsel %vm17978_vm11, %v13069_v52, %v13073_v58  ;;  %v13129_v44 = vrot.slane %v13127_v50, 5  ;;  %v13135_v10 = vrot.slane %v13133_v1, 5  ;;  %v13139_v39 = vrot.slane %v13137_v21, 4  ;;  %v17774_v50 = vld [vmem:[#allocation4 + $0x468] sm:$0xff]  }
 0x754   : > { %16767 = vmatpush3.bf16.msra.mxu1 %v17768_v53  ;;  %v13124_v53 = vshrl.u32 %v12952_v59, 16  ;;  %v14799_v63 = vcombine.low %v13040_v49, %v13050_v55  ;;  %v13064_v33 = vsel %vm17978_vm11, %v13059_v27, %v21446_v20  ;;  %v13106_v40 = vor.u32 %v13105_v38, %v13102_v7  ;;  %v17773_v20 = vld [vmem:[#allocation4 + $0x460] sm:$0xff]   ;;  %v17775_v27 = vld [vmem:[#allocation4 + $0x470] sm:$0xff]  }
 0x755   : > { %16784 = vmatprep.subr.bf16.mxu1 %v17769_v17  ;;  %v13119_v11 = vshll.u32 %v21485_v3, 16  ;;  %v14800_v29 = vcombine.low %v13064_v33, %v13074_v14  ;;  %v13093_v13 = vrot.slane %v13092_v12, 4  ;;  %v13097_v19 = vrot.slane %v13095_v37, 5  ;;  %v17776_v12 = vld [vmem:[#allocation4 + $0x478] sm:$0xff]   ;;  %v13357_v37 = vld [vmem:[#allocation3 + $0x84] sm:$0xe] }
 0x756   : > { %v13126_v28 = vrot.slane %v13124_v53, 4  ;;  %v13117_v22 = vrot.slane %v13116_v45, 4  ;;  %v13390_v56 = vrot.slane %v21363_v8, 5  ;;  %v13393_v58 = vrot.slane %v21383_v23, 5  ;;  %v13358_v45 = vld [vmem:[#allocation3 + $0x90] sm:$0xe] }
 0x757   : > { %16769 = vmatmul.mubr.bf16.vlgmr.msra.gmra.mrb[48].mxu1 %v14797_v4  ;;  %v13140_v4 = vor.u32 %v13139_v39, %v13135_v10  ;;  %v13121_v26 = vrot.slane %v13119_v11, 5  ;;  %v13098_v2 = vsel %vm17978_vm11, %v13093_v13, %v13097_v19  ;;  %v13397_v7 = vrot.slane %v21375_v54, 5  ;;  %v13360_v19 = vld [vmem:[#allocation3 + $0xa8] sm:$0xe] }
 0x758   : > { %16785 = vmatpush3.bf16.msra.mxu1 %v17769_v17  ;;  %16772 = vmatprep.mubr.bf16.mxu1 %v14798_v62  ;;  %v13082_v17 = vor.u32 %v13081_v0, %v13078_v15  ;;  %v13130_v6 = vor.u32 %v13129_v44, %v13126_v28  ;;  %v13143_v62 = vshll.u32 %v21495_v34, 16  ;;  %v13392_v21 = vrot.slane %v13390_v56, 4 }
 0x759   : > { %16786 = vmatprep.subr.bf16.mxu1 %v17770_v24  ;;  %v13122_v59 = vsel %vm17978_vm11, %v13117_v22, %v13121_v26  ;;  %v13141_v52 = vrot.slane %v13140_v4, 4  ;;  %v13404_v55 = vrot.slane %v21389_v9, 5  ;;  %v13400_v54 = vrot.slane %v21413_v41, 5 }
 0x75a   : > { %v13083_v61 = vrot.slane %v13082_v17, 4  ;;  %v13131_v47 = vrot.slane %v13130_v6, 4  ;;  %v13145_v0 = vrot.slane %v13143_v62, 5  ;;  %v13394_v49 = vsel %vm17970_vm10, %v13392_v21, %v13393_v58 }
 0x75b   : > { %v13399_v17 = vrot.slane %v13397_v7, 4  ;;  %v13406_v23 = vrot.slane %v13404_v55, 4  ;;  %v13407_v28 = vrot.slane %v21417_v36, 5  ;;  %v14813_v9 = vrot.slane %v13357_v37, 9 }
 0x75c   : > { %16787 = vmatpush3.bf16.msra.mxu1 %v17770_v24  ;;  %v13107_v24 = vrot.slane %v13106_v40, 4  ;;  %v13088_v15 = vsel %vm17978_vm11, %v13083_v61, %v21471_v43  ;;  %v13136_v8 = vsel %vm17978_vm11, %v13131_v47, %v13135_v10  ;;  %v13146_v43 = vsel %vm17978_vm11, %v13141_v52, %v13145_v0  ;;  %v13363_v52 = vld [vmem:[#allocation3 + $0xcc] sm:$0xe] }
 0x75d   : > { %16788 = vmatprep.subr.bf16.mxu1 %v17771_v32  ;;  %v14801_v30 = vcombine.low %v13088_v15, %v13098_v2  ;;  %v13401_v44 = vsel %vm17970_vm10, %v13399_v17, %v13400_v54  ;;  %v13411_v10 = vrot.slane %v21409_v48, 5  ;;  %v14814_v39 = vrot.slane %v13358_v45, 9  ;;  %v13362_v15 = vld [vmem:[#allocation3 + $0xc0] sm:$0xe] }
 0x75e   : > { %v13112_v53 = vsel %vm17978_vm11, %v13107_v24, %v21473_v5  ;;  %v14803_v5 = vcombine.low %v13136_v8, %v13146_v43  ;;  %v13418_v33 = vrot.slane %v21421_v35, 5  ;;  %v13398_v41 = vsel %vm17970_vm10, %v14813_v9, %v13397_v7  ;;  %v17783_v7 = vld [vmem:[%s21603_s2 + $0x70] sm:$0xff]  }
 0x75f   : > { %16773 = vmatmul.mubr.bf16.gmra.mrb[52].mxu1 %v14799_v63  ;;  %v14802_v1 = vcombine.low %v13112_v53, %v13122_v59  ;;  %v13408_v63 = vsel %vm17970_vm10, %v13406_v23, %v13407_v28  ;;  %v13405_v36 = vsel %vm17970_vm10, %v14814_v39, %v13404_v55  ;;  %v13413_v11 = vrot.slane %v13411_v10, 4  ;;  %v13361_v59 = vld [vmem:[#allocation3 + $0xb4] sm:$0xe]  ;;  %16828 = vmatprep.subr.bf16.mxu0 %v17783_v7 }
 0x760   : > { %16789 = vmatpush3.bf16.msra.mxu1 %v17771_v32  ;;  %16776 = vmatprep.mubr.bf16.mxu1 %v14800_v29  ;;  %v13356_v32 = vld [vmem:[#allocation3 + $0x78] sm:$0xe]  ;;  %v14822_v40 = vcombine.low %v13405_v36, %v13408_v63  ;;  %v13359_v29 = vld [vmem:[#allocation3 + $0x9c] sm:$0xe]  ;;  %v13420_v13 = vrot.slane %v13418_v33, 4  ;;  %v13414_v48 = vrot.slane %v21439_v16, 5 }
 0x761   : > { %16790 = vmatprep.subr.bf16.mxu1 %v17772_v60  ;;  %v14812_v38 = vrot.slane %v13356_v32, 9  ;;  %v13421_v22 = vrot.slane %v21453_v18, 5  ;;  %v14815_v35 = vrot.slane %v13359_v29, 9  ;;  %v13425_v6 = vrot.slane %v21448_v25, 5  ;;  %16829 = vmatpush3.bf16.msra.mxu0 %v17783_v7 }
 0x762   : > { %v13415_v61 = vsel %vm17970_vm10, %v13413_v11, %v13414_v48  ;;  %v14816_v4 = vrot.slane %v13360_v19, 9  ;;  %v13428_v25 = vrot.slane %v21475_v31, 5  ;;  %v13439_v47 = vrot.slane %v21469_v57, 5 }
 0x763   : > { %v13391_v51 = vsel %vm17970_vm10, %v14812_v38, %v13390_v56  ;;  %v13422_v62 = vsel %vm17970_vm10, %v13420_v13, %v13421_v22  ;;  %v13412_v24 = vsel %vm17970_vm10, %v14815_v35, %v13411_v10  ;;  %v13427_v2 = vrot.slane %v13425_v6, 4 }
 0x764   : > { %16791 = vmatpush3.bf16.msra.mxu1 %v17772_v60  ;;  %v14820_v14 = vcombine.low %v13391_v51, %v13394_v49  ;;  %v14821_v60 = vcombine.low %v13398_v41, %v13401_v44  ;;  %v14823_v26 = vcombine.low %v13412_v24, %v13415_v61  ;;  %v13419_v16 = vsel %vm17970_vm10, %v14816_v4, %v13418_v33 }
 0x765   : > { %16792 = vmatprep.subr.bf16.mxu1 %v17773_v20  ;;  %v14824_v18 = vcombine.low %v13419_v16, %v13422_v62  ;;  %v14817_v0 = vrot.slane %v13361_v59, 9  ;;  %v14818_v53 = vrot.slane %v13362_v15, 9  ;;  %v14819_v21 = vrot.slane %v13363_v52, 9  ;;  %v13840_v59 = vld [vmem:[#allocation2 + $0x90] sm:$0xff]  ;;  %v13838_v15 = vld [vmem:[#allocation2 + $0x80] sm:$0xff]  ;;  %v13841_v52 = vld [vmem:[#allocation2 + $0x98] sm:$0xff] }
 0x766   : > { %v13441_v8 = vrot.slane %v13439_v47, 4  ;;  %v13442_v31 = vrot.slane %v21495_v34, 5  ;;  %v17784_v34 = vld [vmem:[%s21603_s2 + $0x78] sm:$0xff]  }
 0x767   : > { %16777 = vmatmul.mubr.bf16.gmra.mrb[56].mxu1 %v14801_v30  ;;  %v13429_v30 = vsel %vm17970_vm10, %v13427_v2, %v13428_v25  ;;  %v13440_v32 = vsel %vm17970_vm10, %v14819_v21, %v13439_v47  ;;  %16830 = vmatprep.subr.bf16.mxu0 %v17784_v34 }
 0x768   : > { %16793 = vmatpush3.bf16.msra.mxu1 %v17773_v20  ;;  %16780 = vmatprep.mubr.bf16.mxu1 %v14802_v1  ;;  %v13432_v20 = vrot.slane %v21455_v42, 5  ;;  %v13435_v42 = vrot.slane %v21485_v3, 5  ;;  %v13426_v1 = vsel %vm17970_vm10, %v14817_v0, %v13425_v6 }
 0x769   : > { %16794 = vmatprep.subr.bf16.mxu1 %v17774_v50  ;;  %v14825_v43 = vcombine.low %v13426_v1, %v13429_v30  ;;  %16831 = vmatpush3.bf16.msra.mxu0 %v17784_v34  ;;  %v13845_v34 = vld [vmem:[#allocation2 + $0xb8] sm:$0xff] }
 0x76a   : > { %v13434_v56 = vrot.slane %v13432_v20, 4  ;;  %v13433_v57 = vsel %vm17970_vm10, %v14818_v53, %v13432_v20 }
 0x76c   : > { %16795 = vmatpush3.bf16.msra.mxu1 %v17774_v50  ;;  %v13436_v50 = vsel %vm17970_vm10, %v13434_v56, %v13435_v42 }
 0x76d   : > { %16796 = vmatprep.subr.bf16.mxu1 %v17775_v27  ;;  %v14826_v3 = vcombine.low %v13433_v57, %v13436_v50  ;;  %v13839_v50 = vld [vmem:[#allocation2 + $0x88] sm:$0xff]  ;;  %v13844_v57 = vld [vmem:[#allocation2 + $0xb0] sm:$0xff] }
 0x76f   : > { %16781 = vmatmul.mubr.bf16.gmra.mrb[60].mxu1 %v14803_v5 }
 0x770   : > { %16797 = vmatpush3.bf16.msra.mxu1 %v17775_v27  ;;  %16800 = vmatprep.mubr.bf16.mxu1 %v14820_v14  ;;  %v13443_v27 = vsel %vm17970_vm10, %v13441_v8, %v13442_v31 }
 0x771   : > { %16798 = vmatprep.subr.bf16.mxu1 %v17776_v12  ;;  %v14827_v58 = vcombine.low %v13440_v32, %v13443_v27  ;;  %v13842_v27 = vld [vmem:[#allocation2 + $0xa0] sm:$0xff] }
 0x774   : > { %16799 = vmatpush3.bf16.msra.mxu1 %v17776_v12 }
 0x777   : > { %16801 = vmatmul.mubr.bf16.vlgmr.msra.gmra.mrb[48].mxu1 %v14821_v60 }
 0x778   : > { %16804 = vmatprep.mubr.bf16.mxu1 %v14822_v40 }
 0x77f   : > { %16805 = vmatmul.mubr.bf16.gmra.mrb[52].mxu1 %v14823_v26 }
 0x780   : > { %16808 = vmatprep.mubr.bf16.mxu1 %v14824_v18 }
 0x787   : > { %16809 = vmatmul.mubr.bf16.gmra.mrb[56].mxu1 %v14825_v43 }
 0x788   : > { %16812 = vmatprep.mubr.bf16.mxu1 %v14826_v3 }
 0x78f   : > { %16813 = vmatmul.mubr.bf16.gmra.mrb[60].mxu1 %v14827_v58 }
 0x84a   : > { %v16802_v5 = vpop.f32.mrb[48].mxu1 }
 0x84b   : > { %v13574_v38 = vpop.f32.mrb[49].mxu1  ;;  %v13655_v55 = vmax.f32 %v16802_v5, 0.0 }
 0x84c   : > { %v16803_v49 = vpop.f32.mrb[50].mxu1  ;;  %v13653_v12 = vmax.f32 %v13574_v38, 0.0 }
 0x84d   : > { %v13656_v46 = vmax.f32 %v16803_v49, 0.0  ;;  %v13577_v51 = vpop.f32.mrb[51].mxu1 }
 0x84e   : > { %v13654_v14 = vmax.f32 %v13577_v51, 0.0 }
 0x84f   : > { %v13670_v17 = vpack.c.bf16 %v13656_v46, %v13655_v55  ;;  %v13843_v55 = vld [vmem:[#allocation2 + $0xa8] sm:$0xff] }
 0x850   : > { %v13669_v37 = vpack.c.bf16 %v13654_v14, %v13653_v12 }
 0x852   : > { %v16806_v23 = vpop.f32.mrb[52].mxu1  ;;  %16832 = vmatprep.mubr.bf16.mxu0 %v13669_v37  ;;  %v13848_v37 = vld [vmem:[#allocation2 + $0xd0] sm:$0xff] }
 0x853   : > { %v13590_v54 = vpop.f32.mrb[53].mxu1  ;;  %16833 = vmatmul.mubr.bf16.vlgmr.msra.gmra.mrb[48].mxu0 %v13670_v17  ;;  %v13659_v28 = vmax.f32 %v16806_v23, 0.0 }
 0x854   : > { %v16807_v45 = vpop.f32.mrb[54].mxu1  ;;  %v13657_v10 = vmax.f32 %v13590_v54, 0.0 }
 0x855   : > { %v13660_v9 = vmax.f32 %v16807_v45, 0.0  ;;  %v13593_v44 = vpop.f32.mrb[55].mxu1  ;;  %v13846_v45 = vld [vmem:[#allocation2 + $0xc0] sm:$0xff] }
 0x856   : > { %v13658_v39 = vmax.f32 %v13593_v44, 0.0  ;;  %v13849_v44 = vld [vmem:[#allocation2 + $0xd8] sm:$0xff] }
 0x857   : > { %v13672_v63 = vpack.c.bf16 %v13660_v9, %v13659_v28 }
 0x858   : > { %v13671_v33 = vpack.c.bf16 %v13658_v39, %v13657_v10 }
 0x85a   : > { %v16810_v41 = vpop.f32.mrb[56].mxu1  ;;  %16836 = vmatprep.mubr.bf16.mxu0 %v13671_v33  ;;  %v13847_v33 = vld [vmem:[#allocation2 + $0xc8] sm:$0xff] }
 0x85b   : > { %v13606_v60 = vpop.f32.mrb[57].mxu1  ;;  %16837 = vmatmul.mubr.bf16.gmra.mrb[52].mxu0 %v13672_v63  ;;  %v13663_v40 = vmax.f32 %v16810_v41, 0.0 }
 0x85c   : > { %v16811_v36 = vpop.f32.mrb[58].mxu1  ;;  %v13661_v13 = vmax.f32 %v13606_v60, 0.0 }
 0x85d   : > { %v13664_v11 = vmax.f32 %v16811_v36, 0.0  ;;  %v13609_v29 = vpop.f32.mrb[59].mxu1 }
 0x85e   : > { %v13662_v48 = vmax.f32 %v13609_v29, 0.0  ;;  %v13852_v29 = vld [vmem:[#allocation2 + $0xf0] sm:$0xff] }
 0x85f   : > { %v13674_v19 = vpack.c.bf16 %v13664_v11, %v13663_v40 }
 0x860   : > { %v13673_v22 = vpack.c.bf16 %v13662_v48, %v13661_v13 }
 0x862   : > { %v16814_v35 = vpop.f32.mrb[60].mxu1  ;;  %16840 = vmatprep.mubr.bf16.mxu0 %v13673_v22 }
 0x863   : > { %v13622_v61 = vpop.f32.mrb[61].mxu1  ;;  %16841 = vmatmul.mubr.bf16.gmra.mrb[56].mxu0 %v13674_v19  ;;  %v13667_v4 = vmax.f32 %v16814_v35, 0.0  ;;  %v13850_v19 = vld [vmem:[#allocation2 + $0xe0] sm:$0xff] }
 0x864   : > { %v16815_v6 = vpop.f32.mrb[62].mxu1  ;;  %v13665_v24 = vmax.f32 %v13622_v61, 0.0  ;;  %v13853_v61 = vld [vmem:[#allocation2 + $0xf8] sm:$0xff] }
 0x865   : > { %v13668_v62 = vmax.f32 %v16815_v6, 0.0  ;;  %v13625_v20 = vpop.f32.mrb[63].mxu1 }
 0x866   : > { %v13666_v26 = vmax.f32 %v13625_v20, 0.0  ;;  %v13851_v20 = vld [vmem:[#allocation2 + $0xe8] sm:$0xff] }
 0x867   : > { %v13676_v16 = vpack.c.bf16 %v13668_v62, %v13667_v4 }
 0x868   : > { %v13675_v18 = vpack.c.bf16 %v13666_v26, %v13665_v24 }
 0x86a   : > { %16844 = vmatprep.mubr.bf16.mxu0 %v13675_v18 }
 0x86b   : > { %16845 = vmatmul.mubr.bf16.gmra.mrb[60].mxu0 %v13676_v16 }
 0x926   : > { %v16834_v2 = vpop.f32.mrb[48].mxu0 }
 0x927   : > { %v13856_v56 = vadd.f32 %v16834_v2, %v13840_v59  ;;  %v13775_v25 = vpop.f32.mrb[49].mxu0 }
 0x928   : > { %v13854_v47 = vadd.f32 %v13838_v15, %v13775_v25  ;;  %v16835_v42 = vpop.f32.mrb[50].mxu0 }
 0x929   : > { %13872 = vst [vmem:[#allocation2 + $0x90] sm:$0xff] %v13856_v56  ;;  %v13936_v0 = vmax.f32 %v13856_v56, 0.0  ;;  %v13857_v30 = vadd.f32 %v16835_v42, %v13841_v52  ;;  %v13778_v53 = vpop.f32.mrb[51].mxu0 }
 0x92a   : > { %13870 = vst [vmem:[#allocation2 + $0x80] sm:$0xff] %v13854_v47  ;;  %v13934_v1 = vmax.f32 %v13854_v47, 0.0  ;;  %v13855_v21 = vadd.f32 %v13839_v50, %v13778_v53 }
 0x92b   : > { %13968 = vst.msk [vmem:[%s21351_s23 + $0x90] sm:$0xff] %vm371_vm5, %v13936_v0  ;;  %13873 = vst [vmem:[#allocation2 + $0x98] sm:$0xff] %v13857_v30  ;;  %v13937_v8 = vmax.f32 %v13857_v30, 0.0 }
 0x92c   : > { %13966 = vst.msk [vmem:[%s21351_s23 + $0x80] sm:$0xff] %vm371_vm5, %v13934_v1  ;;  %13871 = vst [vmem:[#allocation2 + $0x88] sm:$0xff] %v13855_v21  ;;  %v13935_v31 = vmax.f32 %v13855_v21, 0.0 }
 0x92d   : > { %13969 = vst.msk [vmem:[%s21351_s23 + $0x98] sm:$0xff] %vm371_vm5, %v13937_v8 }
 0x92e   : > { %13967 = vst.msk [vmem:[%s21351_s23 + $0x88] sm:$0xff] %vm371_vm5, %v13935_v31  ;;  %v16838_v43 = vpop.f32.mrb[52].mxu0 }
 0x92f   : > { %v13860_v3 = vadd.f32 %v16838_v43, %v13844_v57  ;;  %v13791_v32 = vpop.f32.mrb[53].mxu0 }
 0x930   : > { %v13858_v58 = vadd.f32 %v13842_v27, %v13791_v32  ;;  %v16839_v7 = vpop.f32.mrb[54].mxu0 }
 0x931   : > { %13876 = vst [vmem:[#allocation2 + $0xb0] sm:$0xff] %v13860_v3  ;;  %v13940_v5 = vmax.f32 %v13860_v3, 0.0  ;;  %v13861_v38 = vadd.f32 %v16839_v7, %v13845_v34  ;;  %v13794_v49 = vpop.f32.mrb[55].mxu0 }
 0x932   : > { %13874 = vst [vmem:[#allocation2 + $0xa0] sm:$0xff] %v13858_v58  ;;  %v13938_v46 = vmax.f32 %v13858_v58, 0.0  ;;  %v13859_v51 = vadd.f32 %v13843_v55, %v13794_v49 }
 0x933   : > { %13972 = vst.msk [vmem:[%s21351_s23 + $0xb0] sm:$0xff] %vm371_vm5, %v13940_v5  ;;  %13877 = vst [vmem:[#allocation2 + $0xb8] sm:$0xff] %v13861_v38  ;;  %v13941_v12 = vmax.f32 %v13861_v38, 0.0 }
 0x934   : > { %13970 = vst.msk [vmem:[%s21351_s23 + $0xa0] sm:$0xff] %vm371_vm5, %v13938_v46  ;;  %13875 = vst [vmem:[#allocation2 + $0xa8] sm:$0xff] %v13859_v51  ;;  %v13939_v14 = vmax.f32 %v13859_v51, 0.0 }
 0x935   : > { %13973 = vst.msk [vmem:[%s21351_s23 + $0xb8] sm:$0xff] %vm371_vm5, %v13941_v12 }
 0x936   : > { %13971 = vst.msk [vmem:[%s21351_s23 + $0xa8] sm:$0xff] %vm371_vm5, %v13939_v14  ;;  %v16842_v17 = vpop.f32.mrb[56].mxu0 }
 0x937   : > { %v13864_v23 = vadd.f32 %v16842_v17, %v13848_v37  ;;  %v13807_v54 = vpop.f32.mrb[57].mxu0 }
 0x938   : > { %v13862_v28 = vadd.f32 %v13846_v45, %v13807_v54  ;;  %v16843_v9 = vpop.f32.mrb[58].mxu0 }
 0x939   : > { %13880 = vst [vmem:[#allocation2 + $0xd0] sm:$0xff] %v13864_v23  ;;  %v13944_v10 = vmax.f32 %v13864_v23, 0.0  ;;  %v13865_v39 = vadd.f32 %v16843_v9, %v13849_v44  ;;  %v13810_v63 = vpop.f32.mrb[59].mxu0 }
 0x93a   : > { %13878 = vst [vmem:[#allocation2 + $0xc0] sm:$0xff] %v13862_v28  ;;  %v13942_v41 = vmax.f32 %v13862_v28, 0.0  ;;  %v13863_v60 = vadd.f32 %v13847_v33, %v13810_v63 }
 0x93b   : > { %13976 = vst.msk [vmem:[%s21351_s23 + $0xd0] sm:$0xff] %vm371_vm5, %v13944_v10  ;;  %13881 = vst [vmem:[#allocation2 + $0xd8] sm:$0xff] %v13865_v39  ;;  %v13945_v36 = vmax.f32 %v13865_v39, 0.0 }
 0x93c   : > { %13974 = vst.msk [vmem:[%s21351_s23 + $0xc0] sm:$0xff] %vm371_vm5, %v13942_v41  ;;  %13879 = vst [vmem:[#allocation2 + $0xc8] sm:$0xff] %v13863_v60  ;;  %v13943_v40 = vmax.f32 %v13863_v60, 0.0 }
 0x93d   : > { %13977 = vst.msk [vmem:[%s21351_s23 + $0xd8] sm:$0xff] %vm371_vm5, %v13945_v36 }
 0x93e   : > { %13975 = vst.msk [vmem:[%s21351_s23 + $0xc8] sm:$0xff] %vm371_vm5, %v13943_v40  ;;  %v16846_v11 = vpop.f32.mrb[60].mxu0 }
 0x93f   : > { %v13868_v13 = vadd.f32 %v16846_v11, %v13852_v29  ;;  %v13823_v48 = vpop.f32.mrb[61].mxu0 }
 0x940   : > { %v13866_v22 = vadd.f32 %v13850_v19, %v13823_v48  ;;  %v16847_v35 = vpop.f32.mrb[62].mxu0 }
 0x941   : > { %13884 = vst [vmem:[#allocation2 + $0xf0] sm:$0xff] %v13868_v13  ;;  %v13948_v6 = vmax.f32 %v13868_v13, 0.0  ;;  %v13869_v4 = vadd.f32 %v16847_v35, %v13853_v61  ;;  %v13826_v62 = vpop.f32.mrb[63].mxu0 }
 0x942   : > { %13882 = vst [vmem:[#allocation2 + $0xe0] sm:$0xff] %v13866_v22  ;;  %v13946_v24 = vmax.f32 %v13866_v22, 0.0  ;;  %v13867_v26 = vadd.f32 %v13851_v20, %v13826_v62 }
 0x943   : > { %13980 = vst.msk [vmem:[%s21351_s23 + $0xf0] sm:$0xff] %vm371_vm5, %v13948_v6  ;;  %13885 = vst [vmem:[#allocation2 + $0xf8] sm:$0xff] %v13869_v4  ;;  %v13949_v16 = vmax.f32 %v13869_v4, 0.0 }
 0x944   : > { %13978 = vst.msk [vmem:[%s21351_s23 + $0xe0] sm:$0xff] %vm371_vm5, %v13946_v24  ;;  %13883 = vst [vmem:[#allocation2 + $0xe8] sm:$0xff] %v13867_v26  ;;  %v13947_v18 = vmax.f32 %v13867_v26, 0.0 }
 0x945   : > { %13981 = vst.msk [vmem:[%s21351_s23 + $0xf8] sm:$0xff] %vm371_vm5, %v13949_v16 }
 0x946   : > { %13979 = vst.msk [vmem:[%s21351_s23 + $0xe8] sm:$0xff] %vm371_vm5, %v13947_v18 }
 0x947 PF: > { %s14_s12 = sadd.s32 1, %s17832_s12  }
 0x948   : > { %p11_p3 = scmp.ge.s32.totalorder %s14_s12, 4  }
 0x94a   :  { %13 = sbr.rel (!%p11_p3) target bundleno = 1 (0x1), region = 92 }
 0x951   :  { %14003 = vsyncpa [#allocation5], 1 }
 0x952   :  { %14005 = vsyncpa [#allocation5 + $0x1], 1 }

</bundles_post_ra>
